<compile_context>
chip_gen: v6e
topology: v6e:2x2x1
jax: 0.10.0
libtpu: 0.0.40
codegen_flags: <defaults>
</compile_context>

<pallas_src>
import jax
import jax.numpy as jnp
from jax.experimental import pallas as pl
from jax.experimental.pallas import tpu as pltpu

EPS = 1e-5


# ----------------------------- Pallas kernel --------------------------------
def _subnet2_kernel(x_ref, a1_ref, a2_ref,
                    w1_ref, b1_ref, w2_ref, b2_ref, w3_ref, b3_ref,
                    wf1_ref, bf1_ref, wf2_ref, bf2_ref,
                    o_ref, s1_ref):
    f32 = jnp.float32
    bf16 = jnp.bfloat16
    B = a1_ref.shape[0]                      # samples per grid step (static)

    a1 = a1_ref[...]                         # (B, 256) bf16, per-(c,kh1,kw1) scale

    # ---- Conv1 (+folded BN + ReLU), attention-1 fused on the input ----------
    # x_ref: (16, 4, B, 256) = (conv2 offset j, conv2 position p, sample, patch)
    # Each slab is a full-K (B,256)@(256,16) MXU matmul; results are packed
    # into s1 so that conv2 sees contiguous full-K (j, c1) rows per position.
    for j in range(16):
        for p in range(4):
            xx = x_ref[j, p] * a1                                    # (B, 256)
            y = jnp.dot(xx, w1_ref[...], preferred_element_type=f32) + b1_ref[...]
            s1_ref[p * B:(p + 1) * B, 16 * j:16 * (j + 1)] = jnp.maximum(y, 0.0)

    # ---- Conv2 (+BN+ReLU) with full K=256, Conv3 (+BN+ReLU) accumulated -----
    acc3 = jnp.zeros((B, 128), f32)
    for p in range(4):
        s1p = s1_ref[p * B:(p + 1) * B, :].astype(bf16)              # (B, 256)
        s2p = jnp.maximum(
            jnp.dot(s1p, w2_ref[...], preferred_element_type=f32) + b2_ref[...],
            0.0)                                                     # (B, 32)
        acc3 = acc3 + jnp.dot(s2p.astype(bf16), w3_ref[p],
                              preferred_element_type=f32)            # (B, 128)
    y3 = jnp.maximum(acc3 + b3_ref[...], 0.0)                        # (B, 128)

    # ---- fc1 (attention-2 fused) + ReLU, fc2 (f32, tiny) --------------------
    r2 = y3 * a2_ref[...]
    h = jnp.maximum(jnp.dot(r2, wf1_ref[...], preferred_element_type=f32)
                    + bf1_ref[...], 0.0)                             # (B, 64)
    o_ref[...] = (jnp.dot(h, wf2_ref[...], preferred_element_type=f32)
                  + bf2_ref[...]).astype(o_ref.dtype)


# ------------------------------ parameters ----------------------------------
def init_params(key, out_dim):
    ks = jax.random.split(key, 10)
    bn_scale = 1.0 / (1.0 + EPS) ** 0.5      # BN (gamma=1, mean=0, var=1) folded

    def conv_params(kw, kb, w_shape, fan_in):
        bound = 1.0 / float(fan_in) ** 0.5
        w = jax.random.uniform(kw, w_shape, jnp.float32, -bound, bound)
        b = jax.random.uniform(kb, (1, w_shape[-1]), jnp.float32, -bound, bound)
        return w * bn_scale, b * bn_scale

    def fc_params(kw, kb, fin, fout):
        bound = 1.0 / float(fin) ** 0.5
        w = jax.random.uniform(kw, (fin, fout), jnp.float32, -bound, bound)
        b = jax.random.uniform(kb, (1, fout), jnp.float32, -bound, bound)
        return w, b

    # conv1 weight rows ordered (c, kh1, kw1); conv2 rows ordered (kh2, kw2, c1);
    # conv3 stored as (kernel_offset p = kh3*2+kw3, cin, cout).
    w1, b1 = conv_params(ks[0], ks[1], (256, 16), 16 * 4 * 4)
    w2, b2 = conv_params(ks[2], ks[3], (256, 32), 16 * 4 * 4)
    w3, b3 = conv_params(ks[4], ks[5], (4, 32, 128), 32 * 2 * 2)
    wf1, bf1 = fc_params(ks[6], ks[7], 128, 64)
    wf2, bf2 = fc_params(ks[8], ks[9], 64, out_dim)
    return dict(w1=w1, b1=b1, w2=w2, b2=b2, w3=w3, b3=b3,
                wf1=wf1, bf1=bf1, wf2=wf2, bf2=bf2,
                atten1=jnp.ones((4, 16), jnp.float32),    # nn.Parameter(torch.ones(4,16))
                atten2=jnp.ones((4, 128), jnp.float32))   # nn.Parameter(torch.ones(4,128))


# ------------------------------- forward ------------------------------------
def _pick_block(n):
    """Samples per grid step: full batch if small, else a mult-of-8 divisor."""
    if n <= 128:
        return n
    for b in range(128, 7, -8):
        if n % b == 0:
            return b
    return n                                  # fallback: one big block


def subnet2_forward(params, x, qp_list):
    N, C, H, W = x.shape
    assert (C, H, W) == (16, 32, 32), "res.view(N,128) requires (16,32,32) input"
    out_dim = params["wf2"].shape[1]
    B = _pick_block(N)
    grid = (N // B,)

    # compact per-sample attention scales
    a1 = params["atten1"][qp_list]                               # (N, 16)
    a1e = jnp.repeat(a1, 16, axis=1).astype(jnp.bfloat16)        # (N, 256) per (c,kh1,kw1)
    a2e = params["atten2"][qp_list]                              # (N, 128) f32

    # patchify conv1 input: (j=(kh2,kw2), p=(h2,w2), n, K=(c,kh1,kw1)), bf16.
    xs = x.reshape(N, 16, 2, 4, 4, 2, 4, 4)        # n c h2 kh2 kh1 w2 kw2 kw1
    xs = xs.transpose(3, 6, 2, 5, 0, 1, 4, 7)      # kh2 kw2 h2 w2 n c kh1 kw1
    x1 = xs.reshape(16, 4, N, 256).astype(jnp.bfloat16)

    bf = jnp.bfloat16
    w1 = params["w1"].astype(bf)
    w2 = params["w2"].astype(bf)
    w3 = params["w3"].astype(bf)

    out = pl.pallas_call(
        _subnet2_kernel,
        out_shape=jax.ShapeDtypeStruct((N, out_dim), jnp.float32),
        grid=grid,
        in_specs=[
            pl.BlockSpec((16, 4, B, 256), lambda i: (0, 0, i, 0)),   # conv1 patches
            pl.BlockSpec((B, 256), lambda i: (i, 0)),                # attention-1
            pl.BlockSpec((B, 128), lambda i: (i, 0)),                # attention-2
            pl.BlockSpec((256, 16), lambda i: (0, 0)),               # conv1 w (BN folded)
            pl.BlockSpec((1, 16), lambda i: (0, 0)),                 # conv1 b
            pl.BlockSpec((256, 32), lambda i: (0, 0)),               # conv2 w
            pl.BlockSpec((1, 32), lambda i: (0, 0)),                 # conv2 b
            pl.BlockSpec((4, 32, 128), lambda i: (0, 0, 0)),         # conv3 w
            pl.BlockSpec((1, 128), lambda i: (0, 0)),                # conv3 b
            pl.BlockSpec((128, 64), lambda i: (0, 0)),               # fc1 w
            pl.BlockSpec((1, 64), lambda i: (0, 0)),                 # fc1 b
            pl.BlockSpec((64, out_dim), lambda i: (0, 0)),           # fc2 w
            pl.BlockSpec((1, out_dim), lambda i: (0, 0)),            # fc2 b
        ],
        out_specs=pl.BlockSpec((B, out_dim), lambda i: (i, 0)),
        scratch_shapes=[pltpu.VMEM((4 * B, 256), jnp.float32)],      # conv1 activations
        compiler_params=pltpu.CompilerParams(
            dimension_semantics=("parallel",)),
    )(x1, a1e, a2e,
      w1, params["b1"], w2, params["b2"], w3, params["b3"],
      params["wf1"], params["bf1"], params["wf2"], params["bf2"])
    return out


# -------------------------- pure-JAX reference -------------------------------
def _reference_forward(params, x, qp_list):
    # Independent reference (lax.conv, standard OIHW layout), f32 throughout.
    N = x.shape[0]
    hi = jax.lax.Precision.HIGHEST
    a1 = params["atten1"][qp_list]
    r = x * a1[:, :, None, None]

    def conv(r, w_oihw, b, k):
        y = jax.lax.conv_general_dilated(
            r, w_oihw, window_strides=(k, k), padding="VALID",
            dimension_numbers=("NCHW", "OIHW", "NCHW"), precision=hi)
        return jnp.maximum(y + b.reshape(1, -1, 1, 1), 0.0)

    w1 = params["w1"].reshape(16, 4, 4, 16).transpose(3, 0, 1, 2)
    w2 = params["w2"].reshape(4, 4, 16, 32).transpose(3, 2, 0, 1)
    w3 = params["w3"].reshape(2, 2, 32, 128).transpose(3, 2, 0, 1)
    r = conv(r, w1, params["b1"][0], 4)
    r = conv(r, w2, params["b2"][0], 4)
    r = conv(r, w3, params["b3"][0], 2)
    res = r.reshape(N, 128)
    a2 = params["atten2"][qp_list]
    h = jnp.maximum(jnp.dot(res * a2, params["wf1"], precision=hi)
                    + params["bf1"][0], 0.0)
    return jnp.dot(h, params["wf2"], precision=hi) + params["bf2"][0]


# --------------------------------- main --------------------------------------
if __name__ == "__main__":
    key = jax.random.PRNGKey(0)
    k_param, k_x, k_qp = jax.random.split(key, 3)

    out_dim = 8
    batch = 2
    x = jax.random.normal(k_x, (batch, 16, 32, 32), jnp.float32)
    qp_list = jax.random.randint(k_qp, (batch,), 0, 4)

    params = init_params(k_param, out_dim)
    fwd = jax.jit(subnet2_forward)
    y = fwd(params, x, qp_list)
    jax.block_until_ready(y)
    assert y.shape == (batch, out_dim), y.shape

    # numerical sanity check against the pure-JAX f32 reference
    y_ref = _reference_forward(params, x, qp_list)
    err = float(jnp.max(jnp.abs(y - y_ref)))
    assert err < 1e-2, f"max abs err {err}"
    print("KERNEL_OK")
</pallas_src>

<mosaic_0001>
module attributes {stable_mosaic.version = 11 : i64} {
  func.func @_subnet2_kernel(%arg0: i32, %arg1: memref<16x4x2x256xbf16, #tpu.memory_space<vmem>>, %arg2: memref<2x256xbf16, #tpu.memory_space<vmem>>, %arg3: memref<2x128xf32, #tpu.memory_space<vmem>>, %arg4: memref<256x16xbf16, #tpu.memory_space<vmem>>, %arg5: memref<1x16xf32, #tpu.memory_space<vmem>>, %arg6: memref<256x32xbf16, #tpu.memory_space<vmem>>, %arg7: memref<1x32xf32, #tpu.memory_space<vmem>>, %arg8: memref<4x32x128xbf16, #tpu.memory_space<vmem>>, %arg9: memref<1x128xf32, #tpu.memory_space<vmem>>, %arg10: memref<128x64xf32, #tpu.memory_space<vmem>>, %arg11: memref<1x64xf32, #tpu.memory_space<vmem>>, %arg12: memref<64x8xf32, #tpu.memory_space<vmem>>, %arg13: memref<1x8xf32, #tpu.memory_space<vmem>>, %arg14: memref<2x8xf32, #tpu.memory_space<vmem>>, %arg15: memref<8x256xf32, #tpu.memory_space<vmem>>) attributes {dimension_semantics = [#tpu.dimension_semantics<parallel>], iteration_bounds = array<i64: 1>, scalar_prefetch = 0 : i64, scratch_operands = 1 : i64, tpu.core_type = #tpu.core_type<tc>, window_params = [{transform_indices = @transform_0, window_bounds = array<i64: 16, 4, 2, 256>}, {transform_indices = @transform_1, window_bounds = array<i64: 2, 256>}, {transform_indices = @transform_2, window_bounds = array<i64: 2, 128>}, {pipeline_mode = #tpu.pipeline_mode<synchronous>, transform_indices = @transform_3, window_bounds = array<i64: 256, 16>}, {pipeline_mode = #tpu.pipeline_mode<synchronous>, transform_indices = @transform_4, window_bounds = array<i64: 1, 16>}, {pipeline_mode = #tpu.pipeline_mode<synchronous>, transform_indices = @transform_5, window_bounds = array<i64: 256, 32>}, {pipeline_mode = #tpu.pipeline_mode<synchronous>, transform_indices = @transform_6, window_bounds = array<i64: 1, 32>}, {pipeline_mode = #tpu.pipeline_mode<synchronous>, transform_indices = @transform_7, window_bounds = array<i64: 4, 32, 128>}, {pipeline_mode = #tpu.pipeline_mode<synchronous>, transform_indices = @transform_8, window_bounds = array<i64: 1, 128>}, {pipeline_mode = #tpu.pipeline_mode<synchronous>, transform_indices = @transform_9, window_bounds = array<i64: 128, 64>}, {pipeline_mode = #tpu.pipeline_mode<synchronous>, transform_indices = @transform_10, window_bounds = array<i64: 1, 64>}, {pipeline_mode = #tpu.pipeline_mode<synchronous>, transform_indices = @transform_11, window_bounds = array<i64: 64, 8>}, {pipeline_mode = #tpu.pipeline_mode<synchronous>, transform_indices = @transform_12, window_bounds = array<i64: 1, 8>}, {transform_indices = @transform_13, window_bounds = array<i64: 2, 8>}]} {
    %c0 = arith.constant 0 : index
    %c0_0 = arith.constant 0 : index
    %0 = vector.load %arg2[%c0, %c0_0] : memref<2x256xbf16, #tpu.memory_space<vmem>>, vector<2x256xbf16>
    %c0_1 = arith.constant 0 : index
    %c0_2 = arith.constant 0 : index
    %c0_3 = arith.constant 0 : index
    %c0_4 = arith.constant 0 : index
    %1 = vector.load %arg1[%c0_1, %c0_2, %c0_3, %c0_4] : memref<16x4x2x256xbf16, #tpu.memory_space<vmem>>, vector<1x1x2x256xbf16>
    %2 = vector.shape_cast %1 : vector<1x1x2x256xbf16> to vector<2x256xbf16>
    %3 = arith.mulf %2, %0 : vector<2x256xbf16>
    %c0_5 = arith.constant 0 : index
    %c0_6 = arith.constant 0 : index
    %4 = vector.load %arg4[%c0_5, %c0_6] : memref<256x16xbf16, #tpu.memory_space<vmem>>, vector<256x16xbf16>
    %cst = arith.constant dense<0.000000e+00> : vector<2x16xf32>
    %5 = tpu.matmul %3, %4, %cst {dimension_numbers = #tpu.dot_dimension_numbers<[1], [0], [0], [1], [0, 0, 1, 1], [], []>} : vector<2x256xbf16>, vector<256x16xbf16>, vector<2x16xf32> -> vector<2x16xf32>
    %c0_7 = arith.constant 0 : index
    %c0_8 = arith.constant 0 : index
    %6 = vector.load %arg5[%c0_7, %c0_8] : memref<1x16xf32, #tpu.memory_space<vmem>>, vector<1x16xf32>
    %7 = vector.broadcast %6 : vector<1x16xf32> to vector<2x16xf32>
    %8 = arith.addf %5, %7 : vector<2x16xf32>
    %cst_9 = arith.constant 0.000000e+00 : f32
    %9 = vector.broadcast %cst_9 : f32 to vector<2x16xf32>
    %10 = arith.maximumf %8, %9 : vector<2x16xf32>
    %c0_10 = arith.constant 0 : index
    %c0_11 = arith.constant 0 : index
    %11 = vector.load %arg15[%c0_10, %c0_11] : memref<8x256xf32, #tpu.memory_space<vmem>>, vector<2x16xf32>
    tpu.vector_store %arg15[%c0_10, %c0_11], %10 {strides = array<i32>} : memref<8x256xf32, #tpu.memory_space<vmem>>, vector<2x16xf32>,
    %c0_12 = arith.constant 0 : index
    %c1 = arith.constant 1 : index
    %c0_13 = arith.constant 0 : index
    %c0_14 = arith.constant 0 : index
    %12 = vector.load %arg1[%c0_12, %c1, %c0_13, %c0_14] : memref<16x4x2x256xbf16, #tpu.memory_space<vmem>>, vector<1x1x2x256xbf16>
    %13 = vector.shape_cast %12 : vector<1x1x2x256xbf16> to vector<2x256xbf16>
    %14 = arith.mulf %13, %0 : vector<2x256xbf16>
    %c0_15 = arith.constant 0 : index
    %c0_16 = arith.constant 0 : index
    %15 = vector.load %arg4[%c0_15, %c0_16] : memref<256x16xbf16, #tpu.memory_space<vmem>>, vector<256x16xbf16>
    %cst_17 = arith.constant dense<0.000000e+00> : vector<2x16xf32>
    %16 = tpu.matmul %14, %15, %cst_17 {dimension_numbers = #tpu.dot_dimension_numbers<[1], [0], [0], [1], [0, 0, 1, 1], [], []>} : vector<2x256xbf16>, vector<256x16xbf16>, vector<2x16xf32> -> vector<2x16xf32>
    %c0_18 = arith.constant 0 : index
    %c0_19 = arith.constant 0 : index
    %17 = vector.load %arg5[%c0_18, %c0_19] : memref<1x16xf32, #tpu.memory_space<vmem>>, vector<1x16xf32>
    %18 = vector.broadcast %17 : vector<1x16xf32> to vector<2x16xf32>
    %19 = arith.addf %16, %18 : vector<2x16xf32>
    %cst_20 = arith.constant 0.000000e+00 : f32
    %20 = vector.broadcast %cst_20 : f32 to vector<2x16xf32>
    %21 = arith.maximumf %19, %20 : vector<2x16xf32>
    %c2 = arith.constant 2 : index
    %c0_21 = arith.constant 0 : index
    %22 = vector.load %arg15[%c2, %c0_21] : memref<8x256xf32, #tpu.memory_space<vmem>>, vector<2x16xf32>
    tpu.vector_store %arg15[%c2, %c0_21], %21 {strides = array<i32>} : memref<8x256xf32, #tpu.memory_space<vmem>>, vector<2x16xf32>,
    %c0_22 = arith.constant 0 : index
    %c2_23 = arith.constant 2 : index
    %c0_24 = arith.constant 0 : index
    %c0_25 = arith.constant 0 : index
    %23 = vector.load %arg1[%c0_22, %c2_23, %c0_24, %c0_25] : memref<16x4x2x256xbf16, #tpu.memory_space<vmem>>, vector<1x1x2x256xbf16>
    %24 = vector.shape_cast %23 : vector<1x1x2x256xbf16> to vector<2x256xbf16>
    %25 = arith.mulf %24, %0 : vector<2x256xbf16>
    %c0_26 = arith.constant 0 : index
    %c0_27 = arith.constant 0 : index
    %26 = vector.load %arg4[%c0_26, %c0_27] : memref<256x16xbf16, #tpu.memory_space<vmem>>, vector<256x16xbf16>
    %cst_28 = arith.constant dense<0.000000e+00> : vector<2x16xf32>
    %27 = tpu.matmul %25, %26, %cst_28 {dimension_numbers = #tpu.dot_dimension_numbers<[1], [0], [0], [1], [0, 0, 1, 1], [], []>} : vector<2x256xbf16>, vector<256x16xbf16>, vector<2x16xf32> -> vector<2x16xf32>
    %c0_29 = arith.constant 0 : index
    %c0_30 = arith.constant 0 : index
    %28 = vector.load %arg5[%c0_29, %c0_30] : memref<1x16xf32, #tpu.memory_space<vmem>>, vector<1x16xf32>
    %29 = vector.broadcast %28 : vector<1x16xf32> to vector<2x16xf32>
    %30 = arith.addf %27, %29 : vector<2x16xf32>
    %cst_31 = arith.constant 0.000000e+00 : f32
    %31 = vector.broadcast %cst_31 : f32 to vector<2x16xf32>
    %32 = arith.maximumf %30, %31 : vector<2x16xf32>
    %c4 = arith.constant 4 : index
    %c0_32 = arith.constant 0 : index
    %33 = vector.load %arg15[%c4, %c0_32] : memref<8x256xf32, #tpu.memory_space<vmem>>, vector<2x16xf32>
    tpu.vector_store %arg15[%c4, %c0_32], %32 {strides = array<i32>} : memref<8x256xf32, #tpu.memory_space<vmem>>, vector<2x16xf32>,
    %c0_33 = arith.constant 0 : index
    %c3 = arith.constant 3 : index
    %c0_34 = arith.constant 0 : index
    %c0_35 = arith.constant 0 : index
    %34 = vector.load %arg1[%c0_33, %c3, %c0_34, %c0_35] : memref<16x4x2x256xbf16, #tpu.memory_space<vmem>>, vector<1x1x2x256xbf16>
    %35 = vector.shape_cast %34 : vector<1x1x2x256xbf16> to vector<2x256xbf16>
    %36 = arith.mulf %35, %0 : vector<2x256xbf16>
    %c0_36 = arith.constant 0 : index
    %c0_37 = arith.constant 0 : index
    %37 = vector.load %arg4[%c0_36, %c0_37] : memref<256x16xbf16, #tpu.memory_space<vmem>>, vector<256x16xbf16>
    %cst_38 = arith.constant dense<0.000000e+00> : vector<2x16xf32>
    %38 = tpu.matmul %36, %37, %cst_38 {dimension_numbers = #tpu.dot_dimension_numbers<[1], [0], [0], [1], [0, 0, 1, 1], [], []>} : vector<2x256xbf16>, vector<256x16xbf16>, vector<2x16xf32> -> vector<2x16xf32>
    %c0_39 = arith.constant 0 : index
    %c0_40 = arith.constant 0 : index
    %39 = vector.load %arg5[%c0_39, %c0_40] : memref<1x16xf32, #tpu.memory_space<vmem>>, vector<1x16xf32>
    %40 = vector.broadcast %39 : vector<1x16xf32> to vector<2x16xf32>
    %41 = arith.addf %38, %40 : vector<2x16xf32>
    %cst_41 = arith.constant 0.000000e+00 : f32
    %42 = vector.broadcast %cst_41 : f32 to vector<2x16xf32>
    %43 = arith.maximumf %41, %42 : vector<2x16xf32>
    %c6 = arith.constant 6 : index
    %c0_42 = arith.constant 0 : index
    %44 = vector.load %arg15[%c6, %c0_42] : memref<8x256xf32, #tpu.memory_space<vmem>>, vector<2x16xf32>
    tpu.vector_store %arg15[%c6, %c0_42], %43 {strides = array<i32>} : memref<8x256xf32, #tpu.memory_space<vmem>>, vector<2x16xf32>,
    %c1_43 = arith.constant 1 : index
    %c0_44 = arith.constant 0 : index
    %c0_45 = arith.constant 0 : index
    %c0_46 = arith.constant 0 : index
    %45 = vector.load %arg1[%c1_43, %c0_44, %c0_45, %c0_46] : memref<16x4x2x256xbf16, #tpu.memory_space<vmem>>, vector<1x1x2x256xbf16>
    %46 = vector.shape_cast %45 : vector<1x1x2x256xbf16> to vector<2x256xbf16>
    %47 = arith.mulf %46, %0 : vector<2x256xbf16>
    %c0_47 = arith.constant 0 : index
    %c0_48 = arith.constant 0 : index
    %48 = vector.load %arg4[%c0_47, %c0_48] : memref<256x16xbf16, #tpu.memory_space<vmem>>, vector<256x16xbf16>
    %cst_49 = arith.constant dense<0.000000e+00> : vector<2x16xf32>
    %49 = tpu.matmul %47, %48, %cst_49 {dimension_numbers = #tpu.dot_dimension_numbers<[1], [0], [0], [1], [0, 0, 1, 1], [], []>} : vector<2x256xbf16>, vector<256x16xbf16>, vector<2x16xf32> -> vector<2x16xf32>
    %c0_50 = arith.constant 0 : index
    %c0_51 = arith.constant 0 : index
    %50 = vector.load %arg5[%c0_50, %c0_51] : memref<1x16xf32, #tpu.memory_space<vmem>>, vector<1x16xf32>
    %51 = vector.broadcast %50 : vector<1x16xf32> to vector<2x16xf32>
    %52 = arith.addf %49, %51 : vector<2x16xf32>
    %cst_52 = arith.constant 0.000000e+00 : f32
    %53 = vector.broadcast %cst_52 : f32 to vector<2x16xf32>
    %54 = arith.maximumf %52, %53 : vector<2x16xf32>
    %c0_53 = arith.constant 0 : index
    %c16 = arith.constant 16 : index
    %55 = vector.load %arg15[%c0_53, %c16] : memref<8x256xf32, #tpu.memory_space<vmem>>, vector<2x16xf32>
    tpu.vector_store %arg15[%c0_53, %c16], %54 {strides = array<i32>} : memref<8x256xf32, #tpu.memory_space<vmem>>, vector<2x16xf32>,
    %c1_54 = arith.constant 1 : index
    %c1_55 = arith.constant 1 : index
    %c0_56 = arith.constant 0 : index
    %c0_57 = arith.constant 0 : index
    %56 = vector.load %arg1[%c1_54, %c1_55, %c0_56, %c0_57] : memref<16x4x2x256xbf16, #tpu.memory_space<vmem>>, vector<1x1x2x256xbf16>
    %57 = vector.shape_cast %56 : vector<1x1x2x256xbf16> to vector<2x256xbf16>
    %58 = arith.mulf %57, %0 : vector<2x256xbf16>
    %c0_58 = arith.constant 0 : index
    %c0_59 = arith.constant 0 : index
    %59 = vector.load %arg4[%c0_58, %c0_59] : memref<256x16xbf16, #tpu.memory_space<vmem>>, vector<256x16xbf16>
    %cst_60 = arith.constant dense<0.000000e+00> : vector<2x16xf32>
    %60 = tpu.matmul %58, %59, %cst_60 {dimension_numbers = #tpu.dot_dimension_numbers<[1], [0], [0], [1], [0, 0, 1, 1], [], []>} : vector<2x256xbf16>, vector<256x16xbf16>, vector<2x16xf32> -> vector<2x16xf32>
    %c0_61 = arith.constant 0 : index
    %c0_62 = arith.constant 0 : index
    %61 = vector.load %arg5[%c0_61, %c0_62] : memref<1x16xf32, #tpu.memory_space<vmem>>, vector<1x16xf32>
    %62 = vector.broadcast %61 : vector<1x16xf32> to vector<2x16xf32>
    %63 = arith.addf %60, %62 : vector<2x16xf32>
    %cst_63 = arith.constant 0.000000e+00 : f32
    %64 = vector.broadcast %cst_63 : f32 to vector<2x16xf32>
    %65 = arith.maximumf %63, %64 : vector<2x16xf32>
    %c2_64 = arith.constant 2 : index
    %c16_65 = arith.constant 16 : index
    %66 = vector.load %arg15[%c2_64, %c16_65] : memref<8x256xf32, #tpu.memory_space<vmem>>, vector<2x16xf32>
    tpu.vector_store %arg15[%c2_64, %c16_65], %65 {strides = array<i32>} : memref<8x256xf32, #tpu.memory_space<vmem>>, vector<2x16xf32>,
    %c1_66 = arith.constant 1 : index
    %c2_67 = arith.constant 2 : index
    %c0_68 = arith.constant 0 : index
    %c0_69 = arith.constant 0 : index
    %67 = vector.load %arg1[%c1_66, %c2_67, %c0_68, %c0_69] : memref<16x4x2x256xbf16, #tpu.memory_space<vmem>>, vector<1x1x2x256xbf16>
    %68 = vector.shape_cast %67 : vector<1x1x2x256xbf16> to vector<2x256xbf16>
    %69 = arith.mulf %68, %0 : vector<2x256xbf16>
    %c0_70 = arith.constant 0 : index
    %c0_71 = arith.constant 0 : index
    %70 = vector.load %arg4[%c0_70, %c0_71] : memref<256x16xbf16, #tpu.memory_space<vmem>>, vector<256x16xbf16>
    %cst_72 = arith.constant dense<0.000000e+00> : vector<2x16xf32>
    %71 = tpu.matmul %69, %70, %cst_72 {dimension_numbers = #tpu.dot_dimension_numbers<[1], [0], [0], [1], [0, 0, 1, 1], [], []>} : vector<2x256xbf16>, vector<256x16xbf16>, vector<2x16xf32> -> vector<2x16xf32>
    %c0_73 = arith.constant 0 : index
    %c0_74 = arith.constant 0 : index
    %72 = vector.load %arg5[%c0_73, %c0_74] : memref<1x16xf32, #tpu.memory_space<vmem>>, vector<1x16xf32>
    %73 = vector.broadcast %72 : vector<1x16xf32> to vector<2x16xf32>
    %74 = arith.addf %71, %73 : vector<2x16xf32>
    %cst_75 = arith.constant 0.000000e+00 : f32
    %75 = vector.broadcast %cst_75 : f32 to vector<2x16xf32>
    %76 = arith.maximumf %74, %75 : vector<2x16xf32>
    %c4_76 = arith.constant 4 : index
    %c16_77 = arith.constant 16 : index
    %77 = vector.load %arg15[%c4_76, %c16_77] : memref<8x256xf32, #tpu.memory_space<vmem>>, vector<2x16xf32>
    tpu.vector_store %arg15[%c4_76, %c16_77], %76 {strides = array<i32>} : memref<8x256xf32, #tpu.memory_space<vmem>>, vector<2x16xf32>,
    %c1_78 = arith.constant 1 : index
    %c3_79 = arith.constant 3 : index
    %c0_80 = arith.constant 0 : index
    %c0_81 = arith.constant 0 : index
    %78 = vector.load %arg1[%c1_78, %c3_79, %c0_80, %c0_81] : memref<16x4x2x256xbf16, #tpu.memory_space<vmem>>, vector<1x1x2x256xbf16>
    %79 = vector.shape_cast %78 : vector<1x1x2x256xbf16> to vector<2x256xbf16>
    %80 = arith.mulf %79, %0 : vector<2x256xbf16>
    %c0_82 = arith.constant 0 : index
    %c0_83 = arith.constant 0 : index
    %81 = vector.load %arg4[%c0_82, %c0_83] : memref<256x16xbf16, #tpu.memory_space<vmem>>, vector<256x16xbf16>
    %cst_84 = arith.constant dense<0.000000e+00> : vector<2x16xf32>
    %82 = tpu.matmul %80, %81, %cst_84 {dimension_numbers = #tpu.dot_dimension_numbers<[1], [0], [0], [1], [0, 0, 1, 1], [], []>} : vector<2x256xbf16>, vector<256x16xbf16>, vector<2x16xf32> -> vector<2x16xf32>
    %c0_85 = arith.constant 0 : index
    %c0_86 = arith.constant 0 : index
    %83 = vector.load %arg5[%c0_85, %c0_86] : memref<1x16xf32, #tpu.memory_space<vmem>>, vector<1x16xf32>
    %84 = vector.broadcast %83 : vector<1x16xf32> to vector<2x16xf32>
    %85 = arith.addf %82, %84 : vector<2x16xf32>
    %cst_87 = arith.constant 0.000000e+00 : f32
    %86 = vector.broadcast %cst_87 : f32 to vector<2x16xf32>
    %87 = arith.maximumf %85, %86 : vector<2x16xf32>
    %c6_88 = arith.constant 6 : index
    %c16_89 = arith.constant 16 : index
    %88 = vector.load %arg15[%c6_88, %c16_89] : memref<8x256xf32, #tpu.memory_space<vmem>>, vector<2x16xf32>
    tpu.vector_store %arg15[%c6_88, %c16_89], %87 {strides = array<i32>} : memref<8x256xf32, #tpu.memory_space<vmem>>, vector<2x16xf32>,
    %c2_90 = arith.constant 2 : index
    %c0_91 = arith.constant 0 : index
    %c0_92 = arith.constant 0 : index
    %c0_93 = arith.constant 0 : index
    %89 = vector.load %arg1[%c2_90, %c0_91, %c0_92, %c0_93] : memref<16x4x2x256xbf16, #tpu.memory_space<vmem>>, vector<1x1x2x256xbf16>
    %90 = vector.shape_cast %89 : vector<1x1x2x256xbf16> to vector<2x256xbf16>
    %91 = arith.mulf %90, %0 : vector<2x256xbf16>
    %c0_94 = arith.constant 0 : index
    %c0_95 = arith.constant 0 : index
    %92 = vector.load %arg4[%c0_94, %c0_95] : memref<256x16xbf16, #tpu.memory_space<vmem>>, vector<256x16xbf16>
    %cst_96 = arith.constant dense<0.000000e+00> : vector<2x16xf32>
    %93 = tpu.matmul %91, %92, %cst_96 {dimension_numbers = #tpu.dot_dimension_numbers<[1], [0], [0], [1], [0, 0, 1, 1], [], []>} : vector<2x256xbf16>, vector<256x16xbf16>, vector<2x16xf32> -> vector<2x16xf32>
    %c0_97 = arith.constant 0 : index
    %c0_98 = arith.constant 0 : index
    %94 = vector.load %arg5[%c0_97, %c0_98] : memref<1x16xf32, #tpu.memory_space<vmem>>, vector<1x16xf32>
    %95 = vector.broadcast %94 : vector<1x16xf32> to vector<2x16xf32>
    %96 = arith.addf %93, %95 : vector<2x16xf32>
    %cst_99 = arith.constant 0.000000e+00 : f32
    %97 = vector.broadcast %cst_99 : f32 to vector<2x16xf32>
    %98 = arith.maximumf %96, %97 : vector<2x16xf32>
    %c0_100 = arith.constant 0 : index
    %c32 = arith.constant 32 : index
    %99 = vector.load %arg15[%c0_100, %c32] : memref<8x256xf32, #tpu.memory_space<vmem>>, vector<2x16xf32>
    tpu.vector_store %arg15[%c0_100, %c32], %98 {strides = array<i32>} : memref<8x256xf32, #tpu.memory_space<vmem>>, vector<2x16xf32>,
    %c2_101 = arith.constant 2 : index
    %c1_102 = arith.constant 1 : index
    %c0_103 = arith.constant 0 : index
    %c0_104 = arith.constant 0 : index
    %100 = vector.load %arg1[%c2_101, %c1_102, %c0_103, %c0_104] : memref<16x4x2x256xbf16, #tpu.memory_space<vmem>>, vector<1x1x2x256xbf16>
    %101 = vector.shape_cast %100 : vector<1x1x2x256xbf16> to vector<2x256xbf16>
    %102 = arith.mulf %101, %0 : vector<2x256xbf16>
    %c0_105 = arith.constant 0 : index
    %c0_106 = arith.constant 0 : index
    %103 = vector.load %arg4[%c0_105, %c0_106] : memref<256x16xbf16, #tpu.memory_space<vmem>>, vector<256x16xbf16>
    %cst_107 = arith.constant dense<0.000000e+00> : vector<2x16xf32>
    %104 = tpu.matmul %102, %103, %cst_107 {dimension_numbers = #tpu.dot_dimension_numbers<[1], [0], [0], [1], [0, 0, 1, 1], [], []>} : vector<2x256xbf16>, vector<256x16xbf16>, vector<2x16xf32> -> vector<2x16xf32>
    %c0_108 = arith.constant 0 : index
    %c0_109 = arith.constant 0 : index
    %105 = vector.load %arg5[%c0_108, %c0_109] : memref<1x16xf32, #tpu.memory_space<vmem>>, vector<1x16xf32>
    %106 = vector.broadcast %105 : vector<1x16xf32> to vector<2x16xf32>
    %107 = arith.addf %104, %106 : vector<2x16xf32>
    %cst_110 = arith.constant 0.000000e+00 : f32
    %108 = vector.broadcast %cst_110 : f32 to vector<2x16xf32>
    %109 = arith.maximumf %107, %108 : vector<2x16xf32>
    %c2_111 = arith.constant 2 : index
    %c32_112 = arith.constant 32 : index
    %110 = vector.load %arg15[%c2_111, %c32_112] : memref<8x256xf32, #tpu.memory_space<vmem>>, vector<2x16xf32>
    tpu.vector_store %arg15[%c2_111, %c32_112], %109 {strides = array<i32>} : memref<8x256xf32, #tpu.memory_space<vmem>>, vector<2x16xf32>,
    %c2_113 = arith.constant 2 : index
    %c2_114 = arith.constant 2 : index
    %c0_115 = arith.constant 0 : index
    %c0_116 = arith.constant 0 : index
    %111 = vector.load %arg1[%c2_113, %c2_114, %c0_115, %c0_116] : memref<16x4x2x256xbf16, #tpu.memory_space<vmem>>, vector<1x1x2x256xbf16>
    %112 = vector.shape_cast %111 : vector<1x1x2x256xbf16> to vector<2x256xbf16>
    %113 = arith.mulf %112, %0 : vector<2x256xbf16>
    %c0_117 = arith.constant 0 : index
    %c0_118 = arith.constant 0 : index
    %114 = vector.load %arg4[%c0_117, %c0_118] : memref<256x16xbf16, #tpu.memory_space<vmem>>, vector<256x16xbf16>
    %cst_119 = arith.constant dense<0.000000e+00> : vector<2x16xf32>
    %115 = tpu.matmul %113, %114, %cst_119 {dimension_numbers = #tpu.dot_dimension_numbers<[1], [0], [0], [1], [0, 0, 1, 1], [], []>} : vector<2x256xbf16>, vector<256x16xbf16>, vector<2x16xf32> -> vector<2x16xf32>
    %c0_120 = arith.constant 0 : index
    %c0_121 = arith.constant 0 : index
    %116 = vector.load %arg5[%c0_120, %c0_121] : memref<1x16xf32, #tpu.memory_space<vmem>>, vector<1x16xf32>
    %117 = vector.broadcast %116 : vector<1x16xf32> to vector<2x16xf32>
    %118 = arith.addf %115, %117 : vector<2x16xf32>
    %cst_122 = arith.constant 0.000000e+00 : f32
    %119 = vector.broadcast %cst_122 : f32 to vector<2x16xf32>
    %120 = arith.maximumf %118, %119 : vector<2x16xf32>
    %c4_123 = arith.constant 4 : index
    %c32_124 = arith.constant 32 : index
    %121 = vector.load %arg15[%c4_123, %c32_124] : memref<8x256xf32, #tpu.memory_space<vmem>>, vector<2x16xf32>
    tpu.vector_store %arg15[%c4_123, %c32_124], %120 {strides = array<i32>} : memref<8x256xf32, #tpu.memory_space<vmem>>, vector<2x16xf32>,
    %c2_125 = arith.constant 2 : index
    %c3_126 = arith.constant 3 : index
    %c0_127 = arith.constant 0 : index
    %c0_128 = arith.constant 0 : index
    %122 = vector.load %arg1[%c2_125, %c3_126, %c0_127, %c0_128] : memref<16x4x2x256xbf16, #tpu.memory_space<vmem>>, vector<1x1x2x256xbf16>
    %123 = vector.shape_cast %122 : vector<1x1x2x256xbf16> to vector<2x256xbf16>
    %124 = arith.mulf %123, %0 : vector<2x256xbf16>
    %c0_129 = arith.constant 0 : index
    %c0_130 = arith.constant 0 : index
    %125 = vector.load %arg4[%c0_129, %c0_130] : memref<256x16xbf16, #tpu.memory_space<vmem>>, vector<256x16xbf16>
    %cst_131 = arith.constant dense<0.000000e+00> : vector<2x16xf32>
    %126 = tpu.matmul %124, %125, %cst_131 {dimension_numbers = #tpu.dot_dimension_numbers<[1], [0], [0], [1], [0, 0, 1, 1], [], []>} : vector<2x256xbf16>, vector<256x16xbf16>, vector<2x16xf32> -> vector<2x16xf32>
    %c0_132 = arith.constant 0 : index
    %c0_133 = arith.constant 0 : index
    %127 = vector.load %arg5[%c0_132, %c0_133] : memref<1x16xf32, #tpu.memory_space<vmem>>, vector<1x16xf32>
    %128 = vector.broadcast %127 : vector<1x16xf32> to vector<2x16xf32>
    %129 = arith.addf %126, %128 : vector<2x16xf32>
    %cst_134 = arith.constant 0.000000e+00 : f32
    %130 = vector.broadcast %cst_134 : f32 to vector<2x16xf32>
    %131 = arith.maximumf %129, %130 : vector<2x16xf32>
    %c6_135 = arith.constant 6 : index
    %c32_136 = arith.constant 32 : index
    %132 = vector.load %arg15[%c6_135, %c32_136] : memref<8x256xf32, #tpu.memory_space<vmem>>, vector<2x16xf32>
    tpu.vector_store %arg15[%c6_135, %c32_136], %131 {strides = array<i32>} : memref<8x256xf32, #tpu.memory_space<vmem>>, vector<2x16xf32>,
    %c3_137 = arith.constant 3 : index
    %c0_138 = arith.constant 0 : index
    %c0_139 = arith.constant 0 : index
    %c0_140 = arith.constant 0 : index
    %133 = vector.load %arg1[%c3_137, %c0_138, %c0_139, %c0_140] : memref<16x4x2x256xbf16, #tpu.memory_space<vmem>>, vector<1x1x2x256xbf16>
    %134 = vector.shape_cast %133 : vector<1x1x2x256xbf16> to vector<2x256xbf16>
    %135 = arith.mulf %134, %0 : vector<2x256xbf16>
    %c0_141 = arith.constant 0 : index
    %c0_142 = arith.constant 0 : index
    %136 = vector.load %arg4[%c0_141, %c0_142] : memref<256x16xbf16, #tpu.memory_space<vmem>>, vector<256x16xbf16>
    %cst_143 = arith.constant dense<0.000000e+00> : vector<2x16xf32>
    %137 = tpu.matmul %135, %136, %cst_143 {dimension_numbers = #tpu.dot_dimension_numbers<[1], [0], [0], [1], [0, 0, 1, 1], [], []>} : vector<2x256xbf16>, vector<256x16xbf16>, vector<2x16xf32> -> vector<2x16xf32>
    %c0_144 = arith.constant 0 : index
    %c0_145 = arith.constant 0 : index
    %138 = vector.load %arg5[%c0_144, %c0_145] : memref<1x16xf32, #tpu.memory_space<vmem>>, vector<1x16xf32>
    %139 = vector.broadcast %138 : vector<1x16xf32> to vector<2x16xf32>
    %140 = arith.addf %137, %139 : vector<2x16xf32>
    %cst_146 = arith.constant 0.000000e+00 : f32
    %141 = vector.broadcast %cst_146 : f32 to vector<2x16xf32>
    %142 = arith.maximumf %140, %141 : vector<2x16xf32>
    %c0_147 = arith.constant 0 : index
    %c48 = arith.constant 48 : index
    %143 = vector.load %arg15[%c0_147, %c48] : memref<8x256xf32, #tpu.memory_space<vmem>>, vector<2x16xf32>
    tpu.vector_store %arg15[%c0_147, %c48], %142 {strides = array<i32>} : memref<8x256xf32, #tpu.memory_space<vmem>>, vector<2x16xf32>,
    %c3_148 = arith.constant 3 : index
    %c1_149 = arith.constant 1 : index
    %c0_150 = arith.constant 0 : index
    %c0_151 = arith.constant 0 : index
    %144 = vector.load %arg1[%c3_148, %c1_149, %c0_150, %c0_151] : memref<16x4x2x256xbf16, #tpu.memory_space<vmem>>, vector<1x1x2x256xbf16>
    %145 = vector.shape_cast %144 : vector<1x1x2x256xbf16> to vector<2x256xbf16>
    %146 = arith.mulf %145, %0 : vector<2x256xbf16>
    %c0_152 = arith.constant 0 : index
    %c0_153 = arith.constant 0 : index
    %147 = vector.load %arg4[%c0_152, %c0_153] : memref<256x16xbf16, #tpu.memory_space<vmem>>, vector<256x16xbf16>
    %cst_154 = arith.constant dense<0.000000e+00> : vector<2x16xf32>
    %148 = tpu.matmul %146, %147, %cst_154 {dimension_numbers = #tpu.dot_dimension_numbers<[1], [0], [0], [1], [0, 0, 1, 1], [], []>} : vector<2x256xbf16>, vector<256x16xbf16>, vector<2x16xf32> -> vector<2x16xf32>
    %c0_155 = arith.constant 0 : index
    %c0_156 = arith.constant 0 : index
    %149 = vector.load %arg5[%c0_155, %c0_156] : memref<1x16xf32, #tpu.memory_space<vmem>>, vector<1x16xf32>
    %150 = vector.broadcast %149 : vector<1x16xf32> to vector<2x16xf32>
    %151 = arith.addf %148, %150 : vector<2x16xf32>
    %cst_157 = arith.constant 0.000000e+00 : f32
    %152 = vector.broadcast %cst_157 : f32 to vector<2x16xf32>
    %153 = arith.maximumf %151, %152 : vector<2x16xf32>
    %c2_158 = arith.constant 2 : index
    %c48_159 = arith.constant 48 : index
    %154 = vector.load %arg15[%c2_158, %c48_159] : memref<8x256xf32, #tpu.memory_space<vmem>>, vector<2x16xf32>
    tpu.vector_store %arg15[%c2_158, %c48_159], %153 {strides = array<i32>} : memref<8x256xf32, #tpu.memory_space<vmem>>, vector<2x16xf32>,
    %c3_160 = arith.constant 3 : index
    %c2_161 = arith.constant 2 : index
    %c0_162 = arith.constant 0 : index
    %c0_163 = arith.constant 0 : index
    %155 = vector.load %arg1[%c3_160, %c2_161, %c0_162, %c0_163] : memref<16x4x2x256xbf16, #tpu.memory_space<vmem>>, vector<1x1x2x256xbf16>
    %156 = vector.shape_cast %155 : vector<1x1x2x256xbf16> to vector<2x256xbf16>
    %157 = arith.mulf %156, %0 : vector<2x256xbf16>
    %c0_164 = arith.constant 0 : index
    %c0_165 = arith.constant 0 : index
    %158 = vector.load %arg4[%c0_164, %c0_165] : memref<256x16xbf16, #tpu.memory_space<vmem>>, vector<256x16xbf16>
    %cst_166 = arith.constant dense<0.000000e+00> : vector<2x16xf32>
    %159 = tpu.matmul %157, %158, %cst_166 {dimension_numbers = #tpu.dot_dimension_numbers<[1], [0], [0], [1], [0, 0, 1, 1], [], []>} : vector<2x256xbf16>, vector<256x16xbf16>, vector<2x16xf32> -> vector<2x16xf32>
    %c0_167 = arith.constant 0 : index
    %c0_168 = arith.constant 0 : index
    %160 = vector.load %arg5[%c0_167, %c0_168] : memref<1x16xf32, #tpu.memory_space<vmem>>, vector<1x16xf32>
    %161 = vector.broadcast %160 : vector<1x16xf32> to vector<2x16xf32>
    %162 = arith.addf %159, %161 : vector<2x16xf32>
    %cst_169 = arith.constant 0.000000e+00 : f32
    %163 = vector.broadcast %cst_169 : f32 to vector<2x16xf32>
    %164 = arith.maximumf %162, %163 : vector<2x16xf32>
    %c4_170 = arith.constant 4 : index
    %c48_171 = arith.constant 48 : index
    %165 = vector.load %arg15[%c4_170, %c48_171] : memref<8x256xf32, #tpu.memory_space<vmem>>, vector<2x16xf32>
    tpu.vector_store %arg15[%c4_170, %c48_171], %164 {strides = array<i32>} : memref<8x256xf32, #tpu.memory_space<vmem>>, vector<2x16xf32>,
    %c3_172 = arith.constant 3 : index
    %c3_173 = arith.constant 3 : index
    %c0_174 = arith.constant 0 : index
    %c0_175 = arith.constant 0 : index
    %166 = vector.load %arg1[%c3_172, %c3_173, %c0_174, %c0_175] : memref<16x4x2x256xbf16, #tpu.memory_space<vmem>>, vector<1x1x2x256xbf16>
    %167 = vector.shape_cast %166 : vector<1x1x2x256xbf16> to vector<2x256xbf16>
    %168 = arith.mulf %167, %0 : vector<2x256xbf16>
    %c0_176 = arith.constant 0 : index
    %c0_177 = arith.constant 0 : index
    %169 = vector.load %arg4[%c0_176, %c0_177] : memref<256x16xbf16, #tpu.memory_space<vmem>>, vector<256x16xbf16>
    %cst_178 = arith.constant dense<0.000000e+00> : vector<2x16xf32>
    %170 = tpu.matmul %168, %169, %cst_178 {dimension_numbers = #tpu.dot_dimension_numbers<[1], [0], [0], [1], [0, 0, 1, 1], [], []>} : vector<2x256xbf16>, vector<256x16xbf16>, vector<2x16xf32> -> vector<2x16xf32>
    %c0_179 = arith.constant 0 : index
    %c0_180 = arith.constant 0 : index
    %171 = vector.load %arg5[%c0_179, %c0_180] : memref<1x16xf32, #tpu.memory_space<vmem>>, vector<1x16xf32>
    %172 = vector.broadcast %171 : vector<1x16xf32> to vector<2x16xf32>
    %173 = arith.addf %170, %172 : vector<2x16xf32>
    %cst_181 = arith.constant 0.000000e+00 : f32
    %174 = vector.broadcast %cst_181 : f32 to vector<2x16xf32>
    %175 = arith.maximumf %173, %174 : vector<2x16xf32>
    %c6_182 = arith.constant 6 : index
    %c48_183 = arith.constant 48 : index
    %176 = vector.load %arg15[%c6_182, %c48_183] : memref<8x256xf32, #tpu.memory_space<vmem>>, vector<2x16xf32>
    tpu.vector_store %arg15[%c6_182, %c48_183], %175 {strides = array<i32>} : memref<8x256xf32, #tpu.memory_space<vmem>>, vector<2x16xf32>,
    %c4_184 = arith.constant 4 : index
    %c0_185 = arith.constant 0 : index
    %c0_186 = arith.constant 0 : index
    %c0_187 = arith.constant 0 : index
    %177 = vector.load %arg1[%c4_184, %c0_185, %c0_186, %c0_187] : memref<16x4x2x256xbf16, #tpu.memory_space<vmem>>, vector<1x1x2x256xbf16>
    %178 = vector.shape_cast %177 : vector<1x1x2x256xbf16> to vector<2x256xbf16>
    %179 = arith.mulf %178, %0 : vector<2x256xbf16>
    %c0_188 = arith.constant 0 : index
    %c0_189 = arith.constant 0 : index
    %180 = vector.load %arg4[%c0_188, %c0_189] : memref<256x16xbf16, #tpu.memory_space<vmem>>, vector<256x16xbf16>
    %cst_190 = arith.constant dense<0.000000e+00> : vector<2x16xf32>
    %181 = tpu.matmul %179, %180, %cst_190 {dimension_numbers = #tpu.dot_dimension_numbers<[1], [0], [0], [1], [0, 0, 1, 1], [], []>} : vector<2x256xbf16>, vector<256x16xbf16>, vector<2x16xf32> -> vector<2x16xf32>
    %c0_191 = arith.constant 0 : index
    %c0_192 = arith.constant 0 : index
    %182 = vector.load %arg5[%c0_191, %c0_192] : memref<1x16xf32, #tpu.memory_space<vmem>>, vector<1x16xf32>
    %183 = vector.broadcast %182 : vector<1x16xf32> to vector<2x16xf32>
    %184 = arith.addf %181, %183 : vector<2x16xf32>
    %cst_193 = arith.constant 0.000000e+00 : f32
    %185 = vector.broadcast %cst_193 : f32 to vector<2x16xf32>
    %186 = arith.maximumf %184, %185 : vector<2x16xf32>
    %c0_194 = arith.constant 0 : index
    %c64 = arith.constant 64 : index
    %187 = vector.load %arg15[%c0_194, %c64] : memref<8x256xf32, #tpu.memory_space<vmem>>, vector<2x16xf32>
    tpu.vector_store %arg15[%c0_194, %c64], %186 {strides = array<i32>} : memref<8x256xf32, #tpu.memory_space<vmem>>, vector<2x16xf32>,
    %c4_195 = arith.constant 4 : index
    %c1_196 = arith.constant 1 : index
    %c0_197 = arith.constant 0 : index
    %c0_198 = arith.constant 0 : index
    %188 = vector.load %arg1[%c4_195, %c1_196, %c0_197, %c0_198] : memref<16x4x2x256xbf16, #tpu.memory_space<vmem>>, vector<1x1x2x256xbf16>
    %189 = vector.shape_cast %188 : vector<1x1x2x256xbf16> to vector<2x256xbf16>
    %190 = arith.mulf %189, %0 : vector<2x256xbf16>
    %c0_199 = arith.constant 0 : index
    %c0_200 = arith.constant 0 : index
    %191 = vector.load %arg4[%c0_199, %c0_200] : memref<256x16xbf16, #tpu.memory_space<vmem>>, vector<256x16xbf16>
    %cst_201 = arith.constant dense<0.000000e+00> : vector<2x16xf32>
    %192 = tpu.matmul %190, %191, %cst_201 {dimension_numbers = #tpu.dot_dimension_numbers<[1], [0], [0], [1], [0, 0, 1, 1], [], []>} : vector<2x256xbf16>, vector<256x16xbf16>, vector<2x16xf32> -> vector<2x16xf32>
    %c0_202 = arith.constant 0 : index
    %c0_203 = arith.constant 0 : index
    %193 = vector.load %arg5[%c0_202, %c0_203] : memref<1x16xf32, #tpu.memory_space<vmem>>, vector<1x16xf32>
    %194 = vector.broadcast %193 : vector<1x16xf32> to vector<2x16xf32>
    %195 = arith.addf %192, %194 : vector<2x16xf32>
    %cst_204 = arith.constant 0.000000e+00 : f32
    %196 = vector.broadcast %cst_204 : f32 to vector<2x16xf32>
    %197 = arith.maximumf %195, %196 : vector<2x16xf32>
    %c2_205 = arith.constant 2 : index
    %c64_206 = arith.constant 64 : index
    %198 = vector.load %arg15[%c2_205, %c64_206] : memref<8x256xf32, #tpu.memory_space<vmem>>, vector<2x16xf32>
    tpu.vector_store %arg15[%c2_205, %c64_206], %197 {strides = array<i32>} : memref<8x256xf32, #tpu.memory_space<vmem>>, vector<2x16xf32>,
    %c4_207 = arith.constant 4 : index
    %c2_208 = arith.constant 2 : index
    %c0_209 = arith.constant 0 : index
    %c0_210 = arith.constant 0 : index
    %199 = vector.load %arg1[%c4_207, %c2_208, %c0_209, %c0_210] : memref<16x4x2x256xbf16, #tpu.memory_space<vmem>>, vector<1x1x2x256xbf16>
    %200 = vector.shape_cast %199 : vector<1x1x2x256xbf16> to vector<2x256xbf16>
    %201 = arith.mulf %200, %0 : vector<2x256xbf16>
    %c0_211 = arith.constant 0 : index
    %c0_212 = arith.constant 0 : index
    %202 = vector.load %arg4[%c0_211, %c0_212] : memref<256x16xbf16, #tpu.memory_space<vmem>>, vector<256x16xbf16>
    %cst_213 = arith.constant dense<0.000000e+00> : vector<2x16xf32>
    %203 = tpu.matmul %201, %202, %cst_213 {dimension_numbers = #tpu.dot_dimension_numbers<[1], [0], [0], [1], [0, 0, 1, 1], [], []>} : vector<2x256xbf16>, vector<256x16xbf16>, vector<2x16xf32> -> vector<2x16xf32>
    %c0_214 = arith.constant 0 : index
    %c0_215 = arith.constant 0 : index
    %204 = vector.load %arg5[%c0_214, %c0_215] : memref<1x16xf32, #tpu.memory_space<vmem>>, vector<1x16xf32>
    %205 = vector.broadcast %204 : vector<1x16xf32> to vector<2x16xf32>
    %206 = arith.addf %203, %205 : vector<2x16xf32>
    %cst_216 = arith.constant 0.000000e+00 : f32
    %207 = vector.broadcast %cst_216 : f32 to vector<2x16xf32>
    %208 = arith.maximumf %206, %207 : vector<2x16xf32>
    %c4_217 = arith.constant 4 : index
    %c64_218 = arith.constant 64 : index
    %209 = vector.load %arg15[%c4_217, %c64_218] : memref<8x256xf32, #tpu.memory_space<vmem>>, vector<2x16xf32>
    tpu.vector_store %arg15[%c4_217, %c64_218], %208 {strides = array<i32>} : memref<8x256xf32, #tpu.memory_space<vmem>>, vector<2x16xf32>,
    %c4_219 = arith.constant 4 : index
    %c3_220 = arith.constant 3 : index
    %c0_221 = arith.constant 0 : index
    %c0_222 = arith.constant 0 : index
    %210 = vector.load %arg1[%c4_219, %c3_220, %c0_221, %c0_222] : memref<16x4x2x256xbf16, #tpu.memory_space<vmem>>, vector<1x1x2x256xbf16>
    %211 = vector.shape_cast %210 : vector<1x1x2x256xbf16> to vector<2x256xbf16>
    %212 = arith.mulf %211, %0 : vector<2x256xbf16>
    %c0_223 = arith.constant 0 : index
    %c0_224 = arith.constant 0 : index
    %213 = vector.load %arg4[%c0_223, %c0_224] : memref<256x16xbf16, #tpu.memory_space<vmem>>, vector<256x16xbf16>
    %cst_225 = arith.constant dense<0.000000e+00> : vector<2x16xf32>
    %214 = tpu.matmul %212, %213, %cst_225 {dimension_numbers = #tpu.dot_dimension_numbers<[1], [0], [0], [1], [0, 0, 1, 1], [], []>} : vector<2x256xbf16>, vector<256x16xbf16>, vector<2x16xf32> -> vector<2x16xf32>
    %c0_226 = arith.constant 0 : index
    %c0_227 = arith.constant 0 : index
    %215 = vector.load %arg5[%c0_226, %c0_227] : memref<1x16xf32, #tpu.memory_space<vmem>>, vector<1x16xf32>
    %216 = vector.broadcast %215 : vector<1x16xf32> to vector<2x16xf32>
    %217 = arith.addf %214, %216 : vector<2x16xf32>
    %cst_228 = arith.constant 0.000000e+00 : f32
    %218 = vector.broadcast %cst_228 : f32 to vector<2x16xf32>
    %219 = arith.maximumf %217, %218 : vector<2x16xf32>
    %c6_229 = arith.constant 6 : index
    %c64_230 = arith.constant 64 : index
    %220 = vector.load %arg15[%c6_229, %c64_230] : memref<8x256xf32, #tpu.memory_space<vmem>>, vector<2x16xf32>
    tpu.vector_store %arg15[%c6_229, %c64_230], %219 {strides = array<i32>} : memref<8x256xf32, #tpu.memory_space<vmem>>, vector<2x16xf32>,
    %c5 = arith.constant 5 : index
    %c0_231 = arith.constant 0 : index
    %c0_232 = arith.constant 0 : index
    %c0_233 = arith.constant 0 : index
    %221 = vector.load %arg1[%c5, %c0_231, %c0_232, %c0_233] : memref<16x4x2x256xbf16, #tpu.memory_space<vmem>>, vector<1x1x2x256xbf16>
    %222 = vector.shape_cast %221 : vector<1x1x2x256xbf16> to vector<2x256xbf16>
    %223 = arith.mulf %222, %0 : vector<2x256xbf16>
    %c0_234 = arith.constant 0 : index
    %c0_235 = arith.constant 0 : index
    %224 = vector.load %arg4[%c0_234, %c0_235] : memref<256x16xbf16, #tpu.memory_space<vmem>>, vector<256x16xbf16>
    %cst_236 = arith.constant dense<0.000000e+00> : vector<2x16xf32>
    %225 = tpu.matmul %223, %224, %cst_236 {dimension_numbers = #tpu.dot_dimension_numbers<[1], [0], [0], [1], [0, 0, 1, 1], [], []>} : vector<2x256xbf16>, vector<256x16xbf16>, vector<2x16xf32> -> vector<2x16xf32>
    %c0_237 = arith.constant 0 : index
    %c0_238 = arith.constant 0 : index
    %226 = vector.load %arg5[%c0_237, %c0_238] : memref<1x16xf32, #tpu.memory_space<vmem>>, vector<1x16xf32>
    %227 = vector.broadcast %226 : vector<1x16xf32> to vector<2x16xf32>
    %228 = arith.addf %225, %227 : vector<2x16xf32>
    %cst_239 = arith.constant 0.000000e+00 : f32
    %229 = vector.broadcast %cst_239 : f32 to vector<2x16xf32>
    %230 = arith.maximumf %228, %229 : vector<2x16xf32>
    %c0_240 = arith.constant 0 : index
    %c80 = arith.constant 80 : index
    %231 = vector.load %arg15[%c0_240, %c80] : memref<8x256xf32, #tpu.memory_space<vmem>>, vector<2x16xf32>
    tpu.vector_store %arg15[%c0_240, %c80], %230 {strides = array<i32>} : memref<8x256xf32, #tpu.memory_space<vmem>>, vector<2x16xf32>,
    %c5_241 = arith.constant 5 : index
    %c1_242 = arith.constant 1 : index
    %c0_243 = arith.constant 0 : index
    %c0_244 = arith.constant 0 : index
    %232 = vector.load %arg1[%c5_241, %c1_242, %c0_243, %c0_244] : memref<16x4x2x256xbf16, #tpu.memory_space<vmem>>, vector<1x1x2x256xbf16>
    %233 = vector.shape_cast %232 : vector<1x1x2x256xbf16> to vector<2x256xbf16>
    %234 = arith.mulf %233, %0 : vector<2x256xbf16>
    %c0_245 = arith.constant 0 : index
    %c0_246 = arith.constant 0 : index
    %235 = vector.load %arg4[%c0_245, %c0_246] : memref<256x16xbf16, #tpu.memory_space<vmem>>, vector<256x16xbf16>
    %cst_247 = arith.constant dense<0.000000e+00> : vector<2x16xf32>
    %236 = tpu.matmul %234, %235, %cst_247 {dimension_numbers = #tpu.dot_dimension_numbers<[1], [0], [0], [1], [0, 0, 1, 1], [], []>} : vector<2x256xbf16>, vector<256x16xbf16>, vector<2x16xf32> -> vector<2x16xf32>
    %c0_248 = arith.constant 0 : index
    %c0_249 = arith.constant 0 : index
    %237 = vector.load %arg5[%c0_248, %c0_249] : memref<1x16xf32, #tpu.memory_space<vmem>>, vector<1x16xf32>
    %238 = vector.broadcast %237 : vector<1x16xf32> to vector<2x16xf32>
    %239 = arith.addf %236, %238 : vector<2x16xf32>
    %cst_250 = arith.constant 0.000000e+00 : f32
    %240 = vector.broadcast %cst_250 : f32 to vector<2x16xf32>
    %241 = arith.maximumf %239, %240 : vector<2x16xf32>
    %c2_251 = arith.constant 2 : index
    %c80_252 = arith.constant 80 : index
    %242 = vector.load %arg15[%c2_251, %c80_252] : memref<8x256xf32, #tpu.memory_space<vmem>>, vector<2x16xf32>
    tpu.vector_store %arg15[%c2_251, %c80_252], %241 {strides = array<i32>} : memref<8x256xf32, #tpu.memory_space<vmem>>, vector<2x16xf32>,
    %c5_253 = arith.constant 5 : index
    %c2_254 = arith.constant 2 : index
    %c0_255 = arith.constant 0 : index
    %c0_256 = arith.constant 0 : index
    %243 = vector.load %arg1[%c5_253, %c2_254, %c0_255, %c0_256] : memref<16x4x2x256xbf16, #tpu.memory_space<vmem>>, vector<1x1x2x256xbf16>
    %244 = vector.shape_cast %243 : vector<1x1x2x256xbf16> to vector<2x256xbf16>
    %245 = arith.mulf %244, %0 : vector<2x256xbf16>
    %c0_257 = arith.constant 0 : index
    %c0_258 = arith.constant 0 : index
    %246 = vector.load %arg4[%c0_257, %c0_258] : memref<256x16xbf16, #tpu.memory_space<vmem>>, vector<256x16xbf16>
    %cst_259 = arith.constant dense<0.000000e+00> : vector<2x16xf32>
    %247 = tpu.matmul %245, %246, %cst_259 {dimension_numbers = #tpu.dot_dimension_numbers<[1], [0], [0], [1], [0, 0, 1, 1], [], []>} : vector<2x256xbf16>, vector<256x16xbf16>, vector<2x16xf32> -> vector<2x16xf32>
    %c0_260 = arith.constant 0 : index
    %c0_261 = arith.constant 0 : index
    %248 = vector.load %arg5[%c0_260, %c0_261] : memref<1x16xf32, #tpu.memory_space<vmem>>, vector<1x16xf32>
    %249 = vector.broadcast %248 : vector<1x16xf32> to vector<2x16xf32>
    %250 = arith.addf %247, %249 : vector<2x16xf32>
    %cst_262 = arith.constant 0.000000e+00 : f32
    %251 = vector.broadcast %cst_262 : f32 to vector<2x16xf32>
    %252 = arith.maximumf %250, %251 : vector<2x16xf32>
    %c4_263 = arith.constant 4 : index
    %c80_264 = arith.constant 80 : index
    %253 = vector.load %arg15[%c4_263, %c80_264] : memref<8x256xf32, #tpu.memory_space<vmem>>, vector<2x16xf32>
    tpu.vector_store %arg15[%c4_263, %c80_264], %252 {strides = array<i32>} : memref<8x256xf32, #tpu.memory_space<vmem>>, vector<2x16xf32>,
    %c5_265 = arith.constant 5 : index
    %c3_266 = arith.constant 3 : index
    %c0_267 = arith.constant 0 : index
    %c0_268 = arith.constant 0 : index
    %254 = vector.load %arg1[%c5_265, %c3_266, %c0_267, %c0_268] : memref<16x4x2x256xbf16, #tpu.memory_space<vmem>>, vector<1x1x2x256xbf16>
    %255 = vector.shape_cast %254 : vector<1x1x2x256xbf16> to vector<2x256xbf16>
    %256 = arith.mulf %255, %0 : vector<2x256xbf16>
    %c0_269 = arith.constant 0 : index
    %c0_270 = arith.constant 0 : index
    %257 = vector.load %arg4[%c0_269, %c0_270] : memref<256x16xbf16, #tpu.memory_space<vmem>>, vector<256x16xbf16>
    %cst_271 = arith.constant dense<0.000000e+00> : vector<2x16xf32>
    %258 = tpu.matmul %256, %257, %cst_271 {dimension_numbers = #tpu.dot_dimension_numbers<[1], [0], [0], [1], [0, 0, 1, 1], [], []>} : vector<2x256xbf16>, vector<256x16xbf16>, vector<2x16xf32> -> vector<2x16xf32>
    %c0_272 = arith.constant 0 : index
    %c0_273 = arith.constant 0 : index
    %259 = vector.load %arg5[%c0_272, %c0_273] : memref<1x16xf32, #tpu.memory_space<vmem>>, vector<1x16xf32>
    %260 = vector.broadcast %259 : vector<1x16xf32> to vector<2x16xf32>
    %261 = arith.addf %258, %260 : vector<2x16xf32>
    %cst_274 = arith.constant 0.000000e+00 : f32
    %262 = vector.broadcast %cst_274 : f32 to vector<2x16xf32>
    %263 = arith.maximumf %261, %262 : vector<2x16xf32>
    %c6_275 = arith.constant 6 : index
    %c80_276 = arith.constant 80 : index
    %264 = vector.load %arg15[%c6_275, %c80_276] : memref<8x256xf32, #tpu.memory_space<vmem>>, vector<2x16xf32>
    tpu.vector_store %arg15[%c6_275, %c80_276], %263 {strides = array<i32>} : memref<8x256xf32, #tpu.memory_space<vmem>>, vector<2x16xf32>,
    %c6_277 = arith.constant 6 : index
    %c0_278 = arith.constant 0 : index
    %c0_279 = arith.constant 0 : index
    %c0_280 = arith.constant 0 : index
    %265 = vector.load %arg1[%c6_277, %c0_278, %c0_279, %c0_280] : memref<16x4x2x256xbf16, #tpu.memory_space<vmem>>, vector<1x1x2x256xbf16>
    %266 = vector.shape_cast %265 : vector<1x1x2x256xbf16> to vector<2x256xbf16>
    %267 = arith.mulf %266, %0 : vector<2x256xbf16>
    %c0_281 = arith.constant 0 : index
    %c0_282 = arith.constant 0 : index
    %268 = vector.load %arg4[%c0_281, %c0_282] : memref<256x16xbf16, #tpu.memory_space<vmem>>, vector<256x16xbf16>
    %cst_283 = arith.constant dense<0.000000e+00> : vector<2x16xf32>
    %269 = tpu.matmul %267, %268, %cst_283 {dimension_numbers = #tpu.dot_dimension_numbers<[1], [0], [0], [1], [0, 0, 1, 1], [], []>} : vector<2x256xbf16>, vector<256x16xbf16>, vector<2x16xf32> -> vector<2x16xf32>
    %c0_284 = arith.constant 0 : index
    %c0_285 = arith.constant 0 : index
    %270 = vector.load %arg5[%c0_284, %c0_285] : memref<1x16xf32, #tpu.memory_space<vmem>>, vector<1x16xf32>
    %271 = vector.broadcast %270 : vector<1x16xf32> to vector<2x16xf32>
    %272 = arith.addf %269, %271 : vector<2x16xf32>
    %cst_286 = arith.constant 0.000000e+00 : f32
    %273 = vector.broadcast %cst_286 : f32 to vector<2x16xf32>
    %274 = arith.maximumf %272, %273 : vector<2x16xf32>
    %c0_287 = arith.constant 0 : index
    %c96 = arith.constant 96 : index
    %275 = vector.load %arg15[%c0_287, %c96] : memref<8x256xf32, #tpu.memory_space<vmem>>, vector<2x16xf32>
    tpu.vector_store %arg15[%c0_287, %c96], %274 {strides = array<i32>} : memref<8x256xf32, #tpu.memory_space<vmem>>, vector<2x16xf32>,
    %c6_288 = arith.constant 6 : index
    %c1_289 = arith.constant 1 : index
    %c0_290 = arith.constant 0 : index
    %c0_291 = arith.constant 0 : index
    %276 = vector.load %arg1[%c6_288, %c1_289, %c0_290, %c0_291] : memref<16x4x2x256xbf16, #tpu.memory_space<vmem>>, vector<1x1x2x256xbf16>
    %277 = vector.shape_cast %276 : vector<1x1x2x256xbf16> to vector<2x256xbf16>
    %278 = arith.mulf %277, %0 : vector<2x256xbf16>
    %c0_292 = arith.constant 0 : index
    %c0_293 = arith.constant 0 : index
    %279 = vector.load %arg4[%c0_292, %c0_293] : memref<256x16xbf16, #tpu.memory_space<vmem>>, vector<256x16xbf16>
    %cst_294 = arith.constant dense<0.000000e+00> : vector<2x16xf32>
    %280 = tpu.matmul %278, %279, %cst_294 {dimension_numbers = #tpu.dot_dimension_numbers<[1], [0], [0], [1], [0, 0, 1, 1], [], []>} : vector<2x256xbf16>, vector<256x16xbf16>, vector<2x16xf32> -> vector<2x16xf32>
    %c0_295 = arith.constant 0 : index
    %c0_296 = arith.constant 0 : index
    %281 = vector.load %arg5[%c0_295, %c0_296] : memref<1x16xf32, #tpu.memory_space<vmem>>, vector<1x16xf32>
    %282 = vector.broadcast %281 : vector<1x16xf32> to vector<2x16xf32>
    %283 = arith.addf %280, %282 : vector<2x16xf32>
    %cst_297 = arith.constant 0.000000e+00 : f32
    %284 = vector.broadcast %cst_297 : f32 to vector<2x16xf32>
    %285 = arith.maximumf %283, %284 : vector<2x16xf32>
    %c2_298 = arith.constant 2 : index
    %c96_299 = arith.constant 96 : index
    %286 = vector.load %arg15[%c2_298, %c96_299] : memref<8x256xf32, #tpu.memory_space<vmem>>, vector<2x16xf32>
    tpu.vector_store %arg15[%c2_298, %c96_299], %285 {strides = array<i32>} : memref<8x256xf32, #tpu.memory_space<vmem>>, vector<2x16xf32>,
    %c6_300 = arith.constant 6 : index
    %c2_301 = arith.constant 2 : index
    %c0_302 = arith.constant 0 : index
    %c0_303 = arith.constant 0 : index
    %287 = vector.load %arg1[%c6_300, %c2_301, %c0_302, %c0_303] : memref<16x4x2x256xbf16, #tpu.memory_space<vmem>>, vector<1x1x2x256xbf16>
    %288 = vector.shape_cast %287 : vector<1x1x2x256xbf16> to vector<2x256xbf16>
    %289 = arith.mulf %288, %0 : vector<2x256xbf16>
    %c0_304 = arith.constant 0 : index
    %c0_305 = arith.constant 0 : index
    %290 = vector.load %arg4[%c0_304, %c0_305] : memref<256x16xbf16, #tpu.memory_space<vmem>>, vector<256x16xbf16>
    %cst_306 = arith.constant dense<0.000000e+00> : vector<2x16xf32>
    %291 = tpu.matmul %289, %290, %cst_306 {dimension_numbers = #tpu.dot_dimension_numbers<[1], [0], [0], [1], [0, 0, 1, 1], [], []>} : vector<2x256xbf16>, vector<256x16xbf16>, vector<2x16xf32> -> vector<2x16xf32>
    %c0_307 = arith.constant 0 : index
    %c0_308 = arith.constant 0 : index
    %292 = vector.load %arg5[%c0_307, %c0_308] : memref<1x16xf32, #tpu.memory_space<vmem>>, vector<1x16xf32>
    %293 = vector.broadcast %292 : vector<1x16xf32> to vector<2x16xf32>
    %294 = arith.addf %291, %293 : vector<2x16xf32>
    %cst_309 = arith.constant 0.000000e+00 : f32
    %295 = vector.broadcast %cst_309 : f32 to vector<2x16xf32>
    %296 = arith.maximumf %294, %295 : vector<2x16xf32>
    %c4_310 = arith.constant 4 : index
    %c96_311 = arith.constant 96 : index
    %297 = vector.load %arg15[%c4_310, %c96_311] : memref<8x256xf32, #tpu.memory_space<vmem>>, vector<2x16xf32>
    tpu.vector_store %arg15[%c4_310, %c96_311], %296 {strides = array<i32>} : memref<8x256xf32, #tpu.memory_space<vmem>>, vector<2x16xf32>,
    %c6_312 = arith.constant 6 : index
    %c3_313 = arith.constant 3 : index
    %c0_314 = arith.constant 0 : index
    %c0_315 = arith.constant 0 : index
    %298 = vector.load %arg1[%c6_312, %c3_313, %c0_314, %c0_315] : memref<16x4x2x256xbf16, #tpu.memory_space<vmem>>, vector<1x1x2x256xbf16>
    %299 = vector.shape_cast %298 : vector<1x1x2x256xbf16> to vector<2x256xbf16>
    %300 = arith.mulf %299, %0 : vector<2x256xbf16>
    %c0_316 = arith.constant 0 : index
    %c0_317 = arith.constant 0 : index
    %301 = vector.load %arg4[%c0_316, %c0_317] : memref<256x16xbf16, #tpu.memory_space<vmem>>, vector<256x16xbf16>
    %cst_318 = arith.constant dense<0.000000e+00> : vector<2x16xf32>
    %302 = tpu.matmul %300, %301, %cst_318 {dimension_numbers = #tpu.dot_dimension_numbers<[1], [0], [0], [1], [0, 0, 1, 1], [], []>} : vector<2x256xbf16>, vector<256x16xbf16>, vector<2x16xf32> -> vector<2x16xf32>
    %c0_319 = arith.constant 0 : index
    %c0_320 = arith.constant 0 : index
    %303 = vector.load %arg5[%c0_319, %c0_320] : memref<1x16xf32, #tpu.memory_space<vmem>>, vector<1x16xf32>
    %304 = vector.broadcast %303 : vector<1x16xf32> to vector<2x16xf32>
    %305 = arith.addf %302, %304 : vector<2x16xf32>
    %cst_321 = arith.constant 0.000000e+00 : f32
    %306 = vector.broadcast %cst_321 : f32 to vector<2x16xf32>
    %307 = arith.maximumf %305, %306 : vector<2x16xf32>
    %c6_322 = arith.constant 6 : index
    %c96_323 = arith.constant 96 : index
    %308 = vector.load %arg15[%c6_322, %c96_323] : memref<8x256xf32, #tpu.memory_space<vmem>>, vector<2x16xf32>
    tpu.vector_store %arg15[%c6_322, %c96_323], %307 {strides = array<i32>} : memref<8x256xf32, #tpu.memory_space<vmem>>, vector<2x16xf32>,
    %c7 = arith.constant 7 : index
    %c0_324 = arith.constant 0 : index
    %c0_325 = arith.constant 0 : index
    %c0_326 = arith.constant 0 : index
    %309 = vector.load %arg1[%c7, %c0_324, %c0_325, %c0_326] : memref<16x4x2x256xbf16, #tpu.memory_space<vmem>>, vector<1x1x2x256xbf16>
    %310 = vector.shape_cast %309 : vector<1x1x2x256xbf16> to vector<2x256xbf16>
    %311 = arith.mulf %310, %0 : vector<2x256xbf16>
    %c0_327 = arith.constant 0 : index
    %c0_328 = arith.constant 0 : index
    %312 = vector.load %arg4[%c0_327, %c0_328] : memref<256x16xbf16, #tpu.memory_space<vmem>>, vector<256x16xbf16>
    %cst_329 = arith.constant dense<0.000000e+00> : vector<2x16xf32>
    %313 = tpu.matmul %311, %312, %cst_329 {dimension_numbers = #tpu.dot_dimension_numbers<[1], [0], [0], [1], [0, 0, 1, 1], [], []>} : vector<2x256xbf16>, vector<256x16xbf16>, vector<2x16xf32> -> vector<2x16xf32>
    %c0_330 = arith.constant 0 : index
    %c0_331 = arith.constant 0 : index
    %314 = vector.load %arg5[%c0_330, %c0_331] : memref<1x16xf32, #tpu.memory_space<vmem>>, vector<1x16xf32>
    %315 = vector.broadcast %314 : vector<1x16xf32> to vector<2x16xf32>
    %316 = arith.addf %313, %315 : vector<2x16xf32>
    %cst_332 = arith.constant 0.000000e+00 : f32
    %317 = vector.broadcast %cst_332 : f32 to vector<2x16xf32>
    %318 = arith.maximumf %316, %317 : vector<2x16xf32>
    %c0_333 = arith.constant 0 : index
    %c112 = arith.constant 112 : index
    %319 = vector.load %arg15[%c0_333, %c112] : memref<8x256xf32, #tpu.memory_space<vmem>>, vector<2x16xf32>
    tpu.vector_store %arg15[%c0_333, %c112], %318 {strides = array<i32>} : memref<8x256xf32, #tpu.memory_space<vmem>>, vector<2x16xf32>,
    %c7_334 = arith.constant 7 : index
    %c1_335 = arith.constant 1 : index
    %c0_336 = arith.constant 0 : index
    %c0_337 = arith.constant 0 : index
    %320 = vector.load %arg1[%c7_334, %c1_335, %c0_336, %c0_337] : memref<16x4x2x256xbf16, #tpu.memory_space<vmem>>, vector<1x1x2x256xbf16>
    %321 = vector.shape_cast %320 : vector<1x1x2x256xbf16> to vector<2x256xbf16>
    %322 = arith.mulf %321, %0 : vector<2x256xbf16>
    %c0_338 = arith.constant 0 : index
    %c0_339 = arith.constant 0 : index
    %323 = vector.load %arg4[%c0_338, %c0_339] : memref<256x16xbf16, #tpu.memory_space<vmem>>, vector<256x16xbf16>
    %cst_340 = arith.constant dense<0.000000e+00> : vector<2x16xf32>
    %324 = tpu.matmul %322, %323, %cst_340 {dimension_numbers = #tpu.dot_dimension_numbers<[1], [0], [0], [1], [0, 0, 1, 1], [], []>} : vector<2x256xbf16>, vector<256x16xbf16>, vector<2x16xf32> -> vector<2x16xf32>
    %c0_341 = arith.constant 0 : index
    %c0_342 = arith.constant 0 : index
    %325 = vector.load %arg5[%c0_341, %c0_342] : memref<1x16xf32, #tpu.memory_space<vmem>>, vector<1x16xf32>
    %326 = vector.broadcast %325 : vector<1x16xf32> to vector<2x16xf32>
    %327 = arith.addf %324, %326 : vector<2x16xf32>
    %cst_343 = arith.constant 0.000000e+00 : f32
    %328 = vector.broadcast %cst_343 : f32 to vector<2x16xf32>
    %329 = arith.maximumf %327, %328 : vector<2x16xf32>
    %c2_344 = arith.constant 2 : index
    %c112_345 = arith.constant 112 : index
    %330 = vector.load %arg15[%c2_344, %c112_345] : memref<8x256xf32, #tpu.memory_space<vmem>>, vector<2x16xf32>
    tpu.vector_store %arg15[%c2_344, %c112_345], %329 {strides = array<i32>} : memref<8x256xf32, #tpu.memory_space<vmem>>, vector<2x16xf32>,
    %c7_346 = arith.constant 7 : index
    %c2_347 = arith.constant 2 : index
    %c0_348 = arith.constant 0 : index
    %c0_349 = arith.constant 0 : index
    %331 = vector.load %arg1[%c7_346, %c2_347, %c0_348, %c0_349] : memref<16x4x2x256xbf16, #tpu.memory_space<vmem>>, vector<1x1x2x256xbf16>
    %332 = vector.shape_cast %331 : vector<1x1x2x256xbf16> to vector<2x256xbf16>
    %333 = arith.mulf %332, %0 : vector<2x256xbf16>
    %c0_350 = arith.constant 0 : index
    %c0_351 = arith.constant 0 : index
    %334 = vector.load %arg4[%c0_350, %c0_351] : memref<256x16xbf16, #tpu.memory_space<vmem>>, vector<256x16xbf16>
    %cst_352 = arith.constant dense<0.000000e+00> : vector<2x16xf32>
    %335 = tpu.matmul %333, %334, %cst_352 {dimension_numbers = #tpu.dot_dimension_numbers<[1], [0], [0], [1], [0, 0, 1, 1], [], []>} : vector<2x256xbf16>, vector<256x16xbf16>, vector<2x16xf32> -> vector<2x16xf32>
    %c0_353 = arith.constant 0 : index
    %c0_354 = arith.constant 0 : index
    %336 = vector.load %arg5[%c0_353, %c0_354] : memref<1x16xf32, #tpu.memory_space<vmem>>, vector<1x16xf32>
    %337 = vector.broadcast %336 : vector<1x16xf32> to vector<2x16xf32>
    %338 = arith.addf %335, %337 : vector<2x16xf32>
    %cst_355 = arith.constant 0.000000e+00 : f32
    %339 = vector.broadcast %cst_355 : f32 to vector<2x16xf32>
    %340 = arith.maximumf %338, %339 : vector<2x16xf32>
    %c4_356 = arith.constant 4 : index
    %c112_357 = arith.constant 112 : index
    %341 = vector.load %arg15[%c4_356, %c112_357] : memref<8x256xf32, #tpu.memory_space<vmem>>, vector<2x16xf32>
    tpu.vector_store %arg15[%c4_356, %c112_357], %340 {strides = array<i32>} : memref<8x256xf32, #tpu.memory_space<vmem>>, vector<2x16xf32>,
    %c7_358 = arith.constant 7 : index
    %c3_359 = arith.constant 3 : index
    %c0_360 = arith.constant 0 : index
    %c0_361 = arith.constant 0 : index
    %342 = vector.load %arg1[%c7_358, %c3_359, %c0_360, %c0_361] : memref<16x4x2x256xbf16, #tpu.memory_space<vmem>>, vector<1x1x2x256xbf16>
    %343 = vector.shape_cast %342 : vector<1x1x2x256xbf16> to vector<2x256xbf16>
    %344 = arith.mulf %343, %0 : vector<2x256xbf16>
    %c0_362 = arith.constant 0 : index
    %c0_363 = arith.constant 0 : index
    %345 = vector.load %arg4[%c0_362, %c0_363] : memref<256x16xbf16, #tpu.memory_space<vmem>>, vector<256x16xbf16>
    %cst_364 = arith.constant dense<0.000000e+00> : vector<2x16xf32>
    %346 = tpu.matmul %344, %345, %cst_364 {dimension_numbers = #tpu.dot_dimension_numbers<[1], [0], [0], [1], [0, 0, 1, 1], [], []>} : vector<2x256xbf16>, vector<256x16xbf16>, vector<2x16xf32> -> vector<2x16xf32>
    %c0_365 = arith.constant 0 : index
    %c0_366 = arith.constant 0 : index
    %347 = vector.load %arg5[%c0_365, %c0_366] : memref<1x16xf32, #tpu.memory_space<vmem>>, vector<1x16xf32>
    %348 = vector.broadcast %347 : vector<1x16xf32> to vector<2x16xf32>
    %349 = arith.addf %346, %348 : vector<2x16xf32>
    %cst_367 = arith.constant 0.000000e+00 : f32
    %350 = vector.broadcast %cst_367 : f32 to vector<2x16xf32>
    %351 = arith.maximumf %349, %350 : vector<2x16xf32>
    %c6_368 = arith.constant 6 : index
    %c112_369 = arith.constant 112 : index
    %352 = vector.load %arg15[%c6_368, %c112_369] : memref<8x256xf32, #tpu.memory_space<vmem>>, vector<2x16xf32>
    tpu.vector_store %arg15[%c6_368, %c112_369], %351 {strides = array<i32>} : memref<8x256xf32, #tpu.memory_space<vmem>>, vector<2x16xf32>,
    %c8 = arith.constant 8 : index
    %c0_370 = arith.constant 0 : index
    %c0_371 = arith.constant 0 : index
    %c0_372 = arith.constant 0 : index
    %353 = vector.load %arg1[%c8, %c0_370, %c0_371, %c0_372] : memref<16x4x2x256xbf16, #tpu.memory_space<vmem>>, vector<1x1x2x256xbf16>
    %354 = vector.shape_cast %353 : vector<1x1x2x256xbf16> to vector<2x256xbf16>
    %355 = arith.mulf %354, %0 : vector<2x256xbf16>
    %c0_373 = arith.constant 0 : index
    %c0_374 = arith.constant 0 : index
    %356 = vector.load %arg4[%c0_373, %c0_374] : memref<256x16xbf16, #tpu.memory_space<vmem>>, vector<256x16xbf16>
    %cst_375 = arith.constant dense<0.000000e+00> : vector<2x16xf32>
    %357 = tpu.matmul %355, %356, %cst_375 {dimension_numbers = #tpu.dot_dimension_numbers<[1], [0], [0], [1], [0, 0, 1, 1], [], []>} : vector<2x256xbf16>, vector<256x16xbf16>, vector<2x16xf32> -> vector<2x16xf32>
    %c0_376 = arith.constant 0 : index
    %c0_377 = arith.constant 0 : index
    %358 = vector.load %arg5[%c0_376, %c0_377] : memref<1x16xf32, #tpu.memory_space<vmem>>, vector<1x16xf32>
    %359 = vector.broadcast %358 : vector<1x16xf32> to vector<2x16xf32>
    %360 = arith.addf %357, %359 : vector<2x16xf32>
    %cst_378 = arith.constant 0.000000e+00 : f32
    %361 = vector.broadcast %cst_378 : f32 to vector<2x16xf32>
    %362 = arith.maximumf %360, %361 : vector<2x16xf32>
    %c0_379 = arith.constant 0 : index
    %c128 = arith.constant 128 : index
    %363 = vector.load %arg15[%c0_379, %c128] : memref<8x256xf32, #tpu.memory_space<vmem>>, vector<2x16xf32>
    tpu.vector_store %arg15[%c0_379, %c128], %362 {strides = array<i32>} : memref<8x256xf32, #tpu.memory_space<vmem>>, vector<2x16xf32>,
    %c8_380 = arith.constant 8 : index
    %c1_381 = arith.constant 1 : index
    %c0_382 = arith.constant 0 : index
    %c0_383 = arith.constant 0 : index
    %364 = vector.load %arg1[%c8_380, %c1_381, %c0_382, %c0_383] : memref<16x4x2x256xbf16, #tpu.memory_space<vmem>>, vector<1x1x2x256xbf16>
    %365 = vector.shape_cast %364 : vector<1x1x2x256xbf16> to vector<2x256xbf16>
    %366 = arith.mulf %365, %0 : vector<2x256xbf16>
    %c0_384 = arith.constant 0 : index
    %c0_385 = arith.constant 0 : index
    %367 = vector.load %arg4[%c0_384, %c0_385] : memref<256x16xbf16, #tpu.memory_space<vmem>>, vector<256x16xbf16>
    %cst_386 = arith.constant dense<0.000000e+00> : vector<2x16xf32>
    %368 = tpu.matmul %366, %367, %cst_386 {dimension_numbers = #tpu.dot_dimension_numbers<[1], [0], [0], [1], [0, 0, 1, 1], [], []>} : vector<2x256xbf16>, vector<256x16xbf16>, vector<2x16xf32> -> vector<2x16xf32>
    %c0_387 = arith.constant 0 : index
    %c0_388 = arith.constant 0 : index
    %369 = vector.load %arg5[%c0_387, %c0_388] : memref<1x16xf32, #tpu.memory_space<vmem>>, vector<1x16xf32>
    %370 = vector.broadcast %369 : vector<1x16xf32> to vector<2x16xf32>
    %371 = arith.addf %368, %370 : vector<2x16xf32>
    %cst_389 = arith.constant 0.000000e+00 : f32
    %372 = vector.broadcast %cst_389 : f32 to vector<2x16xf32>
    %373 = arith.maximumf %371, %372 : vector<2x16xf32>
    %c2_390 = arith.constant 2 : index
    %c128_391 = arith.constant 128 : index
    %374 = vector.load %arg15[%c2_390, %c128_391] : memref<8x256xf32, #tpu.memory_space<vmem>>, vector<2x16xf32>
    tpu.vector_store %arg15[%c2_390, %c128_391], %373 {strides = array<i32>} : memref<8x256xf32, #tpu.memory_space<vmem>>, vector<2x16xf32>,
    %c8_392 = arith.constant 8 : index
    %c2_393 = arith.constant 2 : index
    %c0_394 = arith.constant 0 : index
    %c0_395 = arith.constant 0 : index
    %375 = vector.load %arg1[%c8_392, %c2_393, %c0_394, %c0_395] : memref<16x4x2x256xbf16, #tpu.memory_space<vmem>>, vector<1x1x2x256xbf16>
    %376 = vector.shape_cast %375 : vector<1x1x2x256xbf16> to vector<2x256xbf16>
    %377 = arith.mulf %376, %0 : vector<2x256xbf16>
    %c0_396 = arith.constant 0 : index
    %c0_397 = arith.constant 0 : index
    %378 = vector.load %arg4[%c0_396, %c0_397] : memref<256x16xbf16, #tpu.memory_space<vmem>>, vector<256x16xbf16>
    %cst_398 = arith.constant dense<0.000000e+00> : vector<2x16xf32>
    %379 = tpu.matmul %377, %378, %cst_398 {dimension_numbers = #tpu.dot_dimension_numbers<[1], [0], [0], [1], [0, 0, 1, 1], [], []>} : vector<2x256xbf16>, vector<256x16xbf16>, vector<2x16xf32> -> vector<2x16xf32>
    %c0_399 = arith.constant 0 : index
    %c0_400 = arith.constant 0 : index
    %380 = vector.load %arg5[%c0_399, %c0_400] : memref<1x16xf32, #tpu.memory_space<vmem>>, vector<1x16xf32>
    %381 = vector.broadcast %380 : vector<1x16xf32> to vector<2x16xf32>
    %382 = arith.addf %379, %381 : vector<2x16xf32>
    %cst_401 = arith.constant 0.000000e+00 : f32
    %383 = vector.broadcast %cst_401 : f32 to vector<2x16xf32>
    %384 = arith.maximumf %382, %383 : vector<2x16xf32>
    %c4_402 = arith.constant 4 : index
    %c128_403 = arith.constant 128 : index
    %385 = vector.load %arg15[%c4_402, %c128_403] : memref<8x256xf32, #tpu.memory_space<vmem>>, vector<2x16xf32>
    tpu.vector_store %arg15[%c4_402, %c128_403], %384 {strides = array<i32>} : memref<8x256xf32, #tpu.memory_space<vmem>>, vector<2x16xf32>,
    %c8_404 = arith.constant 8 : index
    %c3_405 = arith.constant 3 : index
    %c0_406 = arith.constant 0 : index
    %c0_407 = arith.constant 0 : index
    %386 = vector.load %arg1[%c8_404, %c3_405, %c0_406, %c0_407] : memref<16x4x2x256xbf16, #tpu.memory_space<vmem>>, vector<1x1x2x256xbf16>
    %387 = vector.shape_cast %386 : vector<1x1x2x256xbf16> to vector<2x256xbf16>
    %388 = arith.mulf %387, %0 : vector<2x256xbf16>
    %c0_408 = arith.constant 0 : index
    %c0_409 = arith.constant 0 : index
    %389 = vector.load %arg4[%c0_408, %c0_409] : memref<256x16xbf16, #tpu.memory_space<vmem>>, vector<256x16xbf16>
    %cst_410 = arith.constant dense<0.000000e+00> : vector<2x16xf32>
    %390 = tpu.matmul %388, %389, %cst_410 {dimension_numbers = #tpu.dot_dimension_numbers<[1], [0], [0], [1], [0, 0, 1, 1], [], []>} : vector<2x256xbf16>, vector<256x16xbf16>, vector<2x16xf32> -> vector<2x16xf32>
    %c0_411 = arith.constant 0 : index
    %c0_412 = arith.constant 0 : index
    %391 = vector.load %arg5[%c0_411, %c0_412] : memref<1x16xf32, #tpu.memory_space<vmem>>, vector<1x16xf32>
    %392 = vector.broadcast %391 : vector<1x16xf32> to vector<2x16xf32>
    %393 = arith.addf %390, %392 : vector<2x16xf32>
    %cst_413 = arith.constant 0.000000e+00 : f32
    %394 = vector.broadcast %cst_413 : f32 to vector<2x16xf32>
    %395 = arith.maximumf %393, %394 : vector<2x16xf32>
    %c6_414 = arith.constant 6 : index
    %c128_415 = arith.constant 128 : index
    %396 = vector.load %arg15[%c6_414, %c128_415] : memref<8x256xf32, #tpu.memory_space<vmem>>, vector<2x16xf32>
    tpu.vector_store %arg15[%c6_414, %c128_415], %395 {strides = array<i32>} : memref<8x256xf32, #tpu.memory_space<vmem>>, vector<2x16xf32>,
    %c9 = arith.constant 9 : index
    %c0_416 = arith.constant 0 : index
    %c0_417 = arith.constant 0 : index
    %c0_418 = arith.constant 0 : index
    %397 = vector.load %arg1[%c9, %c0_416, %c0_417, %c0_418] : memref<16x4x2x256xbf16, #tpu.memory_space<vmem>>, vector<1x1x2x256xbf16>
    %398 = vector.shape_cast %397 : vector<1x1x2x256xbf16> to vector<2x256xbf16>
    %399 = arith.mulf %398, %0 : vector<2x256xbf16>
    %c0_419 = arith.constant 0 : index
    %c0_420 = arith.constant 0 : index
    %400 = vector.load %arg4[%c0_419, %c0_420] : memref<256x16xbf16, #tpu.memory_space<vmem>>, vector<256x16xbf16>
    %cst_421 = arith.constant dense<0.000000e+00> : vector<2x16xf32>
    %401 = tpu.matmul %399, %400, %cst_421 {dimension_numbers = #tpu.dot_dimension_numbers<[1], [0], [0], [1], [0, 0, 1, 1], [], []>} : vector<2x256xbf16>, vector<256x16xbf16>, vector<2x16xf32> -> vector<2x16xf32>
    %c0_422 = arith.constant 0 : index
    %c0_423 = arith.constant 0 : index
    %402 = vector.load %arg5[%c0_422, %c0_423] : memref<1x16xf32, #tpu.memory_space<vmem>>, vector<1x16xf32>
    %403 = vector.broadcast %402 : vector<1x16xf32> to vector<2x16xf32>
    %404 = arith.addf %401, %403 : vector<2x16xf32>
    %cst_424 = arith.constant 0.000000e+00 : f32
    %405 = vector.broadcast %cst_424 : f32 to vector<2x16xf32>
    %406 = arith.maximumf %404, %405 : vector<2x16xf32>
    %c0_425 = arith.constant 0 : index
    %c144 = arith.constant 144 : index
    %407 = vector.load %arg15[%c0_425, %c144] : memref<8x256xf32, #tpu.memory_space<vmem>>, vector<2x16xf32>
    tpu.vector_store %arg15[%c0_425, %c144], %406 {strides = array<i32>} : memref<8x256xf32, #tpu.memory_space<vmem>>, vector<2x16xf32>,
    %c9_426 = arith.constant 9 : index
    %c1_427 = arith.constant 1 : index
    %c0_428 = arith.constant 0 : index
    %c0_429 = arith.constant 0 : index
    %408 = vector.load %arg1[%c9_426, %c1_427, %c0_428, %c0_429] : memref<16x4x2x256xbf16, #tpu.memory_space<vmem>>, vector<1x1x2x256xbf16>
    %409 = vector.shape_cast %408 : vector<1x1x2x256xbf16> to vector<2x256xbf16>
    %410 = arith.mulf %409, %0 : vector<2x256xbf16>
    %c0_430 = arith.constant 0 : index
    %c0_431 = arith.constant 0 : index
    %411 = vector.load %arg4[%c0_430, %c0_431] : memref<256x16xbf16, #tpu.memory_space<vmem>>, vector<256x16xbf16>
    %cst_432 = arith.constant dense<0.000000e+00> : vector<2x16xf32>
    %412 = tpu.matmul %410, %411, %cst_432 {dimension_numbers = #tpu.dot_dimension_numbers<[1], [0], [0], [1], [0, 0, 1, 1], [], []>} : vector<2x256xbf16>, vector<256x16xbf16>, vector<2x16xf32> -> vector<2x16xf32>
    %c0_433 = arith.constant 0 : index
    %c0_434 = arith.constant 0 : index
    %413 = vector.load %arg5[%c0_433, %c0_434] : memref<1x16xf32, #tpu.memory_space<vmem>>, vector<1x16xf32>
    %414 = vector.broadcast %413 : vector<1x16xf32> to vector<2x16xf32>
    %415 = arith.addf %412, %414 : vector<2x16xf32>
    %cst_435 = arith.constant 0.000000e+00 : f32
    %416 = vector.broadcast %cst_435 : f32 to vector<2x16xf32>
    %417 = arith.maximumf %415, %416 : vector<2x16xf32>
    %c2_436 = arith.constant 2 : index
    %c144_437 = arith.constant 144 : index
    %418 = vector.load %arg15[%c2_436, %c144_437] : memref<8x256xf32, #tpu.memory_space<vmem>>, vector<2x16xf32>
    tpu.vector_store %arg15[%c2_436, %c144_437], %417 {strides = array<i32>} : memref<8x256xf32, #tpu.memory_space<vmem>>, vector<2x16xf32>,
    %c9_438 = arith.constant 9 : index
    %c2_439 = arith.constant 2 : index
    %c0_440 = arith.constant 0 : index
    %c0_441 = arith.constant 0 : index
    %419 = vector.load %arg1[%c9_438, %c2_439, %c0_440, %c0_441] : memref<16x4x2x256xbf16, #tpu.memory_space<vmem>>, vector<1x1x2x256xbf16>
    %420 = vector.shape_cast %419 : vector<1x1x2x256xbf16> to vector<2x256xbf16>
    %421 = arith.mulf %420, %0 : vector<2x256xbf16>
    %c0_442 = arith.constant 0 : index
    %c0_443 = arith.constant 0 : index
    %422 = vector.load %arg4[%c0_442, %c0_443] : memref<256x16xbf16, #tpu.memory_space<vmem>>, vector<256x16xbf16>
    %cst_444 = arith.constant dense<0.000000e+00> : vector<2x16xf32>
    %423 = tpu.matmul %421, %422, %cst_444 {dimension_numbers = #tpu.dot_dimension_numbers<[1], [0], [0], [1], [0, 0, 1, 1], [], []>} : vector<2x256xbf16>, vector<256x16xbf16>, vector<2x16xf32> -> vector<2x16xf32>
    %c0_445 = arith.constant 0 : index
    %c0_446 = arith.constant 0 : index
    %424 = vector.load %arg5[%c0_445, %c0_446] : memref<1x16xf32, #tpu.memory_space<vmem>>, vector<1x16xf32>
    %425 = vector.broadcast %424 : vector<1x16xf32> to vector<2x16xf32>
    %426 = arith.addf %423, %425 : vector<2x16xf32>
    %cst_447 = arith.constant 0.000000e+00 : f32
    %427 = vector.broadcast %cst_447 : f32 to vector<2x16xf32>
    %428 = arith.maximumf %426, %427 : vector<2x16xf32>
    %c4_448 = arith.constant 4 : index
    %c144_449 = arith.constant 144 : index
    %429 = vector.load %arg15[%c4_448, %c144_449] : memref<8x256xf32, #tpu.memory_space<vmem>>, vector<2x16xf32>
    tpu.vector_store %arg15[%c4_448, %c144_449], %428 {strides = array<i32>} : memref<8x256xf32, #tpu.memory_space<vmem>>, vector<2x16xf32>,
    %c9_450 = arith.constant 9 : index
    %c3_451 = arith.constant 3 : index
    %c0_452 = arith.constant 0 : index
    %c0_453 = arith.constant 0 : index
    %430 = vector.load %arg1[%c9_450, %c3_451, %c0_452, %c0_453] : memref<16x4x2x256xbf16, #tpu.memory_space<vmem>>, vector<1x1x2x256xbf16>
    %431 = vector.shape_cast %430 : vector<1x1x2x256xbf16> to vector<2x256xbf16>
    %432 = arith.mulf %431, %0 : vector<2x256xbf16>
    %c0_454 = arith.constant 0 : index
    %c0_455 = arith.constant 0 : index
    %433 = vector.load %arg4[%c0_454, %c0_455] : memref<256x16xbf16, #tpu.memory_space<vmem>>, vector<256x16xbf16>
    %cst_456 = arith.constant dense<0.000000e+00> : vector<2x16xf32>
    %434 = tpu.matmul %432, %433, %cst_456 {dimension_numbers = #tpu.dot_dimension_numbers<[1], [0], [0], [1], [0, 0, 1, 1], [], []>} : vector<2x256xbf16>, vector<256x16xbf16>, vector<2x16xf32> -> vector<2x16xf32>
    %c0_457 = arith.constant 0 : index
    %c0_458 = arith.constant 0 : index
    %435 = vector.load %arg5[%c0_457, %c0_458] : memref<1x16xf32, #tpu.memory_space<vmem>>, vector<1x16xf32>
    %436 = vector.broadcast %435 : vector<1x16xf32> to vector<2x16xf32>
    %437 = arith.addf %434, %436 : vector<2x16xf32>
    %cst_459 = arith.constant 0.000000e+00 : f32
    %438 = vector.broadcast %cst_459 : f32 to vector<2x16xf32>
    %439 = arith.maximumf %437, %438 : vector<2x16xf32>
    %c6_460 = arith.constant 6 : index
    %c144_461 = arith.constant 144 : index
    %440 = vector.load %arg15[%c6_460, %c144_461] : memref<8x256xf32, #tpu.memory_space<vmem>>, vector<2x16xf32>
    tpu.vector_store %arg15[%c6_460, %c144_461], %439 {strides = array<i32>} : memref<8x256xf32, #tpu.memory_space<vmem>>, vector<2x16xf32>,
    %c10 = arith.constant 10 : index
    %c0_462 = arith.constant 0 : index
    %c0_463 = arith.constant 0 : index
    %c0_464 = arith.constant 0 : index
    %441 = vector.load %arg1[%c10, %c0_462, %c0_463, %c0_464] : memref<16x4x2x256xbf16, #tpu.memory_space<vmem>>, vector<1x1x2x256xbf16>
    %442 = vector.shape_cast %441 : vector<1x1x2x256xbf16> to vector<2x256xbf16>
    %443 = arith.mulf %442, %0 : vector<2x256xbf16>
    %c0_465 = arith.constant 0 : index
    %c0_466 = arith.constant 0 : index
    %444 = vector.load %arg4[%c0_465, %c0_466] : memref<256x16xbf16, #tpu.memory_space<vmem>>, vector<256x16xbf16>
    %cst_467 = arith.constant dense<0.000000e+00> : vector<2x16xf32>
    %445 = tpu.matmul %443, %444, %cst_467 {dimension_numbers = #tpu.dot_dimension_numbers<[1], [0], [0], [1], [0, 0, 1, 1], [], []>} : vector<2x256xbf16>, vector<256x16xbf16>, vector<2x16xf32> -> vector<2x16xf32>
    %c0_468 = arith.constant 0 : index
    %c0_469 = arith.constant 0 : index
    %446 = vector.load %arg5[%c0_468, %c0_469] : memref<1x16xf32, #tpu.memory_space<vmem>>, vector<1x16xf32>
    %447 = vector.broadcast %446 : vector<1x16xf32> to vector<2x16xf32>
    %448 = arith.addf %445, %447 : vector<2x16xf32>
    %cst_470 = arith.constant 0.000000e+00 : f32
    %449 = vector.broadcast %cst_470 : f32 to vector<2x16xf32>
    %450 = arith.maximumf %448, %449 : vector<2x16xf32>
    %c0_471 = arith.constant 0 : index
    %c160 = arith.constant 160 : index
    %451 = vector.load %arg15[%c0_471, %c160] : memref<8x256xf32, #tpu.memory_space<vmem>>, vector<2x16xf32>
    tpu.vector_store %arg15[%c0_471, %c160], %450 {strides = array<i32>} : memref<8x256xf32, #tpu.memory_space<vmem>>, vector<2x16xf32>,
    %c10_472 = arith.constant 10 : index
    %c1_473 = arith.constant 1 : index
    %c0_474 = arith.constant 0 : index
    %c0_475 = arith.constant 0 : index
    %452 = vector.load %arg1[%c10_472, %c1_473, %c0_474, %c0_475] : memref<16x4x2x256xbf16, #tpu.memory_space<vmem>>, vector<1x1x2x256xbf16>
    %453 = vector.shape_cast %452 : vector<1x1x2x256xbf16> to vector<2x256xbf16>
    %454 = arith.mulf %453, %0 : vector<2x256xbf16>
    %c0_476 = arith.constant 0 : index
    %c0_477 = arith.constant 0 : index
    %455 = vector.load %arg4[%c0_476, %c0_477] : memref<256x16xbf16, #tpu.memory_space<vmem>>, vector<256x16xbf16>
    %cst_478 = arith.constant dense<0.000000e+00> : vector<2x16xf32>
    %456 = tpu.matmul %454, %455, %cst_478 {dimension_numbers = #tpu.dot_dimension_numbers<[1], [0], [0], [1], [0, 0, 1, 1], [], []>} : vector<2x256xbf16>, vector<256x16xbf16>, vector<2x16xf32> -> vector<2x16xf32>
    %c0_479 = arith.constant 0 : index
    %c0_480 = arith.constant 0 : index
    %457 = vector.load %arg5[%c0_479, %c0_480] : memref<1x16xf32, #tpu.memory_space<vmem>>, vector<1x16xf32>
    %458 = vector.broadcast %457 : vector<1x16xf32> to vector<2x16xf32>
    %459 = arith.addf %456, %458 : vector<2x16xf32>
    %cst_481 = arith.constant 0.000000e+00 : f32
    %460 = vector.broadcast %cst_481 : f32 to vector<2x16xf32>
    %461 = arith.maximumf %459, %460 : vector<2x16xf32>
    %c2_482 = arith.constant 2 : index
    %c160_483 = arith.constant 160 : index
    %462 = vector.load %arg15[%c2_482, %c160_483] : memref<8x256xf32, #tpu.memory_space<vmem>>, vector<2x16xf32>
    tpu.vector_store %arg15[%c2_482, %c160_483], %461 {strides = array<i32>} : memref<8x256xf32, #tpu.memory_space<vmem>>, vector<2x16xf32>,
    %c10_484 = arith.constant 10 : index
    %c2_485 = arith.constant 2 : index
    %c0_486 = arith.constant 0 : index
    %c0_487 = arith.constant 0 : index
    %463 = vector.load %arg1[%c10_484, %c2_485, %c0_486, %c0_487] : memref<16x4x2x256xbf16, #tpu.memory_space<vmem>>, vector<1x1x2x256xbf16>
    %464 = vector.shape_cast %463 : vector<1x1x2x256xbf16> to vector<2x256xbf16>
    %465 = arith.mulf %464, %0 : vector<2x256xbf16>
    %c0_488 = arith.constant 0 : index
    %c0_489 = arith.constant 0 : index
    %466 = vector.load %arg4[%c0_488, %c0_489] : memref<256x16xbf16, #tpu.memory_space<vmem>>, vector<256x16xbf16>
    %cst_490 = arith.constant dense<0.000000e+00> : vector<2x16xf32>
    %467 = tpu.matmul %465, %466, %cst_490 {dimension_numbers = #tpu.dot_dimension_numbers<[1], [0], [0], [1], [0, 0, 1, 1], [], []>} : vector<2x256xbf16>, vector<256x16xbf16>, vector<2x16xf32> -> vector<2x16xf32>
    %c0_491 = arith.constant 0 : index
    %c0_492 = arith.constant 0 : index
    %468 = vector.load %arg5[%c0_491, %c0_492] : memref<1x16xf32, #tpu.memory_space<vmem>>, vector<1x16xf32>
    %469 = vector.broadcast %468 : vector<1x16xf32> to vector<2x16xf32>
    %470 = arith.addf %467, %469 : vector<2x16xf32>
    %cst_493 = arith.constant 0.000000e+00 : f32
    %471 = vector.broadcast %cst_493 : f32 to vector<2x16xf32>
    %472 = arith.maximumf %470, %471 : vector<2x16xf32>
    %c4_494 = arith.constant 4 : index
    %c160_495 = arith.constant 160 : index
    %473 = vector.load %arg15[%c4_494, %c160_495] : memref<8x256xf32, #tpu.memory_space<vmem>>, vector<2x16xf32>
    tpu.vector_store %arg15[%c4_494, %c160_495], %472 {strides = array<i32>} : memref<8x256xf32, #tpu.memory_space<vmem>>, vector<2x16xf32>,
    %c10_496 = arith.constant 10 : index
    %c3_497 = arith.constant 3 : index
    %c0_498 = arith.constant 0 : index
    %c0_499 = arith.constant 0 : index
    %474 = vector.load %arg1[%c10_496, %c3_497, %c0_498, %c0_499] : memref<16x4x2x256xbf16, #tpu.memory_space<vmem>>, vector<1x1x2x256xbf16>
    %475 = vector.shape_cast %474 : vector<1x1x2x256xbf16> to vector<2x256xbf16>
    %476 = arith.mulf %475, %0 : vector<2x256xbf16>
    %c0_500 = arith.constant 0 : index
    %c0_501 = arith.constant 0 : index
    %477 = vector.load %arg4[%c0_500, %c0_501] : memref<256x16xbf16, #tpu.memory_space<vmem>>, vector<256x16xbf16>
    %cst_502 = arith.constant dense<0.000000e+00> : vector<2x16xf32>
    %478 = tpu.matmul %476, %477, %cst_502 {dimension_numbers = #tpu.dot_dimension_numbers<[1], [0], [0], [1], [0, 0, 1, 1], [], []>} : vector<2x256xbf16>, vector<256x16xbf16>, vector<2x16xf32> -> vector<2x16xf32>
    %c0_503 = arith.constant 0 : index
    %c0_504 = arith.constant 0 : index
    %479 = vector.load %arg5[%c0_503, %c0_504] : memref<1x16xf32, #tpu.memory_space<vmem>>, vector<1x16xf32>
    %480 = vector.broadcast %479 : vector<1x16xf32> to vector<2x16xf32>
    %481 = arith.addf %478, %480 : vector<2x16xf32>
    %cst_505 = arith.constant 0.000000e+00 : f32
    %482 = vector.broadcast %cst_505 : f32 to vector<2x16xf32>
    %483 = arith.maximumf %481, %482 : vector<2x16xf32>
    %c6_506 = arith.constant 6 : index
    %c160_507 = arith.constant 160 : index
    %484 = vector.load %arg15[%c6_506, %c160_507] : memref<8x256xf32, #tpu.memory_space<vmem>>, vector<2x16xf32>
    tpu.vector_store %arg15[%c6_506, %c160_507], %483 {strides = array<i32>} : memref<8x256xf32, #tpu.memory_space<vmem>>, vector<2x16xf32>,
    %c11 = arith.constant 11 : index
    %c0_508 = arith.constant 0 : index
    %c0_509 = arith.constant 0 : index
    %c0_510 = arith.constant 0 : index
    %485 = vector.load %arg1[%c11, %c0_508, %c0_509, %c0_510] : memref<16x4x2x256xbf16, #tpu.memory_space<vmem>>, vector<1x1x2x256xbf16>
    %486 = vector.shape_cast %485 : vector<1x1x2x256xbf16> to vector<2x256xbf16>
    %487 = arith.mulf %486, %0 : vector<2x256xbf16>
    %c0_511 = arith.constant 0 : index
    %c0_512 = arith.constant 0 : index
    %488 = vector.load %arg4[%c0_511, %c0_512] : memref<256x16xbf16, #tpu.memory_space<vmem>>, vector<256x16xbf16>
    %cst_513 = arith.constant dense<0.000000e+00> : vector<2x16xf32>
    %489 = tpu.matmul %487, %488, %cst_513 {dimension_numbers = #tpu.dot_dimension_numbers<[1], [0], [0], [1], [0, 0, 1, 1], [], []>} : vector<2x256xbf16>, vector<256x16xbf16>, vector<2x16xf32> -> vector<2x16xf32>
    %c0_514 = arith.constant 0 : index
    %c0_515 = arith.constant 0 : index
    %490 = vector.load %arg5[%c0_514, %c0_515] : memref<1x16xf32, #tpu.memory_space<vmem>>, vector<1x16xf32>
    %491 = vector.broadcast %490 : vector<1x16xf32> to vector<2x16xf32>
    %492 = arith.addf %489, %491 : vector<2x16xf32>
    %cst_516 = arith.constant 0.000000e+00 : f32
    %493 = vector.broadcast %cst_516 : f32 to vector<2x16xf32>
    %494 = arith.maximumf %492, %493 : vector<2x16xf32>
    %c0_517 = arith.constant 0 : index
    %c176 = arith.constant 176 : index
    %495 = vector.load %arg15[%c0_517, %c176] : memref<8x256xf32, #tpu.memory_space<vmem>>, vector<2x16xf32>
    tpu.vector_store %arg15[%c0_517, %c176], %494 {strides = array<i32>} : memref<8x256xf32, #tpu.memory_space<vmem>>, vector<2x16xf32>,
    %c11_518 = arith.constant 11 : index
    %c1_519 = arith.constant 1 : index
    %c0_520 = arith.constant 0 : index
    %c0_521 = arith.constant 0 : index
    %496 = vector.load %arg1[%c11_518, %c1_519, %c0_520, %c0_521] : memref<16x4x2x256xbf16, #tpu.memory_space<vmem>>, vector<1x1x2x256xbf16>
    %497 = vector.shape_cast %496 : vector<1x1x2x256xbf16> to vector<2x256xbf16>
    %498 = arith.mulf %497, %0 : vector<2x256xbf16>
    %c0_522 = arith.constant 0 : index
    %c0_523 = arith.constant 0 : index
    %499 = vector.load %arg4[%c0_522, %c0_523] : memref<256x16xbf16, #tpu.memory_space<vmem>>, vector<256x16xbf16>
    %cst_524 = arith.constant dense<0.000000e+00> : vector<2x16xf32>
    %500 = tpu.matmul %498, %499, %cst_524 {dimension_numbers = #tpu.dot_dimension_numbers<[1], [0], [0], [1], [0, 0, 1, 1], [], []>} : vector<2x256xbf16>, vector<256x16xbf16>, vector<2x16xf32> -> vector<2x16xf32>
    %c0_525 = arith.constant 0 : index
    %c0_526 = arith.constant 0 : index
    %501 = vector.load %arg5[%c0_525, %c0_526] : memref<1x16xf32, #tpu.memory_space<vmem>>, vector<1x16xf32>
    %502 = vector.broadcast %501 : vector<1x16xf32> to vector<2x16xf32>
    %503 = arith.addf %500, %502 : vector<2x16xf32>
    %cst_527 = arith.constant 0.000000e+00 : f32
    %504 = vector.broadcast %cst_527 : f32 to vector<2x16xf32>
    %505 = arith.maximumf %503, %504 : vector<2x16xf32>
    %c2_528 = arith.constant 2 : index
    %c176_529 = arith.constant 176 : index
    %506 = vector.load %arg15[%c2_528, %c176_529] : memref<8x256xf32, #tpu.memory_space<vmem>>, vector<2x16xf32>
    tpu.vector_store %arg15[%c2_528, %c176_529], %505 {strides = array<i32>} : memref<8x256xf32, #tpu.memory_space<vmem>>, vector<2x16xf32>,
    %c11_530 = arith.constant 11 : index
    %c2_531 = arith.constant 2 : index
    %c0_532 = arith.constant 0 : index
    %c0_533 = arith.constant 0 : index
    %507 = vector.load %arg1[%c11_530, %c2_531, %c0_532, %c0_533] : memref<16x4x2x256xbf16, #tpu.memory_space<vmem>>, vector<1x1x2x256xbf16>
    %508 = vector.shape_cast %507 : vector<1x1x2x256xbf16> to vector<2x256xbf16>
    %509 = arith.mulf %508, %0 : vector<2x256xbf16>
    %c0_534 = arith.constant 0 : index
    %c0_535 = arith.constant 0 : index
    %510 = vector.load %arg4[%c0_534, %c0_535] : memref<256x16xbf16, #tpu.memory_space<vmem>>, vector<256x16xbf16>
    %cst_536 = arith.constant dense<0.000000e+00> : vector<2x16xf32>
    %511 = tpu.matmul %509, %510, %cst_536 {dimension_numbers = #tpu.dot_dimension_numbers<[1], [0], [0], [1], [0, 0, 1, 1], [], []>} : vector<2x256xbf16>, vector<256x16xbf16>, vector<2x16xf32> -> vector<2x16xf32>
    %c0_537 = arith.constant 0 : index
    %c0_538 = arith.constant 0 : index
    %512 = vector.load %arg5[%c0_537, %c0_538] : memref<1x16xf32, #tpu.memory_space<vmem>>, vector<1x16xf32>
    %513 = vector.broadcast %512 : vector<1x16xf32> to vector<2x16xf32>
    %514 = arith.addf %511, %513 : vector<2x16xf32>
    %cst_539 = arith.constant 0.000000e+00 : f32
    %515 = vector.broadcast %cst_539 : f32 to vector<2x16xf32>
    %516 = arith.maximumf %514, %515 : vector<2x16xf32>
    %c4_540 = arith.constant 4 : index
    %c176_541 = arith.constant 176 : index
    %517 = vector.load %arg15[%c4_540, %c176_541] : memref<8x256xf32, #tpu.memory_space<vmem>>, vector<2x16xf32>
    tpu.vector_store %arg15[%c4_540, %c176_541], %516 {strides = array<i32>} : memref<8x256xf32, #tpu.memory_space<vmem>>, vector<2x16xf32>,
    %c11_542 = arith.constant 11 : index
    %c3_543 = arith.constant 3 : index
    %c0_544 = arith.constant 0 : index
    %c0_545 = arith.constant 0 : index
    %518 = vector.load %arg1[%c11_542, %c3_543, %c0_544, %c0_545] : memref<16x4x2x256xbf16, #tpu.memory_space<vmem>>, vector<1x1x2x256xbf16>
    %519 = vector.shape_cast %518 : vector<1x1x2x256xbf16> to vector<2x256xbf16>
    %520 = arith.mulf %519, %0 : vector<2x256xbf16>
    %c0_546 = arith.constant 0 : index
    %c0_547 = arith.constant 0 : index
    %521 = vector.load %arg4[%c0_546, %c0_547] : memref<256x16xbf16, #tpu.memory_space<vmem>>, vector<256x16xbf16>
    %cst_548 = arith.constant dense<0.000000e+00> : vector<2x16xf32>
    %522 = tpu.matmul %520, %521, %cst_548 {dimension_numbers = #tpu.dot_dimension_numbers<[1], [0], [0], [1], [0, 0, 1, 1], [], []>} : vector<2x256xbf16>, vector<256x16xbf16>, vector<2x16xf32> -> vector<2x16xf32>
    %c0_549 = arith.constant 0 : index
    %c0_550 = arith.constant 0 : index
    %523 = vector.load %arg5[%c0_549, %c0_550] : memref<1x16xf32, #tpu.memory_space<vmem>>, vector<1x16xf32>
    %524 = vector.broadcast %523 : vector<1x16xf32> to vector<2x16xf32>
    %525 = arith.addf %522, %524 : vector<2x16xf32>
    %cst_551 = arith.constant 0.000000e+00 : f32
    %526 = vector.broadcast %cst_551 : f32 to vector<2x16xf32>
    %527 = arith.maximumf %525, %526 : vector<2x16xf32>
    %c6_552 = arith.constant 6 : index
    %c176_553 = arith.constant 176 : index
    %528 = vector.load %arg15[%c6_552, %c176_553] : memref<8x256xf32, #tpu.memory_space<vmem>>, vector<2x16xf32>
    tpu.vector_store %arg15[%c6_552, %c176_553], %527 {strides = array<i32>} : memref<8x256xf32, #tpu.memory_space<vmem>>, vector<2x16xf32>,
    %c12 = arith.constant 12 : index
    %c0_554 = arith.constant 0 : index
    %c0_555 = arith.constant 0 : index
    %c0_556 = arith.constant 0 : index
    %529 = vector.load %arg1[%c12, %c0_554, %c0_555, %c0_556] : memref<16x4x2x256xbf16, #tpu.memory_space<vmem>>, vector<1x1x2x256xbf16>
    %530 = vector.shape_cast %529 : vector<1x1x2x256xbf16> to vector<2x256xbf16>
    %531 = arith.mulf %530, %0 : vector<2x256xbf16>
    %c0_557 = arith.constant 0 : index
    %c0_558 = arith.constant 0 : index
    %532 = vector.load %arg4[%c0_557, %c0_558] : memref<256x16xbf16, #tpu.memory_space<vmem>>, vector<256x16xbf16>
    %cst_559 = arith.constant dense<0.000000e+00> : vector<2x16xf32>
    %533 = tpu.matmul %531, %532, %cst_559 {dimension_numbers = #tpu.dot_dimension_numbers<[1], [0], [0], [1], [0, 0, 1, 1], [], []>} : vector<2x256xbf16>, vector<256x16xbf16>, vector<2x16xf32> -> vector<2x16xf32>
    %c0_560 = arith.constant 0 : index
    %c0_561 = arith.constant 0 : index
    %534 = vector.load %arg5[%c0_560, %c0_561] : memref<1x16xf32, #tpu.memory_space<vmem>>, vector<1x16xf32>
    %535 = vector.broadcast %534 : vector<1x16xf32> to vector<2x16xf32>
    %536 = arith.addf %533, %535 : vector<2x16xf32>
    %cst_562 = arith.constant 0.000000e+00 : f32
    %537 = vector.broadcast %cst_562 : f32 to vector<2x16xf32>
    %538 = arith.maximumf %536, %537 : vector<2x16xf32>
    %c0_563 = arith.constant 0 : index
    %c192 = arith.constant 192 : index
    %539 = vector.load %arg15[%c0_563, %c192] : memref<8x256xf32, #tpu.memory_space<vmem>>, vector<2x16xf32>
    tpu.vector_store %arg15[%c0_563, %c192], %538 {strides = array<i32>} : memref<8x256xf32, #tpu.memory_space<vmem>>, vector<2x16xf32>,
    %c12_564 = arith.constant 12 : index
    %c1_565 = arith.constant 1 : index
    %c0_566 = arith.constant 0 : index
    %c0_567 = arith.constant 0 : index
    %540 = vector.load %arg1[%c12_564, %c1_565, %c0_566, %c0_567] : memref<16x4x2x256xbf16, #tpu.memory_space<vmem>>, vector<1x1x2x256xbf16>
    %541 = vector.shape_cast %540 : vector<1x1x2x256xbf16> to vector<2x256xbf16>
    %542 = arith.mulf %541, %0 : vector<2x256xbf16>
    %c0_568 = arith.constant 0 : index
    %c0_569 = arith.constant 0 : index
    %543 = vector.load %arg4[%c0_568, %c0_569] : memref<256x16xbf16, #tpu.memory_space<vmem>>, vector<256x16xbf16>
    %cst_570 = arith.constant dense<0.000000e+00> : vector<2x16xf32>
    %544 = tpu.matmul %542, %543, %cst_570 {dimension_numbers = #tpu.dot_dimension_numbers<[1], [0], [0], [1], [0, 0, 1, 1], [], []>} : vector<2x256xbf16>, vector<256x16xbf16>, vector<2x16xf32> -> vector<2x16xf32>
    %c0_571 = arith.constant 0 : index
    %c0_572 = arith.constant 0 : index
    %545 = vector.load %arg5[%c0_571, %c0_572] : memref<1x16xf32, #tpu.memory_space<vmem>>, vector<1x16xf32>
    %546 = vector.broadcast %545 : vector<1x16xf32> to vector<2x16xf32>
    %547 = arith.addf %544, %546 : vector<2x16xf32>
    %cst_573 = arith.constant 0.000000e+00 : f32
    %548 = vector.broadcast %cst_573 : f32 to vector<2x16xf32>
    %549 = arith.maximumf %547, %548 : vector<2x16xf32>
    %c2_574 = arith.constant 2 : index
    %c192_575 = arith.constant 192 : index
    %550 = vector.load %arg15[%c2_574, %c192_575] : memref<8x256xf32, #tpu.memory_space<vmem>>, vector<2x16xf32>
    tpu.vector_store %arg15[%c2_574, %c192_575], %549 {strides = array<i32>} : memref<8x256xf32, #tpu.memory_space<vmem>>, vector<2x16xf32>,
    %c12_576 = arith.constant 12 : index
    %c2_577 = arith.constant 2 : index
    %c0_578 = arith.constant 0 : index
    %c0_579 = arith.constant 0 : index
    %551 = vector.load %arg1[%c12_576, %c2_577, %c0_578, %c0_579] : memref<16x4x2x256xbf16, #tpu.memory_space<vmem>>, vector<1x1x2x256xbf16>
    %552 = vector.shape_cast %551 : vector<1x1x2x256xbf16> to vector<2x256xbf16>
    %553 = arith.mulf %552, %0 : vector<2x256xbf16>
    %c0_580 = arith.constant 0 : index
    %c0_581 = arith.constant 0 : index
    %554 = vector.load %arg4[%c0_580, %c0_581] : memref<256x16xbf16, #tpu.memory_space<vmem>>, vector<256x16xbf16>
    %cst_582 = arith.constant dense<0.000000e+00> : vector<2x16xf32>
    %555 = tpu.matmul %553, %554, %cst_582 {dimension_numbers = #tpu.dot_dimension_numbers<[1], [0], [0], [1], [0, 0, 1, 1], [], []>} : vector<2x256xbf16>, vector<256x16xbf16>, vector<2x16xf32> -> vector<2x16xf32>
    %c0_583 = arith.constant 0 : index
    %c0_584 = arith.constant 0 : index
    %556 = vector.load %arg5[%c0_583, %c0_584] : memref<1x16xf32, #tpu.memory_space<vmem>>, vector<1x16xf32>
    %557 = vector.broadcast %556 : vector<1x16xf32> to vector<2x16xf32>
    %558 = arith.addf %555, %557 : vector<2x16xf32>
    %cst_585 = arith.constant 0.000000e+00 : f32
    %559 = vector.broadcast %cst_585 : f32 to vector<2x16xf32>
    %560 = arith.maximumf %558, %559 : vector<2x16xf32>
    %c4_586 = arith.constant 4 : index
    %c192_587 = arith.constant 192 : index
    %561 = vector.load %arg15[%c4_586, %c192_587] : memref<8x256xf32, #tpu.memory_space<vmem>>, vector<2x16xf32>
    tpu.vector_store %arg15[%c4_586, %c192_587], %560 {strides = array<i32>} : memref<8x256xf32, #tpu.memory_space<vmem>>, vector<2x16xf32>,
    %c12_588 = arith.constant 12 : index
    %c3_589 = arith.constant 3 : index
    %c0_590 = arith.constant 0 : index
    %c0_591 = arith.constant 0 : index
    %562 = vector.load %arg1[%c12_588, %c3_589, %c0_590, %c0_591] : memref<16x4x2x256xbf16, #tpu.memory_space<vmem>>, vector<1x1x2x256xbf16>
    %563 = vector.shape_cast %562 : vector<1x1x2x256xbf16> to vector<2x256xbf16>
    %564 = arith.mulf %563, %0 : vector<2x256xbf16>
    %c0_592 = arith.constant 0 : index
    %c0_593 = arith.constant 0 : index
    %565 = vector.load %arg4[%c0_592, %c0_593] : memref<256x16xbf16, #tpu.memory_space<vmem>>, vector<256x16xbf16>
    %cst_594 = arith.constant dense<0.000000e+00> : vector<2x16xf32>
    %566 = tpu.matmul %564, %565, %cst_594 {dimension_numbers = #tpu.dot_dimension_numbers<[1], [0], [0], [1], [0, 0, 1, 1], [], []>} : vector<2x256xbf16>, vector<256x16xbf16>, vector<2x16xf32> -> vector<2x16xf32>
    %c0_595 = arith.constant 0 : index
    %c0_596 = arith.constant 0 : index
    %567 = vector.load %arg5[%c0_595, %c0_596] : memref<1x16xf32, #tpu.memory_space<vmem>>, vector<1x16xf32>
    %568 = vector.broadcast %567 : vector<1x16xf32> to vector<2x16xf32>
    %569 = arith.addf %566, %568 : vector<2x16xf32>
    %cst_597 = arith.constant 0.000000e+00 : f32
    %570 = vector.broadcast %cst_597 : f32 to vector<2x16xf32>
    %571 = arith.maximumf %569, %570 : vector<2x16xf32>
    %c6_598 = arith.constant 6 : index
    %c192_599 = arith.constant 192 : index
    %572 = vector.load %arg15[%c6_598, %c192_599] : memref<8x256xf32, #tpu.memory_space<vmem>>, vector<2x16xf32>
    tpu.vector_store %arg15[%c6_598, %c192_599], %571 {strides = array<i32>} : memref<8x256xf32, #tpu.memory_space<vmem>>, vector<2x16xf32>,
    %c13 = arith.constant 13 : index
    %c0_600 = arith.constant 0 : index
    %c0_601 = arith.constant 0 : index
    %c0_602 = arith.constant 0 : index
    %573 = vector.load %arg1[%c13, %c0_600, %c0_601, %c0_602] : memref<16x4x2x256xbf16, #tpu.memory_space<vmem>>, vector<1x1x2x256xbf16>
    %574 = vector.shape_cast %573 : vector<1x1x2x256xbf16> to vector<2x256xbf16>
    %575 = arith.mulf %574, %0 : vector<2x256xbf16>
    %c0_603 = arith.constant 0 : index
    %c0_604 = arith.constant 0 : index
    %576 = vector.load %arg4[%c0_603, %c0_604] : memref<256x16xbf16, #tpu.memory_space<vmem>>, vector<256x16xbf16>
    %cst_605 = arith.constant dense<0.000000e+00> : vector<2x16xf32>
    %577 = tpu.matmul %575, %576, %cst_605 {dimension_numbers = #tpu.dot_dimension_numbers<[1], [0], [0], [1], [0, 0, 1, 1], [], []>} : vector<2x256xbf16>, vector<256x16xbf16>, vector<2x16xf32> -> vector<2x16xf32>
    %c0_606 = arith.constant 0 : index
    %c0_607 = arith.constant 0 : index
    %578 = vector.load %arg5[%c0_606, %c0_607] : memref<1x16xf32, #tpu.memory_space<vmem>>, vector<1x16xf32>
    %579 = vector.broadcast %578 : vector<1x16xf32> to vector<2x16xf32>
    %580 = arith.addf %577, %579 : vector<2x16xf32>
    %cst_608 = arith.constant 0.000000e+00 : f32
    %581 = vector.broadcast %cst_608 : f32 to vector<2x16xf32>
    %582 = arith.maximumf %580, %581 : vector<2x16xf32>
    %c0_609 = arith.constant 0 : index
    %c208 = arith.constant 208 : index
    %583 = vector.load %arg15[%c0_609, %c208] : memref<8x256xf32, #tpu.memory_space<vmem>>, vector<2x16xf32>
    tpu.vector_store %arg15[%c0_609, %c208], %582 {strides = array<i32>} : memref<8x256xf32, #tpu.memory_space<vmem>>, vector<2x16xf32>,
    %c13_610 = arith.constant 13 : index
    %c1_611 = arith.constant 1 : index
    %c0_612 = arith.constant 0 : index
    %c0_613 = arith.constant 0 : index
    %584 = vector.load %arg1[%c13_610, %c1_611, %c0_612, %c0_613] : memref<16x4x2x256xbf16, #tpu.memory_space<vmem>>, vector<1x1x2x256xbf16>
    %585 = vector.shape_cast %584 : vector<1x1x2x256xbf16> to vector<2x256xbf16>
    %586 = arith.mulf %585, %0 : vector<2x256xbf16>
    %c0_614 = arith.constant 0 : index
    %c0_615 = arith.constant 0 : index
    %587 = vector.load %arg4[%c0_614, %c0_615] : memref<256x16xbf16, #tpu.memory_space<vmem>>, vector<256x16xbf16>
    %cst_616 = arith.constant dense<0.000000e+00> : vector<2x16xf32>
    %588 = tpu.matmul %586, %587, %cst_616 {dimension_numbers = #tpu.dot_dimension_numbers<[1], [0], [0], [1], [0, 0, 1, 1], [], []>} : vector<2x256xbf16>, vector<256x16xbf16>, vector<2x16xf32> -> vector<2x16xf32>
    %c0_617 = arith.constant 0 : index
    %c0_618 = arith.constant 0 : index
    %589 = vector.load %arg5[%c0_617, %c0_618] : memref<1x16xf32, #tpu.memory_space<vmem>>, vector<1x16xf32>
    %590 = vector.broadcast %589 : vector<1x16xf32> to vector<2x16xf32>
    %591 = arith.addf %588, %590 : vector<2x16xf32>
    %cst_619 = arith.constant 0.000000e+00 : f32
    %592 = vector.broadcast %cst_619 : f32 to vector<2x16xf32>
    %593 = arith.maximumf %591, %592 : vector<2x16xf32>
    %c2_620 = arith.constant 2 : index
    %c208_621 = arith.constant 208 : index
    %594 = vector.load %arg15[%c2_620, %c208_621] : memref<8x256xf32, #tpu.memory_space<vmem>>, vector<2x16xf32>
    tpu.vector_store %arg15[%c2_620, %c208_621], %593 {strides = array<i32>} : memref<8x256xf32, #tpu.memory_space<vmem>>, vector<2x16xf32>,
    %c13_622 = arith.constant 13 : index
    %c2_623 = arith.constant 2 : index
    %c0_624 = arith.constant 0 : index
    %c0_625 = arith.constant 0 : index
    %595 = vector.load %arg1[%c13_622, %c2_623, %c0_624, %c0_625] : memref<16x4x2x256xbf16, #tpu.memory_space<vmem>>, vector<1x1x2x256xbf16>
    %596 = vector.shape_cast %595 : vector<1x1x2x256xbf16> to vector<2x256xbf16>
    %597 = arith.mulf %596, %0 : vector<2x256xbf16>
    %c0_626 = arith.constant 0 : index
    %c0_627 = arith.constant 0 : index
    %598 = vector.load %arg4[%c0_626, %c0_627] : memref<256x16xbf16, #tpu.memory_space<vmem>>, vector<256x16xbf16>
    %cst_628 = arith.constant dense<0.000000e+00> : vector<2x16xf32>
    %599 = tpu.matmul %597, %598, %cst_628 {dimension_numbers = #tpu.dot_dimension_numbers<[1], [0], [0], [1], [0, 0, 1, 1], [], []>} : vector<2x256xbf16>, vector<256x16xbf16>, vector<2x16xf32> -> vector<2x16xf32>
    %c0_629 = arith.constant 0 : index
    %c0_630 = arith.constant 0 : index
    %600 = vector.load %arg5[%c0_629, %c0_630] : memref<1x16xf32, #tpu.memory_space<vmem>>, vector<1x16xf32>
    %601 = vector.broadcast %600 : vector<1x16xf32> to vector<2x16xf32>
    %602 = arith.addf %599, %601 : vector<2x16xf32>
    %cst_631 = arith.constant 0.000000e+00 : f32
    %603 = vector.broadcast %cst_631 : f32 to vector<2x16xf32>
    %604 = arith.maximumf %602, %603 : vector<2x16xf32>
    %c4_632 = arith.constant 4 : index
    %c208_633 = arith.constant 208 : index
    %605 = vector.load %arg15[%c4_632, %c208_633] : memref<8x256xf32, #tpu.memory_space<vmem>>, vector<2x16xf32>
    tpu.vector_store %arg15[%c4_632, %c208_633], %604 {strides = array<i32>} : memref<8x256xf32, #tpu.memory_space<vmem>>, vector<2x16xf32>,
    %c13_634 = arith.constant 13 : index
    %c3_635 = arith.constant 3 : index
    %c0_636 = arith.constant 0 : index
    %c0_637 = arith.constant 0 : index
    %606 = vector.load %arg1[%c13_634, %c3_635, %c0_636, %c0_637] : memref<16x4x2x256xbf16, #tpu.memory_space<vmem>>, vector<1x1x2x256xbf16>
    %607 = vector.shape_cast %606 : vector<1x1x2x256xbf16> to vector<2x256xbf16>
    %608 = arith.mulf %607, %0 : vector<2x256xbf16>
    %c0_638 = arith.constant 0 : index
    %c0_639 = arith.constant 0 : index
    %609 = vector.load %arg4[%c0_638, %c0_639] : memref<256x16xbf16, #tpu.memory_space<vmem>>, vector<256x16xbf16>
    %cst_640 = arith.constant dense<0.000000e+00> : vector<2x16xf32>
    %610 = tpu.matmul %608, %609, %cst_640 {dimension_numbers = #tpu.dot_dimension_numbers<[1], [0], [0], [1], [0, 0, 1, 1], [], []>} : vector<2x256xbf16>, vector<256x16xbf16>, vector<2x16xf32> -> vector<2x16xf32>
    %c0_641 = arith.constant 0 : index
    %c0_642 = arith.constant 0 : index
    %611 = vector.load %arg5[%c0_641, %c0_642] : memref<1x16xf32, #tpu.memory_space<vmem>>, vector<1x16xf32>
    %612 = vector.broadcast %611 : vector<1x16xf32> to vector<2x16xf32>
    %613 = arith.addf %610, %612 : vector<2x16xf32>
    %cst_643 = arith.constant 0.000000e+00 : f32
    %614 = vector.broadcast %cst_643 : f32 to vector<2x16xf32>
    %615 = arith.maximumf %613, %614 : vector<2x16xf32>
    %c6_644 = arith.constant 6 : index
    %c208_645 = arith.constant 208 : index
    %616 = vector.load %arg15[%c6_644, %c208_645] : memref<8x256xf32, #tpu.memory_space<vmem>>, vector<2x16xf32>
    tpu.vector_store %arg15[%c6_644, %c208_645], %615 {strides = array<i32>} : memref<8x256xf32, #tpu.memory_space<vmem>>, vector<2x16xf32>,
    %c14 = arith.constant 14 : index
    %c0_646 = arith.constant 0 : index
    %c0_647 = arith.constant 0 : index
    %c0_648 = arith.constant 0 : index
    %617 = vector.load %arg1[%c14, %c0_646, %c0_647, %c0_648] : memref<16x4x2x256xbf16, #tpu.memory_space<vmem>>, vector<1x1x2x256xbf16>
    %618 = vector.shape_cast %617 : vector<1x1x2x256xbf16> to vector<2x256xbf16>
    %619 = arith.mulf %618, %0 : vector<2x256xbf16>
    %c0_649 = arith.constant 0 : index
    %c0_650 = arith.constant 0 : index
    %620 = vector.load %arg4[%c0_649, %c0_650] : memref<256x16xbf16, #tpu.memory_space<vmem>>, vector<256x16xbf16>
    %cst_651 = arith.constant dense<0.000000e+00> : vector<2x16xf32>
    %621 = tpu.matmul %619, %620, %cst_651 {dimension_numbers = #tpu.dot_dimension_numbers<[1], [0], [0], [1], [0, 0, 1, 1], [], []>} : vector<2x256xbf16>, vector<256x16xbf16>, vector<2x16xf32> -> vector<2x16xf32>
    %c0_652 = arith.constant 0 : index
    %c0_653 = arith.constant 0 : index
    %622 = vector.load %arg5[%c0_652, %c0_653] : memref<1x16xf32, #tpu.memory_space<vmem>>, vector<1x16xf32>
    %623 = vector.broadcast %622 : vector<1x16xf32> to vector<2x16xf32>
    %624 = arith.addf %621, %623 : vector<2x16xf32>
    %cst_654 = arith.constant 0.000000e+00 : f32
    %625 = vector.broadcast %cst_654 : f32 to vector<2x16xf32>
    %626 = arith.maximumf %624, %625 : vector<2x16xf32>
    %c0_655 = arith.constant 0 : index
    %c224 = arith.constant 224 : index
    %627 = vector.load %arg15[%c0_655, %c224] : memref<8x256xf32, #tpu.memory_space<vmem>>, vector<2x16xf32>
    tpu.vector_store %arg15[%c0_655, %c224], %626 {strides = array<i32>} : memref<8x256xf32, #tpu.memory_space<vmem>>, vector<2x16xf32>,
    %c14_656 = arith.constant 14 : index
    %c1_657 = arith.constant 1 : index
    %c0_658 = arith.constant 0 : index
    %c0_659 = arith.constant 0 : index
    %628 = vector.load %arg1[%c14_656, %c1_657, %c0_658, %c0_659] : memref<16x4x2x256xbf16, #tpu.memory_space<vmem>>, vector<1x1x2x256xbf16>
    %629 = vector.shape_cast %628 : vector<1x1x2x256xbf16> to vector<2x256xbf16>
    %630 = arith.mulf %629, %0 : vector<2x256xbf16>
    %c0_660 = arith.constant 0 : index
    %c0_661 = arith.constant 0 : index
    %631 = vector.load %arg4[%c0_660, %c0_661] : memref<256x16xbf16, #tpu.memory_space<vmem>>, vector<256x16xbf16>
    %cst_662 = arith.constant dense<0.000000e+00> : vector<2x16xf32>
    %632 = tpu.matmul %630, %631, %cst_662 {dimension_numbers = #tpu.dot_dimension_numbers<[1], [0], [0], [1], [0, 0, 1, 1], [], []>} : vector<2x256xbf16>, vector<256x16xbf16>, vector<2x16xf32> -> vector<2x16xf32>
    %c0_663 = arith.constant 0 : index
    %c0_664 = arith.constant 0 : index
    %633 = vector.load %arg5[%c0_663, %c0_664] : memref<1x16xf32, #tpu.memory_space<vmem>>, vector<1x16xf32>
    %634 = vector.broadcast %633 : vector<1x16xf32> to vector<2x16xf32>
    %635 = arith.addf %632, %634 : vector<2x16xf32>
    %cst_665 = arith.constant 0.000000e+00 : f32
    %636 = vector.broadcast %cst_665 : f32 to vector<2x16xf32>
    %637 = arith.maximumf %635, %636 : vector<2x16xf32>
    %c2_666 = arith.constant 2 : index
    %c224_667 = arith.constant 224 : index
    %638 = vector.load %arg15[%c2_666, %c224_667] : memref<8x256xf32, #tpu.memory_space<vmem>>, vector<2x16xf32>
    tpu.vector_store %arg15[%c2_666, %c224_667], %637 {strides = array<i32>} : memref<8x256xf32, #tpu.memory_space<vmem>>, vector<2x16xf32>,
    %c14_668 = arith.constant 14 : index
    %c2_669 = arith.constant 2 : index
    %c0_670 = arith.constant 0 : index
    %c0_671 = arith.constant 0 : index
    %639 = vector.load %arg1[%c14_668, %c2_669, %c0_670, %c0_671] : memref<16x4x2x256xbf16, #tpu.memory_space<vmem>>, vector<1x1x2x256xbf16>
    %640 = vector.shape_cast %639 : vector<1x1x2x256xbf16> to vector<2x256xbf16>
    %641 = arith.mulf %640, %0 : vector<2x256xbf16>
    %c0_672 = arith.constant 0 : index
    %c0_673 = arith.constant 0 : index
    %642 = vector.load %arg4[%c0_672, %c0_673] : memref<256x16xbf16, #tpu.memory_space<vmem>>, vector<256x16xbf16>
    %cst_674 = arith.constant dense<0.000000e+00> : vector<2x16xf32>
    %643 = tpu.matmul %641, %642, %cst_674 {dimension_numbers = #tpu.dot_dimension_numbers<[1], [0], [0], [1], [0, 0, 1, 1], [], []>} : vector<2x256xbf16>, vector<256x16xbf16>, vector<2x16xf32> -> vector<2x16xf32>
    %c0_675 = arith.constant 0 : index
    %c0_676 = arith.constant 0 : index
    %644 = vector.load %arg5[%c0_675, %c0_676] : memref<1x16xf32, #tpu.memory_space<vmem>>, vector<1x16xf32>
    %645 = vector.broadcast %644 : vector<1x16xf32> to vector<2x16xf32>
    %646 = arith.addf %643, %645 : vector<2x16xf32>
    %cst_677 = arith.constant 0.000000e+00 : f32
    %647 = vector.broadcast %cst_677 : f32 to vector<2x16xf32>
    %648 = arith.maximumf %646, %647 : vector<2x16xf32>
    %c4_678 = arith.constant 4 : index
    %c224_679 = arith.constant 224 : index
    %649 = vector.load %arg15[%c4_678, %c224_679] : memref<8x256xf32, #tpu.memory_space<vmem>>, vector<2x16xf32>
    tpu.vector_store %arg15[%c4_678, %c224_679], %648 {strides = array<i32>} : memref<8x256xf32, #tpu.memory_space<vmem>>, vector<2x16xf32>,
    %c14_680 = arith.constant 14 : index
    %c3_681 = arith.constant 3 : index
    %c0_682 = arith.constant 0 : index
    %c0_683 = arith.constant 0 : index
    %650 = vector.load %arg1[%c14_680, %c3_681, %c0_682, %c0_683] : memref<16x4x2x256xbf16, #tpu.memory_space<vmem>>, vector<1x1x2x256xbf16>
    %651 = vector.shape_cast %650 : vector<1x1x2x256xbf16> to vector<2x256xbf16>
    %652 = arith.mulf %651, %0 : vector<2x256xbf16>
    %c0_684 = arith.constant 0 : index
    %c0_685 = arith.constant 0 : index
    %653 = vector.load %arg4[%c0_684, %c0_685] : memref<256x16xbf16, #tpu.memory_space<vmem>>, vector<256x16xbf16>
    %cst_686 = arith.constant dense<0.000000e+00> : vector<2x16xf32>
    %654 = tpu.matmul %652, %653, %cst_686 {dimension_numbers = #tpu.dot_dimension_numbers<[1], [0], [0], [1], [0, 0, 1, 1], [], []>} : vector<2x256xbf16>, vector<256x16xbf16>, vector<2x16xf32> -> vector<2x16xf32>
    %c0_687 = arith.constant 0 : index
    %c0_688 = arith.constant 0 : index
    %655 = vector.load %arg5[%c0_687, %c0_688] : memref<1x16xf32, #tpu.memory_space<vmem>>, vector<1x16xf32>
    %656 = vector.broadcast %655 : vector<1x16xf32> to vector<2x16xf32>
    %657 = arith.addf %654, %656 : vector<2x16xf32>
    %cst_689 = arith.constant 0.000000e+00 : f32
    %658 = vector.broadcast %cst_689 : f32 to vector<2x16xf32>
    %659 = arith.maximumf %657, %658 : vector<2x16xf32>
    %c6_690 = arith.constant 6 : index
    %c224_691 = arith.constant 224 : index
    %660 = vector.load %arg15[%c6_690, %c224_691] : memref<8x256xf32, #tpu.memory_space<vmem>>, vector<2x16xf32>
    tpu.vector_store %arg15[%c6_690, %c224_691], %659 {strides = array<i32>} : memref<8x256xf32, #tpu.memory_space<vmem>>, vector<2x16xf32>,
    %c15 = arith.constant 15 : index
    %c0_692 = arith.constant 0 : index
    %c0_693 = arith.constant 0 : index
    %c0_694 = arith.constant 0 : index
    %661 = vector.load %arg1[%c15, %c0_692, %c0_693, %c0_694] : memref<16x4x2x256xbf16, #tpu.memory_space<vmem>>, vector<1x1x2x256xbf16>
    %662 = vector.shape_cast %661 : vector<1x1x2x256xbf16> to vector<2x256xbf16>
    %663 = arith.mulf %662, %0 : vector<2x256xbf16>
    %c0_695 = arith.constant 0 : index
    %c0_696 = arith.constant 0 : index
    %664 = vector.load %arg4[%c0_695, %c0_696] : memref<256x16xbf16, #tpu.memory_space<vmem>>, vector<256x16xbf16>
    %cst_697 = arith.constant dense<0.000000e+00> : vector<2x16xf32>
    %665 = tpu.matmul %663, %664, %cst_697 {dimension_numbers = #tpu.dot_dimension_numbers<[1], [0], [0], [1], [0, 0, 1, 1], [], []>} : vector<2x256xbf16>, vector<256x16xbf16>, vector<2x16xf32> -> vector<2x16xf32>
    %c0_698 = arith.constant 0 : index
    %c0_699 = arith.constant 0 : index
    %666 = vector.load %arg5[%c0_698, %c0_699] : memref<1x16xf32, #tpu.memory_space<vmem>>, vector<1x16xf32>
    %667 = vector.broadcast %666 : vector<1x16xf32> to vector<2x16xf32>
    %668 = arith.addf %665, %667 : vector<2x16xf32>
    %cst_700 = arith.constant 0.000000e+00 : f32
    %669 = vector.broadcast %cst_700 : f32 to vector<2x16xf32>
    %670 = arith.maximumf %668, %669 : vector<2x16xf32>
    %c0_701 = arith.constant 0 : index
    %c240 = arith.constant 240 : index
    %671 = vector.load %arg15[%c0_701, %c240] : memref<8x256xf32, #tpu.memory_space<vmem>>, vector<2x16xf32>
    tpu.vector_store %arg15[%c0_701, %c240], %670 {strides = array<i32>} : memref<8x256xf32, #tpu.memory_space<vmem>>, vector<2x16xf32>,
    %c15_702 = arith.constant 15 : index
    %c1_703 = arith.constant 1 : index
    %c0_704 = arith.constant 0 : index
    %c0_705 = arith.constant 0 : index
    %672 = vector.load %arg1[%c15_702, %c1_703, %c0_704, %c0_705] : memref<16x4x2x256xbf16, #tpu.memory_space<vmem>>, vector<1x1x2x256xbf16>
    %673 = vector.shape_cast %672 : vector<1x1x2x256xbf16> to vector<2x256xbf16>
    %674 = arith.mulf %673, %0 : vector<2x256xbf16>
    %c0_706 = arith.constant 0 : index
    %c0_707 = arith.constant 0 : index
    %675 = vector.load %arg4[%c0_706, %c0_707] : memref<256x16xbf16, #tpu.memory_space<vmem>>, vector<256x16xbf16>
    %cst_708 = arith.constant dense<0.000000e+00> : vector<2x16xf32>
    %676 = tpu.matmul %674, %675, %cst_708 {dimension_numbers = #tpu.dot_dimension_numbers<[1], [0], [0], [1], [0, 0, 1, 1], [], []>} : vector<2x256xbf16>, vector<256x16xbf16>, vector<2x16xf32> -> vector<2x16xf32>
    %c0_709 = arith.constant 0 : index
    %c0_710 = arith.constant 0 : index
    %677 = vector.load %arg5[%c0_709, %c0_710] : memref<1x16xf32, #tpu.memory_space<vmem>>, vector<1x16xf32>
    %678 = vector.broadcast %677 : vector<1x16xf32> to vector<2x16xf32>
    %679 = arith.addf %676, %678 : vector<2x16xf32>
    %cst_711 = arith.constant 0.000000e+00 : f32
    %680 = vector.broadcast %cst_711 : f32 to vector<2x16xf32>
    %681 = arith.maximumf %679, %680 : vector<2x16xf32>
    %c2_712 = arith.constant 2 : index
    %c240_713 = arith.constant 240 : index
    %682 = vector.load %arg15[%c2_712, %c240_713] : memref<8x256xf32, #tpu.memory_space<vmem>>, vector<2x16xf32>
    tpu.vector_store %arg15[%c2_712, %c240_713], %681 {strides = array<i32>} : memref<8x256xf32, #tpu.memory_space<vmem>>, vector<2x16xf32>,
    %c15_714 = arith.constant 15 : index
    %c2_715 = arith.constant 2 : index
    %c0_716 = arith.constant 0 : index
    %c0_717 = arith.constant 0 : index
    %683 = vector.load %arg1[%c15_714, %c2_715, %c0_716, %c0_717] : memref<16x4x2x256xbf16, #tpu.memory_space<vmem>>, vector<1x1x2x256xbf16>
    %684 = vector.shape_cast %683 : vector<1x1x2x256xbf16> to vector<2x256xbf16>
    %685 = arith.mulf %684, %0 : vector<2x256xbf16>
    %c0_718 = arith.constant 0 : index
    %c0_719 = arith.constant 0 : index
    %686 = vector.load %arg4[%c0_718, %c0_719] : memref<256x16xbf16, #tpu.memory_space<vmem>>, vector<256x16xbf16>
    %cst_720 = arith.constant dense<0.000000e+00> : vector<2x16xf32>
    %687 = tpu.matmul %685, %686, %cst_720 {dimension_numbers = #tpu.dot_dimension_numbers<[1], [0], [0], [1], [0, 0, 1, 1], [], []>} : vector<2x256xbf16>, vector<256x16xbf16>, vector<2x16xf32> -> vector<2x16xf32>
    %c0_721 = arith.constant 0 : index
    %c0_722 = arith.constant 0 : index
    %688 = vector.load %arg5[%c0_721, %c0_722] : memref<1x16xf32, #tpu.memory_space<vmem>>, vector<1x16xf32>
    %689 = vector.broadcast %688 : vector<1x16xf32> to vector<2x16xf32>
    %690 = arith.addf %687, %689 : vector<2x16xf32>
    %cst_723 = arith.constant 0.000000e+00 : f32
    %691 = vector.broadcast %cst_723 : f32 to vector<2x16xf32>
    %692 = arith.maximumf %690, %691 : vector<2x16xf32>
    %c4_724 = arith.constant 4 : index
    %c240_725 = arith.constant 240 : index
    %693 = vector.load %arg15[%c4_724, %c240_725] : memref<8x256xf32, #tpu.memory_space<vmem>>, vector<2x16xf32>
    tpu.vector_store %arg15[%c4_724, %c240_725], %692 {strides = array<i32>} : memref<8x256xf32, #tpu.memory_space<vmem>>, vector<2x16xf32>,
    %c15_726 = arith.constant 15 : index
    %c3_727 = arith.constant 3 : index
    %c0_728 = arith.constant 0 : index
    %c0_729 = arith.constant 0 : index
    %694 = vector.load %arg1[%c15_726, %c3_727, %c0_728, %c0_729] : memref<16x4x2x256xbf16, #tpu.memory_space<vmem>>, vector<1x1x2x256xbf16>
    %695 = vector.shape_cast %694 : vector<1x1x2x256xbf16> to vector<2x256xbf16>
    %696 = arith.mulf %695, %0 : vector<2x256xbf16>
    %c0_730 = arith.constant 0 : index
    %c0_731 = arith.constant 0 : index
    %697 = vector.load %arg4[%c0_730, %c0_731] : memref<256x16xbf16, #tpu.memory_space<vmem>>, vector<256x16xbf16>
    %cst_732 = arith.constant dense<0.000000e+00> : vector<2x16xf32>
    %698 = tpu.matmul %696, %697, %cst_732 {dimension_numbers = #tpu.dot_dimension_numbers<[1], [0], [0], [1], [0, 0, 1, 1], [], []>} : vector<2x256xbf16>, vector<256x16xbf16>, vector<2x16xf32> -> vector<2x16xf32>
    %c0_733 = arith.constant 0 : index
    %c0_734 = arith.constant 0 : index
    %699 = vector.load %arg5[%c0_733, %c0_734] : memref<1x16xf32, #tpu.memory_space<vmem>>, vector<1x16xf32>
    %700 = vector.broadcast %699 : vector<1x16xf32> to vector<2x16xf32>
    %701 = arith.addf %698, %700 : vector<2x16xf32>
    %cst_735 = arith.constant 0.000000e+00 : f32
    %702 = vector.broadcast %cst_735 : f32 to vector<2x16xf32>
    %703 = arith.maximumf %701, %702 : vector<2x16xf32>
    %c6_736 = arith.constant 6 : index
    %c240_737 = arith.constant 240 : index
    %704 = vector.load %arg15[%c6_736, %c240_737] : memref<8x256xf32, #tpu.memory_space<vmem>>, vector<2x16xf32>
    tpu.vector_store %arg15[%c6_736, %c240_737], %703 {strides = array<i32>} : memref<8x256xf32, #tpu.memory_space<vmem>>, vector<2x16xf32>,
    %cst_738 = arith.constant 0.000000e+00 : f32
    %705 = vector.broadcast %cst_738 : f32 to vector<2x128xf32>
    %c0_739 = arith.constant 0 : index
    %c0_740 = arith.constant 0 : index
    %706 = vector.load %arg15[%c0_739, %c0_740] : memref<8x256xf32, #tpu.memory_space<vmem>>, vector<2x256xf32>
    %707 = arith.truncf %706 : vector<2x256xf32> to vector<2x256xbf16>
    %c0_741 = arith.constant 0 : index
    %c0_742 = arith.constant 0 : index
    %708 = vector.load %arg6[%c0_741, %c0_742] : memref<256x32xbf16, #tpu.memory_space<vmem>>, vector<256x32xbf16>
    %cst_743 = arith.constant dense<0.000000e+00> : vector<2x32xf32>
    %709 = tpu.matmul %707, %708, %cst_743 {dimension_numbers = #tpu.dot_dimension_numbers<[1], [0], [0], [1], [0, 0, 1, 1], [], []>} : vector<2x256xbf16>, vector<256x32xbf16>, vector<2x32xf32> -> vector<2x32xf32>
    %c0_744 = arith.constant 0 : index
    %c0_745 = arith.constant 0 : index
    %710 = vector.load %arg7[%c0_744, %c0_745] : memref<1x32xf32, #tpu.memory_space<vmem>>, vector<1x32xf32>
    %711 = vector.broadcast %710 : vector<1x32xf32> to vector<2x32xf32>
    %712 = arith.addf %709, %711 : vector<2x32xf32>
    %cst_746 = arith.constant 0.000000e+00 : f32
    %713 = vector.broadcast %cst_746 : f32 to vector<2x32xf32>
    %714 = arith.maximumf %712, %713 : vector<2x32xf32>
    %715 = arith.truncf %714 : vector<2x32xf32> to vector<2x32xbf16>
    %c0_747 = arith.constant 0 : index
    %c0_748 = arith.constant 0 : index
    %c0_749 = arith.constant 0 : index
    %716 = vector.load %arg8[%c0_747, %c0_748, %c0_749] : memref<4x32x128xbf16, #tpu.memory_space<vmem>>, vector<1x32x128xbf16>
    %717 = vector.shape_cast %716 : vector<1x32x128xbf16> to vector<32x128xbf16>
    %cst_750 = arith.constant dense<0.000000e+00> : vector<2x128xf32>
    %718 = tpu.matmul %715, %717, %cst_750 {dimension_numbers = #tpu.dot_dimension_numbers<[1], [0], [0], [1], [0, 0, 1, 1], [], []>} : vector<2x32xbf16>, vector<32x128xbf16>, vector<2x128xf32> -> vector<2x128xf32>
    %719 = arith.addf %705, %718 : vector<2x128xf32>
    %c2_751 = arith.constant 2 : index
    %c0_752 = arith.constant 0 : index
    %720 = vector.load %arg15[%c2_751, %c0_752] : memref<8x256xf32, #tpu.memory_space<vmem>>, vector<2x256xf32>
    %721 = arith.truncf %720 : vector<2x256xf32> to vector<2x256xbf16>
    %c0_753 = arith.constant 0 : index
    %c0_754 = arith.constant 0 : index
    %722 = vector.load %arg6[%c0_753, %c0_754] : memref<256x32xbf16, #tpu.memory_space<vmem>>, vector<256x32xbf16>
    %cst_755 = arith.constant dense<0.000000e+00> : vector<2x32xf32>
    %723 = tpu.matmul %721, %722, %cst_755 {dimension_numbers = #tpu.dot_dimension_numbers<[1], [0], [0], [1], [0, 0, 1, 1], [], []>} : vector<2x256xbf16>, vector<256x32xbf16>, vector<2x32xf32> -> vector<2x32xf32>
    %c0_756 = arith.constant 0 : index
    %c0_757 = arith.constant 0 : index
    %724 = vector.load %arg7[%c0_756, %c0_757] : memref<1x32xf32, #tpu.memory_space<vmem>>, vector<1x32xf32>
    %725 = vector.broadcast %724 : vector<1x32xf32> to vector<2x32xf32>
    %726 = arith.addf %723, %725 : vector<2x32xf32>
    %cst_758 = arith.constant 0.000000e+00 : f32
    %727 = vector.broadcast %cst_758 : f32 to vector<2x32xf32>
    %728 = arith.maximumf %726, %727 : vector<2x32xf32>
    %729 = arith.truncf %728 : vector<2x32xf32> to vector<2x32xbf16>
    %c1_759 = arith.constant 1 : index
    %c0_760 = arith.constant 0 : index
    %c0_761 = arith.constant 0 : index
    %730 = vector.load %arg8[%c1_759, %c0_760, %c0_761] : memref<4x32x128xbf16, #tpu.memory_space<vmem>>, vector<1x32x128xbf16>
    %731 = vector.shape_cast %730 : vector<1x32x128xbf16> to vector<32x128xbf16>
    %cst_762 = arith.constant dense<0.000000e+00> : vector<2x128xf32>
    %732 = tpu.matmul %729, %731, %cst_762 {dimension_numbers = #tpu.dot_dimension_numbers<[1], [0], [0], [1], [0, 0, 1, 1], [], []>} : vector<2x32xbf16>, vector<32x128xbf16>, vector<2x128xf32> -> vector<2x128xf32>
    %733 = arith.addf %719, %732 : vector<2x128xf32>
    %c4_763 = arith.constant 4 : index
    %c0_764 = arith.constant 0 : index
    %734 = vector.load %arg15[%c4_763, %c0_764] : memref<8x256xf32, #tpu.memory_space<vmem>>, vector<2x256xf32>
    %735 = arith.truncf %734 : vector<2x256xf32> to vector<2x256xbf16>
    %c0_765 = arith.constant 0 : index
    %c0_766 = arith.constant 0 : index
    %736 = vector.load %arg6[%c0_765, %c0_766] : memref<256x32xbf16, #tpu.memory_space<vmem>>, vector<256x32xbf16>
    %cst_767 = arith.constant dense<0.000000e+00> : vector<2x32xf32>
    %737 = tpu.matmul %735, %736, %cst_767 {dimension_numbers = #tpu.dot_dimension_numbers<[1], [0], [0], [1], [0, 0, 1, 1], [], []>} : vector<2x256xbf16>, vector<256x32xbf16>, vector<2x32xf32> -> vector<2x32xf32>
    %c0_768 = arith.constant 0 : index
    %c0_769 = arith.constant 0 : index
    %738 = vector.load %arg7[%c0_768, %c0_769] : memref<1x32xf32, #tpu.memory_space<vmem>>, vector<1x32xf32>
    %739 = vector.broadcast %738 : vector<1x32xf32> to vector<2x32xf32>
    %740 = arith.addf %737, %739 : vector<2x32xf32>
    %cst_770 = arith.constant 0.000000e+00 : f32
    %741 = vector.broadcast %cst_770 : f32 to vector<2x32xf32>
    %742 = arith.maximumf %740, %741 : vector<2x32xf32>
    %743 = arith.truncf %742 : vector<2x32xf32> to vector<2x32xbf16>
    %c2_771 = arith.constant 2 : index
    %c0_772 = arith.constant 0 : index
    %c0_773 = arith.constant 0 : index
    %744 = vector.load %arg8[%c2_771, %c0_772, %c0_773] : memref<4x32x128xbf16, #tpu.memory_space<vmem>>, vector<1x32x128xbf16>
    %745 = vector.shape_cast %744 : vector<1x32x128xbf16> to vector<32x128xbf16>
    %cst_774 = arith.constant dense<0.000000e+00> : vector<2x128xf32>
    %746 = tpu.matmul %743, %745, %cst_774 {dimension_numbers = #tpu.dot_dimension_numbers<[1], [0], [0], [1], [0, 0, 1, 1], [], []>} : vector<2x32xbf16>, vector<32x128xbf16>, vector<2x128xf32> -> vector<2x128xf32>
    %747 = arith.addf %733, %746 : vector<2x128xf32>
    %c6_775 = arith.constant 6 : index
    %c0_776 = arith.constant 0 : index
    %748 = vector.load %arg15[%c6_775, %c0_776] : memref<8x256xf32, #tpu.memory_space<vmem>>, vector<2x256xf32>
    %749 = arith.truncf %748 : vector<2x256xf32> to vector<2x256xbf16>
    %c0_777 = arith.constant 0 : index
    %c0_778 = arith.constant 0 : index
    %750 = vector.load %arg6[%c0_777, %c0_778] : memref<256x32xbf16, #tpu.memory_space<vmem>>, vector<256x32xbf16>
    %cst_779 = arith.constant dense<0.000000e+00> : vector<2x32xf32>
    %751 = tpu.matmul %749, %750, %cst_779 {dimension_numbers = #tpu.dot_dimension_numbers<[1], [0], [0], [1], [0, 0, 1, 1], [], []>} : vector<2x256xbf16>, vector<256x32xbf16>, vector<2x32xf32> -> vector<2x32xf32>
    %c0_780 = arith.constant 0 : index
    %c0_781 = arith.constant 0 : index
    %752 = vector.load %arg7[%c0_780, %c0_781] : memref<1x32xf32, #tpu.memory_space<vmem>>, vector<1x32xf32>
    %753 = vector.broadcast %752 : vector<1x32xf32> to vector<2x32xf32>
    %754 = arith.addf %751, %753 : vector<2x32xf32>
    %cst_782 = arith.constant 0.000000e+00 : f32
    %755 = vector.broadcast %cst_782 : f32 to vector<2x32xf32>
    %756 = arith.maximumf %754, %755 : vector<2x32xf32>
    %757 = arith.truncf %756 : vector<2x32xf32> to vector<2x32xbf16>
    %c3_783 = arith.constant 3 : index
    %c0_784 = arith.constant 0 : index
    %c0_785 = arith.constant 0 : index
    %758 = vector.load %arg8[%c3_783, %c0_784, %c0_785] : memref<4x32x128xbf16, #tpu.memory_space<vmem>>, vector<1x32x128xbf16>
    %759 = vector.shape_cast %758 : vector<1x32x128xbf16> to vector<32x128xbf16>
    %cst_786 = arith.constant dense<0.000000e+00> : vector<2x128xf32>
    %760 = tpu.matmul %757, %759, %cst_786 {dimension_numbers = #tpu.dot_dimension_numbers<[1], [0], [0], [1], [0, 0, 1, 1], [], []>} : vector<2x32xbf16>, vector<32x128xbf16>, vector<2x128xf32> -> vector<2x128xf32>
    %761 = arith.addf %747, %760 : vector<2x128xf32>
    %c0_787 = arith.constant 0 : index
    %c0_788 = arith.constant 0 : index
    %762 = vector.load %arg9[%c0_787, %c0_788] : memref<1x128xf32, #tpu.memory_space<vmem>>, vector<1x128xf32>
    %763 = vector.broadcast %762 : vector<1x128xf32> to vector<2x128xf32>
    %764 = arith.addf %761, %763 : vector<2x128xf32>
    %cst_789 = arith.constant 0.000000e+00 : f32
    %765 = vector.broadcast %cst_789 : f32 to vector<2x128xf32>
    %766 = arith.maximumf %764, %765 : vector<2x128xf32>
    %c0_790 = arith.constant 0 : index
    %c0_791 = arith.constant 0 : index
    %767 = vector.load %arg3[%c0_790, %c0_791] : memref<2x128xf32, #tpu.memory_space<vmem>>, vector<2x128xf32>
    %768 = arith.mulf %766, %767 : vector<2x128xf32>
    %c0_792 = arith.constant 0 : index
    %c0_793 = arith.constant 0 : index
    %769 = vector.load %arg10[%c0_792, %c0_793] : memref<128x64xf32, #tpu.memory_space<vmem>>, vector<128x64xf32>
    %cst_794 = arith.constant dense<0.000000e+00> : vector<2x64xf32>
    %770 = tpu.matmul %768, %769, %cst_794 {dimension_numbers = #tpu.dot_dimension_numbers<[1], [0], [0], [1], [0, 0, 1, 1], [], []>} : vector<2x128xf32>, vector<128x64xf32>, vector<2x64xf32> -> vector<2x64xf32>
    %c0_795 = arith.constant 0 : index
    %c0_796 = arith.constant 0 : index
    %771 = vector.load %arg11[%c0_795, %c0_796] : memref<1x64xf32, #tpu.memory_space<vmem>>, vector<1x64xf32>
    %772 = vector.broadcast %771 : vector<1x64xf32> to vector<2x64xf32>
    %773 = arith.addf %770, %772 : vector<2x64xf32>
    %cst_797 = arith.constant 0.000000e+00 : f32
    %774 = vector.broadcast %cst_797 : f32 to vector<2x64xf32>
    %775 = arith.maximumf %773, %774 : vector<2x64xf32>
    %c0_798 = arith.constant 0 : index
    %c0_799 = arith.constant 0 : index
    %776 = vector.load %arg12[%c0_798, %c0_799] : memref<64x8xf32, #tpu.memory_space<vmem>>, vector<64x8xf32>
    %cst_800 = arith.constant dense<0.000000e+00> : vector<2x8xf32>
    %777 = tpu.matmul %775, %776, %cst_800 {dimension_numbers = #tpu.dot_dimension_numbers<[1], [0], [0], [1], [0, 0, 1, 1], [], []>} : vector<2x64xf32>, vector<64x8xf32>, vector<2x8xf32> -> vector<2x8xf32>
    %c0_801 = arith.constant 0 : index
    %c0_802 = arith.constant 0 : index
    %778 = vector.load %arg13[%c0_801, %c0_802] : memref<1x8xf32, #tpu.memory_space<vmem>>, vector<1x8xf32>
    %779 = vector.broadcast %778 : vector<1x8xf32> to vector<2x8xf32>
    %780 = arith.addf %777, %779 : vector<2x8xf32>
    %c0_803 = arith.constant 0 : index
    %c0_804 = arith.constant 0 : index
    %781 = vector.load %arg14[%c0_803, %c0_804] : memref<2x8xf32, #tpu.memory_space<vmem>>, vector<2x8xf32>
    tpu.vector_store %arg14[%c0_803, %c0_804], %780 {strides = array<i32>} : memref<2x8xf32, #tpu.memory_space<vmem>>, vector<2x8xf32>,
    return
  }
  func.func @transform_0(%arg0: i32) -> (i32, i32, i32, i32) {
    %c0_i32 = arith.constant 0 : i32
    %c0_i32_0 = arith.constant 0 : i32
    %c0_i32_1 = arith.constant 0 : i32
    %c0_i32_2 = arith.constant 0 : i32
    return %c0_i32, %c0_i32_0, %arg0, %c0_i32_1 : i32, i32, i32, i32
  }
  func.func @transform_1(%arg0: i32) -> (i32, i32) {
    %c0_i32 = arith.constant 0 : i32
    %c0_i32_0 = arith.constant 0 : i32
    return %arg0, %c0_i32 : i32, i32
  }
  func.func @transform_2(%arg0: i32) -> (i32, i32) {
    %c0_i32 = arith.constant 0 : i32
    %c0_i32_0 = arith.constant 0 : i32
    return %arg0, %c0_i32 : i32, i32
  }
  func.func @transform_3(%arg0: i32) -> (i32, i32) {
    %c0_i32 = arith.constant 0 : i32
    %c0_i32_0 = arith.constant 0 : i32
    %c0_i32_1 = arith.constant 0 : i32
    return %c0_i32, %c0_i32_0 : i32, i32
  }
  func.func @transform_4(%arg0: i32) -> (i32, i32) {
    %c0_i32 = arith.constant 0 : i32
    %c0_i32_0 = arith.constant 0 : i32
    %c0_i32_1 = arith.constant 0 : i32
    return %c0_i32, %c0_i32_0 : i32, i32
  }
  func.func @transform_5(%arg0: i32) -> (i32, i32) {
    %c0_i32 = arith.constant 0 : i32
    %c0_i32_0 = arith.constant 0 : i32
    %c0_i32_1 = arith.constant 0 : i32
    return %c0_i32, %c0_i32_0 : i32, i32
  }
  func.func @transform_6(%arg0: i32) -> (i32, i32) {
    %c0_i32 = arith.constant 0 : i32
    %c0_i32_0 = arith.constant 0 : i32
    %c0_i32_1 = arith.constant 0 : i32
    return %c0_i32, %c0_i32_0 : i32, i32
  }
  func.func @transform_7(%arg0: i32) -> (i32, i32, i32) {
    %c0_i32 = arith.constant 0 : i32
    %c0_i32_0 = arith.constant 0 : i32
    %c0_i32_1 = arith.constant 0 : i32
    %c0_i32_2 = arith.constant 0 : i32
    return %c0_i32, %c0_i32_0, %c0_i32_1 : i32, i32, i32
  }
  func.func @transform_8(%arg0: i32) -> (i32, i32) {
    %c0_i32 = arith.constant 0 : i32
    %c0_i32_0 = arith.constant 0 : i32
    %c0_i32_1 = arith.constant 0 : i32
    return %c0_i32, %c0_i32_0 : i32, i32
  }
  func.func @transform_9(%arg0: i32) -> (i32, i32) {
    %c0_i32 = arith.constant 0 : i32
    %c0_i32_0 = arith.constant 0 : i32
    %c0_i32_1 = arith.constant 0 : i32
    return %c0_i32, %c0_i32_0 : i32, i32
  }
  func.func @transform_10(%arg0: i32) -> (i32, i32) {
    %c0_i32 = arith.constant 0 : i32
    %c0_i32_0 = arith.constant 0 : i32
    %c0_i32_1 = arith.constant 0 : i32
    return %c0_i32, %c0_i32_0 : i32, i32
  }
  func.func @transform_11(%arg0: i32) -> (i32, i32) {
    %c0_i32 = arith.constant 0 : i32
    %c0_i32_0 = arith.constant 0 : i32
    %c0_i32_1 = arith.constant 0 : i32
    return %c0_i32, %c0_i32_0 : i32, i32
  }
  func.func @transform_12(%arg0: i32) -> (i32, i32) {
    %c0_i32 = arith.constant 0 : i32
    %c0_i32_0 = arith.constant 0 : i32
    %c0_i32_1 = arith.constant 0 : i32
    return %c0_i32, %c0_i32_0 : i32, i32
  }
  func.func @transform_13(%arg0: i32) -> (i32, i32) {
    %c0_i32 = arith.constant 0 : i32
    %c0_i32_0 = arith.constant 0 : i32
    return %arg0, %c0_i32 : i32, i32
  }
}

</mosaic_0001>

<bundles_post_ra>
// kernel: subnet2_forward.1
= control target key start
LH: loop header
LB: loop body
LE: loop exit
PB: predicated region body
PF: predicated region fallthrough
CT: control target
= control target key end

     0   :  { %v92_v25 = vlaneseq  ;;  %v18185_v30 = vmov 1966171168   ;;  %vm250_vm0 = vcmask 123904   ;;  %vm459_vm1 = vcmask 125954   ;;  %s18186_s15 = smov 16   ;;  %s18187_s24 = smov 32   ;;  %s22485_s0 = inlined_call_operand.vmem [shape: bf16[16,4,2,256], index: 0, kind: input, shape index: {}]   ;;  %s22486_s1 = inlined_call_operand.vmem [shape: bf16[2,256], index: 1, kind: input, shape index: {}]   ;;  %s22487_s2 = inlined_call_operand.vmem [shape: f32[2,128], index: 2, kind: input, shape index: {}]   ;;  %s22488_s3 = inlined_call_operand.vmem [shape: bf16[256,16], index: 3, kind: input, shape index: {}]   ;;  %s22489_s4 = inlined_call_operand.vmem [shape: f32[1,16], index: 4, kind: input, shape index: {}]   ;;  %s22490_s5 = inlined_call_operand.vmem [shape: bf16[256,32], index: 5, kind: input, shape index: {}]   ;;  %s22491_s6 = inlined_call_operand.vmem [shape: f32[1,32], index: 6, kind: input, shape index: {}]   ;;  %s22492_s7 = inlined_call_operand.vmem [shape: bf16[4,32,128], index: 7, kind: input, shape index: {}]   ;;  %s22493_s8 = inlined_call_operand.vmem [shape: f32[1,128], index: 8, kind: input, shape index: {}]   ;;  %s22494_s9 = inlined_call_operand.vmem [shape: f32[128,64], index: 9, kind: input, shape index: {}]   ;;  %s22495_s10 = inlined_call_operand.vmem [shape: f32[1,64], index: 10, kind: input, shape index: {}]   ;;  %s22496_s11 = inlined_call_operand.vmem [shape: f32[64,8], index: 11, kind: input, shape index: {}]   ;;  %s22497_s12 = inlined_call_operand.vmem [shape: f32[1,8], index: 12, kind: input, shape index: {}]   ;;  %s22498_s13 = inlined_call_operand.hbm [shape: f32[2,8], index: 13, kind: output, shape index: {}]  }
   0x1   :  { %v17098_v0 = vld [vmem:[%s22488_s3 + $0x78] sm:$0xff]   ;;  %v17100_v2 = vld [vmem:[%s22488_s3 + $0x70] sm:$0xff]   ;;  %v17102_v4 = vld [vmem:[%s22488_s3 + $0x68] sm:$0xff]   ;;  %v90_v31 = vunpack.c.l.s4 %v18185_v30  ;;  %vm668_vm2 = vcmask 128004   ;;  %vm877_vm3 = vcmask 130054   ;;  %vm1087_vm4 = vcmask 255104  }
   0x2   :  { %v17099_v1 = vld [vmem:[%s22488_s3 + $0x38] sm:$0xff]   ;;  %15467 = vmatprep.subr.bf16.mxu0 %v17098_v0  ;;  %v17101_v3 = vld [vmem:[%s22488_s3 + $0x30] sm:$0xff]   ;;  %v17103_v5 = vld [vmem:[%s22488_s3 + $0x28] sm:$0xff]   ;;  %v93_v32 = vshrl.u32 %v92_v25, 7  ;;  %vm1298_vm5 = vcmask 257154   ;;  %s18188_s26 = smov 48  }
   0x3   :  { %15468 = vmatpush3.bf16.msra.mxu0 %v17099_v1  ;;  %v17104_v6 = vld [vmem:[%s22488_s3 + $0x78] sm:$0xff]   ;;  %v17106_v8 = vld [vmem:[%s22488_s3 + $0x60] sm:$0xff]   ;;  %v17108_v10 = vld [vmem:[%s22488_s3 + $0x70] sm:$0xff]   ;;  %v91_v36 = vunpack.c.0.s8 %v90_v31  ;;  %vm1930_vm6 = vcmask 386304   ;;  %vm2141_vm7 = vcmask 388354   ;;  %s18189_s21 = smov 64  }
   0x4   :  { %15469 = vmatprep.subr.bf16.mxu0 %v17100_v2  ;;  %v17105_v7 = vld [vmem:[%s22488_s3 + $0x38] sm:$0xff]   ;;  %15489 = vmatprep.subr.bf16.mxu1 %v17104_v6  ;;  %v17107_v9 = vld [vmem:[%s22488_s3 + $0x20] sm:$0xff]   ;;  %v17109_v11 = vld [vmem:[%s22488_s3 + $0x30] sm:$0xff]   ;;  %vm2773_vm8 = vcmask 517504   ;;  %vm2984_vm9 = vcmask 519554   ;;  %s18190_s20 = smov 80  }
   0x5   :  { %15490 = vmatpush3.bf16.msra.mxu1 %v17105_v7  ;;  %v17110_v12 = vld [vmem:[%s22488_s3 + $0x58] sm:$0xff]   ;;  %v17112_v14 = vld [vmem:[%s22488_s3 + $0x68] sm:$0xff]   ;;  %v17114_v16 = vld [vmem:[%s22488_s3 + $0x50] sm:$0xff]   ;;  %v18365_v38 = vsub.s32 %v91_v36, %v93_v32  ;;  %vm3616_vm10 = vcmask 648704   ;;  %vm3827_vm11 = vcmask 650754   ;;  %s18191_s28 = smov 96  }
   0x6   :  { %15491 = vmatprep.subr.bf16.mxu1 %v17108_v10  ;;  %v17111_v13 = vld [vmem:[%s22488_s3 + $0x18] sm:$0xff]   ;;  %v17113_v15 = vld [vmem:[%s22488_s3 + $0x28] sm:$0xff]   ;;  %v17115_v17 = vld [vmem:[%s22488_s3 + $0x10] sm:$0xff]   ;;  %vm4459_vm12 = vcmask 779904   ;;  %vm4670_vm13 = vcmask 781954   ;;  %s18192_s27 = smov 112  }
   0x7   :  { %15470 = vmatpush3.bf16.msra.mxu0 %v17101_v3  ;;  %v17116_v18 = vld [vmem:[%s22488_s3 + $0x60] sm:$0xff]   ;;  %v17118_v20 = vld [vmem:[%s22488_s3 + $0x48] sm:$0xff]   ;;  %v17120_v22 = vld [vmem:[%s22488_s3 + $0x58] sm:$0xff]   ;;  %vm5302_vm14 = vcmask 911104   ;;  %vm6145_vm15 = vcmask 1042304  }
   0x8   :  { %15471 = vmatprep.subr.bf16.mxu0 %v17102_v4  ;;  %v17117_v19 = vld [vmem:[%s22488_s3 + $0x20] sm:$0xff]   ;;  %v17119_v21 = vld [vmem:[%s22488_s3 + $0x8] sm:$0xff]   ;;  %v17121_v23 = vld [vmem:[%s22488_s3 + $0x18] sm:$0xff]  }
   0x9   :  { %15492 = vmatpush3.bf16.msra.mxu1 %v17109_v11  ;;  %v17122_v24 = vld [vmem:[%s22488_s3 + $0x40] sm:$0xff]   ;;  %v17124_v27 = vld [vmem:[%s22488_s3 + $0x50] sm:$0xff]   ;;  %v17126_v34 = vld [vmem:[%s22488_s3 + $0x78] sm:$0xff]  }
   0xa   :  { %15493 = vmatprep.subr.bf16.mxu1 %v17112_v14  ;;  %v17123_v26 = vld [vmem:[%s22488_s3] sm:$0xff]   ;;  %v17125_v33 = vld [vmem:[%s22488_s3 + $0x10] sm:$0xff]   ;;  %v17128_v37 = vld [vmem:[%s22488_s3 + $0x48] sm:$0xff]  }
   0xb   :  { %15472 = vmatpush3.bf16.msra.mxu0 %v17103_v5  ;;  %v18350_v28 = vld [vmem:[%s22486_s1] sm:$0x3]  ;;  %v17129_v39 = vld [vmem:[%s22488_s3 + $0x8] sm:$0xff]   ;;  %v17127_v45 = vld [vmem:[%s22488_s3 + $0x38] sm:$0xff]  }
   0xc   :  { %15473 = vmatprep.subr.bf16.mxu0 %v17106_v8  ;;  %v47_v29 = vld [vmem:[%s22485_s0] sm:$0x3]  ;;  %v17130_v47 = vld [vmem:[%s22488_s3 + $0x70] sm:$0xff]   ;;  %v14288_v48 = vld [vmem:[%s22485_s0 + $0x2] sm:$0x3] }
   0xd   :  { %15494 = vmatpush3.bf16.msra.mxu1 %v17113_v15  ;;  %v48_v35 = vmul.bf16 %v47_v29, %v18350_v28  ;;  %v17132_v41 = vld [vmem:[%s22488_s3 + $0x40] sm:$0xff]   ;;  %v254_v49 = vmul.bf16 %v14288_v48, %v18350_v28  ;;  %v17136_v50 = vld [vmem:[%s22488_s3 + $0x78] sm:$0xff]   ;;  %v17131_v51 = vld [vmem:[%s22488_s3 + $0x30] sm:$0xff]  }
   0xe   :  { %15495 = vmatprep.subr.bf16.mxu1 %v17116_v18  ;;  %v17133_v43 = vld [vmem:[%s22488_s3] sm:$0xff]   ;;  %v17134_v53 = vld [vmem:[%s22488_s3 + $0x68] sm:$0xff]   ;;  %v17137_v57 = vld [vmem:[%s22488_s3 + $0x38] sm:$0xff]  }
   0xf   :  { %15474 = vmatpush3.bf16.msra.mxu0 %v17107_v9  ;;  %v95_v40 = vrot.slane %v48_v35, %v18365_v38  ;;  %v301_v52 = vrot.slane %v254_v49, %v18365_v38  ;;  %v17135_v54 = vld [vmem:[%s22488_s3 + $0x28] sm:$0xff]   ;;  %v17138_v59 = vld [vmem:[%s22488_s3 + $0x60] sm:$0xff]   ;;  %v17140_v60 = vld [vmem:[%s22488_s3 + $0x70] sm:$0xff]  }
  0x10   :  { %15475 = vmatprep.subr.bf16.mxu0 %v17110_v12  ;;  %v17139_v61 = vld [vmem:[%s22488_s3 + $0x20] sm:$0xff]   ;;  %v17141_v62 = vld [vmem:[%s22488_s3 + $0x30] sm:$0xff]   ;;  %v17142_v63 = vld [vmem:[%s22488_s3 + $0x58] sm:$0xff]  }
  0x11   :  { %15496 = vmatpush3.bf16.msra.mxu1 %v17117_v19  ;;  %v96_v42 = vcombine.high %v95_v40, %v95_v40  ;;  %v103_v44 = vrot.slane %v95_v40, %v18365_v38  ;;  %v302_v55 = vcombine.high %v301_v52, %v301_v52  ;;  %v309_v56 = vrot.slane %v301_v52, %v18365_v38  ;;  %v17144_v0 = vld [vmem:[%s22488_s3 + $0x68] sm:$0xff]   ;;  %v17143_v1 = vld [vmem:[%s22488_s3 + $0x18] sm:$0xff]   ;;  %v17146_v3 = vld [vmem:[%s22488_s3 + $0x50] sm:$0xff]  }
  0x12   :  { %15497 = vmatprep.subr.bf16.mxu1 %v17120_v22  ;;  %v17145_v2 = vld [vmem:[%s22488_s3 + $0x28] sm:$0xff]   ;;  %v17148_v4 = vld [vmem:[%s22488_s3 + $0x60] sm:$0xff]   ;;  %v17147_v5 = vld [vmem:[%s22488_s3 + $0x10] sm:$0xff]  }
  0x13   :  { %15476 = vmatpush3.bf16.msra.mxu0 %v17111_v13  ;;  %v110_v46 = vrot.slane %v96_v42, %v18365_v38  ;;  %v316_v58 = vrot.slane %v302_v55, %v18365_v38  ;;  %v17149_v6 = vld [vmem:[%s22488_s3 + $0x20] sm:$0xff]   ;;  %v17150_v7 = vld [vmem:[%s22488_s3 + $0x48] sm:$0xff]   ;;  %v17152_v8 = vld [vmem:[%s22488_s3 + $0x58] sm:$0xff]  }
  0x14   :  { %15477 = vmatprep.subr.bf16.mxu0 %v17114_v16  ;;  %v17151_v9 = vld [vmem:[%s22488_s3 + $0x8] sm:$0xff]   ;;  %v14306_v10 = vld [vmem:[%s22485_s0 + $0x4] sm:$0x3]  ;;  %v17153_v11 = vld [vmem:[%s22488_s3 + $0x18] sm:$0xff]  }
  0x15   :  { %15498 = vmatpush3.bf16.msra.mxu1 %v17121_v23  ;;  %241 = vmatprep.mubr.bf16.mxu0 %v110_v46  ;;  %v463_v12 = vmul.bf16 %v14306_v10, %v18350_v28  ;;  %v17154_v13 = vld [vmem:[%s22488_s3 + $0x40] sm:$0xff]   ;;  %v17156_v14 = vld [vmem:[%s22488_s3 + $0x50] sm:$0xff]   ;;  %v17158_v19 = vld [vmem:[%s22488_s3 + $0x78] sm:$0xff]  }
  0x16   :  { %15499 = vmatprep.subr.bf16.mxu1 %v17124_v27  ;;  %447 = vmatprep.mubr.bf16.mxu1 %v316_v58  ;;  %v17155_v16 = vld [vmem:[%s22488_s3] sm:$0xff]   ;;  %v17157_v18 = vld [vmem:[%s22488_s3 + $0x10] sm:$0xff]   ;;  %v17159_v22 = vld [vmem:[%s22488_s3 + $0x38] sm:$0xff]  }
  0x17   :  { %15478 = vmatpush3.bf16.msra.mxu0 %v17115_v17  ;;  %v510_v15 = vrot.slane %v463_v12, %v18365_v38  ;;  %v17162_v25 = vld [vmem:[%s22488_s3 + $0x70] sm:$0xff]   ;;  %v14324_v27 = vld [vmem:[%s22485_s0 + $0x6] sm:$0x3]  ;;  %v17166_v32 = vld [vmem:[%s22488_s3 + $0x68] sm:$0xff]  }
  0x18   :  { %15479 = vmatprep.subr.bf16.mxu0 %v17118_v20  ;;  %v17163_v29 = vld [vmem:[%s22488_s3 + $0x30] sm:$0xff]   ;;  %v672_v30 = vmul.bf16 %v14324_v27, %v18350_v28  ;;  %v17165_v31 = vld [vmem:[%s22488_s3] sm:$0xff]   ;;  %v17167_v35 = vld [vmem:[%s22488_s3 + $0x28] sm:$0xff]  }
  0x19   :  { %15500 = vmatpush3.bf16.msra.mxu1 %v17125_v33  ;;  %v511_v17 = vcombine.high %v510_v15, %v510_v15  ;;  %v518_v23 = vrot.slane %v510_v15, %v18365_v38  ;;  %v17172_v42 = vld [vmem:[%s22488_s3 + $0x70] sm:$0xff]   ;;  %v17176_v46 = vld [vmem:[%s22488_s3 + $0x68] sm:$0xff]   ;;  %v17181_v52 = vld [vmem:[%s22488_s3 + $0x20] sm:$0xff]  }
  0x1a   :  { %15501 = vmatprep.subr.bf16.mxu1 %v17128_v37  ;;  %v719_v33 = vrot.slane %v672_v30, %v18365_v38  ;;  %v17177_v48 = vld [vmem:[%s22488_s3 + $0x28] sm:$0xff]   ;;  %v17178_v49 = vld [vmem:[%s22488_s3 + $0x50] sm:$0xff]   ;;  %v17186_v58 = vld [vmem:[%s22488_s3 + $0x40] sm:$0xff]  }
  0x1b   :  { %15480 = vmatpush3.bf16.msra.mxu0 %v17119_v21  ;;  %v525_v20 = vrot.slane %v511_v17, %v18365_v38  ;;  %v17160_v21 = vld [vmem:[%s22488_s3 + $0x48] sm:$0xff]   ;;  %v17195_v10 = vld [vmem:[%s22488_s3 + $0x30] sm:$0xff]   ;;  %v17197_v12 = vld [vmem:[%s22488_s3] sm:$0xff]  }
  0x1c   :  { %15481 = vmatprep.subr.bf16.mxu0 %v17122_v24  ;;  %v17161_v24 = vld [vmem:[%s22488_s3 + $0x8] sm:$0xff]   ;;  %v720_v36 = vcombine.high %v719_v33, %v719_v33  ;;  %v727_v37 = vrot.slane %v719_v33, %v18365_v38  ;;  %v17200_v15 = vld [vmem:[%s22488_s3 + $0x78] sm:$0xff]   ;;  %v17210_v30 = vld [vmem:[%s22488_s3 + $0x50] sm:$0xff]  }
  0x1d   :  { %15502 = vmatpush3.bf16.msra.mxu1 %v17129_v39  ;;  %v17169_v39 = vld [vmem:[%s22488_s3 + $0x38] sm:$0xff]   ;;  %v17183_v55 = vld [vmem:[%s22488_s3 + $0x8] sm:$0xff]   ;;  %v17213_v33 = vld [vmem:[%s22488_s3 + $0x20] sm:$0xff]  }
  0x1e   :  { %15503 = vmatprep.subr.bf16.mxu1 %v17132_v41  ;;  %v734_v40 = vrot.slane %v720_v36, %v18365_v38  ;;  %v17170_v41 = vld [vmem:[%s22488_s3 + $0x60] sm:$0xff]   ;;  %v17207_v27 = vld [vmem:[%s22488_s3 + $0x18] sm:$0xff]   ;;  %v17215_v36 = vld [vmem:[%s22488_s3 + $0x8] sm:$0xff]  }
  0x1f   :  { %15482 = vmatpush3.bf16.msra.mxu0 %v17123_v26  ;;  %v17164_v26 = vld [vmem:[%s22488_s3 + $0x40] sm:$0xff]  }
  0x20   :  { %15511 = vmatprep.subr.bf16.mxu0 %v17126_v34  ;;  %v17168_v34 = vld [vmem:[%s22488_s3 + $0x78] sm:$0xff]  }
  0x21   :  { %15504 = vmatpush3.bf16.msra.mxu1 %v17133_v43  ;;  %v17171_v43 = vld [vmem:[%s22488_s3 + $0x20] sm:$0xff]  }
  0x22   :  { %242 = vmatmul.mubr.bf16.vlgmr.msra.gmra.mxu0 %v103_v44  ;;  %15533 = vmatprep.subr.bf16.mxu1 %v17136_v50  ;;  %v17173_v44 = vld [vmem:[%s22488_s3 + $0x30] sm:$0xff]   ;;  %v17180_v50 = vld [vmem:[%s22488_s3 + $0x60] sm:$0xff]  }
  0x23   :  { %15512 = vmatpush3.bf16.msra.mxu0 %v17127_v45  ;;  %656 = vmatprep.mubr.bf16.mxu0 %v525_v20  ;;  %v17174_v45 = vld [vmem:[%s22488_s3 + $0x58] sm:$0xff]  }
  0x24   :  { %15513 = vmatprep.subr.bf16.mxu0 %v17130_v47  ;;  %448 = vmatmul.mubr.bf16.vlgmr.msra.gmra.mxu1 %v309_v56  ;;  %v17175_v47 = vld [vmem:[%s22488_s3 + $0x18] sm:$0xff]  }
  0x25   :  { %15534 = vmatpush3.bf16.msra.mxu1 %v17137_v57  ;;  %865 = vmatprep.mubr.bf16.mxu1 %v734_v40  ;;  %v17185_v56 = vld [vmem:[%s22488_s3 + $0x18] sm:$0xff]   ;;  %v14342_v57 = vld [vmem:[%s22485_s0 + $0x8] sm:$0x3] }
  0x26   :  { %15535 = vmatprep.subr.bf16.mxu1 %v17140_v60  ;;  %v17188_v60 = vld [vmem:[%s22488_s3 + $0x50] sm:$0xff]  }
  0x27   :  { %15514 = vmatpush3.bf16.msra.mxu0 %v17131_v51  ;;  %v17179_v51 = vld [vmem:[%s22488_s3 + $0x10] sm:$0xff]  }
  0x28   :  { %15515 = vmatprep.subr.bf16.mxu0 %v17134_v53  ;;  %v17182_v53 = vld [vmem:[%s22488_s3 + $0x48] sm:$0xff]  }
  0x29   :  { %15536 = vmatpush3.bf16.msra.mxu1 %v17141_v62  ;;  %v17187_v62 = vld [vmem:[%s22488_s3] sm:$0xff]  }
  0x2a   :  { %15537 = vmatprep.subr.bf16.mxu1 %v17144_v0  ;;  %v17189_v0 = vld [vmem:[%s22488_s3 + $0x10] sm:$0xff]  }
  0x2b   :  { %15516 = vmatpush3.bf16.msra.mxu0 %v17135_v54  ;;  %v17184_v54 = vld [vmem:[%s22488_s3 + $0x58] sm:$0xff]  }
  0x2c   :  { %15517 = vmatprep.subr.bf16.mxu0 %v17138_v59  ;;  %v881_v59 = vmul.bf16 %v14342_v57, %v18350_v28  ;;  %v17229_v57 = vld [vmem:[%s22488_s3] sm:$0xff]  }
  0x2d   :  { %15538 = vmatpush3.bf16.msra.mxu1 %v17145_v2 }
  0x2e   :  { %15539 = vmatprep.subr.bf16.mxu1 %v17148_v4 }
  0x2f   :  { %15518 = vmatpush3.bf16.msra.mxu0 %v17139_v61  ;;  %v928_v61 = vrot.slane %v881_v59, %v18365_v38  ;;  %v17230_v59 = vld [vmem:[%s22488_s3 + $0x68] sm:$0xff]  }
  0x30   :  { %15519 = vmatprep.subr.bf16.mxu0 %v17142_v63 }
  0x31   :  { %15540 = vmatpush3.bf16.msra.mxu1 %v17149_v6  ;;  %v929_v63 = vcombine.high %v928_v61, %v928_v61  ;;  %v936_v4 = vrot.slane %v928_v61, %v18365_v38  ;;  %v17193_v6 = vld [vmem:[%s22488_s3 + $0x8] sm:$0xff]   ;;  %v17232_v61 = vld [vmem:[%s22488_s3 + $0x78] sm:$0xff]  }
  0x32   :  { %15541 = vmatprep.subr.bf16.mxu1 %v17152_v8  ;;  %v17196_v8 = vld [vmem:[%s22488_s3 + $0x40] sm:$0xff]  }
  0x33   :  { %15520 = vmatpush3.bf16.msra.mxu0 %v17143_v1  ;;  %v17190_v1 = vld [vmem:[%s22488_s3 + $0x78] sm:$0xff]   ;;  %v943_v2 = vrot.slane %v929_v63, %v18365_v38 }
  0x34   :  { %15521 = vmatprep.subr.bf16.mxu0 %v17146_v3  ;;  %v17192_v3 = vld [vmem:[%s22488_s3 + $0x48] sm:$0xff]  }
  0x35   :  { %15542 = vmatpush3.bf16.msra.mxu1 %v17153_v11 }
  0x36   :  { %15543 = vmatprep.subr.bf16.mxu1 %v17156_v14 }
  0x37   :  { %15522 = vmatpush3.bf16.msra.mxu0 %v17147_v5  ;;  %v17191_v5 = vld [vmem:[%s22488_s3 + $0x38] sm:$0xff]  }
  0x38   :  { %15523 = vmatprep.subr.bf16.mxu0 %v17150_v7  ;;  %v17194_v7 = vld [vmem:[%s22488_s3 + $0x70] sm:$0xff]  }
  0x39   :  { %15544 = vmatpush3.bf16.msra.mxu1 %v17157_v18 }
  0x3a   :  { %15545 = vmatprep.subr.bf16.mxu1 %v17160_v21  ;;  %v17202_v21 = vld [vmem:[%s22488_s3 + $0x60] sm:$0xff]  }
  0x3b   :  { %15524 = vmatpush3.bf16.msra.mxu0 %v17151_v9  ;;  %v14360_v9 = vld [vmem:[%s22485_s0 + $0xa] sm:$0x3] }
  0x3c   :  { %15525 = vmatprep.subr.bf16.mxu0 %v17154_v13  ;;  %v1091_v11 = vmul.bf16 %v14360_v9, %v18350_v28  ;;  %v17198_v13 = vld [vmem:[%s22488_s3 + $0x68] sm:$0xff]  }
  0x3d   :  { %15546 = vmatpush3.bf16.msra.mxu1 %v17161_v24  ;;  %v17205_v24 = vld [vmem:[%s22488_s3 + $0x30] sm:$0xff]   ;;  %v17241_v9 = vld [vmem:[%s22488_s3 + $0x28] sm:$0xff]  }
  0x3e   :  { %15547 = vmatprep.subr.bf16.mxu1 %v17164_v26  ;;  %v1138_v14 = vrot.slane %v1091_v11, %v18365_v38  ;;  %v17208_v26 = vld [vmem:[%s22488_s3 + $0x68] sm:$0xff]   ;;  %v17243_v11 = vld [vmem:[%s22488_s3 + $0x10] sm:$0xff]  }
  0x3f   :  { %15526 = vmatpush3.bf16.msra.mxu0 %v17155_v16  ;;  %v17199_v16 = vld [vmem:[%s22488_s3 + $0x28] sm:$0xff]  }
  0x40   :  { %15555 = vmatprep.subr.bf16.mxu0 %v17158_v19  ;;  %v1139_v17 = vcombine.high %v1138_v14, %v1138_v14  ;;  %v1146_v18 = vrot.slane %v1138_v14, %v18365_v38  ;;  %v17201_v19 = vld [vmem:[%s22488_s3 + $0x38] sm:$0xff]   ;;  %v17246_v14 = vld [vmem:[%s22488_s3 + $0x48] sm:$0xff]  }
  0x41   :  { %15548 = vmatpush3.bf16.msra.mxu1 %v17165_v31  ;;  %v17212_v31 = vld [vmem:[%s22488_s3 + $0x60] sm:$0xff]  }
  0x42   :  { %657 = vmatmul.mubr.bf16.vlgmr.msra.gmra.mxu0 %v518_v23  ;;  %15577 = vmatprep.subr.bf16.mxu1 %v17168_v34  ;;  %v1153_v20 = vrot.slane %v1139_v17, %v18365_v38  ;;  %v17203_v23 = vld [vmem:[%s22488_s3 + $0x20] sm:$0xff]   ;;  %v17214_v34 = vld [vmem:[%s22488_s3 + $0x48] sm:$0xff]   ;;  %v17249_v17 = vld [vmem:[%s22488_s3 + $0x18] sm:$0xff]  }
  0x43   :  { %15556 = vmatpush3.bf16.msra.mxu0 %v17159_v22  ;;  %1074 = vmatprep.mubr.bf16.mxu0 %v943_v2  ;;  %v17204_v22 = vld [vmem:[%s22488_s3 + $0x70] sm:$0xff]  }
  0x44   :  { %15557 = vmatprep.subr.bf16.mxu0 %v17162_v25  ;;  %866 = vmatmul.mubr.bf16.vlgmr.msra.gmra.mxu1 %v727_v37  ;;  %v17206_v25 = vld [vmem:[%s22488_s3 + $0x58] sm:$0xff]   ;;  %v14378_v37 = vld [vmem:[%s22485_s0 + $0xc] sm:$0x3] }
  0x45   :  { %15578 = vmatpush3.bf16.msra.mxu1 %v17169_v39  ;;  %1284 = vmatprep.mubr.bf16.mxu1 %v1153_v20  ;;  %v17217_v39 = vld [vmem:[%s22488_s3 + $0x18] sm:$0xff]   ;;  %v1302_v40 = vmul.bf16 %v14378_v37, %v18350_v28  ;;  %v18794_v20 = vld [vmem:[%s22486_s1] sm:$0x3]  ;;  %v14432_v37 = vld [vmem:[%s22485_s0 + $0x12] sm:$0x3] }
  0x46   :  { %15579 = vmatprep.subr.bf16.mxu1 %v17172_v42  ;;  %v17220_v42 = vld [vmem:[%s22488_s3 + $0x50] sm:$0xff]  }
  0x47   :  { %15558 = vmatpush3.bf16.msra.mxu0 %v17163_v29  ;;  %v17209_v29 = vld [vmem:[%s22488_s3 + $0x28] sm:$0xff]  }
  0x48   :  { %15559 = vmatprep.subr.bf16.mxu0 %v17166_v32  ;;  %v17211_v32 = vld [vmem:[%s22488_s3 + $0x10] sm:$0xff]  }
  0x49   :  { %15580 = vmatpush3.bf16.msra.mxu1 %v17173_v44  ;;  %v17219_v44 = vld [vmem:[%s22488_s3] sm:$0xff]  }
  0x4a   :  { %15581 = vmatprep.subr.bf16.mxu1 %v17176_v46  ;;  %v17221_v46 = vld [vmem:[%s22488_s3 + $0x10] sm:$0xff]  }
  0x4b   :  { %15560 = vmatpush3.bf16.msra.mxu0 %v17167_v35  ;;  %v17216_v35 = vld [vmem:[%s22488_s3 + $0x58] sm:$0xff]  }
  0x4c   :  { %15561 = vmatprep.subr.bf16.mxu0 %v17170_v41  ;;  %v17218_v41 = vld [vmem:[%s22488_s3 + $0x40] sm:$0xff]  }
  0x4d   :  { %15582 = vmatpush3.bf16.msra.mxu1 %v17177_v48 }
  0x4e   :  { %15583 = vmatprep.subr.bf16.mxu1 %v17180_v50 }
  0x4f   :  { %15562 = vmatpush3.bf16.msra.mxu0 %v17171_v43  ;;  %v1349_v43 = vrot.slane %v1302_v40, %v18365_v38  ;;  %v1934_v40 = vmul.bf16 %v18794_v20, %v14432_v37  ;;  %v17306_v37 = vld [vmem:[%s22488_s3 + $0x50] sm:$0xff]  }
  0x50   :  { %15563 = vmatprep.subr.bf16.mxu0 %v17174_v45 }
  0x51   :  { %15584 = vmatpush3.bf16.msra.mxu1 %v17181_v52  ;;  %v1350_v45 = vcombine.high %v1349_v43, %v1349_v43  ;;  %v1357_v50 = vrot.slane %v1349_v43, %v18365_v38  ;;  %v17225_v52 = vld [vmem:[%s22488_s3 + $0x8] sm:$0xff]   ;;  %v1981_v43 = vrot.slane %v1934_v40, %v18365_v38  ;;  %v17307_v40 = vld [vmem:[%s22488_s3 + $0x10] sm:$0xff]  }
  0x52   :  { %15585 = vmatprep.subr.bf16.mxu1 %v17184_v54  ;;  %v17227_v54 = vld [vmem:[%s22488_s3 + $0x30] sm:$0xff]  }
  0x53   :  { %15564 = vmatpush3.bf16.msra.mxu0 %v17175_v47  ;;  %v17222_v47 = vld [vmem:[%s22488_s3 + $0x78] sm:$0xff]   ;;  %v1364_v48 = vrot.slane %v1350_v45, %v18365_v38  ;;  %v1982_v45 = vcombine.high %v1981_v43, %v1981_v43 }
  0x54   :  { %15565 = vmatprep.subr.bf16.mxu0 %v17178_v49  ;;  %v17224_v49 = vld [vmem:[%s22488_s3 + $0x48] sm:$0xff]  }
  0x55   :  { %15586 = vmatpush3.bf16.msra.mxu1 %v17185_v56  ;;  %v14396_v56 = vld [vmem:[%s22485_s0 + $0xe] sm:$0x3] }
  0x56   :  { %15587 = vmatprep.subr.bf16.mxu1 %v17188_v60 }
  0x57   :  { %15566 = vmatpush3.bf16.msra.mxu0 %v17179_v51  ;;  %v17223_v51 = vld [vmem:[%s22488_s3 + $0x38] sm:$0xff]  }
  0x58   :  { %15567 = vmatprep.subr.bf16.mxu0 %v17182_v53  ;;  %v17226_v53 = vld [vmem:[%s22488_s3 + $0x70] sm:$0xff]  }
  0x59   :  { %15588 = vmatpush3.bf16.msra.mxu1 %v17189_v0 }
  0x5a   :  { %15589 = vmatprep.subr.bf16.mxu1 %v17192_v3  ;;  %v17235_v3 = vld [vmem:[%s22488_s3 + $0x20] sm:$0xff]  }
  0x5b   :  { %15568 = vmatpush3.bf16.msra.mxu0 %v17183_v55  ;;  %v17228_v55 = vld [vmem:[%s22488_s3 + $0x40] sm:$0xff]  }
  0x5c   :  { %15569 = vmatprep.subr.bf16.mxu0 %v17186_v58  ;;  %v1513_v58 = vmul.bf16 %v14396_v56, %v18350_v28  ;;  %v17233_v28 = vld [vmem:[%s22488_s3 + $0x38] sm:$0xff]   ;;  %v17273_v56 = vld [vmem:[%s22488_s3 + $0x28] sm:$0xff]  }
  0x5d   :  { %15590 = vmatpush3.bf16.msra.mxu1 %v17193_v6  ;;  %v17238_v6 = vld [vmem:[%s22488_s3 + $0x58] sm:$0xff]  }
  0x5e   :  { %15591 = vmatprep.subr.bf16.mxu1 %v17196_v8  ;;  %v1560_v60 = vrot.slane %v1513_v58, %v18365_v38  ;;  %v17240_v8 = vld [vmem:[%s22488_s3 + $0x68] sm:$0xff]   ;;  %v17275_v58 = vld [vmem:[%s22488_s3 + $0x10] sm:$0xff]  }
  0x5f   :  { %15570 = vmatpush3.bf16.msra.mxu0 %v17187_v62  ;;  %v17231_v62 = vld [vmem:[%s22488_s3 + $0x28] sm:$0xff]  }
  0x60   :  { %15599 = vmatprep.subr.bf16.mxu0 %v17190_v1  ;;  %v1561_v63 = vcombine.high %v1560_v60, %v1560_v60  ;;  %v1568_v0 = vrot.slane %v1560_v60, %v18365_v38  ;;  %v17234_v1 = vld [vmem:[%s22488_s3 + $0x60] sm:$0xff]  }
  0x61   :  { %15592 = vmatpush3.bf16.msra.mxu1 %v17197_v12  ;;  %v17244_v12 = vld [vmem:[%s22488_s3 + $0x60] sm:$0xff]  }
  0x62   :  { %1075 = vmatmul.mubr.bf16.vlgmr.msra.gmra.mxu0 %v936_v4  ;;  %15621 = vmatprep.subr.bf16.mxu1 %v17200_v15  ;;  %v1575_v2 = vrot.slane %v1561_v63, %v18365_v38  ;;  %v17236_v4 = vld [vmem:[%s22488_s3 + $0x70] sm:$0xff]   ;;  %v17247_v15 = vld [vmem:[%s22488_s3 + $0x8] sm:$0xff]   ;;  %v17277_v60 = vld [vmem:[%s22488_s3 + $0x20] sm:$0xff]  }
  0x63   :  { %15600 = vmatpush3.bf16.msra.mxu0 %v17191_v5  ;;  %1495 = vmatprep.mubr.bf16.mxu0 %v1364_v48  ;;  %v17237_v5 = vld [vmem:[%s22488_s3 + $0x30] sm:$0xff]   ;;  %v17266_v48 = vld [vmem:[%s22488_s3 + $0x60] sm:$0xff]   ;;  %v17280_v63 = vld [vmem:[%s22488_s3 + $0x58] sm:$0xff]  }
  0x64   :  { %15601 = vmatprep.subr.bf16.mxu0 %v17194_v7  ;;  %1285 = vmatmul.mubr.bf16.vlgmr.msra.gmra.mxu1 %v1146_v18  ;;  %v17239_v7 = vld [vmem:[%s22488_s3 + $0x18] sm:$0xff]   ;;  %v14414_v18 = vld [vmem:[%s22485_s0 + $0x10] sm:$0x3] }
  0x65   :  { %15622 = vmatpush3.bf16.msra.mxu1 %v17201_v19  ;;  %1706 = vmatprep.mubr.bf16.mxu1 %v1575_v2  ;;  %v17250_v19 = vld [vmem:[%s22488_s3 + $0x40] sm:$0xff]  }
  0x66   :  { %15623 = vmatprep.subr.bf16.mxu1 %v17204_v22  ;;  %v17251_v22 = vld [vmem:[%s22488_s3] sm:$0xff]  }
  0x67   :  { %15602 = vmatpush3.bf16.msra.mxu0 %v17195_v10  ;;  %v17242_v10 = vld [vmem:[%s22488_s3 + $0x50] sm:$0xff]  }
  0x68   :  { %15603 = vmatprep.subr.bf16.mxu0 %v17198_v13  ;;  %v17245_v13 = vld [vmem:[%s22488_s3 + $0x20] sm:$0xff]  }
  0x69   :  { %15624 = vmatpush3.bf16.msra.mxu1 %v17205_v24 }
  0x6a   :  { %15625 = vmatprep.subr.bf16.mxu1 %v17208_v26 }
  0x6b   :  { %15604 = vmatpush3.bf16.msra.mxu0 %v17199_v16  ;;  %v17248_v16 = vld [vmem:[%s22488_s3 + $0x58] sm:$0xff]  }
  0x6c   :  { %15605 = vmatprep.subr.bf16.mxu0 %v17202_v21  ;;  %v1724_v21 = vmul.bf16 %v18794_v20, %v14414_v18  ;;  %v17294_v18 = vld [vmem:[%s22488_s3 + $0x68] sm:$0xff]  }
  0x6d   :  { %15626 = vmatpush3.bf16.msra.mxu1 %v17209_v29  ;;  %v17255_v29 = vld [vmem:[%s22488_s3 + $0x38] sm:$0xff]  }
  0x6e   :  { %15627 = vmatprep.subr.bf16.mxu1 %v17212_v31  ;;  %v1771_v24 = vrot.slane %v1724_v21, %v18365_v38  ;;  %v17293_v21 = vld [vmem:[%s22488_s3] sm:$0xff]  }
  0x6f   :  { %15606 = vmatpush3.bf16.msra.mxu0 %v17203_v23  ;;  %v17252_v23 = vld [vmem:[%s22488_s3 + $0x50] sm:$0xff]  }
  0x70   :  { %15607 = vmatprep.subr.bf16.mxu0 %v17206_v25  ;;  %v17253_v25 = vld [vmem:[%s22488_s3 + $0x10] sm:$0xff]   ;;  %v1772_v26 = vcombine.high %v1771_v24, %v1771_v24  ;;  %v1779_v31 = vrot.slane %v1771_v24, %v18365_v38  ;;  %v17295_v24 = vld [vmem:[%s22488_s3 + $0x28] sm:$0xff]  }
  0x71   :  { %15628 = vmatpush3.bf16.msra.mxu1 %v17213_v33  ;;  %v17257_v33 = vld [vmem:[%s22488_s3 + $0x8] sm:$0xff]  }
  0x72   :  { %15629 = vmatprep.subr.bf16.mxu1 %v17216_v35  ;;  %v17259_v35 = vld [vmem:[%s22488_s3 + $0x30] sm:$0xff]  }
  0x73   :  { %15608 = vmatpush3.bf16.msra.mxu0 %v17207_v27  ;;  %v17254_v27 = vld [vmem:[%s22488_s3 + $0x78] sm:$0xff]  }
  0x74   :  { %15609 = vmatprep.subr.bf16.mxu0 %v17210_v30  ;;  %v1786_v30 = vrot.slane %v1772_v26, %v18365_v38  ;;  %v17298_v26 = vld [vmem:[%s22488_s3 + $0x60] sm:$0xff]  }
  0x75   :  { %15630 = vmatpush3.bf16.msra.mxu1 %v17217_v39  ;;  %v17261_v39 = vld [vmem:[%s22488_s3] sm:$0xff]  }
  0x76   :  { %15631 = vmatprep.subr.bf16.mxu1 %v17220_v42  ;;  %v17263_v42 = vld [vmem:[%s22488_s3 + $0x28] sm:$0xff]  }
  0x77   :  { %15610 = vmatpush3.bf16.msra.mxu0 %v17211_v32  ;;  %v17256_v32 = vld [vmem:[%s22488_s3 + $0x48] sm:$0xff]  }
  0x78   :  { %15611 = vmatprep.subr.bf16.mxu0 %v17214_v34  ;;  %v17258_v34 = vld [vmem:[%s22488_s3 + $0x70] sm:$0xff]  }
  0x79   :  { %15632 = vmatpush3.bf16.msra.mxu1 %v17221_v46  ;;  %v17265_v46 = vld [vmem:[%s22488_s3 + $0x38] sm:$0xff]  }
  0x7a   :  { %15633 = vmatprep.subr.bf16.mxu1 %v17224_v49  ;;  %v1996_v49 = vrot.slane %v1982_v45, %v18365_v38  ;;  %v17312_v45 = vld [vmem:[%s22488_s3 + $0x58] sm:$0xff]  }
  0x7b   :  { %15612 = vmatpush3.bf16.msra.mxu0 %v17215_v36  ;;  %v17260_v36 = vld [vmem:[%s22488_s3 + $0x40] sm:$0xff]  }
  0x7c   :  { %15613 = vmatprep.subr.bf16.mxu0 %v17218_v41  ;;  %v17262_v41 = vld [vmem:[%s22488_s3 + $0x68] sm:$0xff]  }
  0x7d   :  { %15634 = vmatpush3.bf16.msra.mxu1 %v17225_v52  ;;  %v17269_v52 = vld [vmem:[%s22488_s3 + $0x30] sm:$0xff]  }
  0x7e   :  { %15635 = vmatprep.subr.bf16.mxu1 %v17228_v55  ;;  %v17272_v55 = vld [vmem:[%s22488_s3 + $0x68] sm:$0xff]  }
  0x7f   :  { %15614 = vmatpush3.bf16.msra.mxu0 %v17219_v44  ;;  %v17264_v44 = vld [vmem:[%s22488_s3 + $0x78] sm:$0xff]  }
  0x80   :  { %15643 = vmatprep.subr.bf16.mxu0 %v17222_v47  ;;  %v1989_v47 = vrot.slane %v1981_v43, %v18365_v38  ;;  %v17309_v43 = vld [vmem:[%s22488_s3 + $0x20] sm:$0xff]  }
  0x81   :  { %15636 = vmatpush3.bf16.msra.mxu1 %v17229_v57  ;;  %v17274_v57 = vld [vmem:[%s22488_s3 + $0x50] sm:$0xff]  }
  0x82   :  { %1496 = vmatmul.mubr.bf16.vlgmr.msra.gmra.mxu0 %v1357_v50  ;;  %15665 = vmatprep.subr.bf16.mxu1 %v17232_v61  ;;  %v17267_v50 = vld [vmem:[%s22488_s3 + $0x20] sm:$0xff]   ;;  %v17278_v61 = vld [vmem:[%s22488_s3 + $0x48] sm:$0xff]  }
  0x83   :  { %15644 = vmatpush3.bf16.msra.mxu0 %v17223_v51  ;;  %1917 = vmatprep.mubr.bf16.mxu0 %v1786_v30  ;;  %v17268_v51 = vld [vmem:[%s22488_s3 + $0x70] sm:$0xff]  }
  0x84   :  { %15645 = vmatprep.subr.bf16.mxu0 %v17226_v53  ;;  %1707 = vmatmul.mubr.bf16.vlgmr.msra.gmra.mxu1 %v1568_v0  ;;  %v17270_v53 = vld [vmem:[%s22488_s3 + $0x58] sm:$0xff]   ;;  %v14450_v0 = vld [vmem:[%s22485_s0 + $0x14] sm:$0x3] }
  0x85   :  { %15666 = vmatpush3.bf16.msra.mxu1 %v17233_v28  ;;  %2127 = vmatprep.mubr.bf16.mxu1 %v1996_v49  ;;  %v17282_v28 = vld [vmem:[%s22488_s3 + $0x40] sm:$0xff]   ;;  %v2145_v2 = vmul.bf16 %v18794_v20, %v14450_v0 }
  0x86   :  { %15667 = vmatprep.subr.bf16.mxu1 %v17236_v4  ;;  %v17283_v4 = vld [vmem:[%s22488_s3] sm:$0xff]  }
  0x87   :  { %15646 = vmatpush3.bf16.msra.mxu0 %v17227_v54  ;;  %v17271_v54 = vld [vmem:[%s22488_s3 + $0x18] sm:$0xff]   ;;  %v17324_v0 = vld [vmem:[%s22488_s3 + $0x40] sm:$0xff]  }
  0x88   :  { %15647 = vmatprep.subr.bf16.mxu0 %v17230_v59  ;;  %v17276_v59 = vld [vmem:[%s22488_s3 + $0x60] sm:$0xff]  }
  0x89   :  { %15668 = vmatpush3.bf16.msra.mxu1 %v17237_v5  ;;  %v2192_v5 = vrot.slane %v2145_v2, %v18365_v38  ;;  %v17326_v2 = vld [vmem:[%s22488_s3 + $0x68] sm:$0xff]  }
  0x8a   :  { %15669 = vmatprep.subr.bf16.mxu1 %v17240_v8  ;;  %v17285_v8 = vld [vmem:[%s22488_s3 + $0x10] sm:$0xff]  }
  0x8b   :  { %15648 = vmatpush3.bf16.msra.mxu0 %v17231_v62  ;;  %v17279_v62 = vld [vmem:[%s22488_s3 + $0x8] sm:$0xff]  }
  0x8c   :  { %15649 = vmatprep.subr.bf16.mxu0 %v17234_v1  ;;  %v17281_v1 = vld [vmem:[%s22488_s3 + $0x18] sm:$0xff]  }
  0x8d   :  { %15670 = vmatpush3.bf16.msra.mxu1 %v17241_v9  ;;  %v2200_v9 = vrot.slane %v2192_v5, %v18365_v38 }
  0x8e   :  { %15671 = vmatprep.subr.bf16.mxu1 %v17244_v12  ;;  %v17287_v12 = vld [vmem:[%s22488_s3 + $0x38] sm:$0xff]  }
  0x8f   :  { %15650 = vmatpush3.bf16.msra.mxu0 %v17235_v3  ;;  %v17284_v3 = vld [vmem:[%s22488_s3 + $0x50] sm:$0xff]  }
  0x90   :  { %15651 = vmatprep.subr.bf16.mxu0 %v17238_v6  ;;  %v17286_v6 = vld [vmem:[%s22488_s3 + $0x78] sm:$0xff]  }
  0x91   :  { %15672 = vmatpush3.bf16.msra.mxu1 %v17245_v13  ;;  %v17290_v13 = vld [vmem:[%s22488_s3 + $0x70] sm:$0xff]  }
  0x92   :  { %15673 = vmatprep.subr.bf16.mxu1 %v17248_v16  ;;  %v17291_v16 = vld [vmem:[%s22488_s3 + $0x30] sm:$0xff]  }
  0x93   :  { %15652 = vmatpush3.bf16.msra.mxu0 %v17239_v7  ;;  %v2193_v7 = vcombine.high %v2192_v5, %v2192_v5  ;;  %v17325_v5 = vld [vmem:[%s22488_s3] sm:$0xff]  }
  0x94   :  { %15653 = vmatprep.subr.bf16.mxu0 %v17242_v10  ;;  %v17288_v10 = vld [vmem:[%s22488_s3 + $0x48] sm:$0xff]  }
  0x95   :  { %15674 = vmatpush3.bf16.msra.mxu1 %v17249_v17  ;;  %v14468_v17 = vld [vmem:[%s22485_s0 + $0x16] sm:$0x3] }
  0x96   :  { %15675 = vmatprep.subr.bf16.mxu1 %v17252_v23  ;;  %v17296_v23 = vld [vmem:[%s22488_s3 + $0x78] sm:$0xff]  }
  0x97   :  { %15654 = vmatpush3.bf16.msra.mxu0 %v17243_v11  ;;  %v2207_v11 = vrot.slane %v2193_v7, %v18365_v38 }
  0x98   :  { %15655 = vmatprep.subr.bf16.mxu0 %v17246_v14  ;;  %v17289_v14 = vld [vmem:[%s22488_s3 + $0x8] sm:$0xff]  }
  0x99   :  { %15676 = vmatpush3.bf16.msra.mxu1 %v17253_v25 }
  0x9a   :  { %15677 = vmatprep.subr.bf16.mxu1 %v17256_v32  ;;  %v17300_v32 = vld [vmem:[%s22488_s3 + $0x70] sm:$0xff]  }
  0x9b   :  { %15656 = vmatpush3.bf16.msra.mxu0 %v17247_v15  ;;  %v17292_v15 = vld [vmem:[%s22488_s3 + $0x40] sm:$0xff]  }
  0x9c   :  { %15657 = vmatprep.subr.bf16.mxu0 %v17250_v19  ;;  %v2356_v19 = vmul.bf16 %v18794_v20, %v14468_v17 }
  0x9d   :  { %15678 = vmatpush3.bf16.msra.mxu1 %v17257_v33  ;;  %v17302_v33 = vld [vmem:[%s22488_s3 + $0x58] sm:$0xff]  }
  0x9e   :  { %15679 = vmatprep.subr.bf16.mxu1 %v17260_v36  ;;  %v17304_v36 = vld [vmem:[%s22488_s3 + $0x68] sm:$0xff]  }
  0x9f   :  { %15658 = vmatpush3.bf16.msra.mxu0 %v17251_v22  ;;  %v2403_v22 = vrot.slane %v2356_v19, %v18365_v38  ;;  %v17331_v19 = vld [vmem:[%s22488_s3 + $0x20] sm:$0xff]  }
  0xa0   :  { %15687 = vmatprep.subr.bf16.mxu0 %v17254_v27 }
  0xa1   :  { %15680 = vmatpush3.bf16.msra.mxu1 %v17261_v39  ;;  %v2404_v25 = vcombine.high %v2403_v22, %v2403_v22  ;;  %v2411_v27 = vrot.slane %v2403_v22, %v18365_v38  ;;  %v17305_v39 = vld [vmem:[%s22488_s3 + $0x28] sm:$0xff]   ;;  %v17332_v22 = vld [vmem:[%s22488_s3 + $0x70] sm:$0xff]  }
  0xa2   :  { %1918 = vmatmul.mubr.bf16.vlgmr.msra.gmra.mxu0 %v1779_v31  ;;  %15709 = vmatprep.subr.bf16.mxu1 %v17264_v44  ;;  %v17299_v31 = vld [vmem:[%s22488_s3 + $0x20] sm:$0xff]   ;;  %v17311_v44 = vld [vmem:[%s22488_s3 + $0x8] sm:$0xff]  }
  0xa3   :  { %15688 = vmatpush3.bf16.msra.mxu0 %v17255_v29  ;;  %2338 = vmatprep.mubr.bf16.mxu0 %v2207_v11  ;;  %v17297_v29 = vld [vmem:[%s22488_s3 + $0x38] sm:$0xff]   ;;  %v2418_v30 = vrot.slane %v2404_v25, %v18365_v38 }
  0xa4   :  { %15689 = vmatprep.subr.bf16.mxu0 %v17258_v34  ;;  %2128 = vmatmul.mubr.bf16.vlgmr.msra.gmra.mxu1 %v1989_v47  ;;  %v17301_v34 = vld [vmem:[%s22488_s3 + $0x30] sm:$0xff]   ;;  %v14486_v47 = vld [vmem:[%s22485_s0 + $0x18] sm:$0x3] }
  0xa5   :  { %15710 = vmatpush3.bf16.msra.mxu1 %v17265_v46  ;;  %2549 = vmatprep.mubr.bf16.mxu1 %v2418_v30  ;;  %v17314_v46 = vld [vmem:[%s22488_s3 + $0x40] sm:$0xff]   ;;  %v2567_v49 = vmul.bf16 %v18794_v20, %v14486_v47  ;;  %v17328_v11 = vld [vmem:[%s22488_s3 + $0x78] sm:$0xff]  }
  0xa6   :  { %15711 = vmatprep.subr.bf16.mxu1 %v17268_v51  ;;  %v17316_v51 = vld [vmem:[%s22488_s3 + $0x50] sm:$0xff]   ;;  %v17347_v47 = vld [vmem:[%s22488_s3] sm:$0xff]  }
  0xa7   :  { %15690 = vmatpush3.bf16.msra.mxu0 %v17259_v35  ;;  %v17303_v35 = vld [vmem:[%s22488_s3 + $0x18] sm:$0xff]  }
  0xa8   :  { %15691 = vmatprep.subr.bf16.mxu0 %v17262_v41  ;;  %v17308_v41 = vld [vmem:[%s22488_s3 + $0x60] sm:$0xff]  }
  0xa9   :  { %15712 = vmatpush3.bf16.msra.mxu1 %v17269_v52  ;;  %v2614_v52 = vrot.slane %v2567_v49, %v18365_v38  ;;  %v17348_v49 = vld [vmem:[%s22488_s3 + $0x50] sm:$0xff]  }
  0xaa   :  { %15713 = vmatprep.subr.bf16.mxu1 %v17272_v55  ;;  %v17317_v55 = vld [vmem:[%s22488_s3 + $0x10] sm:$0xff]  }
  0xab   :  { %15692 = vmatpush3.bf16.msra.mxu0 %v17263_v42  ;;  %v17310_v42 = vld [vmem:[%s22488_s3 + $0x48] sm:$0xff]  }
  0xac   :  { %15693 = vmatprep.subr.bf16.mxu0 %v17266_v48  ;;  %v17313_v48 = vld [vmem:[%s22488_s3 + $0x18] sm:$0xff]  }
  0xad   :  { %15714 = vmatpush3.bf16.msra.mxu1 %v17273_v56  ;;  %v2622_v56 = vrot.slane %v2614_v52, %v18365_v38 }
  0xae   :  { %15715 = vmatprep.subr.bf16.mxu1 %v17276_v59  ;;  %v17320_v59 = vld [vmem:[%s22488_s3 + $0x48] sm:$0xff]  }
  0xaf   :  { %15694 = vmatpush3.bf16.msra.mxu0 %v17267_v50  ;;  %v17315_v50 = vld [vmem:[%s22488_s3] sm:$0xff]  }
  0xb0   :  { %15695 = vmatprep.subr.bf16.mxu0 %v17270_v53  ;;  %v17318_v53 = vld [vmem:[%s22488_s3 + $0x78] sm:$0xff]  }
  0xb1   :  { %15716 = vmatpush3.bf16.msra.mxu1 %v17277_v60  ;;  %v17322_v60 = vld [vmem:[%s22488_s3 + $0x70] sm:$0xff]  }
  0xb2   :  { %15717 = vmatprep.subr.bf16.mxu1 %v17280_v63  ;;  %v19047_v63 = vld [vmem:[%s22489_s4] ss:$0 sm:$0xff] }
  0xb3   :  { %15696 = vmatpush3.bf16.msra.mxu0 %v17271_v54  ;;  %v2615_v54 = vcombine.high %v2614_v52, %v2614_v52 }
  0xb4   :  { %15697 = vmatprep.subr.bf16.mxu0 %v17274_v57  ;;  %v17319_v57 = vld [vmem:[%s22488_s3 + $0x38] sm:$0xff]  }
  0xb5   :  { %15718 = vmatpush3.bf16.msra.mxu1 %v17281_v1 }
  0xb6   :  { %15719 = vmatprep.subr.bf16.mxu1 %v17284_v3  ;;  %v14504_v3 = vld [vmem:[%s22485_s0 + $0x1a] sm:$0x3] }
  0xb7   :  { %15698 = vmatpush3.bf16.msra.mxu0 %v17275_v58  ;;  %v2629_v58 = vrot.slane %v2615_v54, %v18365_v38 }
  0xb8   :  { %15699 = vmatprep.subr.bf16.mxu0 %v17278_v61  ;;  %v17321_v61 = vld [vmem:[%s22488_s3 + $0x8] sm:$0xff]  }
  0xb9   :  { %15720 = vmatpush3.bf16.msra.mxu1 %v17285_v8  ;;  %v17327_v8 = vld [vmem:[%s22488_s3 + $0x28] sm:$0xff]  }
  0xba   :  { %15721 = vmatprep.subr.bf16.mxu1 %v17288_v10 }
  0xbb   :  { %15700 = vmatpush3.bf16.msra.mxu0 %v17279_v62 }
  0xbc   :  { %15701 = vmatprep.subr.bf16.mxu0 %v17282_v28  ;;  %v17323_v28 = vld [vmem:[%s22488_s3 + $0x30] sm:$0xff]  }
  0xbd   :  { %15722 = vmatpush3.bf16.msra.mxu1 %v17289_v14 }
  0xbe   :  { %15723 = vmatprep.subr.bf16.mxu1 %v17292_v15 }
  0xbf   :  { %15702 = vmatpush3.bf16.msra.mxu0 %v17283_v4 }
  0xc0   :  { %15731 = vmatprep.subr.bf16.mxu0 %v17286_v6  ;;  %v2777_v6 = vmul.bf16 %v18794_v20, %v14504_v3 }
  0xc1   :  { %15724 = vmatpush3.bf16.msra.mxu1 %v17293_v21 }
  0xc2   :  { %2339 = vmatmul.mubr.bf16.vlgmr.msra.gmra.mxu0 %v2200_v9  ;;  %15753 = vmatprep.subr.bf16.mxu1 %v17296_v23  ;;  %v2824_v10 = vrot.slane %v2777_v6, %v18365_v38 }
  0xc3   :  { %15732 = vmatpush3.bf16.msra.mxu0 %v17287_v12  ;;  %2760 = vmatprep.mubr.bf16.mxu0 %v2629_v58  ;;  %v17353_v58 = vld [vmem:[%s22488_s3 + $0x8] sm:$0xff]  }
  0xc4   :  { %15733 = vmatprep.subr.bf16.mxu0 %v17290_v13  ;;  %2550 = vmatmul.mubr.bf16.vlgmr.msra.gmra.mxu1 %v2411_v27  ;;  %v17330_v13 = vld [vmem:[%s22488_s3 + $0x60] sm:$0xff]   ;;  %v2825_v15 = vcombine.high %v2824_v10, %v2824_v10 }
  0xc5   :  { %15754 = vmatpush3.bf16.msra.mxu1 %v17297_v29  ;;  %v17335_v29 = vld [vmem:[%s22488_s3 + $0x18] sm:$0xff]  }
  0xc6   :  { %15755 = vmatprep.subr.bf16.mxu1 %v17300_v32  ;;  %v2839_v21 = vrot.slane %v2825_v15, %v18365_v38 }
  0xc7   :  { %15734 = vmatpush3.bf16.msra.mxu0 %v17291_v16  ;;  %v17329_v16 = vld [vmem:[%s22488_s3 + $0x38] sm:$0xff]  }
  0xc8   :  { %15735 = vmatprep.subr.bf16.mxu0 %v17294_v18  ;;  %v2832_v18 = vrot.slane %v2824_v10, %v18365_v38  ;;  %2970 = vmatprep.mubr.bf16.mxu1 %v2839_v21  ;;  %v17360_v10 = vld [vmem:[%s22488_s3 + $0x78] sm:$0xff]   ;;  %v17364_v21 = vld [vmem:[%s22488_s3 + $0x70] sm:$0xff]  }
  0xc9   :  { %15756 = vmatpush3.bf16.msra.mxu1 %v17301_v34 }
  0xca   :  { %15757 = vmatprep.subr.bf16.mxu1 %v17304_v36  ;;  %v17339_v36 = vld [vmem:[%s22488_s3 + $0x10] sm:$0xff]  }
  0xcb   :  { %15736 = vmatpush3.bf16.msra.mxu0 %v17295_v24  ;;  %v17334_v24 = vld [vmem:[%s22488_s3 + $0x58] sm:$0xff]  }
  0xcc   :  { %15737 = vmatprep.subr.bf16.mxu0 %v17298_v26  ;;  %v17333_v26 = vld [vmem:[%s22488_s3 + $0x30] sm:$0xff]  }
  0xcd   :  { %15758 = vmatpush3.bf16.msra.mxu1 %v17305_v39  ;;  %v17340_v39 = vld [vmem:[%s22488_s3 + $0x60] sm:$0xff]  }
  0xce   :  { %15759 = vmatprep.subr.bf16.mxu1 %v17308_v41  ;;  %v17341_v41 = vld [vmem:[%s22488_s3 + $0x20] sm:$0xff]  }
  0xcf   :  { %15738 = vmatpush3.bf16.msra.mxu0 %v17299_v31  ;;  %v17336_v31 = vld [vmem:[%s22488_s3 + $0x68] sm:$0xff]  }
  0xd0   :  { %15739 = vmatprep.subr.bf16.mxu0 %v17302_v33  ;;  %v17338_v33 = vld [vmem:[%s22488_s3 + $0x50] sm:$0xff]  }
  0xd1   :  { %15760 = vmatpush3.bf16.msra.mxu1 %v17309_v43  ;;  %v17344_v43 = vld [vmem:[%s22488_s3 + $0x58] sm:$0xff]  }
  0xd2   :  { %15761 = vmatprep.subr.bf16.mxu1 %v17312_v45  ;;  %v17345_v45 = vld [vmem:[%s22488_s3 + $0x18] sm:$0xff]  }
  0xd3   :  { %15740 = vmatpush3.bf16.msra.mxu0 %v17303_v35  ;;  %v17337_v35 = vld [vmem:[%s22488_s3 + $0x28] sm:$0xff]  }
  0xd4   :  { %15741 = vmatprep.subr.bf16.mxu0 %v17306_v37 }
  0xd5   :  { %15762 = vmatpush3.bf16.msra.mxu1 %v17313_v48 }
  0xd6   :  { %15763 = vmatprep.subr.bf16.mxu1 %v17316_v51  ;;  %v17350_v51 = vld [vmem:[%s22488_s3 + $0x78] sm:$0xff]  }
  0xd7   :  { %15742 = vmatpush3.bf16.msra.mxu0 %v17307_v40  ;;  %v17342_v40 = vld [vmem:[%s22488_s3 + $0x48] sm:$0xff]  }
  0xd8   :  { %15743 = vmatprep.subr.bf16.mxu0 %v17310_v42  ;;  %v17343_v42 = vld [vmem:[%s22488_s3 + $0x8] sm:$0xff]  }
  0xd9   :  { %15764 = vmatpush3.bf16.msra.mxu1 %v17317_v55  ;;  %v17351_v55 = vld [vmem:[%s22488_s3 + $0x38] sm:$0xff]  }
  0xda   :  { %15765 = vmatprep.subr.bf16.mxu1 %v17320_v59  ;;  %v17354_v59 = vld [vmem:[%s22488_s3 + $0x70] sm:$0xff]  }
  0xdb   :  { %15744 = vmatpush3.bf16.msra.mxu0 %v17311_v44  ;;  %v17346_v44 = vld [vmem:[%s22488_s3 + $0x40] sm:$0xff]  }
  0xdc   :  { %15745 = vmatprep.subr.bf16.mxu0 %v17314_v46  ;;  %v14522_v46 = vld [vmem:[%s22485_s0 + $0x1c] sm:$0x3] }
  0xdd   :  { %15766 = vmatpush3.bf16.msra.mxu1 %v17321_v61  ;;  %v2988_v48 = vmul.bf16 %v18794_v20, %v14522_v46  ;;  %v17355_v61 = vld [vmem:[%s22488_s3 + $0x30] sm:$0xff]   ;;  %v19255_v46 = vld [vmem:[%s22486_s1] sm:$0x3] }
  0xde   :  { %15767 = vmatprep.subr.bf16.mxu1 %v17324_v0  ;;  %v17358_v0 = vld [vmem:[%s22488_s3 + $0x68] sm:$0xff]  }
  0xdf   :  { %15746 = vmatpush3.bf16.msra.mxu0 %v17315_v50  ;;  %v3035_v50 = vrot.slane %v2988_v48, %v18365_v38  ;;  %v17380_v48 = vld [vmem:[%s22488_s3 + $0x50] sm:$0xff]  }
  0xe0   :  { %15775 = vmatprep.subr.bf16.mxu0 %v17318_v53  ;;  %v17349_v53 = vld [vmem:[%s22488_s3 + $0x10] sm:$0xff]  }
  0xe1   :  { %15768 = vmatpush3.bf16.msra.mxu1 %v17325_v5  ;;  %v3036_v52 = vcombine.high %v3035_v50, %v3035_v50  ;;  %v3043_v54 = vrot.slane %v3035_v50, %v18365_v38  ;;  %v17382_v50 = vld [vmem:[%s22488_s3 + $0x78] sm:$0xff]  }
  0xe2   :  { %v15483_v62 = vpop.f32.mrf.mxu0  ;;  %2761 = vmatmul.mubr.bf16.vlgmr.msra.gmra.mxu0 %v2622_v56  ;;  %15797 = vmatprep.subr.bf16.mxu1 %v17328_v11 }
  0xe3   :  { %15776 = vmatpush3.bf16.msra.mxu0 %v17319_v57  ;;  %v3050_v56 = vrot.slane %v3036_v52, %v18365_v38  ;;  %v17352_v57 = vld [vmem:[%s22488_s3 + $0x48] sm:$0xff]   ;;  %v17381_v52 = vld [vmem:[%s22488_s3 + $0x10] sm:$0xff]  }
  0xe4   :  { %v15484_v1 = vpop.f32.mrf.mxu0  ;;  %15777 = vmatprep.subr.bf16.mxu0 %v17322_v60  ;;  %v15505_v17 = vpop.f32.mrf.mxu1  ;;  %2971 = vmatmul.mubr.bf16.vlgmr.msra.gmra.mxu1 %v2832_v18 }
  0xe5   :  { %v15485_v4 = vadd.f32 %v15484_v1, %v15483_v62  ;;  %15798 = vmatpush3.bf16.msra.mxu1 %v17329_v16  ;;  %3181 = vmatprep.mubr.bf16.mxu0 %v3050_v56  ;;  %v17356_v62 = vld [vmem:[%s22488_s3 + $0x40] sm:$0xff]   ;;  %v17384_v56 = vld [vmem:[%s22488_s3 + $0x48] sm:$0xff]  }
  0xe6   :  { %v15486_v7 = vpop.f32.mrf.mxu0  ;;  %v15506_v23 = vpop.f32.mrf.mxu1  ;;  %15799 = vmatprep.subr.bf16.mxu1 %v17332_v22 }
  0xe7   :  { %v244_v9 = vadd.f32 %v15485_v4, %v19047_v63  ;;  %15778 = vmatpush3.bf16.msra.mxu0 %v17323_v28  ;;  %v15507_v25 = vadd.f32 %v15506_v23, %v15505_v17  ;;  %v17357_v4 = vld [vmem:[%s22488_s3] sm:$0xff]   ;;  %v17359_v7 = vld [vmem:[%s22488_s3 + $0x28] sm:$0xff]   ;;  %v17366_v23 = vld [vmem:[%s22488_s3 + $0x58] sm:$0xff]  }
  0xe8   :  { %v15487_v12 = vpop.f32.mrf.mxu0  ;;  %15779 = vmatprep.subr.bf16.mxu0 %v17326_v2  ;;  %v15508_v27 = vpop.f32.mrf.mxu1  ;;  %v14540_v2 = vld [vmem:[%s22485_s0 + $0x1e] sm:$0x3]  ;;  %v17363_v17 = vld [vmem:[%s22488_s3 + $0x20] sm:$0xff]  }
  0xe9   :  { %v249_v14 = vmax.f32 %v244_v9, 0.0  ;;  %v450_v30 = vadd.f32 %v15507_v25, %v19047_v63  ;;  %15800 = vmatpush3.bf16.msra.mxu1 %v17333_v26  ;;  %v3199_v5 = vmul.bf16 %v18794_v20, %v14540_v2  ;;  %v17362_v20 = vld [vmem:[%s22488_s3 + $0x60] sm:$0xff]   ;;  %v17365_v25 = vld [vmem:[%s22488_s3 + $0x30] sm:$0xff]   ;;  %v17367_v27 = vld [vmem:[%s22488_s3 + $0x18] sm:$0xff]  }
  0xea   :  { %v15509_v32 = vpop.f32.mrf.mxu1  ;;  %15801 = vmatprep.subr.bf16.mxu1 %v17336_v31  ;;  %v17390_v2 = vld [vmem:[%s22488_s3 + $0x68] sm:$0xff]  }
  0xeb   :  { %15780 = vmatpush3.bf16.msra.mxu0 %v17327_v8  ;;  %251 = vst.msk [vmem:[#allocation2] sm:$0x3] %vm250_vm0, %v249_v14  ;;  %v455_v34 = vmax.f32 %v450_v30, 0.0  ;;  %v3246_v9 = vrot.slane %v3199_v5, %v18365_v38  ;;  %v17361_v14 = vld [vmem:[%s22488_s3 + $0x38] sm:$0xff]   ;;  %v17368_v30 = vld [vmem:[%s22488_s3 + $0x68] sm:$0xff]   ;;  %v17370_v32 = vld [vmem:[%s22488_s3 + $0x50] sm:$0xff]  }
  0xec   :  { %15781 = vmatprep.subr.bf16.mxu0 %v17330_v13 }
  0xed   :  { %v457_v37 = vrot.slane %v455_v34, 6  ;;  %15802 = vmatpush3.bf16.msra.mxu1 %v17337_v35  ;;  %v3247_v12 = vcombine.high %v3246_v9, %v3246_v9  ;;  %v3254_v16 = vrot.slane %v3246_v9, %v18365_v38  ;;  %v17371_v35 = vld [vmem:[%s22488_s3 + $0x10] sm:$0xff]  }
  0xee   :  { %15803 = vmatprep.subr.bf16.mxu1 %v17340_v39  ;;  %v17373_v39 = vld [vmem:[%s22488_s3 + $0x20] sm:$0xff]  }
  0xef   :  { %15782 = vmatpush3.bf16.msra.mxu0 %v17331_v19  ;;  %460 = vst.msk [vmem:[#allocation2] sm:$0xc] %vm459_vm1, %v457_v37  ;;  %v3261_v18 = vrot.slane %v3247_v12, %v18365_v38  ;;  %v17374_v37 = vld [vmem:[%s22488_s3 + $0x48] sm:$0xff]  }
  0xf0   :  { %15783 = vmatprep.subr.bf16.mxu0 %v17334_v24 }
  0xf1   :  { %15804 = vmatpush3.bf16.msra.mxu1 %v17341_v41  ;;  %3392 = vmatprep.mubr.bf16.mxu1 %v3261_v18  ;;  %v17376_v41 = vld [vmem:[%s22488_s3 + $0x58] sm:$0xff]   ;;  %v17396_v18 = vld [vmem:[%s22488_s3 + $0x70] sm:$0xff]  }
  0xf2   :  { %15805 = vmatprep.subr.bf16.mxu1 %v17344_v43  ;;  %v17377_v43 = vld [vmem:[%s22488_s3 + $0x18] sm:$0xff]  }
  0xf3   :  { %15784 = vmatpush3.bf16.msra.mxu0 %v17335_v29 }
  0xf4   :  { %15785 = vmatprep.subr.bf16.mxu0 %v17338_v33  ;;  %v17369_v33 = vld [vmem:[%s22488_s3 + $0x28] sm:$0xff]  }
  0xf5   :  { %15806 = vmatpush3.bf16.msra.mxu1 %v17345_v45  ;;  %v17379_v45 = vld [vmem:[%s22488_s3] sm:$0xff]  }
  0xf6   :  { %15807 = vmatprep.subr.bf16.mxu1 %v17348_v49 }
  0xf7   :  { %15786 = vmatpush3.bf16.msra.mxu0 %v17339_v36  ;;  %v17372_v36 = vld [vmem:[%s22488_s3 + $0x60] sm:$0xff]  }
  0xf8   :  { %15787 = vmatprep.subr.bf16.mxu0 %v17342_v40  ;;  %v17375_v40 = vld [vmem:[%s22488_s3 + $0x8] sm:$0xff]  }
  0xf9   :  { %15808 = vmatpush3.bf16.msra.mxu1 %v17349_v53 }
  0xfa   :  { %15809 = vmatprep.subr.bf16.mxu1 %v17352_v57 }
  0xfb   :  { %15788 = vmatpush3.bf16.msra.mxu0 %v17343_v42  ;;  %v17378_v42 = vld [vmem:[%s22488_s3 + $0x40] sm:$0xff]  }
  0xfc   :  { %15789 = vmatprep.subr.bf16.mxu0 %v17346_v44  ;;  %v14558_v44 = vld [vmem:[%s22485_s0 + $0x20] sm:$0x3] }
  0xfd   :  { %15810 = vmatpush3.bf16.msra.mxu1 %v17353_v58  ;;  %v17386_v58 = vld [vmem:[%s22488_s3 + $0x70] sm:$0xff]  }
  0xfe   :  { %15811 = vmatprep.subr.bf16.mxu1 %v17356_v62 }
  0xff   :  { %15790 = vmatpush3.bf16.msra.mxu0 %v17347_v47  ;;  %v3410_v47 = vmul.bf16 %v19255_v46, %v14558_v44  ;;  %v17412_v44 = vld [vmem:[%s22488_s3 + $0x50] sm:$0xff]  }
 0x100   :  { %15819 = vmatprep.subr.bf16.mxu0 %v17350_v51 }
 0x101   :  { %15812 = vmatpush3.bf16.msra.mxu1 %v17357_v4  ;;  %v3457_v49 = vrot.slane %v3410_v47, %v18365_v38  ;;  %v17389_v4 = vld [vmem:[%s22488_s3] sm:$0xff]   ;;  %v17414_v47 = vld [vmem:[%s22488_s3 + $0x78] sm:$0xff]  }
 0x102   :  { %v15527_v60 = vpop.f32.mrf.mxu0  ;;  %3182 = vmatmul.mubr.bf16.vlgmr.msra.gmra.mxu0 %v3043_v54  ;;  %15841 = vmatprep.subr.bf16.mxu1 %v17360_v10  ;;  %v17383_v54 = vld [vmem:[%s22488_s3 + $0x38] sm:$0xff]  }
 0x103   :  { %15820 = vmatpush3.bf16.msra.mxu0 %v17351_v55  ;;  %v3458_v51 = vcombine.high %v3457_v49, %v3457_v49  ;;  %v3465_v53 = vrot.slane %v3457_v49, %v18365_v38  ;;  %v17392_v10 = vld [vmem:[%s22488_s3 + $0x78] sm:$0xff]   ;;  %v17413_v49 = vld [vmem:[%s22488_s3 + $0x10] sm:$0xff]  }
 0x104   :  { %v15528_v28 = vpop.f32.mrf.mxu0  ;;  %15821 = vmatprep.subr.bf16.mxu0 %v17354_v59  ;;  %v15549_v13 = vpop.f32.mrf.mxu1  ;;  %3393 = vmatmul.mubr.bf16.vlgmr.msra.gmra.mxu1 %v3254_v16  ;;  %v17385_v59 = vld [vmem:[%s22488_s3 + $0x8] sm:$0xff]   ;;  %v17395_v16 = vld [vmem:[%s22488_s3 + $0x20] sm:$0xff]  }
 0x105   :  { %v15529_v1 = vadd.f32 %v15528_v28, %v15527_v60  ;;  %15842 = vmatpush3.bf16.msra.mxu1 %v17361_v14  ;;  %v3472_v55 = vrot.slane %v3458_v51, %v18365_v38  ;;  %v17388_v28 = vld [vmem:[%s22488_s3 + $0x40] sm:$0xff]   ;;  %v17393_v14 = vld [vmem:[%s22488_s3 + $0x38] sm:$0xff]   ;;  %v17416_v51 = vld [vmem:[%s22488_s3 + $0x48] sm:$0xff]  }
 0x106   :  { %v15530_v3 = vpop.f32.mrf.mxu0  ;;  %v15550_v19 = vpop.f32.mrf.mxu1  ;;  %15843 = vmatprep.subr.bf16.mxu1 %v17364_v21  ;;  %v17398_v21 = vld [vmem:[%s22488_s3 + $0x58] sm:$0xff]  }
 0x107   :  { %v659_v6 = vadd.f32 %v15529_v1, %v19047_v63  ;;  %15822 = vmatpush3.bf16.msra.mxu0 %v17355_v61  ;;  %v15551_v22 = vadd.f32 %v15550_v19, %v15549_v13  ;;  %3603 = vmatprep.mubr.bf16.mxu0 %v3472_v55  ;;  %v17387_v61 = vld [vmem:[%s22488_s3 + $0x30] sm:$0xff]  }
 0x108   :  { %v15531_v8 = vpop.f32.mrf.mxu0  ;;  %15823 = vmatprep.subr.bf16.mxu0 %v17358_v0  ;;  %v15552_v24 = vpop.f32.mrf.mxu1  ;;  %v14576_v0 = vld [vmem:[%s22485_s0 + $0x22] sm:$0x3]  ;;  %v17418_v55 = vld [vmem:[%s22488_s3 + $0x70] sm:$0xff]  }
 0x109   :  { %v664_v11 = vmax.f32 %v659_v6, 0.0  ;;  %v868_v26 = vadd.f32 %v15551_v22, %v19047_v63  ;;  %15844 = vmatpush3.bf16.msra.mxu1 %v17365_v25  ;;  %v3620_v3 = vmul.bf16 %v19255_v46, %v14576_v0  ;;  %v17399_v24 = vld [vmem:[%s22488_s3 + $0x18] sm:$0xff]  }
 0x10a   :  { %v15553_v29 = vpop.f32.mrf.mxu1  ;;  %15845 = vmatprep.subr.bf16.mxu1 %v17368_v30 }
 0x10b   :  { %v666_v15 = vrot.slane %v664_v11, 4  ;;  %15824 = vmatpush3.bf16.msra.mxu0 %v17359_v7  ;;  %v873_v31 = vmax.f32 %v868_v26, 0.0  ;;  %v17391_v7 = vld [vmem:[%s22488_s3 + $0x28] sm:$0xff]   ;;  %v3667_v8 = vrot.slane %v3620_v3, %v18365_v38  ;;  %v17402_v29 = vld [vmem:[%s22488_s3 + $0x50] sm:$0xff]  }
 0x10c   :  { %15825 = vmatprep.subr.bf16.mxu0 %v17362_v20  ;;  %v17394_v20 = vld [vmem:[%s22488_s3 + $0x60] sm:$0xff]  }
 0x10d   :  { %669 = vst.msk [vmem:[#allocation2] sm:$0x30] %vm668_vm2, %v666_v15  ;;  %v875_v34 = vrot.slane %v873_v31, 2  ;;  %15846 = vmatpush3.bf16.msra.mxu1 %v17369_v33  ;;  %v3668_v11 = vcombine.high %v3667_v8, %v3667_v8  ;;  %v3675_v13 = vrot.slane %v3667_v8, %v18365_v38  ;;  %v17401_v31 = vld [vmem:[%s22488_s3 + $0x28] sm:$0xff]   ;;  %v17404_v33 = vld [vmem:[%s22488_s3 + $0x60] sm:$0xff]  }
 0x10e   :  { %15847 = vmatprep.subr.bf16.mxu1 %v17372_v36  ;;  %v17407_v36 = vld [vmem:[%s22488_s3 + $0x8] sm:$0xff]  }
 0x10f   :  { %15826 = vmatpush3.bf16.msra.mxu0 %v17363_v17  ;;  %878 = vst.msk [vmem:[#allocation2] sm:$0xc0] %vm877_vm3, %v875_v34  ;;  %v3682_v15 = vrot.slane %v3668_v11, %v18365_v38  ;;  %v17406_v34 = vld [vmem:[%s22488_s3 + $0x48] sm:$0xff]  }
 0x110   :  { %15827 = vmatprep.subr.bf16.mxu0 %v17366_v23  ;;  %v17397_v23 = vld [vmem:[%s22488_s3 + $0x30] sm:$0xff]  }
 0x111   :  { %15848 = vmatpush3.bf16.msra.mxu1 %v17373_v39  ;;  %3813 = vmatprep.mubr.bf16.mxu1 %v3682_v15  ;;  %v17409_v39 = vld [vmem:[%s22488_s3 + $0x18] sm:$0xff]  }
 0x112   :  { %15849 = vmatprep.subr.bf16.mxu1 %v17376_v41  ;;  %v14594_v41 = vld [vmem:[%s22485_s0 + $0x24] sm:$0x3]  ;;  %v17430_v15 = vld [vmem:[%s22488_s3 + $0x58] sm:$0xff]  }
 0x113   :  { %15828 = vmatpush3.bf16.msra.mxu0 %v17367_v27  ;;  %v17400_v27 = vld [vmem:[%s22488_s3 + $0x68] sm:$0xff]  }
 0x114   :  { %15829 = vmatprep.subr.bf16.mxu0 %v17370_v32 }
 0x115   :  { %15850 = vmatpush3.bf16.msra.mxu1 %v17377_v43  ;;  %v3831_v43 = vmul.bf16 %v19255_v46, %v14594_v41 }
 0x116   :  { %15851 = vmatprep.subr.bf16.mxu1 %v17380_v48 }
 0x117   :  { %15830 = vmatpush3.bf16.msra.mxu0 %v17371_v35  ;;  %v17405_v35 = vld [vmem:[%s22488_s3 + $0x20] sm:$0xff]  }
 0x118   :  { %15831 = vmatprep.subr.bf16.mxu0 %v17374_v37  ;;  %v17408_v37 = vld [vmem:[%s22488_s3 + $0x58] sm:$0xff]  }
 0x119   :  { %15852 = vmatpush3.bf16.msra.mxu1 %v17381_v52 }
 0x11a   :  { %15853 = vmatprep.subr.bf16.mxu1 %v17384_v56 }
 0x11b   :  { %15832 = vmatpush3.bf16.msra.mxu0 %v17375_v40  ;;  %v17410_v40 = vld [vmem:[%s22488_s3 + $0x40] sm:$0xff]  }
 0x11c   :  { %15833 = vmatprep.subr.bf16.mxu0 %v17378_v42  ;;  %v17411_v42 = vld [vmem:[%s22488_s3] sm:$0xff]  }
 0x11d   :  { %15854 = vmatpush3.bf16.msra.mxu1 %v17385_v59  ;;  %v17420_v59 = vld [vmem:[%s22488_s3 + $0x40] sm:$0xff]  }
 0x11e   :  { %15855 = vmatprep.subr.bf16.mxu1 %v17388_v28  ;;  %v17422_v28 = vld [vmem:[%s22488_s3 + $0x68] sm:$0xff]  }
 0x11f   :  { %15834 = vmatpush3.bf16.msra.mxu0 %v17379_v45  ;;  %v3878_v45 = vrot.slane %v3831_v43, %v18365_v38  ;;  %v17448_v43 = vld [vmem:[%s22488_s3 + $0x48] sm:$0xff]  }
 0x120   :  { %15863 = vmatprep.subr.bf16.mxu0 %v17382_v50 }
 0x121   :  { %15856 = vmatpush3.bf16.msra.mxu1 %v17389_v4  ;;  %v3879_v48 = vcombine.high %v3878_v45, %v3878_v45  ;;  %v3886_v50 = vrot.slane %v3878_v45, %v18365_v38  ;;  %v17424_v4 = vld [vmem:[%s22488_s3 + $0x78] sm:$0xff]  }
 0x122   :  { %v15571_v57 = vpop.f32.mrf.mxu0  ;;  %3604 = vmatmul.mubr.bf16.vlgmr.msra.gmra.mxu0 %v3465_v53  ;;  %15885 = vmatprep.subr.bf16.mxu1 %v17392_v10  ;;  %v17425_v10 = vld [vmem:[%s22488_s3 + $0x38] sm:$0xff]  }
 0x123   :  { %15864 = vmatpush3.bf16.msra.mxu0 %v17383_v54  ;;  %v3893_v52 = vrot.slane %v3879_v48, %v18365_v38  ;;  %v17415_v54 = vld [vmem:[%s22488_s3 + $0x38] sm:$0xff]  }
 0x124   :  { %v15572_v60 = vpop.f32.mrf.mxu0  ;;  %15865 = vmatprep.subr.bf16.mxu0 %v17386_v58  ;;  %v15593_v12 = vpop.f32.mrf.mxu1  ;;  %3814 = vmatmul.mubr.bf16.vlgmr.msra.gmra.mxu1 %v3675_v13  ;;  %v17428_v13 = vld [vmem:[%s22488_s3 + $0x70] sm:$0xff]   ;;  %v17447_v45 = vld [vmem:[%s22488_s3 + $0x38] sm:$0xff]  }
 0x125   :  { %v15573_v62 = vadd.f32 %v15572_v60, %v15571_v57  ;;  %15886 = vmatpush3.bf16.msra.mxu1 %v17393_v14  ;;  %4024 = vmatprep.mubr.bf16.mxu0 %v3893_v52  ;;  %v17417_v57 = vld [vmem:[%s22488_s3 + $0x8] sm:$0xff]  }
 0x126   :  { %v15574_v1 = vpop.f32.mrf.mxu0  ;;  %v15594_v17 = vpop.f32.mrf.mxu1  ;;  %15887 = vmatprep.subr.bf16.mxu1 %v17396_v18  ;;  %v17431_v18 = vld [vmem:[%s22488_s3 + $0x18] sm:$0xff]  }
 0x127   :  { %v1077_v5 = vadd.f32 %v15573_v62, %v19047_v63  ;;  %15866 = vmatpush3.bf16.msra.mxu0 %v17387_v61  ;;  %v15595_v19 = vadd.f32 %v15594_v17, %v15593_v12  ;;  %v17419_v61 = vld [vmem:[%s22488_s3 + $0x30] sm:$0xff]   ;;  %v14612_v62 = vld [vmem:[%s22485_s0 + $0x26] sm:$0x3] }
 0x128   :  { %v15575_v6 = vpop.f32.mrf.mxu0  ;;  %15867 = vmatprep.subr.bf16.mxu0 %v17390_v2  ;;  %v15596_v22 = vpop.f32.mrf.mxu1  ;;  %v4042_v0 = vmul.bf16 %v19255_v46, %v14612_v62  ;;  %v17421_v2 = vld [vmem:[%s22488_s3] sm:$0xff]   ;;  %v17429_v17 = vld [vmem:[%s22488_s3 + $0x30] sm:$0xff]  }
 0x129   :  { %v1082_v9 = vmax.f32 %v1077_v5, 0.0  ;;  %v1287_v25 = vadd.f32 %v15595_v19, %v19047_v63  ;;  %15888 = vmatpush3.bf16.msra.mxu1 %v17397_v23  ;;  %v17403_v63 = vld [vmem:[%s22488_s3 + $0x10] sm:$0xff]   ;;  %v17423_v5 = vld [vmem:[%s22488_s3 + $0x28] sm:$0xff]   ;;  %v17453_v62 = vld [vmem:[%s22488_s3] sm:$0xff]  }
 0x12a   :  { %v15597_v26 = vpop.f32.mrf.mxu1  ;;  %15889 = vmatprep.subr.bf16.mxu1 %v17400_v27  ;;  %v4089_v3 = vrot.slane %v4042_v0, %v18365_v38  ;;  %v17434_v22 = vld [vmem:[%s22488_s3 + $0x50] sm:$0xff]   ;;  %v17433_v23 = vld [vmem:[%s22488_s3 + $0x28] sm:$0xff]   ;;  %v17437_v27 = vld [vmem:[%s22488_s3 + $0x20] sm:$0xff]  }
 0x12b   :  { %1084 = vrot.lane.b32.xlu0 %v1082_v9, %s18186_s15  ;;  %15868 = vmatpush3.bf16.msra.mxu0 %v17391_v7  ;;  %v1292_v30 = vmax.f32 %v1287_v25, 0.0  ;;  %v17426_v7 = vld [vmem:[%s22488_s3 + $0x60] sm:$0xff]   ;;  %v17438_v26 = vld [vmem:[%s22488_s3 + $0x48] sm:$0xff]   ;;  %v17456_v0 = vld [vmem:[%s22488_s3 + $0x78] sm:$0xff]  }
 0x12c   :  { %15869 = vmatprep.subr.bf16.mxu0 %v17394_v20  ;;  %v4090_v6 = vcombine.high %v4089_v3, %v4089_v3  ;;  %v4097_v9 = vrot.slane %v4089_v3, %v18365_v38  ;;  %v17427_v20 = vld [vmem:[%s22488_s3 + $0x20] sm:$0xff]  }
 0x12d   :  { %v1294_v32 = vrot.slane %v1292_v30, 6  ;;  %15890 = vmatpush3.bf16.msra.mxu1 %v17401_v31  ;;  %v17436_v25 = vld [vmem:[%s22488_s3 + $0x60] sm:$0xff]   ;;  %v17440_v30 = vld [vmem:[%s22488_s3 + $0x58] sm:$0xff]  }
 0x12e   :  { %15891 = vmatprep.subr.bf16.mxu1 %v17404_v33  ;;  %v4104_v11 = vrot.slane %v4090_v6, %v18365_v38  ;;  %v17441_v31 = vld [vmem:[%s22488_s3 + $0x18] sm:$0xff]   ;;  %v17443_v33 = vld [vmem:[%s22488_s3] sm:$0xff]  }
 0x12f   :  { %15870 = vmatpush3.bf16.msra.mxu0 %v17395_v16  ;;  %1295 = vrot.lane.b32.xlu1 %v1294_v32, %s18186_s15  ;;  %v14630_v32 = vld [vmem:[%s22485_s0 + $0x28] sm:$0x3]  ;;  %v17457_v6 = vld [vmem:[%s22488_s3 + $0x38] sm:$0xff]  }
 0x130   :  { %15871 = vmatprep.subr.bf16.mxu0 %v17398_v21  ;;  %4235 = vmatprep.mubr.bf16.mxu1 %v4104_v11  ;;  %v17432_v21 = vld [vmem:[%s22488_s3 + $0x68] sm:$0xff]   ;;  %v17460_v11 = vld [vmem:[%s22488_s3 + $0x70] sm:$0xff]  }
 0x131   :  { %15892 = vmatpush3.bf16.msra.mxu1 %v17405_v35  ;;  %v17444_v35 = vld [vmem:[%s22488_s3 + $0x50] sm:$0xff]  }
 0x132   :  { %15893 = vmatprep.subr.bf16.mxu1 %v17408_v37  ;;  %v17446_v37 = vld [vmem:[%s22488_s3 + $0x78] sm:$0xff]  }
 0x133   :  { %15872 = vmatpush3.bf16.msra.mxu0 %v17399_v24  ;;  %v17435_v24 = vld [vmem:[%s22488_s3 + $0x10] sm:$0xff]  }
 0x134   :  { %15873 = vmatprep.subr.bf16.mxu0 %v17402_v29  ;;  %v17439_v29 = vld [vmem:[%s22488_s3 + $0x8] sm:$0xff]  }
 0x135   :  { %15894 = vmatpush3.bf16.msra.mxu1 %v17409_v39 }
 0x136   :  { %15895 = vmatprep.subr.bf16.mxu1 %v17412_v44 }
 0x137   :  { %15874 = vmatpush3.bf16.msra.mxu0 %v17403_v63  ;;  %v17442_v63 = vld [vmem:[%s22488_s3 + $0x40] sm:$0xff]  }
 0x138   :  { %15875 = vmatprep.subr.bf16.mxu0 %v17406_v34  ;;  %v4253_v34 = vmul.bf16 %v19255_v46, %v14630_v32  ;;  %v17473_v32 = vld [vmem:[%s22488_s3 + $0x18] sm:$0xff]  }
 0x139   :  { %15896 = vmatpush3.bf16.msra.mxu1 %v17413_v49  ;;  %v17450_v49 = vld [vmem:[%s22488_s3 + $0x70] sm:$0xff]  }
 0x13a   :  { %15897 = vmatprep.subr.bf16.mxu1 %v17416_v51  ;;  %v17449_v51 = vld [vmem:[%s22488_s3 + $0x8] sm:$0xff]  }
 0x13b   :  { %15876 = vmatpush3.bf16.msra.mxu0 %v17407_v36  ;;  %v4300_v36 = vrot.slane %v4253_v34, %v18365_v38  ;;  %v17475_v34 = vld [vmem:[%s22488_s3] sm:$0xff]  }
 0x13c   :  { %15877 = vmatprep.subr.bf16.mxu0 %v17410_v40  ;;  %v17445_v40 = vld [vmem:[%s22488_s3 + $0x10] sm:$0xff]  }
 0x13d   :  { %15898 = vmatpush3.bf16.msra.mxu1 %v17417_v57  ;;  %v4301_v39 = vcombine.high %v4300_v36, %v4300_v36 }
 0x13e   :  { %15899 = vmatprep.subr.bf16.mxu1 %v17420_v59  ;;  %v17454_v59 = vld [vmem:[%s22488_s3 + $0x68] sm:$0xff]  }
 0x13f   :  { %15878 = vmatpush3.bf16.msra.mxu0 %v17411_v42  ;;  %v4308_v42 = vrot.slane %v4300_v36, %v18365_v38  ;;  %v4315_v44 = vrot.slane %v4301_v39, %v18365_v38 }
 0x140   :  { %15907 = vmatprep.subr.bf16.mxu0 %v17414_v47  ;;  %v19507_v47 = vld [vmem:[%s22489_s4] ss:$0 sm:$0xff] }
 0x141   :  { %15900 = vmatpush3.bf16.msra.mxu1 %v17421_v2 }
 0x142   :  { %v15615_v53 = vpop.f32.mrf.mxu0  ;;  %4025 = vmatmul.mubr.bf16.vlgmr.msra.gmra.mxu0 %v3886_v50  ;;  %15929 = vmatprep.subr.bf16.mxu1 %v17424_v4  ;;  %v17458_v4 = vld [vmem:[%s22488_s3 + $0x60] sm:$0xff]  }
 0x143   :  { %15908 = vmatpush3.bf16.msra.mxu0 %v17415_v54  ;;  %4446 = vmatprep.mubr.bf16.mxu0 %v4315_v44  ;;  %v17480_v44 = vld [vmem:[%s22488_s3 + $0x48] sm:$0xff]  }
 0x144   :  { %v15616_v56 = vpop.f32.mrf.mxu0  ;;  %15909 = vmatprep.subr.bf16.mxu0 %v17418_v55  ;;  %v15637_v8 = vpop.f32.mrf.mxu1  ;;  %4236 = vmatmul.mubr.bf16.vlgmr.msra.gmra.mxu1 %v4097_v9  ;;  %v17451_v55 = vld [vmem:[%s22488_s3 + $0x30] sm:$0xff]   ;;  %v17459_v9 = vld [vmem:[%s22488_s3 + $0x20] sm:$0xff]  }
 0x145   :  { %v19396_v58 = vadd.f32 %v15616_v56, %v15615_v53  ;;  %15930 = vmatpush3.bf16.msra.mxu1 %v17425_v10  ;;  %v17452_v53 = vld [vmem:[%s22488_s3 + $0x40] sm:$0xff]   ;;  %v14648_v56 = vld [vmem:[%s22485_s0 + $0x2a] sm:$0x3] }
 0x146   :  { %v15618_v60 = vpop.f32.mrf.mxu0  ;;  %v15638_v12 = vpop.f32.mrf.mxu1  ;;  %15931 = vmatprep.subr.bf16.mxu1 %v17428_v13 }
 0x147   :  { %15910 = vmatpush3.bf16.msra.mxu0 %v17419_v61  ;;  %v19435_v14 = vadd.f32 %v15638_v12, %v15637_v8  ;;  %v4463_v60 = vmul.bf16 %v19255_v46, %v14648_v56  ;;  %v17462_v12 = vld [vmem:[%s22488_s3 + $0x58] sm:$0xff]   ;;  %v14684_v56 = vld [vmem:[%s22485_s0 + $0x2e] sm:$0x3] }
 0x148   :  { %v15619_v1 = vpop.f32.mrf.mxu0  ;;  %15911 = vmatprep.subr.bf16.mxu0 %v17422_v28  ;;  %v15640_v16 = vpop.f32.mrf.mxu1 }
 0x149   :  { %15932 = vmatpush3.bf16.msra.mxu1 %v17429_v17  ;;  %v4510_v28 = vrot.slane %v4463_v60, %v18365_v38  ;;  %v17455_v1 = vld [vmem:[%s22488_s3 + $0x28] sm:$0xff]   ;;  %v17463_v17 = vld [vmem:[%s22488_s3 + $0x18] sm:$0xff]  }
 0x14a   :  { %v15641_v19 = vpop.f32.mrf.mxu1  ;;  %15933 = vmatprep.subr.bf16.mxu1 %v17432_v21  ;;  %v17466_v21 = vld [vmem:[%s22488_s3 + $0x50] sm:$0xff]  }
 0x14b   :  { %15912 = vmatpush3.bf16.msra.mxu0 %v17423_v5  ;;  %v4511_v2 = vcombine.high %v4510_v28, %v4510_v28  ;;  %v4518_v5 = vrot.slane %v4510_v28, %v18365_v38  ;;  %v17464_v19 = vld [vmem:[%s22488_s3 + $0x68] sm:$0xff]   ;;  %v17488_v28 = vld [vmem:[%s22488_s3 + $0x78] sm:$0xff]  }
 0x14c   :  { %15913 = vmatprep.subr.bf16.mxu0 %v17426_v7 }
 0x14d   :  { %15934 = vmatpush3.bf16.msra.mxu1 %v17433_v23  ;;  %v4525_v7 = vrot.slane %v4511_v2, %v18365_v38  ;;  %v17465_v23 = vld [vmem:[%s22488_s3 + $0x28] sm:$0xff]  }
 0x14e   :  { %15935 = vmatprep.subr.bf16.mxu1 %v17436_v25  ;;  %v17468_v25 = vld [vmem:[%s22488_s3 + $0x60] sm:$0xff]  }
 0x14f   :  { %15914 = vmatpush3.bf16.msra.mxu0 %v17427_v20  ;;  %4656 = vmatprep.mubr.bf16.mxu1 %v4525_v7 }
 0x150   :  { %15915 = vmatprep.subr.bf16.mxu0 %v17430_v15  ;;  %v17461_v15 = vld [vmem:[%s22488_s3 + $0x30] sm:$0xff]  }
 0x151   :  { %15936 = vmatpush3.bf16.msra.mxu1 %v17437_v27  ;;  %v17469_v27 = vld [vmem:[%s22488_s3 + $0x20] sm:$0xff]  }
 0x152   :  { %15937 = vmatprep.subr.bf16.mxu1 %v17440_v30  ;;  %v17472_v30 = vld [vmem:[%s22488_s3 + $0x58] sm:$0xff]  }
 0x153   :  { %15916 = vmatpush3.bf16.msra.mxu0 %v17431_v18 }
 0x154   :  { %15917 = vmatprep.subr.bf16.mxu0 %v17434_v22 }
 0x155   :  { %15938 = vmatpush3.bf16.msra.mxu1 %v17441_v31  ;;  %v17474_v31 = vld [vmem:[%s22488_s3 + $0x40] sm:$0xff]  }
 0x156   :  { %15939 = vmatprep.subr.bf16.mxu1 %v17444_v35  ;;  %v17476_v35 = vld [vmem:[%s22488_s3 + $0x50] sm:$0xff]  }
 0x157   :  { %15918 = vmatpush3.bf16.msra.mxu0 %v17435_v24  ;;  %v17467_v24 = vld [vmem:[%s22488_s3 + $0x10] sm:$0xff]  }
 0x158   :  { %15919 = vmatprep.subr.bf16.mxu0 %v17438_v26  ;;  %v17470_v26 = vld [vmem:[%s22488_s3 + $0x48] sm:$0xff]  }
 0x159   :  { %15940 = vmatpush3.bf16.msra.mxu1 %v17445_v40 }
 0x15a   :  { %15941 = vmatprep.subr.bf16.mxu1 %v17448_v43 }
 0x15b   :  { %15920 = vmatpush3.bf16.msra.mxu0 %v17439_v29  ;;  %v17471_v29 = vld [vmem:[%s22488_s3 + $0x8] sm:$0xff]  }
 0x15c   :  { %15921 = vmatprep.subr.bf16.mxu0 %v17442_v63  ;;  %v14666_v63 = vld [vmem:[%s22485_s0 + $0x2c] sm:$0x3] }
 0x15d   :  { %15942 = vmatpush3.bf16.msra.mxu1 %v17449_v51  ;;  %v17483_v51 = vld [vmem:[%s22488_s3 + $0x30] sm:$0xff]  }
 0x15e   :  { %15943 = vmatprep.subr.bf16.mxu1 %v17452_v53  ;;  %v17484_v53 = vld [vmem:[%s22488_s3 + $0x40] sm:$0xff]  }
 0x15f   :  { %15922 = vmatpush3.bf16.msra.mxu0 %v17443_v33  ;;  %v4674_v33 = vmul.bf16 %v19255_v46, %v14666_v63  ;;  %v17477_v46 = vld [vmem:[%s22488_s3 + $0x10] sm:$0xff]  }
 0x160   :  { %15951 = vmatprep.subr.bf16.mxu0 %v17446_v37  ;;  %v17478_v37 = vld [vmem:[%s22488_s3 + $0x78] sm:$0xff]   ;;  %v17508_v63 = vld [vmem:[%s22488_s3 + $0x50] sm:$0xff]  }
 0x161   :  { %15944 = vmatpush3.bf16.msra.mxu1 %v17453_v62  ;;  %v4721_v36 = vrot.slane %v4674_v33, %v18365_v38  ;;  %v17510_v33 = vld [vmem:[%s22488_s3 + $0x78] sm:$0xff]  }
 0x162   :  { %v15659_v41 = vpop.f32.mrf.mxu0  ;;  %4447 = vmatmul.mubr.bf16.vlgmr.msra.gmra.mxu0 %v4308_v42  ;;  %15973 = vmatprep.subr.bf16.mxu1 %v17456_v0  ;;  %v17479_v42 = vld [vmem:[%s22488_s3 + $0x38] sm:$0xff]   ;;  %v17490_v0 = vld [vmem:[%s22488_s3 + $0x60] sm:$0xff]  }
 0x163   :  { %15952 = vmatpush3.bf16.msra.mxu0 %v17447_v45  ;;  %v4722_v39 = vcombine.high %v4721_v36, %v4721_v36 }
 0x164   :  { %v15660_v48 = vpop.f32.mrf.mxu0  ;;  %15953 = vmatprep.subr.bf16.mxu0 %v17450_v49  ;;  %v15681_v3 = vpop.f32.mrf.mxu1  ;;  %4657 = vmatmul.mubr.bf16.vlgmr.msra.gmra.mxu1 %v4518_v5  ;;  %v17482_v49 = vld [vmem:[%s22488_s3 + $0x70] sm:$0xff]   ;;  %v17491_v5 = vld [vmem:[%s22488_s3 + $0x20] sm:$0xff]  }
 0x165   :  { %v15661_v50 = vadd.f32 %v15660_v48, %v15659_v41  ;;  %15974 = vmatpush3.bf16.msra.mxu1 %v17457_v6  ;;  %v4729_v41 = vrot.slane %v4721_v36, %v18365_v38  ;;  %v4736_v43 = vrot.slane %v4722_v39, %v18365_v38  ;;  %v17481_v48 = vld [vmem:[%s22488_s3 + $0x8] sm:$0xff]   ;;  %v17511_v39 = vld [vmem:[%s22488_s3 + $0x38] sm:$0xff]  }
 0x166   :  { %v15662_v52 = vpop.f32.mrf.mxu0  ;;  %v15682_v8 = vpop.f32.mrf.mxu1  ;;  %15975 = vmatprep.subr.bf16.mxu1 %v17460_v11 }
 0x167   :  { %v1920_v54 = vadd.f32 %v15661_v50, %v19507_v47  ;;  %15954 = vmatpush3.bf16.msra.mxu0 %v17451_v55  ;;  %v15683_v10 = vadd.f32 %v15682_v8, %v15681_v3  ;;  %4867 = vmatprep.mubr.bf16.mxu0 %v4736_v43  ;;  %v17489_v3 = vld [vmem:[%s22488_s3 + $0x38] sm:$0xff]   ;;  %v17492_v8 = vld [vmem:[%s22488_s3 + $0x70] sm:$0xff]  }
 0x168   :  { %v15663_v57 = vpop.f32.mrf.mxu0  ;;  %15955 = vmatprep.subr.bf16.mxu0 %v17454_v59  ;;  %v15684_v20 = vpop.f32.mrf.mxu1  ;;  %v19649_v59 = vld [vmem:[%s22486_s1] sm:$0x3]  ;;  %v17514_v43 = vld [vmem:[%s22488_s3 + $0x70] sm:$0xff]  }
 0x169   :  { %v1925_v61 = vmax.f32 %v1920_v54, 0.0  ;;  %v2130_v13 = vadd.f32 %v15683_v10, %v19507_v47  ;;  %15976 = vmatpush3.bf16.msra.mxu1 %v17461_v15  ;;  %v17486_v54 = vld [vmem:[%s22488_s3 + $0x68] sm:$0xff]   ;;  %v17485_v57 = vld [vmem:[%s22488_s3] sm:$0xff]   ;;  %v4885_v60 = vmul.bf16 %v19649_v59, %v14684_v56  ;;  %v17494_v10 = vld [vmem:[%s22488_s3 + $0x58] sm:$0xff]  }
 0x16a   :  { %v15685_v16 = vpop.f32.mrf.mxu1  ;;  %15977 = vmatprep.subr.bf16.mxu1 %v17464_v19  ;;  %v17493_v20 = vld [vmem:[%s22488_s3 + $0x30] sm:$0xff]   ;;  %v17496_v15 = vld [vmem:[%s22488_s3 + $0x68] sm:$0xff]   ;;  %v17500_v19 = vld [vmem:[%s22488_s3 + $0x60] sm:$0xff]  }
 0x16b   :  { %1927 = vrot.lane.b32.xlu1 %v1925_v61, %s18187_s24  ;;  %15956 = vmatpush3.bf16.msra.mxu0 %v17455_v1  ;;  %v2135_v18 = vmax.f32 %v2130_v13, 0.0  ;;  %v17487_v61 = vld [vmem:[%s22488_s3 + $0x28] sm:$0xff]   ;;  %v4932_v62 = vrot.slane %v4885_v60, %v18365_v38  ;;  %v17498_v16 = vld [vmem:[%s22488_s3 + $0x50] sm:$0xff]   ;;  %v17517_v60 = vld [vmem:[%s22488_s3] sm:$0xff]  }
 0x16c   :  { %15957 = vmatprep.subr.bf16.mxu0 %v17458_v4  ;;  %v17518_v56 = vld [vmem:[%s22488_s3 + $0x68] sm:$0xff]  }
 0x16d   :  { %v2137_v22 = vrot.slane %v2135_v18, 6  ;;  %15978 = vmatpush3.bf16.msra.mxu1 %v17465_v23  ;;  %v4933_v1 = vcombine.high %v4932_v62, %v4932_v62  ;;  %v4940_v4 = vrot.slane %v4932_v62, %v18365_v38  ;;  %v17499_v18 = vld [vmem:[%s22488_s3 + $0x10] sm:$0xff]   ;;  %v17503_v23 = vld [vmem:[%s22488_s3 + $0x8] sm:$0xff]  }
 0x16e   :  { %15979 = vmatprep.subr.bf16.mxu1 %v17468_v25  ;;  %v17506_v25 = vld [vmem:[%s22488_s3 + $0x40] sm:$0xff]  }
 0x16f   :  { %15958 = vmatpush3.bf16.msra.mxu0 %v17459_v9  ;;  %2138 = vrot.lane.b32.xlu1 %v2137_v22, %s18187_s24  ;;  %v4947_v6 = vrot.slane %v4933_v1, %v18365_v38  ;;  %v17501_v22 = vld [vmem:[%s22488_s3 + $0x20] sm:$0xff]  }
 0x170   :  { %15959 = vmatprep.subr.bf16.mxu0 %v17462_v12  ;;  %v17495_v12 = vld [vmem:[%s22488_s3 + $0x18] sm:$0xff]   ;;  %v17522_v1 = vld [vmem:[%s22488_s3 + $0x60] sm:$0xff]  }
 0x171   :  { %15980 = vmatpush3.bf16.msra.mxu1 %v17469_v27  ;;  %5078 = vmatprep.mubr.bf16.mxu1 %v4947_v6  ;;  %v17523_v6 = vld [vmem:[%s22488_s3 + $0x20] sm:$0xff]  }
 0x172   :  { %15981 = vmatprep.subr.bf16.mxu1 %v17472_v30  ;;  %v17507_v30 = vld [vmem:[%s22488_s3] sm:$0xff]  }
 0x173   :  { %15960 = vmatpush3.bf16.msra.mxu0 %v17463_v17  ;;  %v17497_v17 = vld [vmem:[%s22488_s3 + $0x28] sm:$0xff]  }
 0x174   :  { %15961 = vmatprep.subr.bf16.mxu0 %v17466_v21  ;;  %v17502_v21 = vld [vmem:[%s22488_s3 + $0x48] sm:$0xff]  }
 0x175   :  { %15982 = vmatpush3.bf16.msra.mxu1 %v17473_v32 }
 0x176   :  { %15983 = vmatprep.subr.bf16.mxu1 %v17476_v35  ;;  %v17509_v35 = vld [vmem:[%s22488_s3 + $0x10] sm:$0xff]  }
 0x177   :  { %15962 = vmatpush3.bf16.msra.mxu0 %v17467_v24  ;;  %v17504_v24 = vld [vmem:[%s22488_s3 + $0x58] sm:$0xff]  }
 0x178   :  { %15963 = vmatprep.subr.bf16.mxu0 %v17470_v26  ;;  %v17505_v26 = vld [vmem:[%s22488_s3 + $0x18] sm:$0xff]  }
 0x179   :  { %15984 = vmatpush3.bf16.msra.mxu1 %v17477_v46 }
 0x17a   :  { %15985 = vmatprep.subr.bf16.mxu1 %v17480_v44  ;;  %v17513_v44 = vld [vmem:[%s22488_s3 + $0x8] sm:$0xff]  }
 0x17b   :  { %15964 = vmatpush3.bf16.msra.mxu0 %v17471_v29  ;;  %v14702_v29 = vld [vmem:[%s22485_s0 + $0x30] sm:$0x3] }
 0x17c   :  { %15965 = vmatprep.subr.bf16.mxu0 %v17474_v31  ;;  %v5096_v31 = vmul.bf16 %v19649_v59, %v14702_v29  ;;  %v17537_v29 = vld [vmem:[%s22488_s3 + $0x18] sm:$0xff]  }
 0x17d   :  { %15986 = vmatpush3.bf16.msra.mxu1 %v17481_v48 }
 0x17e   :  { %15987 = vmatprep.subr.bf16.mxu1 %v17484_v53  ;;  %v5143_v32 = vrot.slane %v5096_v31, %v18365_v38  ;;  %v14720_v53 = vld [vmem:[%s22485_s0 + $0x32] sm:$0x3]  ;;  %v14738_v31 = vld [vmem:[%s22485_s0 + $0x34] sm:$0x3] }
 0x17f   :  { %15966 = vmatpush3.bf16.msra.mxu0 %v17475_v34 }
 0x180   :  { %15995 = vmatprep.subr.bf16.mxu0 %v17478_v37  ;;  %v5144_v34 = vcombine.high %v5143_v32, %v5143_v32  ;;  %v5151_v37 = vrot.slane %v5143_v32, %v18365_v38  ;;  %v5517_v32 = vmul.bf16 %v19649_v59, %v14738_v31 }
 0x181   :  { %15988 = vmatpush3.bf16.msra.mxu1 %v17485_v57  ;;  %v5306_v57 = vmul.bf16 %v19649_v59, %v14720_v53  ;;  %v14756_v53 = vld [vmem:[%s22485_s0 + $0x36] sm:$0x3] }
 0x182   :  { %v15703_v40 = vpop.f32.mrf.mxu0  ;;  %4868 = vmatmul.mubr.bf16.vlgmr.msra.gmra.mxu0 %v4729_v41  ;;  %16017 = vmatprep.subr.bf16.mxu1 %v17488_v28  ;;  %v5158_v46 = vrot.slane %v5144_v34, %v18365_v38  ;;  %v17512_v41 = vld [vmem:[%s22488_s3 + $0x48] sm:$0xff]   ;;  %v17520_v28 = vld [vmem:[%s22488_s3 + $0x78] sm:$0xff]   ;;  %v5564_v34 = vrot.slane %v5517_v32, %v18365_v38 }
 0x183   :  { %15996 = vmatpush3.bf16.msra.mxu0 %v17479_v42  ;;  %v5353_v62 = vrot.slane %v5306_v57, %v18365_v38 }
 0x184   :  { %v15704_v45 = vpop.f32.mrf.mxu0  ;;  %15997 = vmatprep.subr.bf16.mxu0 %v17482_v49  ;;  %v15725_v2 = vpop.f32.mrf.mxu1  ;;  %5079 = vmatmul.mubr.bf16.vlgmr.msra.gmra.mxu1 %v4940_v4  ;;  %v17515_v49 = vld [vmem:[%s22488_s3 + $0x30] sm:$0xff]   ;;  %v17521_v4 = vld [vmem:[%s22488_s3 + $0x38] sm:$0xff]  }
 0x185   :  { %v19629_v50 = vadd.f32 %v15704_v45, %v15703_v40  ;;  %16018 = vmatpush3.bf16.msra.mxu1 %v17489_v3  ;;  %5289 = vmatprep.mubr.bf16.mxu0 %v5158_v46  ;;  %v5361_v3 = vrot.slane %v5353_v62, %v18365_v38  ;;  %v5572_v46 = vrot.slane %v5564_v34, %v18365_v38 }
 0x186   :  { %v15706_v52 = vpop.f32.mrf.mxu0  ;;  %v15726_v7 = vpop.f32.mrf.mxu1  ;;  %16019 = vmatprep.subr.bf16.mxu1 %v17492_v8  ;;  %v17524_v8 = vld [vmem:[%s22488_s3 + $0x70] sm:$0xff]  }
 0x187   :  { %15998 = vmatpush3.bf16.msra.mxu0 %v17483_v51  ;;  %v19673_v9 = vadd.f32 %v15726_v7, %v15725_v2  ;;  %v17516_v52 = vld [vmem:[%s22488_s3 + $0x40] sm:$0xff]  }
 0x188   :  { %v15707_v55 = vpop.f32.mrf.mxu0  ;;  %15999 = vmatprep.subr.bf16.mxu0 %v17486_v54  ;;  %v15728_v11 = vpop.f32.mrf.mxu1 }
 0x189   :  { %16020 = vmatpush3.bf16.msra.mxu1 %v17493_v20  ;;  %v17526_v11 = vld [vmem:[%s22488_s3 + $0x58] sm:$0xff]  }
 0x18a   :  { %v15729_v13 = vpop.f32.mrf.mxu1  ;;  %16021 = vmatprep.subr.bf16.mxu1 %v17496_v15  ;;  %v17527_v15 = vld [vmem:[%s22488_s3 + $0x18] sm:$0xff]  }
 0x18b   :  { %16000 = vmatpush3.bf16.msra.mxu0 %v17487_v61  ;;  %v17519_v61 = vld [vmem:[%s22488_s3 + $0x28] sm:$0xff]  }
 0x18c   :  { %16001 = vmatprep.subr.bf16.mxu0 %v17490_v0  ;;  %v5354_v0 = vcombine.high %v5353_v62, %v5353_v62 }
 0x18d   :  { %16022 = vmatpush3.bf16.msra.mxu1 %v17497_v17  ;;  %v17528_v17 = vld [vmem:[%s22488_s3 + $0x68] sm:$0xff]  }
 0x18e   :  { %16023 = vmatprep.subr.bf16.mxu1 %v17500_v19  ;;  %v17530_v19 = vld [vmem:[%s22488_s3 + $0x50] sm:$0xff]  }
 0x18f   :  { %16002 = vmatpush3.bf16.msra.mxu0 %v17491_v5  ;;  %v5368_v5 = vrot.slane %v5354_v0, %v18365_v38 }
 0x190   :  { %16003 = vmatprep.subr.bf16.mxu0 %v17494_v10 }
 0x191   :  { %16024 = vmatpush3.bf16.msra.mxu1 %v17501_v22  ;;  %5499 = vmatprep.mubr.bf16.mxu1 %v5368_v5  ;;  %v17531_v22 = vld [vmem:[%s22488_s3 + $0x10] sm:$0xff]  }
 0x192   :  { %16025 = vmatprep.subr.bf16.mxu1 %v17504_v24  ;;  %v17534_v24 = vld [vmem:[%s22488_s3 + $0x48] sm:$0xff]  }
 0x193   :  { %16004 = vmatpush3.bf16.msra.mxu0 %v17495_v12  ;;  %v17525_v12 = vld [vmem:[%s22488_s3 + $0x30] sm:$0xff]  }
 0x194   :  { %16005 = vmatprep.subr.bf16.mxu0 %v17498_v16 }
 0x195   :  { %16026 = vmatpush3.bf16.msra.mxu1 %v17505_v26  ;;  %v17535_v26 = vld [vmem:[%s22488_s3 + $0x8] sm:$0xff]  }
 0x196   :  { %16027 = vmatprep.subr.bf16.mxu1 %v17508_v63  ;;  %v17539_v63 = vld [vmem:[%s22488_s3] sm:$0xff]  }
 0x197   :  { %16006 = vmatpush3.bf16.msra.mxu0 %v17499_v18 }
 0x198   :  { %16007 = vmatprep.subr.bf16.mxu0 %v17502_v21 }
 0x199   :  { %16028 = vmatpush3.bf16.msra.mxu1 %v17509_v35  ;;  %v17542_v35 = vld [vmem:[%s22488_s3 + $0x78] sm:$0xff]  }
 0x19a   :  { %16029 = vmatprep.subr.bf16.mxu1 %v17512_v41 }
 0x19b   :  { %16008 = vmatpush3.bf16.msra.mxu0 %v17503_v23  ;;  %v17532_v23 = vld [vmem:[%s22488_s3 + $0x60] sm:$0xff]  }
 0x19c   :  { %16009 = vmatprep.subr.bf16.mxu0 %v17506_v25  ;;  %v17533_v25 = vld [vmem:[%s22488_s3 + $0x20] sm:$0xff]  }
 0x19d   :  { %v1085_v27 = vpop.permute.xlu0 %1084  ;;  %16030 = vmatpush3.bf16.msra.mxu1 %v17513_v44  ;;  %v17546_v44 = vld [vmem:[%s22488_s3 + $0x70] sm:$0xff]  }
 0x19e   :  { %1088 = vst.msk [vmem:[#allocation2] sm:$0x3] %vm1087_vm4, %v1085_v27  ;;  %16031 = vmatprep.subr.bf16.mxu1 %v17516_v52  ;;  %v17536_v27 = vld [vmem:[%s22488_s3 + $0x58] sm:$0xff]  }
 0x19f   :  { %16010 = vmatpush3.bf16.msra.mxu0 %v17507_v30  ;;  %v17538_v30 = vld [vmem:[%s22488_s3 + $0x40] sm:$0xff]  }
 0x1a0   :  { %16039 = vmatprep.subr.bf16.mxu0 %v17510_v33  ;;  %v17540_v33 = vld [vmem:[%s22488_s3 + $0x50] sm:$0xff]  }
 0x1a1   :  { %v1296_v54 = vpop.permute.xlu1 %1295  ;;  %16032 = vmatpush3.bf16.msra.mxu1 %v17517_v60  ;;  %v17552_v60 = vld [vmem:[%s22488_s3 + $0x78] sm:$0xff]  }
 0x1a2   :  { %v15747_v36 = vpop.f32.mrf.mxu0  ;;  %5290 = vmatmul.mubr.bf16.vlgmr.msra.gmra.mxu0 %v5151_v37  ;;  %1299 = vst.msk [vmem:[#allocation2] sm:$0xc] %vm1298_vm5, %v1296_v54  ;;  %16061 = vmatprep.subr.bf16.mxu1 %v17520_v28  ;;  %v17541_v37 = vld [vmem:[%s22488_s3 + $0x10] sm:$0xff]   ;;  %v17550_v54 = vld [vmem:[%s22488_s3 + $0x68] sm:$0xff]   ;;  %v17554_v28 = vld [vmem:[%s22488_s3 + $0x60] sm:$0xff]  }
 0x1a3   :  { %16040 = vmatpush3.bf16.msra.mxu0 %v17511_v39 }
 0x1a4   :  { %v15748_v40 = vpop.f32.mrf.mxu0  ;;  %16041 = vmatprep.subr.bf16.mxu0 %v17514_v43  ;;  %v15769_v2 = vpop.f32.mrf.mxu1  ;;  %5500 = vmatmul.mubr.bf16.vlgmr.msra.gmra.mxu1 %v5361_v3 }
 0x1a5   :  { %v15749_v42 = vadd.f32 %v15748_v40, %v15747_v36  ;;  %16062 = vmatpush3.bf16.msra.mxu1 %v17521_v4  ;;  %v5565_v36 = vcombine.high %v5564_v34, %v5564_v34  ;;  %v17544_v40 = vld [vmem:[%s22488_s3 + $0x48] sm:$0xff]   ;;  %v17555_v4 = vld [vmem:[%s22488_s3 + $0x20] sm:$0xff]  }
 0x1a6   :  { %v15750_v45 = vpop.f32.mrf.mxu0  ;;  %v15770_v7 = vpop.f32.mrf.mxu1  ;;  %16063 = vmatprep.subr.bf16.mxu1 %v17524_v8  ;;  %v17558_v8 = vld [vmem:[%s22488_s3 + $0x58] sm:$0xff]  }
 0x1a7   :  { %v2763_v48 = vadd.f32 %v15749_v42, %v19507_v47  ;;  %16042 = vmatpush3.bf16.msra.mxu0 %v17515_v49  ;;  %v15771_v10 = vadd.f32 %v15770_v7, %v15769_v2  ;;  %v5579_v41 = vrot.slane %v5565_v36, %v18365_v38  ;;  %v17543_v42 = vld [vmem:[%s22488_s3 + $0x38] sm:$0xff]   ;;  %v17545_v45 = vld [vmem:[%s22488_s3 + $0x8] sm:$0xff]   ;;  %v17548_v49 = vld [vmem:[%s22488_s3 + $0x40] sm:$0xff]  }
 0x1a8   :  { %v15751_v51 = vpop.f32.mrf.mxu0  ;;  %16043 = vmatprep.subr.bf16.mxu0 %v17518_v56  ;;  %v15772_v20 = vpop.f32.mrf.mxu1  ;;  %v17549_v56 = vld [vmem:[%s22488_s3] sm:$0xff]   ;;  %v17553_v2 = vld [vmem:[%s22488_s3 + $0x38] sm:$0xff]   ;;  %v17576_v36 = vld [vmem:[%s22488_s3 + $0x48] sm:$0xff]  }
 0x1a9   :  { %v2768_v55 = vmax.f32 %v2763_v48, 0.0  ;;  %v2973_v13 = vadd.f32 %v15771_v10, %v19507_v47  ;;  %v17529_v47 = vld [vmem:[%s22488_s3 + $0x28] sm:$0xff]   ;;  %16064 = vmatpush3.bf16.msra.mxu1 %v17525_v12  ;;  %5710 = vmatprep.mubr.bf16.mxu0 %v5579_v41  ;;  %v17547_v51 = vld [vmem:[%s22488_s3 + $0x30] sm:$0xff]   ;;  %v17559_v20 = vld [vmem:[%s22488_s3 + $0x18] sm:$0xff]  }
 0x1aa   :  { %v15773_v16 = vpop.f32.mrf.mxu1  ;;  %16065 = vmatprep.subr.bf16.mxu1 %v17528_v17  ;;  %v17563_v17 = vld [vmem:[%s22488_s3 + $0x10] sm:$0xff]  }
 0x1ab   :  { %2770 = vrot.lane.b32.xlu1 %v2768_v55, %s18188_s26  ;;  %16044 = vmatpush3.bf16.msra.mxu0 %v17519_v61  ;;  %v2978_v18 = vmax.f32 %v2973_v13, 0.0  ;;  %v5728_v55 = vmul.bf16 %v19649_v59, %v14756_v53  ;;  %v17551_v61 = vld [vmem:[%s22488_s3 + $0x28] sm:$0xff]  }
 0x1ac   :  { %16045 = vmatprep.subr.bf16.mxu0 %v17522_v1  ;;  %v17560_v13 = vld [vmem:[%s22488_s3 + $0x68] sm:$0xff]  }
 0x1ad   :  { %v2980_v21 = vrot.slane %v2978_v18, 6  ;;  %16066 = vmatpush3.bf16.msra.mxu1 %v17529_v47  ;;  %v5775_v57 = vrot.slane %v5728_v55, %v18365_v38  ;;  %v17561_v16 = vld [vmem:[%s22488_s3 + $0x28] sm:$0xff]   ;;  %v17564_v18 = vld [vmem:[%s22488_s3 + $0x60] sm:$0xff]  }
 0x1ae   :  { %16067 = vmatprep.subr.bf16.mxu1 %v17532_v23  ;;  %v17565_v47 = vld [vmem:[%s22488_s3 + $0x20] sm:$0xff]  }
 0x1af   :  { %16046 = vmatpush3.bf16.msra.mxu0 %v17523_v6  ;;  %2981 = vrot.lane.b32.xlu1 %v2980_v21, %s18188_s26  ;;  %v5776_v62 = vcombine.high %v5775_v57, %v5775_v57  ;;  %v5783_v1 = vrot.slane %v5775_v57, %v18365_v38  ;;  %v17556_v6 = vld [vmem:[%s22488_s3 + $0x70] sm:$0xff]   ;;  %v17567_v21 = vld [vmem:[%s22488_s3 + $0x8] sm:$0xff]  }
 0x1b0   :  { %16047 = vmatprep.subr.bf16.mxu0 %v17526_v11  ;;  %v17557_v11 = vld [vmem:[%s22488_s3 + $0x30] sm:$0xff]   ;;  %v17582_v57 = vld [vmem:[%s22488_s3 + $0x68] sm:$0xff]  }
 0x1b1   :  { %16068 = vmatpush3.bf16.msra.mxu1 %v17533_v25  ;;  %v5790_v3 = vrot.slane %v5776_v62, %v18365_v38  ;;  %v17570_v25 = vld [vmem:[%s22488_s3 + $0x40] sm:$0xff]  }
 0x1b2   :  { %16069 = vmatprep.subr.bf16.mxu1 %v17536_v27  ;;  %v17571_v27 = vld [vmem:[%s22488_s3] sm:$0xff]  }
 0x1b3   :  { %16048 = vmatpush3.bf16.msra.mxu0 %v17527_v15  ;;  %5921 = vmatprep.mubr.bf16.mxu1 %v5790_v3  ;;  %v17562_v15 = vld [vmem:[%s22488_s3 + $0x50] sm:$0xff]  }
 0x1b4   :  { %16049 = vmatprep.subr.bf16.mxu0 %v17530_v19  ;;  %v17566_v19 = vld [vmem:[%s22488_s3 + $0x48] sm:$0xff]  }
 0x1b5   :  { %16070 = vmatpush3.bf16.msra.mxu1 %v17537_v29 }
 0x1b6   :  { %16071 = vmatprep.subr.bf16.mxu1 %v17540_v33  ;;  %v17573_v33 = vld [vmem:[%s22488_s3 + $0x10] sm:$0xff]  }
 0x1b7   :  { %16050 = vmatpush3.bf16.msra.mxu0 %v17531_v22  ;;  %v17568_v22 = vld [vmem:[%s22488_s3 + $0x58] sm:$0xff]  }
 0x1b8   :  { %16051 = vmatprep.subr.bf16.mxu0 %v17534_v24  ;;  %v17569_v24 = vld [vmem:[%s22488_s3 + $0x18] sm:$0xff]  }
 0x1b9   :  { %16072 = vmatpush3.bf16.msra.mxu1 %v17541_v37  ;;  %v19974_v37 = vld [vmem:[%s22489_s4] ss:$0 sm:$0xff] }
 0x1ba   :  { %16073 = vmatprep.subr.bf16.mxu1 %v17544_v40  ;;  %v17575_v40 = vld [vmem:[%s22488_s3 + $0x38] sm:$0xff]  }
 0x1bb   :  { %16052 = vmatpush3.bf16.msra.mxu0 %v17535_v26  ;;  %v14774_v26 = vld [vmem:[%s22485_s0 + $0x38] sm:$0x3] }
 0x1bc   :  { %16053 = vmatprep.subr.bf16.mxu0 %v17538_v30  ;;  %v5939_v29 = vmul.bf16 %v19649_v59, %v14774_v26  ;;  %v17572_v30 = vld [vmem:[%s22488_s3 + $0x50] sm:$0xff]   ;;  %v17597_v26 = vld [vmem:[%s22488_s3 + $0x20] sm:$0xff]  }
 0x1bd   :  { %16074 = vmatpush3.bf16.msra.mxu1 %v17545_v45  ;;  %v17577_v45 = vld [vmem:[%s22488_s3 + $0x8] sm:$0xff]  }
 0x1be   :  { %16075 = vmatprep.subr.bf16.mxu1 %v17548_v49  ;;  %v5986_v31 = vrot.slane %v5939_v29, %v18365_v38  ;;  %v17600_v29 = vld [vmem:[%s22488_s3 + $0x58] sm:$0xff]  }
 0x1bf   :  { %16054 = vmatpush3.bf16.msra.mxu0 %v17539_v63  ;;  %v17574_v63 = vld [vmem:[%s22488_s3 + $0x78] sm:$0xff]  }
 0x1c0   :  { %16083 = vmatprep.subr.bf16.mxu0 %v17542_v35  ;;  %v5987_v32 = vcombine.high %v5986_v31, %v5986_v31  ;;  %v5994_v35 = vrot.slane %v5986_v31, %v18365_v38  ;;  %v14810_v31 = vld [vmem:[%s22485_s0 + $0x3c] sm:$0x3] }
 0x1c1   :  { %16076 = vmatpush3.bf16.msra.mxu1 %v17549_v56 }
 0x1c2   :  { %v19850_v39 = vpop.f32.mrf.mxu0  ;;  %5711 = vmatmul.mubr.bf16.vlgmr.msra.gmra.mxu0 %v5572_v46  ;;  %16105 = vmatprep.subr.bf16.mxu1 %v17552_v60  ;;  %v6001_v46 = vrot.slane %v5987_v32, %v18365_v38  ;;  %v20076_v32 = vld [vmem:[%s22486_s1] sm:$0x3] }
 0x1c3   :  { %16084 = vmatpush3.bf16.msra.mxu0 %v17543_v42 }
 0x1c4   :  { %v19860_v43 = vpop.f32.mrf.mxu0  ;;  %16085 = vmatprep.subr.bf16.mxu0 %v17546_v44  ;;  %v15813_v0 = vpop.f32.mrf.mxu1  ;;  %5922 = vmatmul.mubr.bf16.vlgmr.msra.gmra.mxu1 %v5783_v1  ;;  %v17578_v44 = vld [vmem:[%s22488_s3 + $0x70] sm:$0xff]  }
 0x1c5   :  { %16106 = vmatpush3.bf16.msra.mxu1 %v17553_v2  ;;  %6132 = vmatprep.mubr.bf16.mxu0 %v6001_v46  ;;  %v17586_v2 = vld [vmem:[%s22488_s3 + $0x60] sm:$0xff]   ;;  %v17606_v46 = vld [vmem:[%s22488_s3 + $0x78] sm:$0xff]  }
 0x1c6   :  { %v15794_v48 = vpop.f32.mrf.mxu0  ;;  %v15814_v5 = vpop.f32.mrf.mxu1  ;;  %16107 = vmatprep.subr.bf16.mxu1 %v17556_v6 }
 0x1c7   :  { %16086 = vmatpush3.bf16.msra.mxu0 %v17547_v51  ;;  %v19905_v7 = vadd.f32 %v15814_v5, %v15813_v0  ;;  %v17580_v51 = vld [vmem:[%s22488_s3 + $0x40] sm:$0xff]  }
 0x1c8   :  { %v15795_v52 = vpop.f32.mrf.mxu0  ;;  %16087 = vmatprep.subr.bf16.mxu0 %v17550_v54  ;;  %v15816_v10 = vpop.f32.mrf.mxu1  ;;  %v14792_v54 = vld [vmem:[%s22485_s0 + $0x3a] sm:$0x3] }
 0x1c9   :  { %16108 = vmatpush3.bf16.msra.mxu1 %v17557_v11  ;;  %v17579_v52 = vld [vmem:[%s22488_s3 + $0x30] sm:$0xff]   ;;  %v6149_v60 = vmul.bf16 %v19649_v59, %v14792_v54  ;;  %v17583_v59 = vld [vmem:[%s22488_s3 + $0x28] sm:$0xff]  }
 0x1ca   :  { %v15817_v12 = vpop.f32.mrf.mxu1  ;;  %16109 = vmatprep.subr.bf16.mxu1 %v17560_v13  ;;  %v17588_v11 = vld [vmem:[%s22488_s3 + $0x70] sm:$0xff]  }
 0x1cb   :  { %16088 = vmatpush3.bf16.msra.mxu0 %v17551_v61  ;;  %v17581_v61 = vld [vmem:[%s22488_s3] sm:$0xff]   ;;  %v6196_v62 = vrot.slane %v6149_v60, %v18365_v38  ;;  %v17590_v12 = vld [vmem:[%s22488_s3 + $0x58] sm:$0xff]   ;;  %v17614_v60 = vld [vmem:[%s22488_s3 + $0x68] sm:$0xff]  }
 0x1cc   :  { %16089 = vmatprep.subr.bf16.mxu0 %v17554_v28  ;;  %v17584_v28 = vld [vmem:[%s22488_s3 + $0x78] sm:$0xff]  }
 0x1cd   :  { %16110 = vmatpush3.bf16.msra.mxu1 %v17561_v16  ;;  %v6197_v0 = vcombine.high %v6196_v62, %v6196_v62  ;;  %v6204_v3 = vrot.slane %v6196_v62, %v18365_v38  ;;  %v14828_v62 = vld [vmem:[%s22485_s0 + $0x3e] sm:$0x3] }
 0x1ce   :  { %16111 = vmatprep.subr.bf16.mxu1 %v17564_v18 }
 0x1cf   :  { %16090 = vmatpush3.bf16.msra.mxu0 %v17555_v4  ;;  %v17585_v4 = vld [vmem:[%s22488_s3 + $0x38] sm:$0xff]   ;;  %v6211_v5 = vrot.slane %v6197_v0, %v18365_v38  ;;  %v17615_v0 = vld [vmem:[%s22488_s3 + $0x28] sm:$0xff]  }
 0x1d0   :  { %16091 = vmatprep.subr.bf16.mxu0 %v17558_v8  ;;  %v17587_v8 = vld [vmem:[%s22488_s3 + $0x20] sm:$0xff]  }
 0x1d1   :  { %16112 = vmatpush3.bf16.msra.mxu1 %v17565_v47  ;;  %6342 = vmatprep.mubr.bf16.mxu1 %v6211_v5  ;;  %v17594_v47 = vld [vmem:[%s22488_s3 + $0x50] sm:$0xff]  }
 0x1d2   :  { %16113 = vmatprep.subr.bf16.mxu1 %v17568_v22  ;;  %v17593_v22 = vld [vmem:[%s22488_s3 + $0x28] sm:$0xff]  }
 0x1d3   :  { %16092 = vmatpush3.bf16.msra.mxu0 %v17559_v20 }
 0x1d4   :  { %16093 = vmatprep.subr.bf16.mxu0 %v17562_v15  ;;  %v17589_v15 = vld [vmem:[%s22488_s3 + $0x30] sm:$0xff]  }
 0x1d5   :  { %16114 = vmatpush3.bf16.msra.mxu1 %v17569_v24  ;;  %v17596_v24 = vld [vmem:[%s22488_s3 + $0x60] sm:$0xff]  }
 0x1d6   :  { %16115 = vmatprep.subr.bf16.mxu1 %v17572_v30  ;;  %v17602_v30 = vld [vmem:[%s22488_s3 + $0x40] sm:$0xff]  }
 0x1d7   :  { %16094 = vmatpush3.bf16.msra.mxu0 %v17563_v17  ;;  %v17591_v17 = vld [vmem:[%s22488_s3 + $0x18] sm:$0xff]  }
 0x1d8   :  { %16095 = vmatprep.subr.bf16.mxu0 %v17566_v19  ;;  %v17592_v19 = vld [vmem:[%s22488_s3 + $0x68] sm:$0xff]  }
 0x1d9   :  { %16116 = vmatpush3.bf16.msra.mxu1 %v17573_v33  ;;  %v6360_v33 = vmul.bf16 %v20076_v32, %v14810_v31  ;;  %v17633_v31 = vld [vmem:[%s22488_s3 + $0x18] sm:$0xff]  }
 0x1da   :  { %16117 = vmatprep.subr.bf16.mxu1 %v17576_v36 }
 0x1db   :  { %16096 = vmatpush3.bf16.msra.mxu0 %v17567_v21  ;;  %v6407_v36 = vrot.slane %v6360_v33, %v18365_v38  ;;  %v17635_v33 = vld [vmem:[%s22488_s3] sm:$0xff]  }
 0x1dc   :  { %16097 = vmatprep.subr.bf16.mxu0 %v17570_v25  ;;  %v17598_v25 = vld [vmem:[%s22488_s3 + $0x48] sm:$0xff]  }
 0x1dd   :  { %v1928_v23 = vpop.permute.xlu1 %1927  ;;  %16118 = vmatpush3.bf16.msra.mxu1 %v17577_v45  ;;  %v17607_v45 = vld [vmem:[%s22488_s3 + $0x38] sm:$0xff]  }
 0x1de   :  { %1931 = vst.msk [vmem:[#allocation2] sm:$0x3] %vm1930_vm6, %v1928_v23  ;;  %16119 = vmatprep.subr.bf16.mxu1 %v17580_v51  ;;  %v17595_v23 = vld [vmem:[%s22488_s3 + $0x10] sm:$0xff]  }
 0x1df   :  { %16098 = vmatpush3.bf16.msra.mxu0 %v17571_v27  ;;  %v17599_v27 = vld [vmem:[%s22488_s3 + $0x8] sm:$0xff]  }
 0x1e0   :  { %16127 = vmatprep.subr.bf16.mxu0 %v17574_v63  ;;  %v17601_v63 = vld [vmem:[%s22488_s3 + $0x18] sm:$0xff]  }
 0x1e1   :  { %v2139_v55 = vpop.permute.xlu1 %2138  ;;  %16120 = vmatpush3.bf16.msra.mxu1 %v17581_v61 }
 0x1e2   :  { %v15835_v34 = vpop.f32.mrf.mxu0  ;;  %6133 = vmatmul.mubr.bf16.vlgmr.msra.gmra.mxu0 %v5994_v35  ;;  %2142 = vst.msk [vmem:[#allocation2] sm:$0xc] %vm2141_vm7, %v2139_v55  ;;  %16149 = vmatprep.subr.bf16.mxu1 %v17584_v28  ;;  %v17604_v35 = vld [vmem:[%s22488_s3 + $0x50] sm:$0xff]   ;;  %v17613_v28 = vld [vmem:[%s22488_s3] sm:$0xff]  }
 0x1e3   :  { %16128 = vmatpush3.bf16.msra.mxu0 %v17575_v40  ;;  %v6408_v40 = vcombine.high %v6407_v36, %v6407_v36  ;;  %v17611_v55 = vld [vmem:[%s22488_s3 + $0x30] sm:$0xff]  }
 0x1e4   :  { %v15836_v41 = vpop.f32.mrf.mxu0  ;;  %16129 = vmatprep.subr.bf16.mxu0 %v17578_v44  ;;  %v15857_v1 = vpop.f32.mrf.mxu1  ;;  %6343 = vmatmul.mubr.bf16.vlgmr.msra.gmra.mxu1 %v6204_v3  ;;  %v6415_v44 = vrot.slane %v6407_v36, %v18365_v38  ;;  %v17618_v3 = vld [vmem:[%s22488_s3 + $0x60] sm:$0xff]  }
 0x1e5   :  { %v15837_v42 = vadd.f32 %v15836_v41, %v15835_v34  ;;  %16150 = vmatpush3.bf16.msra.mxu1 %v17585_v4  ;;  %v17603_v34 = vld [vmem:[%s22488_s3] sm:$0xff]   ;;  %v17605_v41 = vld [vmem:[%s22488_s3 + $0x10] sm:$0xff]  }
 0x1e6   :  { %v15838_v48 = vpop.f32.mrf.mxu0  ;;  %v15858_v6 = vpop.f32.mrf.mxu1  ;;  %16151 = vmatprep.subr.bf16.mxu1 %v17588_v11 }
 0x1e7   :  { %v3606_v49 = vadd.f32 %v15837_v42, %v19974_v37  ;;  %16130 = vmatpush3.bf16.msra.mxu0 %v17579_v52  ;;  %v15859_v10 = vadd.f32 %v15858_v6, %v15857_v1  ;;  %v6422_v48 = vrot.slane %v6408_v40, %v18365_v38  ;;  %v17609_v52 = vld [vmem:[%s22488_s3 + $0x8] sm:$0xff]   ;;  %v17617_v6 = vld [vmem:[%s22488_s3 + $0x38] sm:$0xff]  }
 0x1e8   :  { %v15839_v53 = vpop.f32.mrf.mxu0  ;;  %16131 = vmatprep.subr.bf16.mxu0 %v17582_v57  ;;  %v15860_v20 = vpop.f32.mrf.mxu1  ;;  %v17612_v57 = vld [vmem:[%s22488_s3 + $0x40] sm:$0xff]  }
 0x1e9   :  { %v3611_v56 = vmax.f32 %v3606_v49, 0.0  ;;  %v3816_v13 = vadd.f32 %v15859_v10, %v19974_v37  ;;  %16152 = vmatpush3.bf16.msra.mxu1 %v17589_v15  ;;  %v17608_v49 = vld [vmem:[%s22488_s3 + $0x48] sm:$0xff]   ;;  %v17610_v53 = vld [vmem:[%s22488_s3 + $0x70] sm:$0xff]   ;;  %6553 = vmatprep.mubr.bf16.mxu0 %v6422_v48  ;;  %v17619_v10 = vld [vmem:[%s22488_s3 + $0x20] sm:$0xff]  }
 0x1ea   :  { %v15861_v16 = vpop.f32.mrf.mxu1  ;;  %16153 = vmatprep.subr.bf16.mxu1 %v17592_v19  ;;  %v17624_v19 = vld [vmem:[%s22488_s3 + $0x68] sm:$0xff]  }
 0x1eb   :  { %3613 = vrot.lane.b32.xlu1 %v3611_v56, %s18189_s21  ;;  %16132 = vmatpush3.bf16.msra.mxu0 %v17583_v59  ;;  %v3821_v18 = vmax.f32 %v3816_v13, 0.0  ;;  %v6571_v59 = vmul.bf16 %v20076_v32, %v14828_v62  ;;  %v17622_v13 = vld [vmem:[%s22488_s3 + $0x58] sm:$0xff]   ;;  %v17621_v16 = vld [vmem:[%s22488_s3 + $0x30] sm:$0xff]   ;;  %v14864_v62 = vld [vmem:[%s22485_s0 + $0x42] sm:$0x3] }
 0x1ec   :  { %16133 = vmatprep.subr.bf16.mxu0 %v17586_v2  ;;  %v17616_v2 = vld [vmem:[%s22488_s3 + $0x78] sm:$0xff]  }
 0x1ed   :  { %v3823_v21 = vrot.slane %v3821_v18, 6  ;;  %16154 = vmatpush3.bf16.msra.mxu1 %v17593_v22  ;;  %v6618_v1 = vrot.slane %v6571_v59, %v18365_v38  ;;  %v17627_v22 = vld [vmem:[%s22488_s3 + $0x10] sm:$0xff]  }
 0x1ee   :  { %16155 = vmatprep.subr.bf16.mxu1 %v17596_v24  ;;  %v17630_v24 = vld [vmem:[%s22488_s3 + $0x48] sm:$0xff]  }
 0x1ef   :  { %16134 = vmatpush3.bf16.msra.mxu0 %v17587_v8  ;;  %3824 = vrot.lane.b32.xlu1 %v3823_v21, %s18189_s21  ;;  %v6619_v4 = vcombine.high %v6618_v1, %v6618_v1  ;;  %v6626_v8 = vrot.slane %v6618_v1, %v18365_v38  ;;  %v17625_v21 = vld [vmem:[%s22488_s3 + $0x28] sm:$0xff]   ;;  %v6987_v1 = vmul.bf16 %v20076_v32, %v14864_v62  ;;  %v17671_v62 = vld [vmem:[%s22488_s3 + $0x38] sm:$0xff]  }
 0x1f0   :  { %16135 = vmatprep.subr.bf16.mxu0 %v17590_v12  ;;  %v17620_v12 = vld [vmem:[%s22488_s3 + $0x70] sm:$0xff]  }
 0x1f1   :  { %16156 = vmatpush3.bf16.msra.mxu1 %v17597_v26  ;;  %v6633_v11 = vrot.slane %v6619_v4, %v18365_v38  ;;  %v17631_v26 = vld [vmem:[%s22488_s3 + $0x8] sm:$0xff]   ;;  %v7034_v4 = vrot.slane %v6987_v1, %v18365_v38 }
 0x1f2   :  { %16157 = vmatprep.subr.bf16.mxu1 %v17600_v29  ;;  %v17632_v29 = vld [vmem:[%s22488_s3 + $0x58] sm:$0xff]   ;;  %v17673_v1 = vld [vmem:[%s22488_s3 + $0x8] sm:$0xff]  }
 0x1f3   :  { %16136 = vmatpush3.bf16.msra.mxu0 %v17591_v17  ;;  %6764 = vmatprep.mubr.bf16.mxu1 %v6633_v11  ;;  %v17623_v17 = vld [vmem:[%s22488_s3 + $0x18] sm:$0xff]   ;;  %v17650_v11 = vld [vmem:[%s22488_s3 + $0x60] sm:$0xff]  }
 0x1f4   :  { %16137 = vmatprep.subr.bf16.mxu0 %v17594_v47  ;;  %v17626_v47 = vld [vmem:[%s22488_s3 + $0x50] sm:$0xff]  }
 0x1f5   :  { %16158 = vmatpush3.bf16.msra.mxu1 %v17601_v63  ;;  %v14846_v63 = vld [vmem:[%s22485_s0 + $0x40] sm:$0x3] }
 0x1f6   :  { %16159 = vmatprep.subr.bf16.mxu1 %v17604_v35  ;;  %v17636_v35 = vld [vmem:[%s22488_s3 + $0x50] sm:$0xff]  }
 0x1f7   :  { %16138 = vmatpush3.bf16.msra.mxu0 %v17595_v23  ;;  %v17628_v23 = vld [vmem:[%s22488_s3 + $0x60] sm:$0xff]  }
 0x1f8   :  { %16139 = vmatprep.subr.bf16.mxu0 %v17598_v25  ;;  %v17629_v25 = vld [vmem:[%s22488_s3 + $0x20] sm:$0xff]  }
 0x1f9   :  { %16160 = vmatpush3.bf16.msra.mxu1 %v17605_v41  ;;  %v17637_v41 = vld [vmem:[%s22488_s3 + $0x10] sm:$0xff]  }
 0x1fa   :  { %16161 = vmatprep.subr.bf16.mxu1 %v17608_v49  ;;  %v17640_v49 = vld [vmem:[%s22488_s3 + $0x48] sm:$0xff]  }
 0x1fb   :  { %16140 = vmatpush3.bf16.msra.mxu0 %v17599_v27 }
 0x1fc   :  { %16141 = vmatprep.subr.bf16.mxu0 %v17602_v30  ;;  %v17634_v30 = vld [vmem:[%s22488_s3 + $0x40] sm:$0xff]  }
 0x1fd   :  { %16162 = vmatpush3.bf16.msra.mxu1 %v17609_v52  ;;  %v17642_v52 = vld [vmem:[%s22488_s3 + $0x70] sm:$0xff]  }
 0x1fe   :  { %16163 = vmatprep.subr.bf16.mxu1 %v17612_v57  ;;  %v17643_v57 = vld [vmem:[%s22488_s3 + $0x30] sm:$0xff]  }
 0x1ff   :  { %16142 = vmatpush3.bf16.msra.mxu0 %v17603_v34  ;;  %v6782_v34 = vmul.bf16 %v20076_v32, %v14846_v63 }
 0x200   :  { %16171 = vmatprep.subr.bf16.mxu0 %v17606_v46  ;;  %v17638_v46 = vld [vmem:[%s22488_s3 + $0x78] sm:$0xff]  }
 0x201   :  { %16164 = vmatpush3.bf16.msra.mxu1 %v17613_v28  ;;  %v6829_v36 = vrot.slane %v6782_v34, %v18365_v38  ;;  %v17660_v34 = vld [vmem:[%s22488_s3 + $0x60] sm:$0xff]  }
 0x202   :  { %v15879_v42 = vpop.f32.mrf.mxu0  ;;  %6554 = vmatmul.mubr.bf16.vlgmr.msra.gmra.mxu0 %v6415_v44  ;;  %16193 = vmatprep.subr.bf16.mxu1 %v17616_v2  ;;  %v17645_v2 = vld [vmem:[%s22488_s3] sm:$0xff]  }
 0x203   :  { %16172 = vmatpush3.bf16.msra.mxu0 %v17607_v45  ;;  %v6830_v40 = vcombine.high %v6829_v36, %v6829_v36  ;;  %v6837_v44 = vrot.slane %v6829_v36, %v18365_v38  ;;  %v17639_v45 = vld [vmem:[%s22488_s3 + $0x38] sm:$0xff]   ;;  %v17661_v36 = vld [vmem:[%s22488_s3 + $0x20] sm:$0xff]  }
 0x204   :  { %v15880_v51 = vpop.f32.mrf.mxu0  ;;  %16173 = vmatprep.subr.bf16.mxu0 %v17610_v53  ;;  %v20134_v5 = vpop.f32.mrf.mxu1  ;;  %6765 = vmatmul.mubr.bf16.vlgmr.msra.gmra.mxu1 %v6626_v8  ;;  %v7035_v8 = vcombine.high %v7034_v4, %v7034_v4 }
 0x205   :  { %v20106_v54 = vadd.f32 %v15880_v51, %v15879_v42  ;;  %16194 = vmatpush3.bf16.msra.mxu1 %v17617_v6  ;;  %v6844_v48 = vrot.slane %v6830_v40, %v18365_v38  ;;  %v17648_v6 = vld [vmem:[%s22488_s3 + $0x78] sm:$0xff]  }
 0x206   :  { %v15882_v56 = vpop.f32.mrf.mxu0  ;;  %v20144_v20 = vpop.f32.mrf.mxu1  ;;  %16195 = vmatprep.subr.bf16.mxu1 %v17620_v12  ;;  %v17664_v40 = vld [vmem:[%s22488_s3 + $0x58] sm:$0xff]  }
 0x207   :  { %16174 = vmatpush3.bf16.msra.mxu0 %v17611_v55  ;;  %6975 = vmatprep.mubr.bf16.mxu0 %v6844_v48  ;;  %v17641_v55 = vld [vmem:[%s22488_s3 + $0x8] sm:$0xff]  }
 0x208   :  { %v15883_v61 = vpop.f32.mrf.mxu0  ;;  %16175 = vmatprep.subr.bf16.mxu0 %v17614_v60  ;;  %v15904_v15 = vpop.f32.mrf.mxu1 }
 0x209   :  { %16196 = vmatpush3.bf16.msra.mxu1 %v17621_v16  ;;  %v17644_v61 = vld [vmem:[%s22488_s3 + $0x40] sm:$0xff]   ;;  %v7049_v16 = vrot.slane %v7035_v8, %v18365_v38  ;;  %v17678_v8 = vld [vmem:[%s22488_s3 + $0x68] sm:$0xff]  }
 0x20a   :  { %v15905_v18 = vpop.f32.mrf.mxu1  ;;  %16197 = vmatprep.subr.bf16.mxu1 %v17624_v19  ;;  %v20259_v15 = vld [vmem:[%s22489_s4] ss:$0 sm:$0xff]  ;;  %v17652_v19 = vld [vmem:[%s22488_s3 + $0x70] sm:$0xff]  }
 0x20b   :  { %16176 = vmatpush3.bf16.msra.mxu0 %v17615_v0  ;;  %v17646_v0 = vld [vmem:[%s22488_s3 + $0x68] sm:$0xff]   ;;  %7180 = vmatprep.mubr.bf16.mxu1 %v7049_v16 }
 0x20c   :  { %16177 = vmatprep.subr.bf16.mxu0 %v17618_v3  ;;  %v17647_v3 = vld [vmem:[%s22488_s3 + $0x28] sm:$0xff]  }
 0x20d   :  { %16198 = vmatpush3.bf16.msra.mxu1 %v17625_v21  ;;  %v17654_v21 = vld [vmem:[%s22488_s3 + $0x58] sm:$0xff]   ;;  %v17679_v16 = vld [vmem:[%s22488_s3 + $0x28] sm:$0xff]  }
 0x20e   :  { %16199 = vmatprep.subr.bf16.mxu1 %v17628_v23  ;;  %v17653_v23 = vld [vmem:[%s22488_s3 + $0x30] sm:$0xff]  }
 0x20f   :  { %16178 = vmatpush3.bf16.msra.mxu0 %v17619_v10  ;;  %v17649_v10 = vld [vmem:[%s22488_s3 + $0x38] sm:$0xff]  }
 0x210   :  { %16179 = vmatprep.subr.bf16.mxu0 %v17622_v13  ;;  %v7042_v13 = vrot.slane %v7034_v4, %v18365_v38 }
 0x211   :  { %16200 = vmatpush3.bf16.msra.mxu1 %v17629_v25  ;;  %v17655_v25 = vld [vmem:[%s22488_s3 + $0x18] sm:$0xff]  }
 0x212   :  { %16201 = vmatprep.subr.bf16.mxu1 %v17632_v29 }
 0x213   :  { %16180 = vmatpush3.bf16.msra.mxu0 %v17623_v17  ;;  %v17651_v17 = vld [vmem:[%s22488_s3 + $0x20] sm:$0xff]  }
 0x214   :  { %16181 = vmatprep.subr.bf16.mxu0 %v17626_v47 }
 0x215   :  { %16202 = vmatpush3.bf16.msra.mxu1 %v17633_v31  ;;  %v17657_v31 = vld [vmem:[%s22488_s3 + $0x28] sm:$0xff]  }
 0x216   :  { %16203 = vmatprep.subr.bf16.mxu1 %v17636_v35  ;;  %v17662_v35 = vld [vmem:[%s22488_s3 + $0x48] sm:$0xff]  }
 0x217   :  { %16182 = vmatpush3.bf16.msra.mxu0 %v17627_v22 }
 0x218   :  { %16183 = vmatprep.subr.bf16.mxu0 %v17630_v24 }
 0x219   :  { %16204 = vmatpush3.bf16.msra.mxu1 %v17637_v41  ;;  %v17666_v41 = vld [vmem:[%s22488_s3 + $0x40] sm:$0xff]  }
 0x21a   :  { %16205 = vmatprep.subr.bf16.mxu1 %v17640_v49  ;;  %v17668_v49 = vld [vmem:[%s22488_s3 + $0x50] sm:$0xff]  }
 0x21b   :  { %16184 = vmatpush3.bf16.msra.mxu0 %v17631_v26 }
 0x21c   :  { %16185 = vmatprep.subr.bf16.mxu0 %v17634_v30  ;;  %v17658_v30 = vld [vmem:[%s22488_s3 + $0x50] sm:$0xff]  }
 0x21d   :  { %v2771_v27 = vpop.permute.xlu1 %2770  ;;  %16206 = vmatpush3.bf16.msra.mxu1 %v17641_v55  ;;  %v17669_v55 = vld [vmem:[%s22488_s3 + $0x10] sm:$0xff]  }
 0x21e   :  { %2774 = vst.msk [vmem:[#allocation2] sm:$0x3] %vm2773_vm8, %v2771_v27  ;;  %16207 = vmatprep.subr.bf16.mxu1 %v17644_v61  ;;  %v17656_v27 = vld [vmem:[%s22488_s3 + $0x68] sm:$0xff]  }
 0x21f   :  { %16186 = vmatpush3.bf16.msra.mxu0 %v17635_v33  ;;  %v17659_v33 = vld [vmem:[%s22488_s3 + $0x10] sm:$0xff]  }
 0x220   :  { %16215 = vmatprep.subr.bf16.mxu0 %v17638_v46  ;;  %v17663_v46 = vld [vmem:[%s22488_s3 + $0x8] sm:$0xff]  }
 0x221   :  { %v2982_v28 = vpop.permute.xlu1 %2981  ;;  %16208 = vmatpush3.bf16.msra.mxu1 %v17645_v2  ;;  %v17676_v2 = vld [vmem:[%s22488_s3 + $0x40] sm:$0xff]  }
 0x222   :  { %v15923_v42 = vpop.f32.mrf.mxu0  ;;  %6976 = vmatmul.mubr.bf16.vlgmr.msra.gmra.mxu0 %v6837_v44  ;;  %2985 = vst.msk [vmem:[#allocation2] sm:$0xc] %vm2984_vm9, %v2982_v28  ;;  %16237 = vmatprep.subr.bf16.mxu1 %v17648_v6  ;;  %v14882_v44 = vld [vmem:[%s22485_s0 + $0x44] sm:$0x3]  ;;  %v14900_v6 = vld [vmem:[%s22485_s0 + $0x46] sm:$0x3] }
 0x223   :  { %16216 = vmatpush3.bf16.msra.mxu0 %v17639_v45  ;;  %v17667_v45 = vld [vmem:[%s22488_s3] sm:$0xff]   ;;  %v7195_v48 = vmul.bf16 %v20076_v32, %v14882_v44 }
 0x224   :  { %v15924_v51 = vpop.f32.mrf.mxu0  ;;  %16217 = vmatprep.subr.bf16.mxu0 %v17642_v52  ;;  %v15945_v12 = vpop.f32.mrf.mxu1  ;;  %7181 = vmatmul.mubr.bf16.vlgmr.msra.gmra.mxu1 %v7042_v13  ;;  %v17670_v52 = vld [vmem:[%s22488_s3 + $0x78] sm:$0xff]  }
 0x225   :  { %v15925_v53 = vadd.f32 %v15924_v51, %v15923_v42  ;;  %16238 = vmatpush3.bf16.msra.mxu1 %v17649_v10  ;;  %v17665_v42 = vld [vmem:[%s22488_s3 + $0x18] sm:$0xff]   ;;  %v7242_v51 = vrot.slane %v7195_v48, %v18365_v38  ;;  %v7403_v10 = vmul.bf16 %v20076_v32, %v14900_v6 }
 0x226   :  { %v15926_v56 = vpop.f32.mrf.mxu0  ;;  %v15946_v18 = vpop.f32.mrf.mxu1  ;;  %16239 = vmatprep.subr.bf16.mxu1 %v17652_v19  ;;  %v17680_v13 = vld [vmem:[%s22488_s3 + $0x78] sm:$0xff]  }
 0x227   :  { %v4449_v60 = vadd.f32 %v15925_v53, %v19974_v37  ;;  %16218 = vmatpush3.bf16.msra.mxu0 %v17643_v57  ;;  %v15947_v47 = vadd.f32 %v15946_v18, %v15945_v12  ;;  %v7243_v53 = vcombine.high %v7242_v51, %v7242_v51  ;;  %v7250_v57 = vrot.slane %v7242_v51, %v18365_v38  ;;  %v17682_v18 = vld [vmem:[%s22488_s3 + $0x60] sm:$0xff]   ;;  %v17697_v48 = vld [vmem:[%s22488_s3 + $0x18] sm:$0xff]   ;;  %v14918_v51 = vld [vmem:[%s22485_s0 + $0x48] sm:$0x3] }
 0x228   :  { %v15927_v59 = vpop.f32.mrf.mxu0  ;;  %16219 = vmatprep.subr.bf16.mxu0 %v17646_v0  ;;  %v15948_v22 = vpop.f32.mrf.mxu1  ;;  %v17674_v0 = vld [vmem:[%s22488_s3 + $0x70] sm:$0xff]   ;;  %v7450_v12 = vrot.slane %v7403_v10, %v18365_v38  ;;  %v17708_v10 = vld [vmem:[%s22488_s3 + $0x40] sm:$0xff]  }
 0x229   :  { %v4454_v37 = vmax.f32 %v4449_v60, 0.0  ;;  %v4659_v24 = vadd.f32 %v15947_v47, %v20259_v15  ;;  %16240 = vmatpush3.bf16.msra.mxu1 %v17653_v23  ;;  %v17672_v60 = vld [vmem:[%s22488_s3 + $0x48] sm:$0xff]   ;;  %v7257_v61 = vrot.slane %v7243_v53, %v18365_v38  ;;  %v17683_v23 = vld [vmem:[%s22488_s3 + $0x20] sm:$0xff]   ;;  %v7611_v53 = vmul.bf16 %v20076_v32, %v14918_v51 }
 0x22a   :  { %v15949_v26 = vpop.f32.mrf.mxu1  ;;  %16241 = vmatprep.subr.bf16.mxu1 %v17656_v27  ;;  %v7458_v47 = vrot.slane %v7450_v12, %v18365_v38  ;;  %v17686_v27 = vld [vmem:[%s22488_s3 + $0x58] sm:$0xff]   ;;  %v17724_v51 = vld [vmem:[%s22488_s3 + $0x60] sm:$0xff]  }
 0x22b   :  { %4456 = vrot.lane.b32.xlu1 %v4454_v37, %s18190_s20  ;;  %16220 = vmatpush3.bf16.msra.mxu0 %v17647_v3  ;;  %v4664_v29 = vmax.f32 %v4659_v24, 0.0  ;;  %v17675_v3 = vld [vmem:[%s22488_s3 + $0x30] sm:$0xff]  }
 0x22c   :  { %16221 = vmatprep.subr.bf16.mxu0 %v17650_v11  ;;  %7388 = vmatprep.mubr.bf16.mxu0 %v7257_v61  ;;  %v17677_v11 = vld [vmem:[%s22488_s3] sm:$0xff]   ;;  %v17701_v61 = vld [vmem:[%s22488_s3 + $0x10] sm:$0xff]  }
 0x22d   :  { %v4666_v63 = vrot.slane %v4664_v29, 6  ;;  %16242 = vmatpush3.bf16.msra.mxu1 %v17657_v31  ;;  %v17687_v31 = vld [vmem:[%s22488_s3 + $0x18] sm:$0xff]  }
 0x22e   :  { %16243 = vmatprep.subr.bf16.mxu1 %v17660_v34  ;;  %v17690_v34 = vld [vmem:[%s22488_s3 + $0x50] sm:$0xff]  }
 0x22f   :  { %16222 = vmatpush3.bf16.msra.mxu0 %v17651_v17  ;;  %4667 = vrot.lane.b32.xlu1 %v4666_v63, %s18190_s20  ;;  %v7451_v17 = vcombine.high %v7450_v12, %v7450_v12 }
 0x230   :  { %16223 = vmatprep.subr.bf16.mxu0 %v17654_v21  ;;  %v17681_v21 = vld [vmem:[%s22488_s3 + $0x38] sm:$0xff]  }
 0x231   :  { %16244 = vmatpush3.bf16.msra.mxu1 %v17661_v36  ;;  %v7465_v22 = vrot.slane %v7451_v17, %v18365_v38  ;;  %v17691_v36 = vld [vmem:[%s22488_s3 + $0x10] sm:$0xff]  }
 0x232   :  { %16245 = vmatprep.subr.bf16.mxu1 %v17664_v40  ;;  %v17694_v40 = vld [vmem:[%s22488_s3 + $0x48] sm:$0xff]  }
 0x233   :  { %16224 = vmatpush3.bf16.msra.mxu0 %v17655_v25  ;;  %v17684_v25 = vld [vmem:[%s22488_s3 + $0x70] sm:$0xff]   ;;  %7596 = vmatprep.mubr.bf16.mxu1 %v7465_v22  ;;  %v17712_v22 = vld [vmem:[%s22488_s3 + $0x78] sm:$0xff]  }
 0x234   :  { %16225 = vmatprep.subr.bf16.mxu0 %v17658_v30  ;;  %v17685_v30 = vld [vmem:[%s22488_s3 + $0x30] sm:$0xff]  }
 0x235   :  { %16246 = vmatpush3.bf16.msra.mxu1 %v17665_v42  ;;  %v17695_v42 = vld [vmem:[%s22488_s3 + $0x8] sm:$0xff]  }
 0x236   :  { %16247 = vmatprep.subr.bf16.mxu1 %v17668_v49  ;;  %v17698_v49 = vld [vmem:[%s22488_s3 + $0x40] sm:$0xff]  }
 0x237   :  { %16226 = vmatpush3.bf16.msra.mxu0 %v17659_v33  ;;  %v17688_v33 = vld [vmem:[%s22488_s3 + $0x68] sm:$0xff]  }
 0x238   :  { %16227 = vmatprep.subr.bf16.mxu0 %v17662_v35  ;;  %v17689_v35 = vld [vmem:[%s22488_s3 + $0x28] sm:$0xff]  }
 0x239   :  { %16248 = vmatpush3.bf16.msra.mxu1 %v17669_v55  ;;  %v17700_v55 = vld [vmem:[%s22488_s3 + $0x50] sm:$0xff]  }
 0x23a   :  { %16249 = vmatprep.subr.bf16.mxu1 %v17672_v60 }
 0x23b   :  { %16228 = vmatpush3.bf16.msra.mxu0 %v17663_v46  ;;  %v17692_v46 = vld [vmem:[%s22488_s3 + $0x60] sm:$0xff]  }
 0x23c   :  { %16229 = vmatprep.subr.bf16.mxu0 %v17666_v41  ;;  %v17693_v41 = vld [vmem:[%s22488_s3 + $0x20] sm:$0xff]  }
 0x23d   :  { %16250 = vmatpush3.bf16.msra.mxu1 %v17673_v1  ;;  %v17703_v1 = vld [vmem:[%s22488_s3 + $0x38] sm:$0xff]  }
 0x23e   :  { %16251 = vmatprep.subr.bf16.mxu1 %v17676_v2 }
 0x23f   :  { %16230 = vmatpush3.bf16.msra.mxu0 %v17667_v45  ;;  %v17696_v45 = vld [vmem:[%s22488_s3 + $0x58] sm:$0xff]  }
 0x240   :  { %16259 = vmatprep.subr.bf16.mxu0 %v17670_v52  ;;  %v17699_v52 = vld [vmem:[%s22488_s3] sm:$0xff]  }
 0x241   :  { %16252 = vmatpush3.bf16.msra.mxu1 %v17677_v11  ;;  %v17707_v11 = vld [vmem:[%s22488_s3 + $0x30] sm:$0xff]  }
 0x242   :  { %v15967_v56 = vpop.f32.mrf.mxu0  ;;  %7389 = vmatmul.mubr.bf16.vlgmr.msra.gmra.mxu0 %v7250_v57  ;;  %16281 = vmatprep.subr.bf16.mxu1 %v17680_v13  ;;  %v17702_v57 = vld [vmem:[%s22488_s3 + $0x78] sm:$0xff]   ;;  %v14936_v13 = vld [vmem:[%s22485_s0 + $0x4a] sm:$0x3] }
 0x243   :  { %16260 = vmatpush3.bf16.msra.mxu0 %v17671_v62 }
 0x244   :  { %v15968_v28 = vpop.f32.mrf.mxu0  ;;  %16261 = vmatprep.subr.bf16.mxu0 %v17674_v0  ;;  %v15989_v19 = vpop.f32.mrf.mxu1  ;;  %7597 = vmatmul.mubr.bf16.vlgmr.msra.gmra.mxu1 %v7458_v47  ;;  %v17709_v47 = vld [vmem:[%s22488_s3] sm:$0xff]  }
 0x245   :  { %v20337_v59 = vadd.f32 %v15968_v28, %v15967_v56  ;;  %16282 = vmatpush3.bf16.msra.mxu1 %v17681_v21  ;;  %v7658_v56 = vrot.slane %v7611_v53, %v18365_v38  ;;  %v17704_v28 = vld [vmem:[%s22488_s3 + $0x48] sm:$0xff]   ;;  %v17725_v53 = vld [vmem:[%s22488_s3 + $0x20] sm:$0xff]  }
 0x246   :  { %v15970_v37 = vpop.f32.mrf.mxu0  ;;  %v15990_v24 = vpop.f32.mrf.mxu1  ;;  %16283 = vmatprep.subr.bf16.mxu1 %v17684_v25 }
 0x247   :  { %16262 = vmatpush3.bf16.msra.mxu0 %v17675_v3  ;;  %v20382_v26 = vadd.f32 %v15990_v24, %v15989_v19  ;;  %v7659_v60 = vcombine.high %v7658_v56, %v7658_v56  ;;  %v7666_v62 = vrot.slane %v7658_v56, %v18365_v38  ;;  %v17706_v3 = vld [vmem:[%s22488_s3 + $0x70] sm:$0xff]   ;;  %v17728_v56 = vld [vmem:[%s22488_s3 + $0x58] sm:$0xff]  }
 0x248   :  { %v15971_v4 = vpop.f32.mrf.mxu0  ;;  %16263 = vmatprep.subr.bf16.mxu0 %v17678_v8  ;;  %v15992_v29 = vpop.f32.mrf.mxu1 }
 0x249   :  { %16284 = vmatpush3.bf16.msra.mxu1 %v17685_v30  ;;  %v7673_v0 = vrot.slane %v7659_v60, %v18365_v38  ;;  %v17705_v4 = vld [vmem:[%s22488_s3 + $0x8] sm:$0xff]   ;;  %v17713_v30 = vld [vmem:[%s22488_s3 + $0x38] sm:$0xff]  }
 0x24a   :  { %v15993_v63 = vpop.f32.mrf.mxu1  ;;  %16285 = vmatprep.subr.bf16.mxu1 %v17688_v33  ;;  %v17715_v33 = vld [vmem:[%s22488_s3 + $0x20] sm:$0xff]   ;;  %v14954_v60 = vld [vmem:[%s22485_s0 + $0x4c] sm:$0x3] }
 0x24b   :  { %16264 = vmatpush3.bf16.msra.mxu0 %v17679_v16  ;;  %7804 = vmatprep.mubr.bf16.mxu0 %v7673_v0 }
 0x24c   :  { %16265 = vmatprep.subr.bf16.mxu0 %v17682_v18  ;;  %v20474_v18 = vld [vmem:[%s22486_s1] sm:$0x3] }
 0x24d   :  { %16286 = vmatpush3.bf16.msra.mxu1 %v17689_v35  ;;  %v7820_v19 = vmul.bf16 %v20474_v18, %v14936_v13  ;;  %v17716_v35 = vld [vmem:[%s22488_s3 + $0x70] sm:$0xff]  }
 0x24e   :  { %16287 = vmatprep.subr.bf16.mxu1 %v17692_v46  ;;  %v17718_v46 = vld [vmem:[%s22488_s3 + $0x58] sm:$0xff]   ;;  %v17738_v13 = vld [vmem:[%s22488_s3 + $0x70] sm:$0xff]  }
 0x24f   :  { %16266 = vmatpush3.bf16.msra.mxu0 %v17683_v23  ;;  %v7867_v21 = vrot.slane %v7820_v19, %v18365_v38  ;;  %v17711_v23 = vld [vmem:[%s22488_s3 + $0x28] sm:$0xff]   ;;  %v17740_v19 = vld [vmem:[%s22488_s3 + $0x40] sm:$0xff]  }
 0x250   :  { %16267 = vmatprep.subr.bf16.mxu0 %v17686_v27  ;;  %v17714_v27 = vld [vmem:[%s22488_s3 + $0x60] sm:$0xff]  }
 0x251   :  { %16288 = vmatpush3.bf16.msra.mxu1 %v17693_v41  ;;  %v7868_v24 = vcombine.high %v7867_v21, %v7867_v21  ;;  %v7875_v29 = vrot.slane %v7867_v21, %v18365_v38 }
 0x252   :  { %16289 = vmatprep.subr.bf16.mxu1 %v17696_v45  ;;  %v17722_v45 = vld [vmem:[%s22488_s3 + $0x50] sm:$0xff]  }
 0x253   :  { %16268 = vmatpush3.bf16.msra.mxu0 %v17687_v31  ;;  %v7882_v31 = vrot.slane %v7868_v24, %v18365_v38 }
 0x254   :  { %16269 = vmatprep.subr.bf16.mxu0 %v17690_v34 }
 0x255   :  { %16290 = vmatpush3.bf16.msra.mxu1 %v17697_v48  ;;  %8013 = vmatprep.mubr.bf16.mxu1 %v7882_v31  ;;  %v17721_v48 = vld [vmem:[%s22488_s3 + $0x28] sm:$0xff]  }
 0x256   :  { %16291 = vmatprep.subr.bf16.mxu1 %v17700_v55  ;;  %v17727_v55 = vld [vmem:[%s22488_s3 + $0x8] sm:$0xff]  }
 0x257   :  { %16270 = vmatpush3.bf16.msra.mxu0 %v17691_v36 }
 0x258   :  { %16271 = vmatprep.subr.bf16.mxu0 %v17694_v40  ;;  %v17717_v40 = vld [vmem:[%s22488_s3 + $0x30] sm:$0xff]  }
 0x259   :  { %16292 = vmatpush3.bf16.msra.mxu1 %v17701_v61  ;;  %v17729_v61 = vld [vmem:[%s22488_s3 + $0x18] sm:$0xff]  }
 0x25a   :  { %16293 = vmatprep.subr.bf16.mxu1 %v17704_v28  ;;  %v17732_v28 = vld [vmem:[%s22488_s3 + $0x50] sm:$0xff]  }
 0x25b   :  { %16272 = vmatpush3.bf16.msra.mxu0 %v17695_v42  ;;  %v17719_v42 = vld [vmem:[%s22488_s3 + $0x18] sm:$0xff]  }
 0x25c   :  { %16273 = vmatprep.subr.bf16.mxu0 %v17698_v49  ;;  %v17723_v49 = vld [vmem:[%s22488_s3 + $0x10] sm:$0xff]  }
 0x25d   :  { %v3614_v44 = vpop.permute.xlu1 %3613  ;;  %16294 = vmatpush3.bf16.msra.mxu1 %v17705_v4 }
 0x25e   :  { %3617 = vst.msk [vmem:[#allocation2] sm:$0x3] %vm3616_vm10, %v3614_v44  ;;  %16295 = vmatprep.subr.bf16.mxu1 %v17708_v10  ;;  %v17720_v44 = vld [vmem:[%s22488_s3 + $0x68] sm:$0xff]  }
 0x25f   :  { %16274 = vmatpush3.bf16.msra.mxu0 %v17699_v52  ;;  %v17726_v52 = vld [vmem:[%s22488_s3 + $0x48] sm:$0xff]  }
 0x260   :  { %16303 = vmatprep.subr.bf16.mxu0 %v17702_v57  ;;  %v17730_v57 = vld [vmem:[%s22488_s3 + $0x40] sm:$0xff]   ;;  %v17736_v10 = vld [vmem:[%s22488_s3 + $0x48] sm:$0xff]  }
 0x261   :  { %v3825_v16 = vpop.permute.xlu1 %3824  ;;  %16296 = vmatpush3.bf16.msra.mxu1 %v17709_v47  ;;  %v17742_v47 = vld [vmem:[%s22488_s3 + $0x68] sm:$0xff]  }
 0x262   :  { %v16011_v32 = vpop.f32.mrf.mxu0  ;;  %7805 = vmatmul.mubr.bf16.vlgmr.msra.gmra.mxu0 %v7666_v62  ;;  %3828 = vst.msk [vmem:[#allocation2] sm:$0xc] %vm3827_vm11, %v3825_v16  ;;  %16325 = vmatprep.subr.bf16.mxu1 %v17712_v22  ;;  %v17731_v62 = vld [vmem:[%s22488_s3] sm:$0xff]   ;;  %v14972_v22 = vld [vmem:[%s22485_s0 + $0x4e] sm:$0x3] }
 0x263   :  { %16304 = vmatpush3.bf16.msra.mxu0 %v17703_v1  ;;  %v17734_v1 = vld [vmem:[%s22488_s3 + $0x78] sm:$0xff]   ;;  %v8240_v24 = vmul.bf16 %v20474_v18, %v14972_v22  ;;  %v17769_v22 = vld [vmem:[%s22488_s3 + $0x8] sm:$0xff]  }
 0x264   :  { %v16012_v37 = vpop.f32.mrf.mxu0  ;;  %16305 = vmatprep.subr.bf16.mxu0 %v17706_v3  ;;  %v16033_v25 = vpop.f32.mrf.mxu1  ;;  %8014 = vmatmul.mubr.bf16.vlgmr.msra.gmra.mxu1 %v7875_v29  ;;  %v17744_v29 = vld [vmem:[%s22488_s3 + $0x78] sm:$0xff]  }
 0x265   :  { %v16013_v2 = vadd.f32 %v16012_v37, %v16011_v32  ;;  %16326 = vmatpush3.bf16.msra.mxu1 %v17713_v30  ;;  %v8030_v32 = vmul.bf16 %v20474_v18, %v14954_v60  ;;  %v17746_v30 = vld [vmem:[%s22488_s3 + $0x60] sm:$0xff]   ;;  %v17758_v60 = vld [vmem:[%s22488_s3 + $0x48] sm:$0xff]  }
 0x266   :  { %v16014_v6 = vpop.f32.mrf.mxu0  ;;  %v16034_v63 = vpop.f32.mrf.mxu1  ;;  %16327 = vmatprep.subr.bf16.mxu1 %v17716_v35 }
 0x267   :  { %v5292_v8 = vadd.f32 %v16013_v2, %v20259_v15  ;;  %v17710_v15 = vld [vmem:[%s22488_s3 + $0x68] sm:$0xff]   ;;  %16306 = vmatpush3.bf16.msra.mxu0 %v17707_v11  ;;  %v20500_v34 = vadd.f32 %v16034_v63, %v16033_v25  ;;  %v8077_v0 = vrot.slane %v8030_v32, %v18365_v38  ;;  %v17733_v2 = vld [vmem:[%s22488_s3 + $0x10] sm:$0xff]   ;;  %v17735_v6 = vld [vmem:[%s22488_s3 + $0x38] sm:$0xff]  }
 0x268   :  { %v16015_v12 = vpop.f32.mrf.mxu0  ;;  %16307 = vmatprep.subr.bf16.mxu0 %v17710_v15  ;;  %v16036_v36 = vpop.f32.mrf.mxu1  ;;  %v17743_v25 = vld [vmem:[%s22488_s3 + $0x28] sm:$0xff]  }
 0x269   :  { %v5297_v17 = vmax.f32 %v5292_v8, 0.0  ;;  %16328 = vmatpush3.bf16.msra.mxu1 %v17717_v40  ;;  %v8078_v37 = vcombine.high %v8077_v0, %v8077_v0  ;;  %v8085_v4 = vrot.slane %v8077_v0, %v18365_v38  ;;  %v17737_v12 = vld [vmem:[%s22488_s3 + $0x8] sm:$0xff]   ;;  %v17747_v36 = vld [vmem:[%s22488_s3 + $0x20] sm:$0xff]  }
 0x26a   :  { %v16037_v41 = vpop.f32.mrf.mxu1  ;;  %16329 = vmatprep.subr.bf16.mxu1 %v17720_v44  ;;  %v17750_v44 = vld [vmem:[%s22488_s3 + $0x58] sm:$0xff]   ;;  %v17759_v32 = vld [vmem:[%s22488_s3 + $0x8] sm:$0xff]   ;;  %v17762_v0 = vld [vmem:[%s22488_s3 + $0x40] sm:$0xff]  }
 0x26b   :  { %5299 = vrot.lane.b32.xlu1 %v5297_v17, %s18191_s28  ;;  %16308 = vmatpush3.bf16.msra.mxu0 %v17711_v23  ;;  %v8092_v8 = vrot.slane %v8078_v37, %v18365_v38  ;;  %v17739_v17 = vld [vmem:[%s22488_s3 + $0x30] sm:$0xff]   ;;  %v17741_v23 = vld [vmem:[%s22488_s3] sm:$0xff]   ;;  %v17761_v37 = vld [vmem:[%s22488_s3 + $0x18] sm:$0xff]  }
 0x26c   :  { %16309 = vmatprep.subr.bf16.mxu0 %v17714_v27  ;;  %v8287_v27 = vrot.slane %v8240_v24, %v18365_v38  ;;  %v17748_v41 = vld [vmem:[%s22488_s3 + $0x70] sm:$0xff]  }
 0x26d   :  { %16330 = vmatpush3.bf16.msra.mxu1 %v17721_v48  ;;  %8223 = vmatprep.mubr.bf16.mxu0 %v8092_v8  ;;  %v17749_v48 = vld [vmem:[%s22488_s3 + $0x30] sm:$0xff]   ;;  %v17766_v8 = vld [vmem:[%s22488_s3 + $0x78] sm:$0xff]  }
 0x26e   :  { %16331 = vmatprep.subr.bf16.mxu1 %v17724_v51  ;;  %v8288_v31 = vcombine.high %v8287_v27, %v8287_v27  ;;  %v8295_v35 = vrot.slane %v8287_v27, %v18365_v38 }
 0x26f   :  { %16310 = vmatpush3.bf16.msra.mxu0 %v17715_v33  ;;  %v17745_v33 = vld [vmem:[%s22488_s3 + $0x38] sm:$0xff]  }
 0x270   :  { %16311 = vmatprep.subr.bf16.mxu0 %v17718_v46  ;;  %v8302_v46 = vrot.slane %v8288_v31, %v18365_v38  ;;  %v17774_v31 = vld [vmem:[%s22488_s3 + $0x68] sm:$0xff]  }
 0x271   :  { %16332 = vmatpush3.bf16.msra.mxu1 %v17725_v53  ;;  %v17754_v53 = vld [vmem:[%s22488_s3 + $0x50] sm:$0xff]  }
 0x272   :  { %16333 = vmatprep.subr.bf16.mxu1 %v17728_v56  ;;  %8433 = vmatprep.mubr.bf16.mxu1 %v8302_v46  ;;  %v17755_v56 = vld [vmem:[%s22488_s3 + $0x10] sm:$0xff]   ;;  %v17773_v46 = vld [vmem:[%s22488_s3] sm:$0xff]  }
 0x273   :  { %16312 = vmatpush3.bf16.msra.mxu0 %v17719_v42 }
 0x274   :  { %16313 = vmatprep.subr.bf16.mxu0 %v17722_v45 }
 0x275   :  { %16334 = vmatpush3.bf16.msra.mxu1 %v17729_v61  ;;  %v17757_v61 = vld [vmem:[%s22488_s3 + $0x20] sm:$0xff]  }
 0x276   :  { %16335 = vmatprep.subr.bf16.mxu1 %v17732_v28 }
 0x277   :  { %16314 = vmatpush3.bf16.msra.mxu0 %v17723_v49  ;;  %v17751_v49 = vld [vmem:[%s22488_s3 + $0x18] sm:$0xff]  }
 0x278   :  { %16315 = vmatprep.subr.bf16.mxu0 %v17726_v52  ;;  %v17752_v52 = vld [vmem:[%s22488_s3 + $0x68] sm:$0xff]  }
 0x279   :  { %16336 = vmatpush3.bf16.msra.mxu1 %v17733_v2 }
 0x27a   :  { %16337 = vmatprep.subr.bf16.mxu1 %v17736_v10  ;;  %v17765_v10 = vld [vmem:[%s22488_s3 + $0x10] sm:$0xff]  }
 0x27b   :  { %16316 = vmatpush3.bf16.msra.mxu0 %v17727_v55  ;;  %v17753_v55 = vld [vmem:[%s22488_s3 + $0x28] sm:$0xff]  }
 0x27c   :  { %16317 = vmatprep.subr.bf16.mxu0 %v17730_v57  ;;  %v17756_v57 = vld [vmem:[%s22488_s3 + $0x60] sm:$0xff]  }
 0x27d   :  { %16338 = vmatpush3.bf16.msra.mxu1 %v17737_v12  ;;  %v17767_v12 = vld [vmem:[%s22488_s3 + $0x38] sm:$0xff]  }
 0x27e   :  { %16339 = vmatprep.subr.bf16.mxu1 %v17740_v19 }
 0x27f   :  { %16318 = vmatpush3.bf16.msra.mxu0 %v17731_v62  ;;  %v17760_v62 = vld [vmem:[%s22488_s3 + $0x58] sm:$0xff]  }
 0x280   :  { %16347 = vmatprep.subr.bf16.mxu0 %v17734_v1  ;;  %v14990_v1 = vld [vmem:[%s22485_s0 + $0x50] sm:$0x3] }
 0x281   :  { %16340 = vmatpush3.bf16.msra.mxu1 %v17741_v23  ;;  %v8450_v2 = vmul.bf16 %v20474_v18, %v14990_v1  ;;  %v17770_v23 = vld [vmem:[%s22488_s3 + $0x70] sm:$0xff]  }
 0x282   :  { %v16055_v3 = vpop.f32.mrf.mxu0  ;;  %8224 = vmatmul.mubr.bf16.vlgmr.msra.gmra.mxu0 %v8085_v4  ;;  %16369 = vmatprep.subr.bf16.mxu1 %v17744_v29  ;;  %v17764_v4 = vld [vmem:[%s22488_s3 + $0x50] sm:$0xff]   ;;  %v17772_v29 = vld [vmem:[%s22488_s3 + $0x40] sm:$0xff]  }
 0x283   :  { %16348 = vmatpush3.bf16.msra.mxu0 %v17735_v6  ;;  %v8497_v6 = vrot.slane %v8450_v2, %v18365_v38  ;;  %v17786_v2 = vld [vmem:[%s22488_s3 + $0x50] sm:$0xff]  }
 0x284   :  { %v16056_v11 = vpop.f32.mrf.mxu0  ;;  %16349 = vmatprep.subr.bf16.mxu0 %v17738_v13  ;;  %v16077_v63 = vpop.f32.mrf.mxu1  ;;  %8434 = vmatmul.mubr.bf16.vlgmr.msra.gmra.mxu1 %v8295_v35  ;;  %v15008_v35 = vld [vmem:[%s22485_s0 + $0x52] sm:$0x3] }
 0x285   :  { %v20578_v16 = vadd.f32 %v16056_v11, %v16055_v3  ;;  %16370 = vmatpush3.bf16.msra.mxu1 %v17745_v33  ;;  %v17763_v3 = vld [vmem:[%s22488_s3] sm:$0xff]   ;;  %v8498_v11 = vcombine.high %v8497_v6, %v8497_v6 }
 0x286   :  { %v16058_v15 = vpop.f32.mrf.mxu0  ;;  %v16078_v40 = vpop.f32.mrf.mxu1  ;;  %16371 = vmatprep.subr.bf16.mxu1 %v17748_v41  ;;  %v17775_v41 = vld [vmem:[%s22488_s3 + $0x28] sm:$0xff]  }
 0x287   :  { %16350 = vmatpush3.bf16.msra.mxu0 %v17739_v17  ;;  %v20617_v42 = vadd.f32 %v16078_v40, %v16077_v63  ;;  %v8505_v17 = vrot.slane %v8497_v6, %v18365_v38  ;;  %v20686_v15 = vld [vmem:[%s22489_s4] ss:$0 sm:$0xff]  ;;  %v8512_v19 = vrot.slane %v8498_v11, %v18365_v38  ;;  %v8659_v40 = vmul.bf16 %v20474_v18, %v15008_v35  ;;  %v17791_v11 = vld [vmem:[%s22488_s3 + $0x8] sm:$0xff]  }
 0x288   :  { %v16059_v21 = vpop.f32.mrf.mxu0  ;;  %16351 = vmatprep.subr.bf16.mxu0 %v17742_v47  ;;  %v16080_v45 = vpop.f32.mrf.mxu1  ;;  %v17768_v47 = vld [vmem:[%s22488_s3 + $0x48] sm:$0xff]   ;;  %v17788_v6 = vld [vmem:[%s22488_s3 + $0x60] sm:$0xff]  }
 0x289   :  { %16372 = vmatpush3.bf16.msra.mxu1 %v17749_v48  ;;  %8643 = vmatprep.mubr.bf16.mxu0 %v8512_v19  ;;  %v17776_v45 = vld [vmem:[%s22488_s3 + $0x78] sm:$0xff]   ;;  %v17778_v48 = vld [vmem:[%s22488_s3 + $0x60] sm:$0xff]   ;;  %v15026_v19 = vld [vmem:[%s22485_s0 + $0x54] sm:$0x3] }
 0x28a   :  { %v16081_v51 = vpop.f32.mrf.mxu1  ;;  %16373 = vmatprep.subr.bf16.mxu1 %v17752_v52  ;;  %v17777_v52 = vld [vmem:[%s22488_s3 + $0x38] sm:$0xff]   ;;  %v17800_v35 = vld [vmem:[%s22488_s3 + $0x48] sm:$0xff]  }
 0x28b   :  { %16352 = vmatpush3.bf16.msra.mxu0 %v17743_v25  ;;  %v17771_v25 = vld [vmem:[%s22488_s3 + $0x30] sm:$0xff]  }
 0x28c   :  { %16353 = vmatprep.subr.bf16.mxu0 %v17746_v30 }
 0x28d   :  { %16374 = vmatpush3.bf16.msra.mxu1 %v17753_v55  ;;  %v17779_v55 = vld [vmem:[%s22488_s3 + $0x20] sm:$0xff]  }
 0x28e   :  { %16375 = vmatprep.subr.bf16.mxu1 %v17756_v57 }
 0x28f   :  { %16354 = vmatpush3.bf16.msra.mxu0 %v17747_v36 }
 0x290   :  { %16355 = vmatprep.subr.bf16.mxu0 %v17750_v44  ;;  %v8706_v44 = vrot.slane %v8659_v40, %v18365_v38  ;;  %v17801_v40 = vld [vmem:[%s22488_s3 + $0x8] sm:$0xff]  }
 0x291   :  { %16376 = vmatpush3.bf16.msra.mxu1 %v17757_v61 }
 0x292   :  { %16377 = vmatprep.subr.bf16.mxu1 %v17760_v62 }
 0x293   :  { %16356 = vmatpush3.bf16.msra.mxu0 %v17751_v49  ;;  %v8707_v49 = vcombine.high %v8706_v44, %v8706_v44 }
 0x294   :  { %16357 = vmatprep.subr.bf16.mxu0 %v17754_v53  ;;  %v8714_v53 = vrot.slane %v8706_v44, %v18365_v38  ;;  %v17803_v44 = vld [vmem:[%s22488_s3 + $0x30] sm:$0xff]  }
 0x295   :  { %16378 = vmatpush3.bf16.msra.mxu1 %v17761_v37  ;;  %v17784_v37 = vld [vmem:[%s22488_s3 + $0x68] sm:$0xff]  }
 0x296   :  { %16379 = vmatprep.subr.bf16.mxu1 %v17764_v4  ;;  %v17787_v4 = vld [vmem:[%s22488_s3 + $0x10] sm:$0xff]  }
 0x297   :  { %16358 = vmatpush3.bf16.msra.mxu0 %v17755_v56  ;;  %v8721_v56 = vrot.slane %v8707_v49, %v18365_v38  ;;  %v15044_v49 = vld [vmem:[%s22485_s0 + $0x56] sm:$0x3] }
 0x298   :  { %16359 = vmatprep.subr.bf16.mxu0 %v17758_v60  ;;  %v17780_v60 = vld [vmem:[%s22488_s3 + $0x70] sm:$0xff]  }
 0x299   :  { %16380 = vmatpush3.bf16.msra.mxu1 %v17765_v10  ;;  %8852 = vmatprep.mubr.bf16.mxu1 %v8721_v56  ;;  %v17789_v10 = vld [vmem:[%s22488_s3 + $0x20] sm:$0xff]  }
 0x29a   :  { %16381 = vmatprep.subr.bf16.mxu1 %v17768_v47  ;;  %v17795_v47 = vld [vmem:[%s22488_s3] sm:$0xff]  }
 0x29b   :  { %16360 = vmatpush3.bf16.msra.mxu0 %v17759_v32  ;;  %v17782_v32 = vld [vmem:[%s22488_s3 + $0x58] sm:$0xff]  }
 0x29c   :  { %16361 = vmatprep.subr.bf16.mxu0 %v17762_v0  ;;  %v17783_v0 = vld [vmem:[%s22488_s3 + $0x18] sm:$0xff]  }
 0x29d   :  { %v4457_v28 = vpop.permute.xlu1 %4456  ;;  %16382 = vmatpush3.bf16.msra.mxu1 %v17769_v22  ;;  %v17796_v22 = vld [vmem:[%s22488_s3 + $0x50] sm:$0xff]  }
 0x29e   :  { %4460 = vst.msk [vmem:[#allocation2] sm:$0x3] %vm4459_vm12, %v4457_v28  ;;  %16383 = vmatprep.subr.bf16.mxu1 %v17772_v29  ;;  %v17781_v28 = vld [vmem:[%s22488_s3 + $0x30] sm:$0xff]  }
 0x29f   :  { %16362 = vmatpush3.bf16.msra.mxu0 %v17763_v3  ;;  %v17785_v3 = vld [vmem:[%s22488_s3 + $0x28] sm:$0xff]  }
 0x2a0   :  { %16391 = vmatprep.subr.bf16.mxu0 %v17766_v8  ;;  %v17790_v8 = vld [vmem:[%s22488_s3 + $0x48] sm:$0xff]  }
 0x2a1   :  { %v4668_v63 = vpop.permute.xlu1 %4667  ;;  %16384 = vmatpush3.bf16.msra.mxu1 %v17773_v46  ;;  %v17802_v46 = vld [vmem:[%s22488_s3 + $0x70] sm:$0xff]  }
 0x2a2   :  { %v16099_v13 = vpop.f32.mrf.mxu0  ;;  %8644 = vmatmul.mubr.bf16.vlgmr.msra.gmra.mxu0 %v8505_v17  ;;  %4671 = vst.msk [vmem:[#allocation2] sm:$0xc] %vm4670_vm13, %v4668_v63  ;;  %16413 = vmatprep.subr.bf16.mxu1 %v17776_v45  ;;  %v17793_v17 = vld [vmem:[%s22488_s3 + $0x18] sm:$0xff]  }
 0x2a3   :  { %16392 = vmatpush3.bf16.msra.mxu0 %v17767_v12  ;;  %v17792_v12 = vld [vmem:[%s22488_s3 + $0x58] sm:$0xff]  }
 0x2a4   :  { %v16100_v21 = vpop.f32.mrf.mxu0  ;;  %16393 = vmatprep.subr.bf16.mxu0 %v17770_v23  ;;  %v16121_v51 = vpop.f32.mrf.mxu1  ;;  %8853 = vmatmul.mubr.bf16.vlgmr.msra.gmra.mxu1 %v8714_v53  ;;  %v17805_v53 = vld [vmem:[%s22488_s3] sm:$0xff]  }
 0x2a5   :  { %v16101_v24 = vadd.f32 %v16100_v21, %v16099_v13  ;;  %16414 = vmatpush3.bf16.msra.mxu1 %v17777_v52  ;;  %v17794_v13 = vld [vmem:[%s22488_s3 + $0x40] sm:$0xff]   ;;  %v8869_v21 = vmul.bf16 %v20474_v18, %v15026_v19  ;;  %v9079_v52 = vmul.bf16 %v20474_v18, %v15044_v49  ;;  %v17819_v19 = vld [vmem:[%s22488_s3 + $0x10] sm:$0xff]   ;;  %v17832_v49 = vld [vmem:[%s22488_s3 + $0x48] sm:$0xff]  }
 0x2a6   :  { %v16102_v27 = vpop.f32.mrf.mxu0  ;;  %v16122_v57 = vpop.f32.mrf.mxu1  ;;  %16415 = vmatprep.subr.bf16.mxu1 %v17780_v60  ;;  %v17810_v18 = vld [vmem:[%s22488_s3 + $0x60] sm:$0xff]  }
 0x2a7   :  { %v6135_v30 = vadd.f32 %v16101_v24, %v20686_v15  ;;  %16394 = vmatpush3.bf16.msra.mxu0 %v17771_v25  ;;  %v20738_v61 = vadd.f32 %v16122_v57, %v16121_v51  ;;  %v8916_v23 = vrot.slane %v8869_v21, %v18365_v38  ;;  %v17798_v24 = vld [vmem:[%s22488_s3 + $0x78] sm:$0xff]   ;;  %v17797_v27 = vld [vmem:[%s22488_s3 + $0x10] sm:$0xff]   ;;  %v17806_v51 = vld [vmem:[%s22488_s3 + $0x68] sm:$0xff]   ;;  %v9126_v56 = vrot.slane %v9079_v52, %v18365_v38 }
 0x2a8   :  { %v16103_v33 = vpop.f32.mrf.mxu0  ;;  %16395 = vmatprep.subr.bf16.mxu0 %v17774_v31  ;;  %v16124_v62 = vpop.f32.mrf.mxu1  ;;  %v17799_v31 = vld [vmem:[%s22488_s3 + $0x38] sm:$0xff]   ;;  %v17822_v21 = vld [vmem:[%s22488_s3 + $0x48] sm:$0xff]  }
 0x2a9   :  { %v6140_v36 = vmax.f32 %v6135_v30, 0.0  ;;  %16416 = vmatpush3.bf16.msra.mxu1 %v17781_v28  ;;  %v8917_v25 = vcombine.high %v8916_v23, %v8916_v23  ;;  %v8924_v30 = vrot.slane %v8916_v23, %v18365_v38  ;;  %v17808_v57 = vld [vmem:[%s22488_s3 + $0x78] sm:$0xff]   ;;  %v9127_v60 = vcombine.high %v9126_v56, %v9126_v56  ;;  %v17823_v23 = vld [vmem:[%s22488_s3 + $0x8] sm:$0xff]  }
 0x2aa   :  { %v16125_v1 = vpop.f32.mrf.mxu1  ;;  %16417 = vmatprep.subr.bf16.mxu1 %v17784_v37  ;;  %v9134_v62 = vrot.slane %v9126_v56, %v18365_v38  ;;  %v17809_v28 = vld [vmem:[%s22488_s3 + $0x38] sm:$0xff]   ;;  %v17834_v56 = vld [vmem:[%s22488_s3 + $0x70] sm:$0xff]  }
 0x2ab   :  { %6142 = vrot.lane.b32.xlu1 %v6140_v36, %s18192_s27  ;;  %16396 = vmatpush3.bf16.msra.mxu0 %v17775_v41  ;;  %v8931_v63 = vrot.slane %v8917_v25, %v18365_v38  ;;  %v17811_v1 = vld [vmem:[%s22488_s3 + $0x20] sm:$0xff]   ;;  %v17824_v25 = vld [vmem:[%s22488_s3 + $0x58] sm:$0xff]  }
 0x2ac   :  { %16397 = vmatprep.subr.bf16.mxu0 %v17778_v48  ;;  %v17804_v48 = vld [vmem:[%s22488_s3 + $0x40] sm:$0xff]   ;;  %v17831_v52 = vld [vmem:[%s22488_s3 + $0x38] sm:$0xff]  }
 0x2ad   :  { %16418 = vmatpush3.bf16.msra.mxu1 %v17785_v3  ;;  %9062 = vmatprep.mubr.bf16.mxu0 %v8931_v63  ;;  %v20906_v63 = vld [vmem:[%s22486_s1] sm:$0x3] }
 0x2ae   :  { %16419 = vmatprep.subr.bf16.mxu1 %v17788_v6 }
 0x2af   :  { %16398 = vmatpush3.bf16.msra.mxu0 %v17779_v55  ;;  %v17807_v55 = vld [vmem:[%s22488_s3 + $0x28] sm:$0xff]  }
 0x2b0   :  { %16399 = vmatprep.subr.bf16.mxu0 %v17782_v32 }
 0x2b1   :  { %16420 = vmatpush3.bf16.msra.mxu1 %v17789_v10  ;;  %v17815_v10 = vld [vmem:[%s22488_s3 + $0x18] sm:$0xff]  }
 0x2b2   :  { %16421 = vmatprep.subr.bf16.mxu1 %v17792_v12  ;;  %v17816_v12 = vld [vmem:[%s22488_s3 + $0x68] sm:$0xff]  }
 0x2b3   :  { %16400 = vmatpush3.bf16.msra.mxu0 %v17783_v0  ;;  %v9141_v0 = vrot.slane %v9127_v60, %v18365_v38 }
 0x2b4   :  { %16401 = vmatprep.subr.bf16.mxu0 %v17786_v2  ;;  %v17812_v2 = vld [vmem:[%s22488_s3 + $0x70] sm:$0xff]  }
 0x2b5   :  { %16422 = vmatpush3.bf16.msra.mxu1 %v17793_v17  ;;  %9272 = vmatprep.mubr.bf16.mxu1 %v9141_v0  ;;  %v17817_v17 = vld [vmem:[%s22488_s3 + $0x28] sm:$0xff]   ;;  %v15080_v0 = vld [vmem:[%s22485_s0 + $0x5a] sm:$0x3] }
 0x2b6   :  { %16423 = vmatprep.subr.bf16.mxu1 %v17796_v22  ;;  %v17821_v22 = vld [vmem:[%s22488_s3 + $0x20] sm:$0xff]  }
 0x2b7   :  { %16402 = vmatpush3.bf16.msra.mxu0 %v17787_v4  ;;  %v17814_v4 = vld [vmem:[%s22488_s3 + $0x58] sm:$0xff]  }
 0x2b8   :  { %16403 = vmatprep.subr.bf16.mxu0 %v17790_v8  ;;  %v17813_v8 = vld [vmem:[%s22488_s3 + $0x30] sm:$0xff]  }
 0x2b9   :  { %16424 = vmatpush3.bf16.msra.mxu1 %v17797_v27  ;;  %v17825_v27 = vld [vmem:[%s22488_s3 + $0x18] sm:$0xff]  }
 0x2ba   :  { %16425 = vmatprep.subr.bf16.mxu1 %v17800_v35  ;;  %v17828_v35 = vld [vmem:[%s22488_s3 + $0x50] sm:$0xff]  }
 0x2bb   :  { %16404 = vmatpush3.bf16.msra.mxu0 %v17791_v11 }
 0x2bc   :  { %16405 = vmatprep.subr.bf16.mxu0 %v17794_v13  ;;  %v17818_v13 = vld [vmem:[%s22488_s3 + $0x50] sm:$0xff]  }
 0x2bd   :  { %16426 = vmatpush3.bf16.msra.mxu1 %v17801_v40  ;;  %v17830_v40 = vld [vmem:[%s22488_s3 + $0x78] sm:$0xff]  }
 0x2be   :  { %16427 = vmatprep.subr.bf16.mxu1 %v17804_v48 }
 0x2bf   :  { %16406 = vmatpush3.bf16.msra.mxu0 %v17795_v47  ;;  %v17820_v47 = vld [vmem:[%s22488_s3 + $0x60] sm:$0xff]  }
 0x2c0   :  { %16435 = vmatprep.subr.bf16.mxu0 %v17798_v24 }
 0x2c1   :  { %16428 = vmatpush3.bf16.msra.mxu1 %v17805_v53 }
 0x2c2   :  { %v16143_v29 = vpop.f32.mrf.mxu0  ;;  %9063 = vmatmul.mubr.bf16.vlgmr.msra.gmra.mxu0 %v8924_v30  ;;  %16457 = vmatprep.subr.bf16.mxu1 %v17808_v57  ;;  %v15062_v30 = vld [vmem:[%s22485_s0 + $0x58] sm:$0x3]  ;;  %v17833_v57 = vld [vmem:[%s22488_s3 + $0x8] sm:$0xff]  }
 0x2c3   :  { %16436 = vmatpush3.bf16.msra.mxu0 %v17799_v31  ;;  %v17827_v31 = vld [vmem:[%s22488_s3] sm:$0xff]  }
 0x2c4   :  { %v16144_v33 = vpop.f32.mrf.mxu0  ;;  %16437 = vmatprep.subr.bf16.mxu0 %v17802_v46  ;;  %v16165_v32 = vpop.f32.mrf.mxu1  ;;  %9273 = vmatmul.mubr.bf16.vlgmr.msra.gmra.mxu1 %v9134_v62  ;;  %v17835_v62 = vld [vmem:[%s22488_s3 + $0x30] sm:$0xff]  }
 0x2c5   :  { %v20807_v36 = vadd.f32 %v16144_v33, %v16143_v29  ;;  %16458 = vmatpush3.bf16.msra.mxu1 %v17809_v28  ;;  %v17826_v29 = vld [vmem:[%s22488_s3 + $0x40] sm:$0xff]   ;;  %v9289_v33 = vmul.bf16 %v20906_v63, %v15062_v30  ;;  %v17845_v30 = vld [vmem:[%s22488_s3 + $0x30] sm:$0xff]  }
 0x2c6   :  { %v16146_v41 = vpop.f32.mrf.mxu0  ;;  %v16166_v37 = vpop.f32.mrf.mxu1  ;;  %16459 = vmatprep.subr.bf16.mxu1 %v17812_v2  ;;  %v9498_v2 = vmul.bf16 %v20906_v63, %v15080_v0 }
 0x2c7   :  { %16438 = vmatpush3.bf16.msra.mxu0 %v17803_v44  ;;  %v20852_v3 = vadd.f32 %v16166_v37, %v16165_v32  ;;  %v9336_v46 = vrot.slane %v9289_v33, %v18365_v38  ;;  %v17829_v44 = vld [vmem:[%s22488_s3 + $0x10] sm:$0xff]   ;;  %v17836_v32 = vld [vmem:[%s22488_s3 + $0x40] sm:$0xff]   ;;  %v17838_v37 = vld [vmem:[%s22488_s3 + $0x68] sm:$0xff]  }
 0x2c8   :  { %v16147_v45 = vpop.f32.mrf.mxu0  ;;  %16439 = vmatprep.subr.bf16.mxu0 %v17806_v51  ;;  %v16168_v6 = vpop.f32.mrf.mxu1  ;;  %v17847_v33 = vld [vmem:[%s22488_s3 + $0x18] sm:$0xff]  }
 0x2c9   :  { %16460 = vmatpush3.bf16.msra.mxu1 %v17813_v8  ;;  %v9337_v41 = vcombine.high %v9336_v46, %v9336_v46  ;;  %v9344_v48 = vrot.slane %v9336_v46, %v18365_v38  ;;  %v9545_v6 = vrot.slane %v9498_v2, %v18365_v38  ;;  %v17840_v8 = vld [vmem:[%s22488_s3 + $0x78] sm:$0xff]   ;;  %v17848_v46 = vld [vmem:[%s22488_s3 + $0x68] sm:$0xff]  }
 0x2ca   :  { %v16169_v11 = vpop.f32.mrf.mxu1  ;;  %16461 = vmatprep.subr.bf16.mxu1 %v17816_v12 }
 0x2cb   :  { %16440 = vmatpush3.bf16.msra.mxu0 %v17807_v55  ;;  %v9351_v51 = vrot.slane %v9337_v41, %v18365_v38  ;;  %v9546_v11 = vcombine.high %v9545_v6, %v9545_v6 }
 0x2cc   :  { %16441 = vmatprep.subr.bf16.mxu0 %v17810_v18 }
 0x2cd   :  { %16462 = vmatpush3.bf16.msra.mxu1 %v17817_v17  ;;  %9482 = vmatprep.mubr.bf16.mxu0 %v9351_v51  ;;  %v9553_v17 = vrot.slane %v9545_v6, %v18365_v38  ;;  %v17853_v51 = vld [vmem:[%s22488_s3 + $0x20] sm:$0xff]  }
 0x2ce   :  { %16463 = vmatprep.subr.bf16.mxu1 %v17820_v47  ;;  %v9560_v47 = vrot.slane %v9546_v11, %v18365_v38  ;;  %v17865_v11 = vld [vmem:[%s22488_s3 + $0x8] sm:$0xff]  }
 0x2cf   :  { %16442 = vmatpush3.bf16.msra.mxu0 %v17811_v1 }
 0x2d0   :  { %16443 = vmatprep.subr.bf16.mxu0 %v17814_v4  ;;  %v17837_v4 = vld [vmem:[%s22488_s3] sm:$0xff]   ;;  %9691 = vmatprep.mubr.bf16.mxu1 %v9560_v47 }
 0x2d1   :  { %16464 = vmatpush3.bf16.msra.mxu1 %v17821_v22  ;;  %v17843_v22 = vld [vmem:[%s22488_s3 + $0x20] sm:$0xff]  }
 0x2d2   :  { %16465 = vmatprep.subr.bf16.mxu1 %v17824_v25  ;;  %v17868_v47 = vld [vmem:[%s22488_s3 + $0x40] sm:$0xff]  }
 0x2d3   :  { %16444 = vmatpush3.bf16.msra.mxu0 %v17815_v10  ;;  %v17839_v10 = vld [vmem:[%s22488_s3 + $0x28] sm:$0xff]  }
 0x2d4   :  { %16445 = vmatprep.subr.bf16.mxu0 %v17818_v13  ;;  %v17842_v13 = vld [vmem:[%s22488_s3 + $0x60] sm:$0xff]  }
 0x2d5   :  { %16466 = vmatpush3.bf16.msra.mxu1 %v17825_v27  ;;  %v17846_v27 = vld [vmem:[%s22488_s3 + $0x58] sm:$0xff]  }
 0x2d6   :  { %16467 = vmatprep.subr.bf16.mxu1 %v17828_v35 }
 0x2d7   :  { %16446 = vmatpush3.bf16.msra.mxu0 %v17819_v19  ;;  %v17841_v19 = vld [vmem:[%s22488_s3 + $0x38] sm:$0xff]  }
 0x2d8   :  { %16447 = vmatprep.subr.bf16.mxu0 %v17822_v21 }
 0x2d9   :  { %16468 = vmatpush3.bf16.msra.mxu1 %v17829_v44  ;;  %v17849_v44 = vld [vmem:[%s22488_s3 + $0x28] sm:$0xff]  }
 0x2da   :  { %16469 = vmatprep.subr.bf16.mxu1 %v17832_v49  ;;  %v17854_v49 = vld [vmem:[%s22488_s3 + $0x48] sm:$0xff]  }
 0x2db   :  { %16448 = vmatpush3.bf16.msra.mxu0 %v17823_v23 }
 0x2dc   :  { %16449 = vmatprep.subr.bf16.mxu0 %v17826_v29 }
 0x2dd   :  { %v5300_v24 = vpop.permute.xlu1 %5299  ;;  %16470 = vmatpush3.bf16.msra.mxu1 %v17833_v57  ;;  %v17857_v57 = vld [vmem:[%s22488_s3 + $0x18] sm:$0xff]  }
 0x2de   :  { %5303 = vst.msk [vmem:[#allocation2] sm:$0x3] %vm5302_vm14, %v5300_v24  ;;  %16471 = vmatprep.subr.bf16.mxu1 %v17836_v32  ;;  %v17844_v24 = vld [vmem:[%s22488_s3 + $0x70] sm:$0xff]  }
 0x2df   :  { %16450 = vmatpush3.bf16.msra.mxu0 %v17827_v31  ;;  %v17860_v32 = vld [vmem:[%s22488_s3 + $0x50] sm:$0xff]  }
 0x2e0   :  { %16479 = vmatprep.subr.bf16.mxu0 %v17830_v40  ;;  %v17850_v40 = vld [vmem:[%s22488_s3 + $0x50] sm:$0xff]  }
 0x2e1   :  { %16472 = vmatpush3.bf16.msra.mxu1 %v17837_v4  ;;  %v17863_v4 = vld [vmem:[%s22488_s3 + $0x38] sm:$0xff]  }
 0x2e2   :  { %v16187_v45 = vpop.f32.mrf.mxu0  ;;  %9483 = vmatmul.mubr.bf16.vlgmr.msra.gmra.mxu0 %v9344_v48  ;;  %16501 = vmatprep.subr.bf16.mxu1 %v17840_v8  ;;  %v17852_v48 = vld [vmem:[%s22488_s3 + $0x60] sm:$0xff]   ;;  %v17864_v8 = vld [vmem:[%s22488_s3 + $0x48] sm:$0xff]  }
 0x2e3   :  { %16480 = vmatpush3.bf16.msra.mxu0 %v17831_v52  ;;  %v17855_v52 = vld [vmem:[%s22488_s3 + $0x8] sm:$0xff]  }
 0x2e4   :  { %v16188_v53 = vpop.f32.mrf.mxu0  ;;  %16481 = vmatprep.subr.bf16.mxu0 %v17834_v56  ;;  %v16209_v12 = vpop.f32.mrf.mxu1  ;;  %9692 = vmatmul.mubr.bf16.vlgmr.msra.gmra.mxu1 %v9553_v17  ;;  %v15098_v56 = vld [vmem:[%s22485_s0 + $0x5c] sm:$0x3]  ;;  %v17867_v17 = vld [vmem:[%s22488_s3 + $0x30] sm:$0xff]  }
 0x2e5   :  { %v16189_v55 = vadd.f32 %v16188_v53, %v16187_v45  ;;  %16502 = vmatpush3.bf16.msra.mxu1 %v17841_v19  ;;  %v17851_v45 = vld [vmem:[%s22488_s3 + $0x10] sm:$0xff]   ;;  %v17856_v53 = vld [vmem:[%s22488_s3 + $0x58] sm:$0xff]  }
 0x2e6   :  { %v16190_v60 = vpop.f32.mrf.mxu0  ;;  %v16210_v21 = vpop.f32.mrf.mxu1  ;;  %16503 = vmatprep.subr.bf16.mxu1 %v17844_v24  ;;  %v15116_v24 = vld [vmem:[%s22485_s0 + $0x5e] sm:$0x3] }
 0x2e7   :  { %v6978_v18 = vadd.f32 %v16189_v55, %v20686_v15  ;;  %16482 = vmatpush3.bf16.msra.mxu0 %v17835_v62  ;;  %v16211_v23 = vadd.f32 %v16210_v21, %v16209_v12  ;;  %v17858_v55 = vld [vmem:[%s22488_s3 + $0x40] sm:$0xff]   ;;  %v9708_v60 = vmul.bf16 %v20906_v63, %v15098_v56  ;;  %v17866_v12 = vld [vmem:[%s22488_s3 + $0x70] sm:$0xff]  }
 0x2e8   :  { %v16191_v28 = vpop.f32.mrf.mxu0  ;;  %16483 = vmatprep.subr.bf16.mxu0 %v17838_v37  ;;  %v16212_v25 = vpop.f32.mrf.mxu1 }
 0x2e9   :  { %v6983_v1 = vmax.f32 %v6978_v18, 0.0  ;;  %v7183_v29 = vadd.f32 %v16211_v23, %v20686_v15  ;;  %16504 = vmatpush3.bf16.msra.mxu1 %v17845_v30  ;;  %v17859_v18 = vld [vmem:[%s22488_s3] sm:$0xff]   ;;  %v9755_v62 = vrot.slane %v9708_v60, %v18365_v38  ;;  %v17862_v28 = vld [vmem:[%s22488_s3 + $0x78] sm:$0xff]   ;;  %v17871_v30 = vld [vmem:[%s22488_s3 + $0x28] sm:$0xff]  }
 0x2ea   :  { %v16213_v31 = vpop.f32.mrf.mxu1  ;;  %16505 = vmatprep.subr.bf16.mxu1 %v17848_v46 }
 0x2eb   :  { %6984 = vst.msk [vmem:[#allocation2 + $0x8] sm:$0x3] %vm250_vm0, %v6983_v1  ;;  %16484 = vmatpush3.bf16.msra.mxu0 %v17839_v10  ;;  %v7188_v35 = vmax.f32 %v7183_v29, 0.0  ;;  %v9756_v0 = vcombine.high %v9755_v62, %v9755_v62  ;;  %v17861_v1 = vld [vmem:[%s22488_s3 + $0x10] sm:$0xff]   ;;  %v9763_v2 = vrot.slane %v9755_v62, %v18365_v38  ;;  %v17869_v29 = vld [vmem:[%s22488_s3] sm:$0xff]   ;;  %v17880_v62 = vld [vmem:[%s22488_s3 + $0x68] sm:$0xff]  }
 0x2ec   :  { %16485 = vmatprep.subr.bf16.mxu0 %v17842_v13  ;;  %vm5513_vm0 = vcmask 913154  }
 0x2ed   :  { %v7190_v41 = vrot.slane %v7188_v35, 6  ;;  %16506 = vmatpush3.bf16.msra.mxu1 %v17849_v44  ;;  %v9770_v6 = vrot.slane %v9756_v0, %v18365_v38  ;;  %v17874_v35 = vld [vmem:[%s22488_s3 + $0x60] sm:$0xff]   ;;  %v17882_v0 = vld [vmem:[%s22488_s3 + $0x50] sm:$0xff]  }
 0x2ee   :  { %16507 = vmatprep.subr.bf16.mxu1 %v17852_v48  ;;  %v21080_v44 = vld [vmem:[%s22489_s4] ss:$0 sm:$0xff] }
 0x2ef   :  { %16486 = vmatpush3.bf16.msra.mxu0 %v17843_v22  ;;  %7192 = vst.msk [vmem:[#allocation2 + $0x8] sm:$0xc] %vm459_vm1, %v7190_v41  ;;  %9901 = vmatprep.mubr.bf16.mxu0 %v9770_v6  ;;  %v17870_v22 = vld [vmem:[%s22488_s3 + $0x68] sm:$0xff]   ;;  %v17873_v41 = vld [vmem:[%s22488_s3 + $0x38] sm:$0xff]   ;;  %v17875_v48 = vld [vmem:[%s22488_s3 + $0x20] sm:$0xff]   ;;  %vm22500_vm1 = vcmask 1044354  }
 0x2f0   :  { %16487 = vmatprep.subr.bf16.mxu0 %v17846_v27  ;;  %v9918_v27 = vmul.bf16 %v20906_v63, %v15116_v24  ;;  %v17886_v6 = vld [vmem:[%s22488_s3 + $0x48] sm:$0xff]   ;;  %v17894_v24 = vld [vmem:[%s22488_s3 + $0x78] sm:$0xff]  }
 0x2f1   :  { %16508 = vmatpush3.bf16.msra.mxu1 %v17853_v51 }
 0x2f2   :  { %16509 = vmatprep.subr.bf16.mxu1 %v17856_v53  ;;  %v9965_v31 = vrot.slane %v9918_v27, %v18365_v38  ;;  %v17893_v27 = vld [vmem:[%s22488_s3 + $0x10] sm:$0xff]  }
 0x2f3   :  { %16488 = vmatpush3.bf16.msra.mxu0 %v17847_v33  ;;  %v17872_v33 = vld [vmem:[%s22488_s3 + $0x78] sm:$0xff]  }
 0x2f4   :  { %16489 = vmatprep.subr.bf16.mxu0 %v17850_v40  ;;  %v9966_v46 = vcombine.high %v9965_v31, %v9965_v31 }
 0x2f5   :  { %16510 = vmatpush3.bf16.msra.mxu1 %v17857_v57  ;;  %v17877_v57 = vld [vmem:[%s22488_s3 + $0x30] sm:$0xff]  }
 0x2f6   :  { %16511 = vmatprep.subr.bf16.mxu1 %v17860_v32 }
 0x2f7   :  { %16490 = vmatpush3.bf16.msra.mxu0 %v17851_v45  ;;  %v9973_v45 = vrot.slane %v9965_v31, %v18365_v38 }
 0x2f8   :  { %16491 = vmatprep.subr.bf16.mxu0 %v17854_v49  ;;  %v9980_v49 = vrot.slane %v9966_v46, %v18365_v38  ;;  %v17897_v46 = vld [vmem:[%s22488_s3 + $0x8] sm:$0xff]  }
 0x2f9   :  { %16512 = vmatpush3.bf16.msra.mxu1 %v17861_v1  ;;  %v17881_v1 = vld [vmem:[%s22488_s3 + $0x28] sm:$0xff]  }
 0x2fa   :  { %16513 = vmatprep.subr.bf16.mxu1 %v17864_v8  ;;  %10111 = vmatprep.mubr.bf16.mxu1 %v9980_v49  ;;  %v17885_v8 = vld [vmem:[%s22488_s3 + $0x20] sm:$0xff]  }
 0x2fb   :  { %16492 = vmatpush3.bf16.msra.mxu0 %v17855_v52  ;;  %v17876_v52 = vld [vmem:[%s22488_s3 + $0x70] sm:$0xff]   ;;  %v17900_v49 = vld [vmem:[%s22488_s3 + $0x40] sm:$0xff]  }
 0x2fc   :  { %16493 = vmatprep.subr.bf16.mxu0 %v17858_v55  ;;  %v17878_v55 = vld [vmem:[%s22488_s3 + $0x58] sm:$0xff]  }
 0x2fd   :  { %16514 = vmatpush3.bf16.msra.mxu1 %v17865_v11  ;;  %v17888_v11 = vld [vmem:[%s22488_s3 + $0x58] sm:$0xff]  }
 0x2fe   :  { %16515 = vmatprep.subr.bf16.mxu1 %v17868_v47  ;;  %v17891_v47 = vld [vmem:[%s22488_s3] sm:$0xff]  }
 0x2ff   :  { %16494 = vmatpush3.bf16.msra.mxu0 %v17859_v18  ;;  %v17879_v18 = vld [vmem:[%s22488_s3 + $0x18] sm:$0xff]  }
 0x300   :  { %16523 = vmatprep.subr.bf16.mxu0 %v17862_v28 }
 0x301   :  { %16516 = vmatpush3.bf16.msra.mxu1 %v17869_v29 }
 0x302   :  { %v16231_v37 = vpop.f32.mrf.mxu0  ;;  %9902 = vmatmul.mubr.bf16.vlgmr.msra.gmra.mxu0 %v9763_v2  ;;  %16545 = vmatprep.subr.bf16.mxu1 %v17872_v33  ;;  %v17883_v2 = vld [vmem:[%s22488_s3 + $0x10] sm:$0xff]   ;;  %v17896_v33 = vld [vmem:[%s22488_s3 + $0x48] sm:$0xff]  }
 0x303   :  { %16524 = vmatpush3.bf16.msra.mxu0 %v17863_v4  ;;  %v17884_v4 = vld [vmem:[%s22488_s3 + $0x60] sm:$0xff]  }
 0x304   :  { %v16232_v10 = vpop.f32.mrf.mxu0  ;;  %16525 = vmatprep.subr.bf16.mxu0 %v17866_v12  ;;  %v16253_v40 = vpop.f32.mrf.mxu1  ;;  %10112 = vmatmul.mubr.bf16.vlgmr.msra.gmra.mxu1 %v9973_v45  ;;  %v17899_v45 = vld [vmem:[%s22488_s3 + $0x30] sm:$0xff]  }
 0x305   :  { %v16233_v13 = vadd.f32 %v16232_v10, %v16231_v37  ;;  %16546 = vmatpush3.bf16.msra.mxu1 %v17873_v41  ;;  %v17887_v10 = vld [vmem:[%s22488_s3 + $0x8] sm:$0xff]  }
 0x306   :  { %v16234_v19 = vpop.f32.mrf.mxu0  ;;  %v16254_v51 = vpop.f32.mrf.mxu1  ;;  %16547 = vmatprep.subr.bf16.mxu1 %v17876_v52  ;;  %v17902_v52 = vld [vmem:[%s22488_s3 + $0x68] sm:$0xff]  }
 0x307   :  { %v7391_v21 = vadd.f32 %v16233_v13, %v20686_v15  ;;  %16526 = vmatpush3.bf16.msra.mxu0 %v17867_v17  ;;  %v16255_v53 = vadd.f32 %v16254_v51, %v16253_v40  ;;  %v17890_v13 = vld [vmem:[%s22488_s3 + $0x40] sm:$0xff]   ;;  %v17889_v17 = vld [vmem:[%s22488_s3 + $0x18] sm:$0xff]   ;;  %v17898_v40 = vld [vmem:[%s22488_s3 + $0x70] sm:$0xff]  }
 0x308   :  { %v16235_v23 = vpop.f32.mrf.mxu0  ;;  %16527 = vmatprep.subr.bf16.mxu0 %v17870_v22  ;;  %v16256_v56 = vpop.f32.mrf.mxu1  ;;  %v15134_v19 = vld [vmem:[%s22485_s0 + $0x60] sm:$0x3]  ;;  %v17892_v22 = vld [vmem:[%s22488_s3 + $0x50] sm:$0xff]  }
 0x309   :  { %v7396_v25 = vmax.f32 %v7391_v21, 0.0  ;;  %v7599_v60 = vadd.f32 %v16255_v53, %v21080_v44  ;;  %16548 = vmatpush3.bf16.msra.mxu1 %v17877_v57  ;;  %v10128_v21 = vmul.bf16 %v20906_v63, %v15134_v19  ;;  %v17901_v57 = vld [vmem:[%s22488_s3] sm:$0xff]  }
 0x30a   :  { %v16257_v32 = vpop.f32.mrf.mxu1  ;;  %16549 = vmatprep.subr.bf16.mxu1 %v17880_v62  ;;  %v17904_v62 = vld [vmem:[%s22488_s3 + $0x78] sm:$0xff]  }
 0x30b   :  { %v7398_v15 = vrot.slane %v7396_v25, 4  ;;  %16528 = vmatpush3.bf16.msra.mxu0 %v17871_v30  ;;  %v7604_v28 = vmax.f32 %v7599_v60, 0.0  ;;  %v10175_v23 = vrot.slane %v10128_v21, %v18365_v38  ;;  %v17895_v30 = vld [vmem:[%s22488_s3 + $0x38] sm:$0xff]  }
 0x30c   :  { %16529 = vmatprep.subr.bf16.mxu0 %v17874_v35 }
 0x30d   :  { %7400 = vst.msk [vmem:[#allocation2 + $0x8] sm:$0x30] %vm668_vm2, %v7398_v15  ;;  %v7606_v37 = vrot.slane %v7604_v28, 2  ;;  %16550 = vmatpush3.bf16.msra.mxu1 %v17881_v1  ;;  %v10176_v25 = vcombine.high %v10175_v23, %v10175_v23  ;;  %v10183_v15 = vrot.slane %v10175_v23, %v18365_v38  ;;  %v17906_v28 = vld [vmem:[%s22488_s3 + $0x60] sm:$0xff]   ;;  %vm1509_vm2 = vcmask 259204  }
 0x30e   :  { %16551 = vmatprep.subr.bf16.mxu1 %v17884_v4  ;;  %v17907_v4 = vld [vmem:[%s22488_s3 + $0x20] sm:$0xff]  }
 0x30f   :  { %16530 = vmatpush3.bf16.msra.mxu0 %v17875_v48  ;;  %7608 = vst.msk [vmem:[#allocation2 + $0x8] sm:$0xc0] %vm877_vm3, %v7606_v37  ;;  %v10190_v31 = vrot.slane %v10176_v25, %v18365_v38  ;;  %v17905_v37 = vld [vmem:[%s22488_s3 + $0x38] sm:$0xff]   ;;  %v17913_v25 = vld [vmem:[%s22488_s3 + $0x28] sm:$0xff]   ;;  %vm2352_vm3 = vcmask 390404  }
 0x310   :  { %16531 = vmatprep.subr.bf16.mxu0 %v17878_v55  ;;  %v15152_v55 = vld [vmem:[%s22485_s0 + $0x62] sm:$0x3] }
 0x311   :  { %16552 = vmatpush3.bf16.msra.mxu1 %v17885_v8  ;;  %10321 = vmatprep.mubr.bf16.mxu0 %v10190_v31  ;;  %v10337_v60 = vmul.bf16 %v20906_v63, %v15152_v55  ;;  %v17917_v31 = vld [vmem:[%s22488_s3 + $0x20] sm:$0xff]   ;;  %v17925_v55 = vld [vmem:[%s22488_s3 + $0x10] sm:$0xff]  }
 0x312   :  { %16553 = vmatprep.subr.bf16.mxu1 %v17888_v11 }
 0x313   :  { %16532 = vmatpush3.bf16.msra.mxu0 %v17879_v18  ;;  %v17903_v18 = vld [vmem:[%s22488_s3 + $0x28] sm:$0xff]   ;;  %v10384_v32 = vrot.slane %v10337_v60, %v18365_v38 }
 0x314   :  { %16533 = vmatprep.subr.bf16.mxu0 %v17882_v0 }
 0x315   :  { %16554 = vmatpush3.bf16.msra.mxu1 %v17889_v17  ;;  %v10385_v0 = vcombine.high %v10384_v32, %v10384_v32  ;;  %v17909_v17 = vld [vmem:[%s22488_s3 + $0x30] sm:$0xff]  }
 0x316   :  { %16555 = vmatprep.subr.bf16.mxu1 %v17892_v22  ;;  %v17912_v22 = vld [vmem:[%s22488_s3 + $0x68] sm:$0xff]  }
 0x317   :  { %16534 = vmatpush3.bf16.msra.mxu0 %v17883_v2  ;;  %v10392_v2 = vrot.slane %v10384_v32, %v18365_v38  ;;  %v17928_v32 = vld [vmem:[%s22488_s3 + $0x48] sm:$0xff]  }
 0x318   :  { %16535 = vmatprep.subr.bf16.mxu0 %v17886_v6  ;;  %v10399_v6 = vrot.slane %v10385_v0, %v18365_v38  ;;  %v17929_v0 = vld [vmem:[%s22488_s3 + $0x8] sm:$0xff]  }
 0x319   :  { %16556 = vmatpush3.bf16.msra.mxu1 %v17893_v27 }
 0x31a   :  { %16557 = vmatprep.subr.bf16.mxu1 %v17896_v33  ;;  %10530 = vmatprep.mubr.bf16.mxu1 %v10399_v6  ;;  %v17919_v33 = vld [vmem:[%s22488_s3 + $0x8] sm:$0xff]   ;;  %v15188_v6 = vld [vmem:[%s22485_s0 + $0x66] sm:$0x3] }
 0x31b   :  { %16536 = vmatpush3.bf16.msra.mxu0 %v17887_v10  ;;  %v17908_v10 = vld [vmem:[%s22488_s3 + $0x70] sm:$0xff]  }
 0x31c   :  { %16537 = vmatprep.subr.bf16.mxu0 %v17890_v13 }
 0x31d   :  { %v6143_v12 = vpop.permute.xlu1 %6142  ;;  %16558 = vmatpush3.bf16.msra.mxu1 %v17897_v46  ;;  %v17922_v46 = vld [vmem:[%s22488_s3 + $0x40] sm:$0xff]  }
 0x31e   :  { %6146 = vst.msk [vmem:[#allocation2] sm:$0x3] %vm6145_vm15, %v6143_v12  ;;  %16559 = vmatprep.subr.bf16.mxu1 %v17900_v49  ;;  %v17910_v12 = vld [vmem:[%s22488_s3 + $0x58] sm:$0xff]   ;;  %v17924_v49 = vld [vmem:[%s22488_s3 + $0x50] sm:$0xff]  }
 0x31f   :  { %16538 = vmatpush3.bf16.msra.mxu0 %v17891_v47  ;;  %v17911_v47 = vld [vmem:[%s22488_s3 + $0x18] sm:$0xff]  }
 0x320   :  { %16567 = vmatprep.subr.bf16.mxu0 %v17894_v24  ;;  %v17914_v24 = vld [vmem:[%s22488_s3 + $0x50] sm:$0xff]  }
 0x321   :  { %16560 = vmatpush3.bf16.msra.mxu1 %v17901_v57  ;;  %v17927_v57 = vld [vmem:[%s22488_s3 + $0x38] sm:$0xff]  }
 0x322   :  { %v16275_v29 = vpop.f32.mrf.mxu0  ;;  %10322 = vmatmul.mubr.bf16.vlgmr.msra.gmra.mxu0 %v10183_v15  ;;  %16589 = vmatprep.subr.bf16.mxu1 %v17904_v62  ;;  %v17916_v15 = vld [vmem:[%s22488_s3 + $0x60] sm:$0xff]  }
 0x323   :  { %16568 = vmatpush3.bf16.msra.mxu0 %v17895_v30  ;;  %v17918_v30 = vld [vmem:[%s22488_s3 + $0x48] sm:$0xff]  }
 0x324   :  { %v16276_v35 = vpop.f32.mrf.mxu0  ;;  %16569 = vmatprep.subr.bf16.mxu0 %v17898_v40  ;;  %v16297_v1 = vpop.f32.mrf.mxu1  ;;  %10531 = vmatmul.mubr.bf16.vlgmr.msra.gmra.mxu1 %v10392_v2  ;;  %v17921_v40 = vld [vmem:[%s22488_s3 + $0x18] sm:$0xff]  }
 0x325   :  { %v16277_v41 = vadd.f32 %v16276_v35, %v16275_v29  ;;  %16590 = vmatpush3.bf16.msra.mxu1 %v17905_v37  ;;  %v17915_v29 = vld [vmem:[%s22488_s3 + $0x10] sm:$0xff]   ;;  %v17920_v35 = vld [vmem:[%s22488_s3 + $0x58] sm:$0xff]  }
 0x326   :  { %v16278_v48 = vpop.f32.mrf.mxu0  ;;  %v16298_v8 = vpop.f32.mrf.mxu1  ;;  %16591 = vmatprep.subr.bf16.mxu1 %v17908_v10  ;;  %v17931_v37 = vld [vmem:[%s22488_s3 + $0x30] sm:$0xff]   ;;  %v21298_v10 = vld [vmem:[%s22486_s1] sm:$0x3] }
 0x327   :  { %v7807_v51 = vadd.f32 %v16277_v41, %v21080_v44  ;;  %16570 = vmatpush3.bf16.msra.mxu0 %v17899_v45  ;;  %v16299_v11 = vadd.f32 %v16298_v8, %v16297_v1  ;;  %v15170_v41 = vld [vmem:[%s22485_s0 + $0x64] sm:$0x3]  ;;  %v17934_v8 = vld [vmem:[%s22488_s3 + $0x68] sm:$0xff]  }
 0x328   :  { %v16279_v53 = vpop.f32.mrf.mxu0  ;;  %16571 = vmatprep.subr.bf16.mxu0 %v17902_v52  ;;  %v16300_v13 = vpop.f32.mrf.mxu1  ;;  %v17923_v45 = vld [vmem:[%s22488_s3] sm:$0xff]   ;;  %v10547_v48 = vmul.bf16 %v20906_v63, %v15170_v41  ;;  %v17926_v52 = vld [vmem:[%s22488_s3 + $0x78] sm:$0xff]   ;;  %v17944_v41 = vld [vmem:[%s22488_s3 + $0x68] sm:$0xff]  }
 0x329   :  { %v7812_v56 = vmax.f32 %v7807_v51, 0.0  ;;  %v8016_v19 = vadd.f32 %v16299_v11, %v21080_v44  ;;  %16592 = vmatpush3.bf16.msra.mxu1 %v17909_v17  ;;  %v10757_v11 = vmul.bf16 %v21298_v10, %v15188_v6  ;;  %v17935_v13 = vld [vmem:[%s22488_s3 + $0x28] sm:$0xff]  }
 0x32a   :  { %v16301_v21 = vpop.f32.mrf.mxu1  ;;  %16593 = vmatprep.subr.bf16.mxu1 %v17912_v22  ;;  %v10594_v51 = vrot.slane %v10547_v48, %v18365_v38  ;;  %v17945_v48 = vld [vmem:[%s22488_s3 + $0x28] sm:$0xff]  }
 0x32b   :  { %7814 = vrot.lane.b32.xlu0 %v7812_v56, %s18186_s15  ;;  %16572 = vmatpush3.bf16.msra.mxu0 %v17903_v18  ;;  %v8021_v23 = vmax.f32 %v8016_v19, 0.0  ;;  %v10804_v17 = vrot.slane %v10757_v11, %v18365_v38  ;;  %v17936_v19 = vld [vmem:[%s22488_s3 + $0x78] sm:$0xff]   ;;  %v17938_v21 = vld [vmem:[%s22488_s3 + $0x60] sm:$0xff]  }
 0x32c   :  { %16573 = vmatprep.subr.bf16.mxu0 %v17906_v28  ;;  %v10595_v53 = vcombine.high %v10594_v51, %v10594_v51  ;;  %v10602_v56 = vrot.slane %v10594_v51, %v18365_v38  ;;  %v17930_v28 = vld [vmem:[%s22488_s3 + $0x70] sm:$0xff]   ;;  %v17948_v51 = vld [vmem:[%s22488_s3 + $0x60] sm:$0xff]  }
 0x32d   :  { %v8023_v27 = vrot.slane %v8021_v23, 6  ;;  %16594 = vmatpush3.bf16.msra.mxu1 %v17913_v25  ;;  %v10812_v23 = vrot.slane %v10804_v17, %v18365_v38  ;;  %v21393_v11 = vld [vmem:[%s22489_s4] ss:$0 sm:$0xff] }
 0x32e   :  { %16595 = vmatprep.subr.bf16.mxu1 %v17916_v15  ;;  %v10609_v60 = vrot.slane %v10595_v53, %v18365_v38  ;;  %v17940_v15 = vld [vmem:[%s22488_s3 + $0x70] sm:$0xff]   ;;  %v17949_v53 = vld [vmem:[%s22488_s3 + $0x20] sm:$0xff]  }
 0x32f   :  { %16574 = vmatpush3.bf16.msra.mxu0 %v17907_v4  ;;  %8024 = vrot.lane.b32.xlu0 %v8023_v27, %s18186_s15  ;;  %v17932_v4 = vld [vmem:[%s22488_s3 + $0x40] sm:$0xff]  }
 0x330   :  { %16575 = vmatprep.subr.bf16.mxu0 %v17910_v12  ;;  %10740 = vmatprep.mubr.bf16.mxu0 %v10609_v60  ;;  %v17933_v12 = vld [vmem:[%s22488_s3] sm:$0xff]   ;;  %v15206_v60 = vld [vmem:[%s22485_s0 + $0x68] sm:$0x3] }
 0x331   :  { %16596 = vmatpush3.bf16.msra.mxu1 %v17917_v31  ;;  %v17939_v27 = vld [vmem:[%s22488_s3 + $0x20] sm:$0xff]   ;;  %v17942_v31 = vld [vmem:[%s22488_s3 + $0x58] sm:$0xff]  }
 0x332   :  { %16597 = vmatprep.subr.bf16.mxu1 %v17920_v35  ;;  %v17941_v35 = vld [vmem:[%s22488_s3 + $0x30] sm:$0xff]  }
 0x333   :  { %16576 = vmatpush3.bf16.msra.mxu0 %v17911_v47  ;;  %v10805_v47 = vcombine.high %v10804_v17, %v10804_v17  ;;  %v17959_v17 = vld [vmem:[%s22488_s3 + $0x38] sm:$0xff]  }
 0x334   :  { %16577 = vmatprep.subr.bf16.mxu0 %v17914_v24  ;;  %v17937_v24 = vld [vmem:[%s22488_s3 + $0x38] sm:$0xff]  }
 0x335   :  { %16598 = vmatpush3.bf16.msra.mxu1 %v17921_v40  ;;  %v10819_v25 = vrot.slane %v10805_v47, %v18365_v38 }
 0x336   :  { %16599 = vmatprep.subr.bf16.mxu1 %v17924_v49  ;;  %v17947_v49 = vld [vmem:[%s22488_s3 + $0x10] sm:$0xff]  }
 0x337   :  { %16578 = vmatpush3.bf16.msra.mxu0 %v17915_v29  ;;  %10950 = vmatprep.mubr.bf16.mxu1 %v10819_v25 }
 0x338   :  { %16579 = vmatprep.subr.bf16.mxu0 %v17918_v30 }
 0x339   :  { %16600 = vmatpush3.bf16.msra.mxu1 %v17925_v55  ;;  %v17951_v55 = vld [vmem:[%s22488_s3 + $0x8] sm:$0xff]  }
 0x33a   :  { %16601 = vmatprep.subr.bf16.mxu1 %v17928_v32  ;;  %v10967_v32 = vmul.bf16 %v21298_v10, %v15206_v60 }
 0x33b   :  { %16580 = vmatpush3.bf16.msra.mxu0 %v17919_v33 }
 0x33c   :  { %16581 = vmatprep.subr.bf16.mxu0 %v17922_v46  ;;  %v17943_v46 = vld [vmem:[%s22488_s3 + $0x18] sm:$0xff]  }
 0x33d   :  { %16602 = vmatpush3.bf16.msra.mxu1 %v17929_v0  ;;  %v11014_v0 = vrot.slane %v10967_v32, %v18365_v38  ;;  %v21458_v32 = vld [vmem:[%s22489_s4] ss:$0 sm:$0xff] }
 0x33e   :  { %16603 = vmatprep.subr.bf16.mxu1 %v17932_v4 }
 0x33f   :  { %16582 = vmatpush3.bf16.msra.mxu0 %v17923_v45  ;;  %v17946_v45 = vld [vmem:[%s22488_s3 + $0x50] sm:$0xff]   ;;  %v11022_v6 = vrot.slane %v11014_v0, %v18365_v38 }
 0x340   :  { %16611 = vmatprep.subr.bf16.mxu0 %v17926_v52  ;;  %v17950_v52 = vld [vmem:[%s22488_s3 + $0x48] sm:$0xff]  }
 0x341   :  { %16604 = vmatpush3.bf16.msra.mxu1 %v17933_v12  ;;  %v5502_v12 = vadd.f32 %v21393_v11, %v20500_v34 }
 0x342   :  { %v16319_v63 = vpop.f32.mrf.mxu0  ;;  %10741 = vmatmul.mubr.bf16.vlgmr.msra.gmra.mxu0 %v10602_v56  ;;  %16633 = vmatprep.subr.bf16.mxu1 %v17936_v19  ;;  %v17953_v56 = vld [vmem:[%s22488_s3 + $0x18] sm:$0xff]  }
 0x343   :  { %16612 = vmatpush3.bf16.msra.mxu0 %v17927_v57  ;;  %v17954_v57 = vld [vmem:[%s22488_s3 + $0x40] sm:$0xff]   ;;  %v5507_v25 = vmax.f32 %v5502_v12, 0.0 }
 0x344   :  { %v16320_v18 = vpop.f32.mrf.mxu0  ;;  %16613 = vmatprep.subr.bf16.mxu0 %v17930_v28  ;;  %v16341_v22 = vpop.f32.mrf.mxu1  ;;  %10951 = vmatmul.mubr.bf16.vlgmr.msra.gmra.mxu1 %v10812_v23  ;;  %v17956_v28 = vld [vmem:[%s22488_s3 + $0x50] sm:$0xff]  }
 0x345   :  { %v21275_v62 = vadd.f32 %v16320_v18, %v16319_v63  ;;  %16634 = vmatpush3.bf16.msra.mxu1 %v17937_v24  ;;  %v17952_v63 = vld [vmem:[%s22488_s3 + $0x58] sm:$0xff]   ;;  %v17955_v18 = vld [vmem:[%s22488_s3] sm:$0xff]  }
 0x346   :  { %v16322_v1 = vpop.f32.mrf.mxu0  ;;  %v16342_v29 = vpop.f32.mrf.mxu1  ;;  %16635 = vmatprep.subr.bf16.mxu1 %v17940_v15  ;;  %v17964_v24 = vld [vmem:[%s22488_s3 + $0x40] sm:$0xff]   ;;  %v15224_v15 = vld [vmem:[%s22485_s0 + $0x6a] sm:$0x3] }
 0x347   :  { %16614 = vmatpush3.bf16.msra.mxu0 %v17931_v37  ;;  %v21325_v30 = vadd.f32 %v16342_v29, %v16341_v22  ;;  %v17958_v1 = vld [vmem:[%s22488_s3 + $0x78] sm:$0xff]   ;;  %v11015_v37 = vcombine.high %v11014_v0, %v11014_v0  ;;  %v17961_v22 = vld [vmem:[%s22488_s3 + $0x8] sm:$0xff]   ;;  %v15793_v0 = vadd.f32 %v19860_v43, %v19850_v39  ;;  %v18157_v43 = vld [vmem:[%s22489_s4] ss:$0 sm:$0xff] }
 0x348   :  { %v16323_v2 = vpop.f32.mrf.mxu0  ;;  %16615 = vmatprep.subr.bf16.mxu0 %v17934_v8  ;;  %v16344_v33 = vpop.f32.mrf.mxu1  ;;  %v17960_v8 = vld [vmem:[%s22488_s3 + $0x48] sm:$0xff]  }
 0x349   :  { %16636 = vmatpush3.bf16.msra.mxu1 %v17941_v35  ;;  %v17957_v2 = vld [vmem:[%s22488_s3 + $0x10] sm:$0xff]   ;;  %v17966_v35 = vld [vmem:[%s22488_s3 + $0x68] sm:$0xff]  }
 0x34a   :  { %v16345_v40 = vpop.f32.mrf.mxu1  ;;  %16637 = vmatprep.subr.bf16.mxu1 %v17944_v41  ;;  %v18155_v41 = vld [vmem:[%s22489_s4] ss:$0 sm:$0xff] }
 0x34b   :  { %16616 = vmatpush3.bf16.msra.mxu0 %v17935_v13  ;;  %v11029_v13 = vrot.slane %v11015_v37, %v18365_v38  ;;  %v17965_v40 = vld [vmem:[%s22488_s3] sm:$0xff]   ;;  %v17972_v37 = vld [vmem:[%s22488_s3 + $0x70] sm:$0xff]  }
 0x34c   :  { %16617 = vmatprep.subr.bf16.mxu0 %v17938_v21  ;;  %v17962_v21 = vld [vmem:[%s22488_s3 + $0x70] sm:$0xff]  }
 0x34d   :  { %16638 = vmatpush3.bf16.msra.mxu1 %v17945_v48  ;;  %11160 = vmatprep.mubr.bf16.mxu0 %v11029_v13  ;;  %v17968_v48 = vld [vmem:[%s22488_s3 + $0x78] sm:$0xff]  }
 0x34e   :  { %16639 = vmatprep.subr.bf16.mxu1 %v17948_v51  ;;  %v17967_v51 = vld [vmem:[%s22488_s3 + $0x28] sm:$0xff]   ;;  %v17975_v13 = vld [vmem:[%s22488_s3 + $0x18] sm:$0xff]  }
 0x34f   :  { %16618 = vmatpush3.bf16.msra.mxu0 %v17939_v27  ;;  %v17963_v27 = vld [vmem:[%s22488_s3 + $0x30] sm:$0xff]  }
 0x350   :  { %16619 = vmatprep.subr.bf16.mxu0 %v17942_v31 }
 0x351   :  { %16640 = vmatpush3.bf16.msra.mxu1 %v17949_v53 }
 0x352   :  { %16641 = vmatprep.subr.bf16.mxu1 %v17952_v63 }
 0x353   :  { %16620 = vmatpush3.bf16.msra.mxu0 %v17943_v46  ;;  %v11176_v46 = vmul.bf16 %v21298_v10, %v15224_v15  ;;  %v17980_v15 = vld [vmem:[%s22488_s3 + $0x60] sm:$0xff]  }
 0x354   :  { %16621 = vmatprep.subr.bf16.mxu0 %v17946_v45  ;;  %v1498_v45 = vadd.f32 %v18155_v41, %v19396_v58  ;;  %v17970_v58 = vld [vmem:[%s22488_s3 + $0x60] sm:$0xff]  }
 0x355   :  { %16642 = vmatpush3.bf16.msra.mxu1 %v17953_v56  ;;  %v17969_v56 = vld [vmem:[%s22488_s3 + $0x38] sm:$0xff]  }
 0x356   :  { %16643 = vmatprep.subr.bf16.mxu1 %v17956_v28  ;;  %v2341_v28 = vadd.f32 %v21458_v32, %v19629_v50  ;;  %v17973_v50 = vld [vmem:[%s22488_s3 + $0x30] sm:$0xff]  }
 0x357   :  { %16622 = vmatpush3.bf16.msra.mxu0 %v17947_v49  ;;  %v5509_v49 = vrot.slane %v5507_v25, 6 }
 0x358   :  { %16623 = vmatprep.subr.bf16.mxu0 %v17950_v52 }
 0x359   :  { %16644 = vmatpush3.bf16.msra.mxu1 %v17957_v2 }
 0x35a   :  { %16645 = vmatprep.subr.bf16.mxu1 %v17960_v8 }
 0x35b   :  { %16624 = vmatpush3.bf16.msra.mxu0 %v17951_v55 }
 0x35c   :  { %16625 = vmatprep.subr.bf16.mxu0 %v17954_v57  ;;  %v1503_v57 = vmax.f32 %v1498_v45, 0.0 }
 0x35d   :  { %16646 = vmatpush3.bf16.msra.mxu1 %v17961_v22  ;;  %v17976_v22 = vld [vmem:[%s22488_s3 + $0x68] sm:$0xff]  }
 0x35e   :  { %16647 = vmatprep.subr.bf16.mxu1 %v17964_v24  ;;  %v1505_v39 = vrot.slane %v1503_v57, 4  ;;  %v17977_v24 = vld [vmem:[%s22488_s3 + $0x28] sm:$0xff]  }
 0x35f   :  { %16626 = vmatpush3.bf16.msra.mxu0 %v17955_v18  ;;  %v17971_v18 = vld [vmem:[%s22488_s3 + $0x20] sm:$0xff]  }
 0x360   :  { %16655 = vmatprep.subr.bf16.mxu0 %v17958_v1 }
 0x361   :  { %16648 = vmatpush3.bf16.msra.mxu1 %v17965_v40  ;;  %v17983_v40 = vld [vmem:[%s22488_s3 + $0x8] sm:$0xff]  }
 0x362   :  { %v16363_v4 = vpop.f32.mrf.mxu0  ;;  %11161 = vmatmul.mubr.bf16.vlgmr.msra.gmra.mxu0 %v11022_v6  ;;  %16677 = vmatprep.subr.bf16.mxu1 %v17968_v48  ;;  %v17974_v6 = vld [vmem:[%s22488_s3 + $0x58] sm:$0xff]   ;;  %v15242_v48 = vld [vmem:[%s22485_s0 + $0x6c] sm:$0x3] }
 0x363   :  { %16656 = vmatpush3.bf16.msra.mxu0 %v17959_v17  ;;  %v2346_v17 = vmax.f32 %v2341_v28, 0.0 }
 0x364   :  { %v16364_v19 = vpop.f32.mrf.mxu0  ;;  %16657 = vmatprep.subr.bf16.mxu0 %v17962_v21  ;;  %v16385_v55 = vpop.f32.mrf.mxu1 }
 0x365   :  { %v16365_v47 = vadd.f32 %v16364_v19, %v16363_v4  ;;  %v21483_v19 = vld [vmem:[%s22489_s4] ss:$0 sm:$0xff] }
 0x366   :  { %v16366_v34 = vpop.f32.mrf.mxu0  ;;  %v16386_v1 = vpop.f32.mrf.mxu1 }
 0x367   :  { %v8646_v23 = vadd.f32 %v16365_v47, %v21080_v44  ;;  %v21420_v44 = vld [vmem:[%s22489_s4] ss:$0 sm:$0xff]  ;;  %16658 = vmatpush3.bf16.msra.mxu0 %v17963_v27  ;;  %v16387_v4 = vadd.f32 %v16386_v1, %v16385_v55  ;;  %v3184_v47 = vadd.f32 %v21483_v19, %v15793_v0  ;;  %v17979_v27 = vld [vmem:[%s22488_s3 + $0x10] sm:$0xff]   ;;  %v17991_v1 = vld [vmem:[%s22488_s3 + $0x38] sm:$0xff]  }
 0x368   :  { %v16367_v29 = vpop.f32.mrf.mxu0  ;;  %v6345_v31 = vadd.f32 %v21420_v44, %v20738_v61  ;;  %v11223_v61 = vrot.slane %v11176_v46, %v18365_v38  ;;  %16659 = vmatprep.subr.bf16.mxu0 %v17966_v35  ;;  %v16388_v8 = vpop.f32.mrf.mxu1  ;;  %v17982_v35 = vld [vmem:[%s22488_s3 + $0x48] sm:$0xff]   ;;  %v17981_v46 = vld [vmem:[%s22488_s3 + $0x20] sm:$0xff]  }
 0x369   :  { %v8651_v33 = vmax.f32 %v8646_v23, 0.0  ;;  %v8855_v12 = vadd.f32 %v18157_v43, %v16387_v4  ;;  %v17978_v23 = vld [vmem:[%s22488_s3 + $0x50] sm:$0xff]   ;;  %v3189_v29 = vmax.f32 %v3184_v47, 0.0  ;;  %v6556_v43 = vadd.f32 %v21420_v44, %v20807_v36  ;;  %v17998_v36 = vld [vmem:[%s22488_s3 + $0x68] sm:$0xff]  }
 0x36a   :  { %v6350_v52 = vmax.f32 %v6345_v31, 0.0  ;;  %v11224_v53 = vcombine.high %v11223_v61, %v11223_v61  ;;  %v11231_v63 = vrot.slane %v11223_v61, %v18365_v38  ;;  %v16389_v21 = vpop.f32.mrf.mxu1  ;;  %v2348_v31 = vrot.slane %v2346_v17, 4  ;;  %v17986_v61 = vld [vmem:[%s22488_s3 + $0x40] sm:$0xff]   ;;  %v17994_v4 = vld [vmem:[%s22488_s3 + $0x70] sm:$0xff]  }
 0x36b   :  { %8653 = vrot.lane.b32.xlu1 %v8651_v33, %s18187_s24  ;;  %16660 = vmatpush3.bf16.msra.mxu0 %v17967_v51  ;;  %v8860_v34 = vmax.f32 %v8855_v12, 0.0  ;;  %v4027_v33 = vadd.f32 %v21483_v19, %v20106_v54  ;;  %v17984_v54 = vld [vmem:[%s22488_s3 + $0x58] sm:$0xff]   ;;  %v3191_v41 = vrot.slane %v3189_v29, 4  ;;  %v11386_v51 = vmul.bf16 %v21298_v10, %v15242_v48  ;;  %v17996_v17 = vld [vmem:[%s22488_s3 + $0x40] sm:$0xff]   ;;  %v15260_v21 = vld [vmem:[%s22485_s0 + $0x6e] sm:$0x3] }
 0x36c   :  { %v11238_v60 = vrot.slane %v11224_v53, %v18365_v38  ;;  %v6352_v2 = vrot.slane %v6350_v52, 6  ;;  %16661 = vmatprep.subr.bf16.mxu0 %v17970_v58  ;;  %v4870_v52 = vadd.f32 %v21393_v11, %v20337_v59  ;;  %v17987_v53 = vld [vmem:[%s22488_s3] sm:$0xff]   ;;  %v17988_v58 = vld [vmem:[%s22488_s3 + $0x50] sm:$0xff]   ;;  %v17990_v59 = vld [vmem:[%s22488_s3 + $0x78] sm:$0xff]  }
 0x36d   :  { %v8862_v25 = vrot.slane %v8860_v34, 6  ;;  %v4032_v45 = vmax.f32 %v4027_v33, 0.0  ;;  %v11433_v55 = vrot.slane %v11386_v51, %v18365_v38  ;;  %v17997_v34 = vld [vmem:[%s22488_s3] sm:$0xff]  }
 0x36e   :  { %11369 = vmatprep.mubr.bf16.mxu1 %v11238_v60  ;;  %v17989_v60 = vld [vmem:[%s22488_s3 + $0x10] sm:$0xff]  }
 0x36f   :  { %5510 = vrot.lane.b32.xlu1 %v5509_v49, %s18191_s28  ;;  %11370 = vmatmul.mubr.bf16.vlgmr.msra.gmra.mxu1 %v11231_v63  ;;  %v17985_v49 = vld [vmem:[%s22488_s3 + $0x18] sm:$0xff]   ;;  %v4034_v63 = vrot.slane %v4032_v45, 4  ;;  %v11434_v57 = vcombine.high %v11433_v55, %v11433_v55  ;;  %v11441_v0 = vrot.slane %v11433_v55, %v18365_v38 }
 0x370   :  { %16678 = vmatpush3.bf16.msra.mxu1 %v17969_v56  ;;  %16662 = vmatpush3.bf16.msra.mxu0 %v17971_v18  ;;  %v5713_v56 = vadd.f32 %v21393_v11, %v20578_v16  ;;  %v4875_v18 = vmax.f32 %v4870_v52, 0.0  ;;  %v18005_v52 = vld [vmem:[%s22488_s3 + $0x30] sm:$0xff]   ;;  %v18007_v55 = vld [vmem:[%s22488_s3 + $0x18] sm:$0xff]  }
 0x371   :  { %16679 = vmatprep.subr.bf16.mxu1 %v17972_v37  ;;  %16663 = vmatprep.subr.bf16.mxu0 %v17974_v6  ;;  %v11448_v16 = vrot.slane %v11434_v57, %v18365_v38  ;;  %v17992_v37 = vld [vmem:[%s22488_s3 + $0x48] sm:$0xff]  }
 0x372   :  { %8863 = vrot.lane.b32.xlu0 %v8862_v25, %s18187_s24  ;;  %v5718_v6 = vmax.f32 %v5713_v56, 0.0  ;;  %v17999_v25 = vld [vmem:[%s22488_s3 + $0x28] sm:$0xff]  }
 0x373   :  { %6353 = vrot.lane.b32.xlu1 %v6352_v2, %s18192_s27  ;;  %11579 = vmatprep.mubr.bf16.mxu0 %v11448_v16  ;;  %v18008_v57 = vld [vmem:[%s22488_s3 + $0x68] sm:$0xff]  }
 0x374   :  { %16680 = vmatpush3.bf16.msra.mxu1 %v17973_v50  ;;  %16664 = vmatpush3.bf16.msra.mxu0 %v17975_v13  ;;  %v17993_v50 = vld [vmem:[%s22488_s3 + $0x8] sm:$0xff]   ;;  %v17995_v13 = vld [vmem:[%s22488_s3 + $0x30] sm:$0xff]  }
 0x375   :  { %16681 = vmatprep.subr.bf16.mxu1 %v17976_v22  ;;  %16665 = vmatprep.subr.bf16.mxu0 %v17978_v23  ;;  %v5720_v22 = vrot.slane %v5718_v6, 4  ;;  %v11596_v23 = vmul.bf16 %v21298_v10, %v15260_v21  ;;  %v18016_v6 = vld [vmem:[%s22488_s3 + $0x58] sm:$0xff]   ;;  %v18020_v21 = vld [vmem:[%s22488_s3 + $0x50] sm:$0xff]  }
 0x377   :  { %1506 = vrot.lane.b32.xlu1 %v1505_v39, %s18186_s15  ;;  %v4877_v39 = vrot.slane %v4875_v18, 4  ;;  %v11643_v29 = vrot.slane %v11596_v23, %v18365_v38  ;;  %v18011_v18 = vld [vmem:[%s22488_s3 + $0x10] sm:$0xff]  }
 0x378   :  { %16682 = vmatpush3.bf16.msra.mxu1 %v17977_v24  ;;  %16666 = vmatpush3.bf16.msra.mxu0 %v17979_v27  ;;  %v6561_v24 = vmax.f32 %v6556_v43, 0.0  ;;  %v1709_v27 = vadd.f32 %v21458_v32, %v19435_v14  ;;  %v18001_v14 = vld [vmem:[%s22488_s3 + $0x38] sm:$0xff]  }
 0x379   :  { %16683 = vmatprep.subr.bf16.mxu1 %v17980_v15  ;;  %16667 = vmatprep.subr.bf16.mxu0 %v17982_v35  ;;  %v18000_v15 = vld [vmem:[%s22488_s3 + $0x78] sm:$0xff]   ;;  %v11644_v33 = vcombine.high %v11643_v29, %v11643_v29 }
 0x37a   :  { %v1714_v45 = vmax.f32 %v1709_v27, 0.0  ;;  %v18017_v43 = vld [vmem:[%s22488_s3 + $0x18] sm:$0xff]  }
 0x37b   :  { %2349 = vrot.lane.b32.xlu1 %v2348_v31, %s18187_s24  ;;  %v18002_v31 = vld [vmem:[%s22488_s3 + $0x60] sm:$0xff]  }
 0x37c   :  { %16684 = vmatpush3.bf16.msra.mxu1 %v17981_v46  ;;  %16668 = vmatpush3.bf16.msra.mxu0 %v17983_v40  ;;  %v2552_v46 = vadd.f32 %v21458_v32, %v19673_v9  ;;  %v6563_v40 = vrot.slane %v6561_v24, 4  ;;  %v18006_v32 = vld [vmem:[%s22488_s3 + $0x58] sm:$0xff]   ;;  %v6767_v24 = vadd.f32 %v21420_v44, %v20852_v3  ;;  %v21697_v3 = vld [vmem:[%s22489_s4] ss:$0 sm:$0xff] }
 0x37d   :  { %16685 = vmatprep.subr.bf16.mxu1 %v17984_v54  ;;  %16669 = vmatprep.subr.bf16.mxu0 %v17986_v61  ;;  %v11651_v54 = vrot.slane %v11643_v29, %v18365_v38  ;;  %v11658_v61 = vrot.slane %v11644_v33, %v18365_v38  ;;  %v18023_v29 = vld [vmem:[%s22488_s3 + $0x38] sm:$0xff]   ;;  %v18025_v33 = vld [vmem:[%s22488_s3 + $0x8] sm:$0xff]  }
 0x37f   :  { %3192 = vrot.lane.b32.xlu1 %v3191_v41, %s18188_s26  ;;  %v18003_v41 = vld [vmem:[%s22488_s3 + $0x20] sm:$0xff]   ;;  %11789 = vmatprep.mubr.bf16.mxu1 %v11658_v61 }
 0x380   :  { %16686 = vmatpush3.bf16.msra.mxu1 %v17985_v49  ;;  %16670 = vmatpush3.bf16.msra.mxu0 %v17987_v53  ;;  %v18004_v49 = vld [vmem:[%s22488_s3 + $0x70] sm:$0xff]   ;;  %v2557_v53 = vmax.f32 %v2552_v46, 0.0 }
 0x381   :  { %16687 = vmatprep.subr.bf16.mxu1 %v17988_v58  ;;  %16699 = vmatprep.subr.bf16.mxu0 %v17990_v59  ;;  %v15903_v58 = vadd.f32 %v20144_v20, %v20134_v5  ;;  %v3395_v59 = vadd.f32 %v21483_v19, %v19905_v7  ;;  %v18010_v5 = vld [vmem:[%s22488_s3 + $0x50] sm:$0xff]   ;;  %v18009_v20 = vld [vmem:[%s22488_s3 + $0x28] sm:$0xff]  }
 0x382   :  { %v16407_v28 = vpop.f32.mrf.mxu0  ;;  %v2559_v7 = vrot.slane %v2557_v53, 2  ;;  %v18029_v53 = vld [vmem:[%s22488_s3] sm:$0xff]  }
 0x383   :  { %4035 = vrot.lane.b32.xlu1 %v4034_v63, %s18189_s21  ;;  %11580 = vmatmul.mubr.bf16.vlgmr.msra.gmra.mxu0 %v11441_v0  ;;  %v1716_v63 = vrot.slane %v1714_v45, 2  ;;  %v18012_v0 = vld [vmem:[%s22488_s3 + $0x60] sm:$0xff]  }
 0x384   :  { %v16408_v2 = vpop.f32.mrf.mxu0  ;;  %16688 = vmatpush3.bf16.msra.mxu1 %v17989_v60  ;;  %16700 = vmatpush3.bf16.msra.mxu0 %v17991_v1  ;;  %v16429_v35 = vpop.f32.mrf.mxu1  ;;  %v4238_v60 = vadd.f32 %v21483_v19, %v15903_v58  ;;  %v18014_v1 = vld [vmem:[%s22488_s3 + $0x48] sm:$0xff]   ;;  %v18013_v19 = vld [vmem:[%s22488_s3 + $0x20] sm:$0xff]  }
 0x385   :  { %v21558_v8 = vadd.f32 %v16408_v2, %v16407_v28  ;;  %16689 = vmatprep.subr.bf16.mxu1 %v17992_v37  ;;  %16701 = vmatprep.subr.bf16.mxu0 %v17994_v4  ;;  %v3400_v28 = vmax.f32 %v3395_v59, 0.0  ;;  %v18015_v37 = vld [vmem:[%s22488_s3 + $0x8] sm:$0xff]   ;;  %v5081_v4 = vadd.f32 %v21393_v11, %v20382_v26  ;;  %v15278_v26 = vld [vmem:[%s22485_s0 + $0x70] sm:$0x3]  ;;  %v18028_v45 = vld [vmem:[%s22488_s3 + $0x40] sm:$0xff]  }
 0x386   :  { %v16410_v12 = vpop.f32.mrf.mxu0  ;;  %v16430_v48 = vpop.f32.mrf.mxu1  ;;  %v4243_v16 = vmax.f32 %v4238_v60, 0.0  ;;  %v21726_v58 = vld [vmem:[%s22486_s1] sm:$0x3]  ;;  %v18031_v59 = vld [vmem:[%s22488_s3 + $0x28] sm:$0xff]   ;;  %v18033_v60 = vld [vmem:[%s22488_s3 + $0x38] sm:$0xff]  }
 0x387   :  { %4878 = vrot.lane.b32.xlu1 %v4877_v39, %s18190_s20  ;;  %v21608_v9 = vadd.f32 %v16430_v48, %v16429_v35  ;;  %v3402_v2 = vrot.slane %v3400_v28, 2  ;;  %v18018_v39 = vld [vmem:[%s22488_s3 + $0x40] sm:$0xff]   ;;  %v5924_v12 = vadd.f32 %v21393_v11, %v20617_v42  ;;  %v18022_v42 = vld [vmem:[%s22488_s3 + $0x78] sm:$0xff]   ;;  %v18026_v35 = vld [vmem:[%s22488_s3 + $0x70] sm:$0xff]  }
 0x388   :  { %v16411_v47 = vpop.f32.mrf.mxu0  ;;  %16690 = vmatpush3.bf16.msra.mxu1 %v17993_v50  ;;  %16702 = vmatpush3.bf16.msra.mxu0 %v17995_v13  ;;  %v16432_v51 = vpop.f32.mrf.mxu1  ;;  %v18019_v13 = vld [vmem:[%s22488_s3] sm:$0xff]   ;;  %v18030_v48 = vld [vmem:[%s22488_s3 + $0x68] sm:$0xff]  }
 0x389   :  { %16691 = vmatprep.subr.bf16.mxu1 %v17996_v17  ;;  %16703 = vmatprep.subr.bf16.mxu0 %v17998_v36  ;;  %v4245_v17 = vrot.slane %v4243_v16, 2  ;;  %v11806_v47 = vmul.bf16 %v21298_v10, %v15278_v26  ;;  %v5086_v36 = vmax.f32 %v5081_v4, 0.0  ;;  %v5929_v11 = vmax.f32 %v5924_v12, 0.0  ;;  %v18021_v10 = vld [vmem:[%s22488_s3 + $0x10] sm:$0xff]   ;;  %v18035_v28 = vld [vmem:[%s22488_s3 + $0x20] sm:$0xff]  }
 0x38a   :  { %v16433_v56 = vpop.f32.mrf.mxu1  ;;  %v18037_v4 = vld [vmem:[%s22488_s3 + $0x30] sm:$0xff]  }
 0x38b   :  { %5721 = vrot.lane.b32.xlu1 %v5720_v22, %s18191_s28  ;;  %v11853_v22 = vrot.slane %v11806_v47, %v18365_v38  ;;  %v5088_v23 = vrot.slane %v5086_v36, 2  ;;  %v18042_v12 = vld [vmem:[%s22488_s3 + $0x50] sm:$0xff]   ;;  %v18044_v36 = vld [vmem:[%s22488_s3 + $0x60] sm:$0xff]  }
 0x38c   :  { %16692 = vmatpush3.bf16.msra.mxu1 %v17997_v34  ;;  %16704 = vmatpush3.bf16.msra.mxu0 %v17999_v25  ;;  %v18043_v47 = vld [vmem:[%s22488_s3 + $0x10] sm:$0xff]  }
 0x38d   :  { %16721 = vmatprep.subr.bf16.mxu1 %v18000_v15  ;;  %16705 = vmatprep.subr.bf16.mxu0 %v18002_v31  ;;  %v11854_v34 = vcombine.high %v11853_v22, %v11853_v22  ;;  %v11861_v25 = vrot.slane %v11853_v22, %v18365_v38  ;;  %v18024_v31 = vld [vmem:[%s22488_s3 + $0x48] sm:$0xff]   ;;  %v18045_v22 = vld [vmem:[%s22488_s3 + $0x20] sm:$0xff]  }
 0x38f   :  { %6564 = vrot.lane.b32.xlu1 %v6563_v40, %s18192_s27  ;;  %11790 = vmatmul.mubr.bf16.vlgmr.msra.gmra.mxu1 %v11651_v54  ;;  %v11868_v15 = vrot.slane %v11854_v34, %v18365_v38  ;;  %v18027_v40 = vld [vmem:[%s22488_s3 + $0x30] sm:$0xff]   ;;  %v6772_v54 = vmax.f32 %v6767_v24, 0.0  ;;  %v18050_v34 = vld [vmem:[%s22488_s3 + $0x40] sm:$0xff]  }
 0x390   :  { %16722 = vmatpush3.bf16.msra.mxu1 %v18001_v14  ;;  %16706 = vmatpush3.bf16.msra.mxu0 %v18003_v41  ;;  %v5931_v14 = vrot.slane %v5929_v11, 2  ;;  %v18048_v11 = vld [vmem:[%s22488_s3 + $0x58] sm:$0xff]   ;;  %v18051_v24 = vld [vmem:[%s22488_s3] sm:$0xff]  }
 0x391   :  { %16723 = vmatprep.subr.bf16.mxu1 %v18004_v49  ;;  %16707 = vmatprep.subr.bf16.mxu0 %v18006_v32  ;;  %v15296_v32 = vld [vmem:[%s22485_s0 + $0x72] sm:$0x3] }
 0x392   :  { %11999 = vmatprep.mubr.bf16.mxu0 %v11868_v15  ;;  %v18054_v15 = vld [vmem:[%s22488_s3 + $0x78] sm:$0xff]  }
 0x393   :  { %1717 = vrot.lane.b32.xlu1 %v1716_v63, %s18186_s15  ;;  %v6774_v63 = vrot.slane %v6772_v54, 2  ;;  %v18056_v54 = vld [vmem:[%s22488_s3 + $0x48] sm:$0xff]  }
 0x394   :  { %16724 = vmatpush3.bf16.msra.mxu1 %v18005_v52  ;;  %16708 = vmatpush3.bf16.msra.mxu0 %v18007_v55  ;;  %v12015_v55 = vmul.bf16 %v21726_v58, %v15296_v32 }
 0x395   :  { %16725 = vmatprep.subr.bf16.mxu1 %v18008_v57  ;;  %16709 = vmatprep.subr.bf16.mxu0 %v18010_v5  ;;  %v18032_v57 = vld [vmem:[%s22488_s3 + $0x78] sm:$0xff]   ;;  %v18034_v5 = vld [vmem:[%s22488_s3 + $0x60] sm:$0xff]  }
 0x396   :  { %v12062_v56 = vrot.slane %v12015_v55, %v18365_v38 }
 0x397   :  { %2560 = vrot.lane.b32.xlu1 %v2559_v7, %s18187_s24 }
 0x398   :  { %16726 = vmatpush3.bf16.msra.mxu1 %v18009_v20  ;;  %16710 = vmatpush3.bf16.msra.mxu0 %v18011_v18  ;;  %v12063_v20 = vcombine.high %v12062_v56, %v12062_v56  ;;  %v12070_v18 = vrot.slane %v12062_v56, %v18365_v38 }
 0x399   :  { %16727 = vmatprep.subr.bf16.mxu1 %v18012_v0  ;;  %16711 = vmatprep.subr.bf16.mxu0 %v18014_v1 }
 0x39a   :  { %v12077_v0 = vrot.slane %v12063_v20, %v18365_v38  ;;  %v18066_v20 = vld [vmem:[%s22488_s3 + $0x60] sm:$0xff]  }
 0x39b   :  { %3403 = vrot.lane.b32.xlu1 %v3402_v2, %s18188_s26 }
 0x39c   :  { %16728 = vmatpush3.bf16.msra.mxu1 %v18013_v19  ;;  %16712 = vmatpush3.bf16.msra.mxu0 %v18015_v37  ;;  %v18036_v19 = vld [vmem:[%s22488_s3 + $0x70] sm:$0xff]   ;;  %v18038_v37 = vld [vmem:[%s22488_s3 + $0x58] sm:$0xff]  }
 0x39d   :  { %v7815_v50 = vpop.permute.xlu0 %7814  ;;  %16729 = vmatprep.subr.bf16.mxu1 %v18016_v6  ;;  %16713 = vmatprep.subr.bf16.mxu0 %v18018_v39 }
 0x39e   :  { %7817 = vst.msk [vmem:[#allocation2 + $0x8] sm:$0x3] %vm1087_vm4, %v7815_v50  ;;  %12208 = vmatprep.mubr.bf16.mxu1 %v12077_v0  ;;  %v18039_v50 = vld [vmem:[%s22488_s3 + $0x18] sm:$0xff]   ;;  %v18067_v0 = vld [vmem:[%s22488_s3 + $0x20] sm:$0xff]   ;;  %vm22503_vm4 = vcmask 521604  }
 0x39f   :  { %4246 = vrot.lane.b32.xlu1 %v4245_v17, %s18189_s21 }
 0x3a0   :  { %16730 = vmatpush3.bf16.msra.mxu1 %v18017_v43  ;;  %16714 = vmatpush3.bf16.msra.mxu0 %v18019_v13  ;;  %v18040_v43 = vld [vmem:[%s22488_s3 + $0x68] sm:$0xff]  }
 0x3a1   :  { %16731 = vmatprep.subr.bf16.mxu1 %v18020_v21  ;;  %16743 = vmatprep.subr.bf16.mxu0 %v18022_v42  ;;  %v8025_v51 = vpop.permute.xlu0 %8024  ;;  %v18041_v13 = vld [vmem:[%s22488_s3 + $0x28] sm:$0xff]  }
 0x3a2   :  { %v16451_v27 = vpop.f32.mrf.mxu0  ;;  %8027 = vst.msk [vmem:[#allocation2 + $0x8] sm:$0xc] %vm1298_vm5, %v8025_v51  ;;  %v18046_v21 = vld [vmem:[%s22488_s3 + $0x48] sm:$0xff]   ;;  %v18060_v51 = vld [vmem:[%s22488_s3 + $0x40] sm:$0xff]   ;;  %vm22499_vm5 = vcmask 652804  }
 0x3a3   :  { %5089 = vrot.lane.b32.xlu1 %v5088_v23, %s18190_s20  ;;  %12000 = vmatmul.mubr.bf16.vlgmr.msra.gmra.mxu0 %v11861_v25  ;;  %v18047_v42 = vld [vmem:[%s22488_s3 + $0x8] sm:$0xff]   ;;  %v15314_v23 = vld [vmem:[%s22485_s0 + $0x74] sm:$0x3] }
 0x3a4   :  { %v16452_v44 = vpop.f32.mrf.mxu0  ;;  %16732 = vmatpush3.bf16.msra.mxu1 %v18021_v10  ;;  %16744 = vmatpush3.bf16.msra.mxu0 %v18023_v29  ;;  %v16473_v7 = vpop.f32.mrf.mxu1  ;;  %v18049_v10 = vld [vmem:[%s22488_s3 + $0x18] sm:$0xff]   ;;  %v12225_v25 = vmul.bf16 %v21726_v58, %v15314_v23 }
 0x3a5   :  { %v16453_v46 = vadd.f32 %v16452_v44, %v16451_v27  ;;  %16733 = vmatprep.subr.bf16.mxu1 %v18024_v31  ;;  %16745 = vmatprep.subr.bf16.mxu0 %v18026_v35  ;;  %v18052_v27 = vld [vmem:[%s22488_s3 + $0x50] sm:$0xff]  }
 0x3a6   :  { %v16454_v41 = vpop.f32.mrf.mxu0  ;;  %v16474_v1 = vpop.f32.mrf.mxu1  ;;  %v12272_v29 = vrot.slane %v12225_v25, %v18365_v38  ;;  %v18053_v44 = vld [vmem:[%s22488_s3 + $0x10] sm:$0xff]  }
 0x3a7   :  { %v9485_v61 = vadd.f32 %v16453_v46, %v21697_v3  ;;  %5932 = vrot.lane.b32.xlu1 %v5931_v14, %s18191_s28  ;;  %v16475_v16 = vadd.f32 %v16474_v1, %v16473_v7  ;;  %v18055_v14 = vld [vmem:[%s22488_s3 + $0x38] sm:$0xff]   ;;  %v18084_v25 = vld [vmem:[%s22488_s3 + $0x50] sm:$0xff]  }
 0x3a8   :  { %v16455_v49 = vpop.f32.mrf.mxu0  ;;  %16734 = vmatpush3.bf16.msra.mxu1 %v18025_v33  ;;  %16746 = vmatpush3.bf16.msra.mxu0 %v18027_v40  ;;  %v16476_v2 = vpop.f32.mrf.mxu1  ;;  %v12273_v31 = vcombine.high %v12272_v29, %v12272_v29  ;;  %v12280_v35 = vrot.slane %v12272_v29, %v18365_v38  ;;  %v18086_v29 = vld [vmem:[%s22488_s3 + $0x78] sm:$0xff]  }
 0x3a9   :  { %v9490_v52 = vmax.f32 %v9485_v61, 0.0  ;;  %16735 = vmatprep.subr.bf16.mxu1 %v18028_v45  ;;  %16747 = vmatprep.subr.bf16.mxu0 %v18030_v48  ;;  %v9694_v6 = vadd.f32 %v16475_v16, %v21697_v3  ;;  %v18058_v45 = vld [vmem:[%s22488_s3 + $0x70] sm:$0xff]   ;;  %v18057_v61 = vld [vmem:[%s22488_s3 + $0x8] sm:$0xff]  }
 0x3aa   :  { %v16477_v39 = vpop.f32.mrf.mxu1  ;;  %v12287_v46 = vrot.slane %v12273_v31, %v18365_v38  ;;  %v18059_v49 = vld [vmem:[%s22488_s3 + $0x30] sm:$0xff]  }
 0x3ab   :  { %6775 = vrot.lane.b32.xlu1 %v6774_v63, %s18192_s27  ;;  %9492 = vrot.lane.b32.xlu0 %v9490_v52, %s18188_s26  ;;  %v9699_v26 = vmax.f32 %v9694_v6, 0.0  ;;  %v15332_v52 = vld [vmem:[%s22485_s0 + $0x76] sm:$0x3]  ;;  %v18061_v63 = vld [vmem:[%s22488_s3] sm:$0xff]  }
 0x3ac   :  { %16736 = vmatpush3.bf16.msra.mxu1 %v18029_v53  ;;  %16748 = vmatpush3.bf16.msra.mxu0 %v18031_v59  ;;  %v18062_v53 = vld [vmem:[%s22488_s3 + $0x68] sm:$0xff]   ;;  %v12435_v55 = vmul.bf16 %v21726_v58, %v15332_v52  ;;  %v18071_v6 = vld [vmem:[%s22488_s3 + $0x18] sm:$0xff]   ;;  %v18085_v31 = vld [vmem:[%s22488_s3 + $0x10] sm:$0xff]  }
 0x3ad   :  { %16765 = vmatprep.subr.bf16.mxu1 %v18032_v57  ;;  %16749 = vmatprep.subr.bf16.mxu0 %v18034_v5  ;;  %v9701_v17 = vrot.slane %v9699_v26, 6  ;;  %v18063_v59 = vld [vmem:[%s22488_s3 + $0x28] sm:$0xff]   ;;  %v18064_v57 = vld [vmem:[%s22488_s3 + $0x78] sm:$0xff]   ;;  %v18092_v52 = vld [vmem:[%s22488_s3 + $0x40] sm:$0xff]  }
 0x3ae   :  { %12418 = vmatprep.mubr.bf16.mxu0 %v12287_v46  ;;  %v12482_v56 = vrot.slane %v12435_v55, %v18365_v38  ;;  %v18072_v39 = vld [vmem:[%s22488_s3 + $0x68] sm:$0xff]   ;;  %v18091_v55 = vld [vmem:[%s22488_s3 + $0x30] sm:$0xff]  }
 0x3af   :  { %12209 = vmatmul.mubr.bf16.vlgmr.msra.gmra.mxu1 %v12070_v18  ;;  %9702 = vrot.lane.b32.xlu0 %v9701_v17, %s18188_s26  ;;  %v18065_v18 = vld [vmem:[%s22488_s3 + $0x38] sm:$0xff]   ;;  %v18073_v26 = vld [vmem:[%s22488_s3 + $0x28] sm:$0xff]  }
 0x3b0   :  { %16766 = vmatpush3.bf16.msra.mxu1 %v18033_v60  ;;  %16750 = vmatpush3.bf16.msra.mxu0 %v18035_v28  ;;  %v12483_v5 = vcombine.high %v12482_v56, %v12482_v56  ;;  %v12490_v7 = vrot.slane %v12482_v56, %v18365_v38  ;;  %v18078_v17 = vld [vmem:[%s22488_s3 + $0x48] sm:$0xff]  }
 0x3b1   :  { %16767 = vmatprep.subr.bf16.mxu1 %v18036_v19  ;;  %16751 = vmatprep.subr.bf16.mxu0 %v18038_v37  ;;  %v18068_v19 = vld [vmem:[%s22488_s3 + $0x70] sm:$0xff]   ;;  %v18070_v37 = vld [vmem:[%s22488_s3 + $0x58] sm:$0xff]  }
 0x3b2   :  { %v12497_v28 = vrot.slane %v12483_v5, %v18365_v38  ;;  %v18093_v5 = vld [vmem:[%s22488_s3] sm:$0xff]  }
 0x3b4   :  { %16768 = vmatpush3.bf16.msra.mxu1 %v18037_v4  ;;  %16752 = vmatpush3.bf16.msra.mxu0 %v18039_v50  ;;  %v18069_v4 = vld [vmem:[%s22488_s3 + $0x30] sm:$0xff]  }
 0x3b5   :  { %16769 = vmatprep.subr.bf16.mxu1 %v18040_v43  ;;  %16753 = vmatprep.subr.bf16.mxu0 %v18042_v12  ;;  %v18074_v43 = vld [vmem:[%s22488_s3 + $0x50] sm:$0xff]  }
 0x3b6   :  { %12628 = vmatprep.mubr.bf16.mxu1 %v12497_v28  ;;  %v18075_v12 = vld [vmem:[%s22488_s3 + $0x10] sm:$0xff]  }
 0x3b8   :  { %16770 = vmatpush3.bf16.msra.mxu1 %v18041_v13  ;;  %16754 = vmatpush3.bf16.msra.mxu0 %v18043_v47  ;;  %v18076_v13 = vld [vmem:[%s22488_s3 + $0x60] sm:$0xff]  }
 0x3b9   :  { %16771 = vmatprep.subr.bf16.mxu1 %v18044_v36  ;;  %16755 = vmatprep.subr.bf16.mxu0 %v18046_v21  ;;  %v18077_v47 = vld [vmem:[%s22488_s3 + $0x20] sm:$0xff]   ;;  %v18079_v36 = vld [vmem:[%s22488_s3 + $0x8] sm:$0xff]  }
 0x3bc   :  { %16772 = vmatpush3.bf16.msra.mxu1 %v18045_v22  ;;  %16756 = vmatpush3.bf16.msra.mxu0 %v18047_v42  ;;  %v18080_v22 = vld [vmem:[%s22488_s3 + $0x58] sm:$0xff]  }
 0x3bd   :  { %16773 = vmatprep.subr.bf16.mxu1 %v18048_v11  ;;  %16757 = vmatprep.subr.bf16.mxu0 %v18050_v34  ;;  %v18081_v42 = vld [vmem:[%s22488_s3 + $0x18] sm:$0xff]   ;;  %v18082_v11 = vld [vmem:[%s22488_s3 + $0x40] sm:$0xff]  }
 0x3be   :  { %v15350_v34 = vld [vmem:[%s22485_s0 + $0x78] sm:$0x3] }
 0x3bf   :  { %v12645_v23 = vmul.bf16 %v21726_v58, %v15350_v34 }
 0x3c0   :  { %16774 = vmatpush3.bf16.msra.mxu1 %v18049_v10  ;;  %16758 = vmatpush3.bf16.msra.mxu0 %v18051_v24  ;;  %v18083_v10 = vld [vmem:[%s22488_s3] sm:$0xff]  }
 0x3c1   :  { %16775 = vmatprep.subr.bf16.mxu1 %v18052_v27  ;;  %16787 = vmatprep.subr.bf16.mxu0 %v18054_v15  ;;  %v12692_v27 = vrot.slane %v12645_v23, %v18365_v38 }
 0x3c2   :  { %v16495_v33 = vpop.f32.mrf.mxu0 }
 0x3c3   :  { %12419 = vmatmul.mubr.bf16.vlgmr.msra.gmra.mxu0 %v12280_v35  ;;  %v12693_v15 = vcombine.high %v12692_v27, %v12692_v27  ;;  %v12700_v35 = vrot.slane %v12692_v27, %v18365_v38  ;;  %v18104_v27 = vld [vmem:[%s22488_s3 + $0x40] sm:$0xff]  }
 0x3c4   :  { %v16496_v40 = vpop.f32.mrf.mxu0  ;;  %16776 = vmatpush3.bf16.msra.mxu1 %v18053_v44  ;;  %16788 = vmatpush3.bf16.msra.mxu0 %v18055_v14  ;;  %v16517_v60 = vpop.f32.mrf.mxu1  ;;  %v18088_v14 = vld [vmem:[%s22488_s3 + $0x48] sm:$0xff]  }
 0x3c5   :  { %v21822_v41 = vadd.f32 %v16496_v40, %v16495_v33  ;;  %16777 = vmatprep.subr.bf16.mxu1 %v18056_v54  ;;  %16789 = vmatprep.subr.bf16.mxu0 %v18058_v45  ;;  %v12707_v46 = vrot.slane %v12693_v15, %v18365_v38  ;;  %v18087_v40 = vld [vmem:[%s22488_s3 + $0x38] sm:$0xff]   ;;  %v18105_v15 = vld [vmem:[%s22488_s3] sm:$0xff]  }
 0x3c6   :  { %v16498_v48 = vpop.f32.mrf.mxu0  ;;  %v16518_v1 = vpop.f32.mrf.mxu1 }
 0x3c7   :  { %v21867_v16 = vadd.f32 %v16518_v1, %v16517_v60  ;;  %12838 = vmatprep.mubr.bf16.mxu0 %v12707_v46  ;;  %v18089_v48 = vld [vmem:[%s22488_s3 + $0x8] sm:$0xff]  }
 0x3c8   :  { %v16499_v32 = vpop.f32.mrf.mxu0  ;;  %16778 = vmatpush3.bf16.msra.mxu1 %v18057_v61  ;;  %16790 = vmatpush3.bf16.msra.mxu0 %v18059_v49  ;;  %v16520_v2 = vpop.f32.mrf.mxu1  ;;  %v18090_v61 = vld [vmem:[%s22488_s3 + $0x70] sm:$0xff]  }
 0x3c9   :  { %16779 = vmatprep.subr.bf16.mxu1 %v18060_v51  ;;  %16791 = vmatprep.subr.bf16.mxu0 %v18062_v53  ;;  %v15368_v53 = vld [vmem:[%s22485_s0 + $0x7a] sm:$0x3]  ;;  %v21978_v2 = vld [vmem:[%s22489_s4] ss:$0 sm:$0xff] }
 0x3ca   :  { %v16521_v50 = vpop.f32.mrf.mxu1 }
 0x3cc   :  { %16780 = vmatpush3.bf16.msra.mxu1 %v18061_v63  ;;  %16792 = vmatpush3.bf16.msra.mxu0 %v18063_v59  ;;  %v12854_v59 = vmul.bf16 %v21726_v58, %v15368_v53 }
 0x3cd   :  { %16809 = vmatprep.subr.bf16.mxu1 %v18064_v57  ;;  %16793 = vmatprep.subr.bf16.mxu0 %v18066_v20  ;;  %v18094_v57 = vld [vmem:[%s22488_s3 + $0x68] sm:$0xff]  }
 0x3ce   :  { %v12901_v20 = vrot.slane %v12854_v59, %v18365_v38 }
 0x3cf   :  { %12629 = vmatmul.mubr.bf16.vlgmr.msra.gmra.mxu1 %v12490_v7 }
 0x3d0   :  { %16810 = vmatpush3.bf16.msra.mxu1 %v18065_v18  ;;  %16794 = vmatpush3.bf16.msra.mxu0 %v18067_v0  ;;  %v12902_v60 = vcombine.high %v12901_v20, %v12901_v20  ;;  %v18095_v18 = vld [vmem:[%s22488_s3 + $0x28] sm:$0xff]   ;;  %v12909_v28 = vrot.slane %v12901_v20, %v18365_v38  ;;  %v18096_v0 = vld [vmem:[%s22488_s3 + $0x60] sm:$0xff]  }
 0x3d1   :  { %16811 = vmatprep.subr.bf16.mxu1 %v18068_v19  ;;  %16795 = vmatprep.subr.bf16.mxu0 %v18070_v37 }
 0x3d2   :  { %v12916_v1 = vrot.slane %v12902_v60, %v18365_v38 }
 0x3d4   :  { %16812 = vmatpush3.bf16.msra.mxu1 %v18069_v4  ;;  %16796 = vmatpush3.bf16.msra.mxu0 %v18071_v6  ;;  %v18097_v6 = vld [vmem:[%s22488_s3 + $0x20] sm:$0xff]  }
 0x3d5   :  { %16813 = vmatprep.subr.bf16.mxu1 %v18072_v39  ;;  %16797 = vmatprep.subr.bf16.mxu0 %v18074_v43  ;;  %v18098_v39 = vld [vmem:[%s22488_s3 + $0x58] sm:$0xff]  }
 0x3d6   :  { %13047 = vmatprep.mubr.bf16.mxu1 %v12916_v1 }
 0x3d8   :  { %16814 = vmatpush3.bf16.msra.mxu1 %v18073_v26  ;;  %16798 = vmatpush3.bf16.msra.mxu0 %v18075_v12  ;;  %v18099_v26 = vld [vmem:[%s22488_s3 + $0x18] sm:$0xff]  }
 0x3d9   :  { %16815 = vmatprep.subr.bf16.mxu1 %v18076_v13  ;;  %16799 = vmatprep.subr.bf16.mxu0 %v18078_v17  ;;  %v15386_v17 = vld [vmem:[%s22485_s0 + $0x7c] sm:$0x3] }
 0x3dc   :  { %16816 = vmatpush3.bf16.msra.mxu1 %v18077_v47  ;;  %16800 = vmatpush3.bf16.msra.mxu0 %v18079_v36  ;;  %v13064_v36 = vmul.bf16 %v21726_v58, %v15386_v17 }
 0x3dd   :  { %v8654_v21 = vpop.permute.xlu1 %8653  ;;  %16817 = vmatprep.subr.bf16.mxu1 %v18080_v22  ;;  %16801 = vmatprep.subr.bf16.mxu0 %v18082_v11  ;;  %v18100_v22 = vld [vmem:[%s22488_s3 + $0x50] sm:$0xff]  }
 0x3de   :  { %8656 = vst.msk [vmem:[#allocation2 + $0x8] sm:$0x3] %vm1930_vm6, %v8654_v21  ;;  %vm22501_vm6 = vcmask 784004   ;;  %v13111_v11 = vrot.slane %v13064_v36, %v18365_v38 }
 0x3e0   :  { %16818 = vmatpush3.bf16.msra.mxu1 %v18081_v42  ;;  %16802 = vmatpush3.bf16.msra.mxu0 %v18083_v10  ;;  %v18101_v42 = vld [vmem:[%s22488_s3 + $0x10] sm:$0xff]   ;;  %v18102_v10 = vld [vmem:[%s22488_s3 + $0x48] sm:$0xff]   ;;  %v13112_v23 = vcombine.high %v13111_v11, %v13111_v11 }
 0x3e1   :  { %v5511_v24 = vpop.permute.xlu1 %5510  ;;  %16819 = vmatprep.subr.bf16.mxu1 %v18084_v25  ;;  %16831 = vmatprep.subr.bf16.mxu0 %v18086_v29 }
 0x3e2   :  { %5514 = vst.msk [vmem:[#allocation2] sm:$0xc] %vm5513_vm0, %v5511_v24  ;;  %v16539_v44 = vpop.f32.mrf.mxu0  ;;  %v18103_v24 = vld [vmem:[%s22488_s3 + $0x8] sm:$0xff]   ;;  %v13126_v25 = vrot.slane %v13112_v23, %v18365_v38 }
 0x3e3   :  { %12839 = vmatmul.mubr.bf16.vlgmr.msra.gmra.mxu0 %v12700_v35 }
 0x3e4   :  { %v16540_v54 = vpop.f32.mrf.mxu0  ;;  %16820 = vmatpush3.bf16.msra.mxu1 %v18085_v31  ;;  %16832 = vmatpush3.bf16.msra.mxu0 %v18087_v40  ;;  %v16561_v19 = vpop.f32.mrf.mxu1 }
 0x3e5   :  { %v6354_v33 = vpop.permute.xlu1 %6353  ;;  %v16541_v45 = vadd.f32 %v16540_v54, %v16539_v44  ;;  %16821 = vmatprep.subr.bf16.mxu1 %v18088_v14  ;;  %16833 = vmatprep.subr.bf16.mxu0 %v18090_v61  ;;  %v13119_v44 = vrot.slane %v13111_v11, %v18365_v38 }
 0x3e6   :  { %6357 = vst.msk [vmem:[#allocation2] sm:$0xc] %vm22500_vm1, %v6354_v33  ;;  %v16542_v49 = vpop.f32.mrf.mxu0  ;;  %v16562_v4 = vpop.f32.mrf.mxu1  ;;  %vm22504_vm1 = vcmask 261254   ;;  %13257 = vmatprep.mubr.bf16.mxu0 %v13126_v25 }
 0x3e7   :  { %v10324_v51 = vadd.f32 %v16541_v45, %v21697_v3  ;;  %v8864_v3 = vpop.permute.xlu0 %8863  ;;  %v16563_v50 = vadd.f32 %v16562_v4, %v16561_v19 }
 0x3e8   :  { %v16543_v63 = vpop.f32.mrf.mxu0  ;;  %8866 = vst.msk [vmem:[#allocation2 + $0x8] sm:$0xc] %vm2141_vm7, %v8864_v3  ;;  %16822 = vmatpush3.bf16.msra.mxu1 %v18089_v48  ;;  %16834 = vmatpush3.bf16.msra.mxu0 %v18091_v55  ;;  %v16564_v43 = vpop.f32.mrf.mxu1  ;;  %vm22502_vm7 = vcmask 915204  }
 0x3e9   :  { %v1507_v32 = vpop.permute.xlu1 %1506  ;;  %v10329_v56 = vmax.f32 %v10324_v51, 0.0  ;;  %16823 = vmatprep.subr.bf16.mxu1 %v18092_v52  ;;  %16835 = vmatprep.subr.bf16.mxu0 %v18094_v57  ;;  %v10533_v13 = vadd.f32 %v16563_v50, %v21978_v2 }
 0x3ea   :  { %1510 = vst.msk [vmem:[#allocation2] sm:$0x30] %vm1509_vm2, %v1507_v32  ;;  %v16565_v47 = vpop.f32.mrf.mxu1 }
 0x3eb   :  { %10331 = vrot.lane.b32.xlu0 %v10329_v56, %s18189_s21  ;;  %v10538_v21 = vmax.f32 %v10533_v13, 0.0 }
 0x3ec   :  { %16824 = vmatpush3.bf16.msra.mxu1 %v18093_v5  ;;  %16836 = vmatpush3.bf16.msra.mxu0 %v18095_v18 }
 0x3ed   :  { %v2350_v7 = vpop.permute.xlu1 %2349  ;;  %16837 = vmatprep.subr.bf16.mxu0 %v18096_v0  ;;  %v10540_v34 = vrot.slane %v10538_v21, 6 }
 0x3ee   :  { %2353 = vst.msk [vmem:[#allocation2] sm:$0x30] %vm2352_vm3, %v2350_v7 }
 0x3ef   :  { %13048 = vmatmul.mubr.bf16.vlgmr.msra.gmra.mxu1 %v12909_v28  ;;  %10541 = vrot.lane.b32.xlu0 %v10540_v34, %s18189_s21 }
 0x3f0   :  { %16838 = vmatpush3.bf16.msra.mxu0 %v18097_v6 }
 0x3f1   :  { %v3193_v37 = vpop.permute.xlu1 %3192  ;;  %16839 = vmatprep.subr.bf16.mxu0 %v18098_v39 }
 0x3f2   :  { %3196 = vst.msk [vmem:[#allocation2] sm:$0x30] %vm22503_vm4, %v3193_v37  ;;  %vm4249_vm4 = vcmask 654854  }
 0x3f4   :  { %16840 = vmatpush3.bf16.msra.mxu0 %v18099_v26 }
 0x3f5   :  { %v4036_v12 = vpop.permute.xlu1 %4035  ;;  %16841 = vmatprep.subr.bf16.mxu0 %v18100_v22 }
 0x3f6   :  { %4039 = vst.msk [vmem:[#allocation2] sm:$0x30] %vm22499_vm5, %v4036_v12  ;;  %vm22506_vm5 = vcmask 1046404  }
 0x3f8   :  { %16842 = vmatpush3.bf16.msra.mxu0 %v18101_v42 }
 0x3f9   :  { %v4879_v58 = vpop.permute.xlu1 %4878  ;;  %16843 = vmatprep.subr.bf16.mxu0 %v18102_v10 }
 0x3fa   :  { %4882 = vst.msk [vmem:[#allocation2] sm:$0x30] %vm22501_vm6, %v4879_v58  ;;  %vm22505_vm6 = vcmask 392454  }
 0x3fc   :  { %16844 = vmatpush3.bf16.msra.mxu0 %v18103_v24 }
 0x3fd   :  { %v5722_v29 = vpop.permute.xlu1 %5721  ;;  %16845 = vmatprep.subr.bf16.mxu0 %v18104_v27 }
 0x3fe   :  { %5725 = vst.msk [vmem:[#allocation2] sm:$0x30] %vm22502_vm7, %v5722_v29  ;;  %vm3406_vm7 = vcmask 523654  }
 0x400   :  { %16846 = vmatpush3.bf16.msra.mxu0 %v18105_v15 }
 0x401   :  { %v6565_v31 = vpop.permute.xlu1 %6564 }
 0x402   :  { %6568 = vst.msk [vmem:[#allocation2] sm:$0x30] %vm22506_vm5, %v6565_v31  ;;  %v16583_v33 = vpop.f32.mrf.mxu0 }
 0x403   :  { %13258 = vmatmul.mubr.bf16.vlgmr.msra.gmra.mxu0 %v13119_v44 }
 0x404   :  { %v16584_v35 = vpop.f32.mrf.mxu0  ;;  %v16605_v48 = vpop.f32.mrf.mxu1 }
 0x405   :  { %v1718_v14 = vpop.permute.xlu1 %1717  ;;  %v22021_v46 = vadd.f32 %v16584_v35, %v16583_v33 }
 0x406   :  { %1721 = vst.msk [vmem:[#allocation2] sm:$0xc0] %vm22504_vm1, %v1718_v14  ;;  %v16586_v40 = vpop.f32.mrf.mxu0 }
 0x408   :  { %v16587_v54 = vpop.f32.mrf.mxu0 }
 0x409   :  { %v2561_v45 = vpop.permute.xlu1 %2560 }
 0x40a   :  { %2564 = vst.msk [vmem:[#allocation2] sm:$0xc0] %vm22505_vm6, %v2561_v45 }
 0x40d   :  { %v3404_v61 = vpop.permute.xlu1 %3403 }
 0x40e   :  { %3407 = vst.msk [vmem:[#allocation2] sm:$0xc0] %vm3406_vm7, %v3404_v61 }
 0x40f   :  { %18 = vsyncpa [#allocation4], 0  ;;  %v16606_v49 = vpop.f32.mrf.mxu1  ;;  %vm5092_vm1 = vcmask 786054   ;;  %vm5935_vm6 = vcmask 917254   ;;  %vm6778_vm5 = vcmask 1048454   ;;  %v18106_v17 = vld [vmem:[%s22488_s3 + $0x78] sm:$0xff]  }
 0x410   :  { %v22026_v32 = vadd.f32 %v16606_v49, %v16605_v48  ;;  %v18107_v36 = vld [vmem:[%s22488_s3 + $0x38] sm:$0xff]   ;;  %16853 = vmatprep.subr.bf16.mxu1 %v18106_v17  ;;  %v18108_v21 = vld [vmem:[%s22488_s3 + $0x70] sm:$0xff]   ;;  %v18110_v11 = vld [vmem:[%s22488_s3 + $0x68] sm:$0xff]   ;;  %s18195_s18 = smov [#allocation3]  }
 0x411   :  { %v4247_v51 = vpop.permute.xlu1 %4246  ;;  %v16608_v52 = vpop.f32.mrf.mxu1  ;;  %16854 = vmatpush3.bf16.msra.mxu1 %v18107_v36  ;;  %v18109_v22 = vld [vmem:[%s22488_s3 + $0x30] sm:$0xff]   ;;  %v18111_v10 = vld [vmem:[%s22488_s3 + $0x28] sm:$0xff]   ;;  %v18112_v24 = vld [vmem:[%s22488_s3 + $0x60] sm:$0xff]  }
 0x412   :  { %4250 = vst.msk [vmem:[#allocation2] sm:$0xc0] %vm4249_vm4, %v4247_v51  ;;  %16855 = vmatprep.subr.bf16.mxu1 %v18108_v21  ;;  %v18113_v27 = vld [vmem:[%s22488_s3 + $0x20] sm:$0xff]   ;;  %v18114_v29 = vld [vmem:[%s22488_s3 + $0x58] sm:$0xff]   ;;  %v18116_v44 = vld [vmem:[%s22488_s3 + $0x50] sm:$0xff]  }
 0x413   :  { %v16609_v53 = vpop.f32.mrf.mxu1  ;;  %v18115_v15 = vld [vmem:[%s22488_s3 + $0x18] sm:$0xff]   ;;  %v18117_v33 = vld [vmem:[%s22488_s3 + $0x10] sm:$0xff]   ;;  %v18118_v35 = vld [vmem:[%s22488_s3 + $0x48] sm:$0xff]  }
 0x414   :  { %v15404_v14 = vld [vmem:[%s22485_s0 + $0x7e] sm:$0x3]  ;;  %v18119_v40 = vld [vmem:[%s22488_s3 + $0x8] sm:$0xff]   ;;  %v18160_v54 = vld [vmem:[%s22486_s1] sm:$0x3] }
 0x415   :  { %v5090_v55 = vpop.permute.xlu1 %5089  ;;  %16856 = vmatpush3.bf16.msra.mxu1 %v18109_v22  ;;  %v13274_v45 = vmul.bf16 %v18160_v54, %v15404_v14  ;;  %v18120_v49 = vld [vmem:[%s22488_s3 + $0x40] sm:$0xff]   ;;  %v22160_v17 = vld [vmem:[%s22490_s5 + $0x58] sm:$0xff]   ;;  %v22175_v36 = vld [vmem:[%s22490_s5 + $0x50] sm:$0xff]  }
 0x416   :  { %5093 = vst.msk [vmem:[#allocation2] sm:$0xc0] %vm5092_vm1, %v5090_v55  ;;  %16857 = vmatprep.subr.bf16.mxu1 %v18110_v11  ;;  %v18121_v51 = vld [vmem:[%s22488_s3] sm:$0xff]  }
 0x417   :  { %v13321_v61 = vrot.slane %v13274_v45, %v18365_v38  ;;  %v22215_v14 = vld [vmem:[%s22490_s5] sm:$0xff]  }
 0x419   :  { %v5933_v63 = vpop.permute.xlu1 %5932  ;;  %16858 = vmatpush3.bf16.msra.mxu1 %v18111_v10  ;;  %v13322_v52 = vcombine.high %v13321_v61, %v13321_v61  ;;  %v13329_v55 = vrot.slane %v13321_v61, %v18365_v38 }
 0x41a   :  { %5936 = vst.msk [vmem:[#allocation2] sm:$0xc0] %vm5935_vm6, %v5933_v63  ;;  %16859 = vmatprep.subr.bf16.mxu1 %v18112_v24 }
 0x41d   :  { %v6776_v59 = vpop.permute.xlu1 %6775  ;;  %v9493_v3 = vpop.permute.xlu0 %9492  ;;  %16860 = vmatpush3.bf16.msra.mxu1 %v18113_v27 }
 0x41e   :  { %6779 = vst.msk [vmem:[#allocation2] sm:$0xc0] %vm6778_vm5, %v6776_v59  ;;  %16861 = vmatprep.subr.bf16.mxu1 %v18114_v29  ;;  %v13336_v59 = vrot.slane %v13322_v52, %v18365_v38  ;;  %v22111_v38 = vld [vmem:[%s22490_s5 + $0x38] sm:$0xff]   ;;  %v22188_v29 = vld [vmem:[%s22490_s5 + $0x10] sm:$0xff]  }
 0x41f   :  { %9495 = vst.msk [vmem:[#allocation2 + $0x8] sm:$0x3] %vm2773_vm8, %v9493_v3  ;;  %vm22507_vm8 = vcmask 521604  }
 0x420   :  { %13467 = vmatprep.mubr.bf16.mxu1 %v13336_v59 }
 0x421   :  { %v9703_v18 = vpop.permute.xlu0 %9702  ;;  %16862 = vmatpush3.bf16.msra.mxu1 %v18115_v15  ;;  %v22194_v15 = vld [vmem:[%s22490_s5 + $0x48] sm:$0xff]  }
 0x422   :  { %v16627_v56 = vpop.f32.mrf.mxu0  ;;  %9705 = vst.msk [vmem:[#allocation2 + $0x8] sm:$0xc] %vm2984_vm9, %v9703_v18  ;;  %16863 = vmatprep.subr.bf16.mxu1 %v18116_v44  ;;  %vm22508_vm9 = vcmask 1044354  }
 0x424   :  { %v16628_v57 = vpop.f32.mrf.mxu0 }
 0x425   :  { %v16629_v5 = vadd.f32 %v16628_v57, %v16627_v56  ;;  %16864 = vmatpush3.bf16.msra.mxu1 %v18117_v33  ;;  %v22208_v33 = vld [vmem:[%s22490_s5 + $0x40] sm:$0xff]  }
 0x426   :  { %v16630_v20 = vpop.f32.mrf.mxu0  ;;  %16865 = vmatprep.subr.bf16.mxu1 %v18118_v35 }
 0x427   :  { %v11163_v7 = vadd.f32 %v16629_v5, %v21978_v2 }
 0x428   :  { %v16631_v60 = vpop.f32.mrf.mxu0 }
 0x429   :  { %v11168_v28 = vmax.f32 %v11163_v7, 0.0  ;;  %16866 = vmatpush3.bf16.msra.mxu1 %v18119_v40  ;;  %v22106_v7 = vld [vmem:[%s22490_s5 + $0x78] sm:$0xff]   ;;  %v22116_v60 = vld [vmem:[%s22490_s5 + $0x70] sm:$0xff]   ;;  %v18161_v40 = vld [vmem:[%s22489_s4] ss:$0 sm:$0xff] }
 0x42a   :  { %16867 = vmatprep.subr.bf16.mxu1 %v18120_v49  ;;  %16875 = vmatprep.subr.bf16.mxu0 %v22106_v7  ;;  %v8226_v54 = vadd.f32 %v18161_v40, %v21275_v62 }
 0x42b   :  { %11170 = vrot.lane.b32.xlu0 %v11168_v28, %s18190_s20  ;;  %16876 = vmatpush3.bf16.msra.mxu0 %v22111_v38  ;;  %v22124_v28 = vld [vmem:[%s22490_s5 + $0x30] sm:$0xff]  }
 0x42c   :  { %16877 = vmatprep.subr.bf16.mxu0 %v22116_v60  ;;  %v8231_v52 = vmax.f32 %v8226_v54, 0.0 }
 0x42d   :  { %16868 = vmatpush3.bf16.msra.mxu1 %v18121_v51 }
 0x42e   :  { %16897 = vmatprep.subr.bf16.mxu1 %v22106_v7  ;;  %v8233_v59 = vrot.slane %v8231_v52, 4 }
 0x42f   :  { %v16649_v0 = vpop.f32.mrf.mxu1  ;;  %16878 = vmatpush3.bf16.msra.mxu0 %v22124_v28 }
 0x430   :  { %13468 = vmatmul.mubr.bf16.vlgmr.msra.gmra.mxu1 %v13329_v55 }
 0x431   :  { %v16650_v1 = vpop.f32.mrf.mxu1  ;;  %16898 = vmatpush3.bf16.msra.mxu1 %v22111_v38 }
 0x432   :  { %v16651_v19 = vadd.f32 %v16650_v1, %v16649_v0  ;;  %v22131_v1 = vld [vmem:[%s22490_s5 + $0x68] sm:$0xff]   ;;  %16899 = vmatprep.subr.bf16.mxu1 %v22116_v60 }
 0x433   :  { %v16652_v37 = vpop.f32.mrf.mxu1  ;;  %16879 = vmatprep.subr.bf16.mxu0 %v22131_v1 }
 0x434   :  { %v11372_v4 = vadd.f32 %v16651_v19, %v21978_v2 }
 0x435   :  { %v16653_v6 = vpop.f32.mrf.mxu1  ;;  %16900 = vmatpush3.bf16.msra.mxu1 %v22124_v28 }
 0x436   :  { %v11377_v50 = vmax.f32 %v11372_v4, 0.0  ;;  %v22139_v6 = vld [vmem:[%s22490_s5 + $0x28] sm:$0xff]   ;;  %16901 = vmatprep.subr.bf16.mxu1 %v22131_v1 }
 0x437   :  { %16880 = vmatpush3.bf16.msra.mxu0 %v22139_v6 }
 0x438   :  { %v11379_v39 = vrot.slane %v11377_v50, 6 }
 0x439   :  { %16902 = vmatpush3.bf16.msra.mxu1 %v22139_v6 }
 0x43a   :  { %11380 = vrot.lane.b32.xlu0 %v11379_v39, %s18190_s20  ;;  %v22146_v39 = vld [vmem:[%s22490_s5 + $0x60] sm:$0xff]  }
 0x43b   :  { %16881 = vmatprep.subr.bf16.mxu0 %v22146_v39  ;;  %16903 = vmatprep.subr.bf16.mxu1 %v22146_v39 }
 0x443   :  { %v16671_v43 = vpop.f32.mrf.mxu0 }
 0x445   :  { %v16672_v26 = vpop.f32.mrf.mxu0 }
 0x446   :  { %v22038_v12 = vadd.f32 %v16672_v26, %v16671_v43 }
 0x447   :  { %v16674_v13 = vpop.f32.mrf.mxu0 }
 0x448   :  { %v22153_v13 = vld [vmem:[%s22490_s5 + $0x20] sm:$0xff]  }
 0x449   :  { %v16675_v47 = vpop.f32.mrf.mxu0  ;;  %16882 = vmatpush3.bf16.msra.mxu0 %v22153_v13  ;;  %16904 = vmatpush3.bf16.msra.mxu1 %v22153_v13 }
 0x44a   :  { %v22168_v47 = vld [vmem:[%s22490_s5 + $0x18] sm:$0xff]   ;;  %16883 = vmatprep.subr.bf16.mxu0 %v22160_v17  ;;  %16905 = vmatprep.subr.bf16.mxu1 %v22160_v17 }
 0x44d   :  { %16884 = vmatpush3.bf16.msra.mxu0 %v22168_v47  ;;  %16906 = vmatpush3.bf16.msra.mxu1 %v22168_v47 }
 0x44e   :  { %16885 = vmatprep.subr.bf16.mxu0 %v22175_v36  ;;  %16907 = vmatprep.subr.bf16.mxu1 %v22175_v36 }
 0x44f   :  { %v16693_v42 = vpop.f32.mrf.mxu1 }
 0x451   :  { %v16694_v34 = vpop.f32.mrf.mxu1  ;;  %16886 = vmatpush3.bf16.msra.mxu0 %v22188_v29  ;;  %16908 = vmatpush3.bf16.msra.mxu1 %v22188_v29 }
 0x452   :  { %v22058_v58 = vadd.f32 %v16694_v34, %v16693_v42  ;;  %16887 = vmatprep.subr.bf16.mxu0 %v22194_v15  ;;  %16909 = vmatprep.subr.bf16.mxu1 %v22194_v15 }
 0x453   :  { %v16696_v23 = vpop.f32.mrf.mxu1 }
 0x455   :  { %v16697_v25 = vpop.f32.mrf.mxu1 }
 0x45d   :  { %v10332_v31 = vpop.permute.xlu0 %10331 }
 0x45e   :  { %10334 = vst.msk [vmem:[#allocation2 + $0x8] sm:$0x3] %vm3616_vm10, %v10332_v31  ;;  %v22201_v31 = vld [vmem:[%s22490_s5 + $0x8] sm:$0xff]   ;;  %vm22509_vm10 = vcmask 652804  }
 0x45f   :  { %16888 = vmatpush3.bf16.msra.mxu0 %v22201_v31  ;;  %16910 = vmatpush3.bf16.msra.mxu1 %v22201_v31 }
 0x460   :  { %16889 = vmatprep.subr.bf16.mxu0 %v22208_v33  ;;  %16911 = vmatprep.subr.bf16.mxu1 %v22208_v33 }
 0x461   :  { %v10542_v5 = vpop.permute.xlu0 %10541 }
 0x462   :  { %10544 = vst.msk [vmem:[#allocation2 + $0x8] sm:$0xc] %vm3827_vm11, %v10542_v5  ;;  %vm22510_vm11 = vcmask 784004  }
 0x463   :  { %v16715_v48 = vpop.f32.mrf.mxu0  ;;  %16890 = vmatpush3.bf16.msra.mxu0 %v22215_v14  ;;  %16912 = vmatpush3.bf16.msra.mxu1 %v22215_v14 }
 0x464   :  { %16925 = vmatprep.subr.bf16.mxu0 %v22106_v7 }
 0x465   :  { %v16716_v53 = vpop.f32.mrf.mxu0 }
 0x466   :  { %v16717_v63 = vadd.f32 %v16716_v53, %v16715_v48  ;;  %v18162_v53 = vld [vmem:[%s22489_s4] ss:$0 sm:$0xff] }
 0x467   :  { %v16718_v3 = vpop.f32.mrf.mxu0  ;;  %v9065_v62 = vadd.f32 %v18162_v53, %v21558_v8 }
 0x468   :  { %v12002_v56 = vadd.f32 %v16717_v63, %v21978_v2 }
 0x469   :  { %v16719_v57 = vpop.f32.mrf.mxu0  ;;  %v9070_v3 = vmax.f32 %v9065_v62, 0.0  ;;  %v10114_v62 = vadd.f32 %v18162_v53, %v21867_v16 }
 0x46a   :  { %v12007_v20 = vmax.f32 %v12002_v56, 0.0  ;;  %v9904_v56 = vadd.f32 %v18162_v53, %v21822_v41 }
 0x46c   :  { %12009 = vrot.lane.b32.xlu0 %v12007_v20, %s18191_s28 }
 0x46f   :  { %v16737_v18 = vpop.f32.mrf.mxu1 }
 0x471   :  { %v16738_v0 = vpop.f32.mrf.mxu1 }
 0x472   :  { %v16739_v19 = vadd.f32 %v16738_v0, %v16737_v18  ;;  %v9072_v18 = vrot.slane %v9070_v3, 4  ;;  %v9909_v0 = vmax.f32 %v9904_v56, 0.0 }
 0x473   :  { %v16740_v37 = vpop.f32.mrf.mxu1 }
 0x474   :  { %v12211_v4 = vadd.f32 %v16739_v19, %v21978_v2  ;;  %v9911_v8 = vrot.slane %v9909_v0, 4 }
 0x475   :  { %v16741_v50 = vpop.f32.mrf.mxu1 }
 0x476   :  { %v12216_v43 = vmax.f32 %v12211_v4, 0.0  ;;  %v10743_v50 = vadd.f32 %v22021_v46, %v21978_v2 }
 0x478   :  { %v12218_v26 = vrot.slane %v12216_v43, 6  ;;  %v10748_v41 = vmax.f32 %v10743_v50, 0.0 }
 0x47a   :  { %12219 = vrot.lane.b32.xlu0 %v12218_v26, %s18191_s28  ;;  %v11582_v26 = vadd.f32 %v22038_v12, %v21978_v2  ;;  %v8436_v12 = vadd.f32 %v18161_v40, %v21325_v30  ;;  %v10119_v30 = vmax.f32 %v10114_v62, 0.0  ;;  %v10953_v40 = vadd.f32 %v22026_v32, %v21978_v2 }
 0x483   :  { %v16759_v21 = vpop.f32.mrf.mxu0 }
 0x485   :  { %v16760_v22 = vpop.f32.mrf.mxu0 }
 0x487   :  { %v16762_v42 = vpop.f32.mrf.mxu0 }
 0x488   :  { %v16761_v42 = vadd.f32 %v16760_v22, %v16759_v21 }
 0x489   :  { %v16763_v11 = vpop.f32.mrf.mxu0 }
 0x48a   :  { %v10750_v11 = vrot.slane %v10748_v41, 4 }
 0x48f   :  { %v16781_v34 = vpop.f32.mrf.mxu1 }
 0x491   :  { %v16782_v10 = vpop.f32.mrf.mxu1 }
 0x492   :  { %v22182_v23 = vadd.f32 %v16782_v10, %v16781_v34  ;;  %v11587_v34 = vmax.f32 %v11582_v26, 0.0  ;;  %v12421_v10 = vadd.f32 %v16761_v42, %v21978_v2 }
 0x493   :  { %v16784_v24 = vpop.f32.mrf.mxu1 }
 0x494   :  { %v11589_v24 = vrot.slane %v11587_v34, 4  ;;  %v12631_v16 = vadd.f32 %v22182_v23, %v21978_v2  ;;  %v13482_v23 = vld [vmem:[#allocation2] sm:$0x3] }
 0x495   :  { %v16785_v25 = vpop.f32.mrf.mxu1 }
 0x496   :  { %v12426_v25 = vmax.f32 %v12421_v10, 0.0 }
 0x49d   :  { %v11171_v27 = vpop.permute.xlu0 %11170 }
 0x49e   :  { %11173 = vst.msk [vmem:[#allocation2 + $0x8] sm:$0x3] %vm4459_vm12, %v11171_v27  ;;  %vm22511_vm12 = vcmask 915204  }
 0x4a3   :  { %v16803_v44 = vpop.f32.mrf.mxu0 }
 0x4a5   :  { %v16804_v35 = vpop.f32.mrf.mxu0 }
 0x4a6   :  { %v16805_v45 = vadd.f32 %v16804_v35, %v16803_v44  ;;  %v12428_v44 = vrot.slane %v12426_v25, 4 }
 0x4a7   :  { %v16806_v61 = vpop.f32.mrf.mxu0 }
 0x4a8   :  { %v12841_v48 = vadd.f32 %v16805_v45, %v21978_v2  ;;  %v8441_v61 = vmax.f32 %v8436_v12, 0.0 }
 0x4a9   :  { %v16807_v51 = vpop.f32.mrf.mxu0 }
 0x4aa   :  { %v12846_v55 = vmax.f32 %v12841_v48, 0.0  ;;  %v9275_v48 = vadd.f32 %v18162_v53, %v21608_v9  ;;  %v8443_v51 = vrot.slane %v8441_v61, 2  ;;  %v11792_v9 = vadd.f32 %v22058_v58, %v21978_v2  ;;  %v13835_v61 = vld [vmem:[#allocation2] sm:$0x30] }
 0x4ac   :  { %v11381_v49 = vpop.permute.xlu0 %11380  ;;  %12848 = vrot.lane.b32.xlu0 %v12846_v55, %s18192_s27  ;;  %v9280_v52 = vmax.f32 %v9275_v48, 0.0  ;;  %v11797_v56 = vmax.f32 %v11792_v9, 0.0  ;;  %v18138_v9 = vld [vmem:[%s22492_s7 + $0x18] sm:$0xff]  }
 0x4ad   :  { %11383 = vst.msk [vmem:[#allocation2 + $0x8] sm:$0xc] %vm4670_vm13, %v11381_v49  ;;  %vm22512_vm13 = vcmask 1046404  }
 0x4ae   :  { %v9282_v55 = vrot.slane %v9280_v52, 2  ;;  %v11799_v32 = vrot.slane %v11797_v56, 2  ;;  %v18139_v56 = vld [vmem:[%s22492_s7 + $0x10] sm:$0xff]  }
 0x4af   :  { %v16825_v63 = vpop.f32.mrf.mxu1 }
 0x4b0   :  { %8234 = vrot.lane.b32.xlu0 %v8233_v59, %s18186_s15  ;;  %v10958_v59 = vmax.f32 %v10953_v40, 0.0 }
 0x4b1   :  { %v16826_v57 = vpop.f32.mrf.mxu1 }
 0x4b2   :  { %v16827_v5 = vadd.f32 %v16826_v57, %v16825_v63  ;;  %v10121_v63 = vrot.slane %v10119_v30, 2  ;;  %v10960_v3 = vrot.slane %v10958_v59, 2  ;;  %v12636_v57 = vmax.f32 %v12631_v16, 0.0 }
 0x4b3   :  { %v16828_v20 = vpop.f32.mrf.mxu1 }
 0x4b4   :  { %v13050_v19 = vadd.f32 %v16827_v5, %v21978_v2  ;;  %9073 = vrot.lane.b32.xlu0 %v9072_v18, %s18187_s24  ;;  %v12638_v5 = vrot.slane %v12636_v57, 2 }
 0x4b5   :  { %v16829_v37 = vpop.f32.mrf.mxu1 }
 0x4b6   :  { %v13055_v4 = vmax.f32 %v13050_v19, 0.0 }
 0x4b8   :  { %v13057_v43 = vrot.slane %v13055_v4, 6  ;;  %9912 = vrot.lane.b32.xlu0 %v9911_v8, %s18188_s26  ;;  %v13484_v8 = vpack.c.bf16 %v13482_v23, %v13482_v23  ;;  %v22315_v23 = vld [vmem:[%s22491_s6] ss:$0 sm:$0xff] }
 0x4bc   :  { %13058 = vrot.lane.b32.xlu0 %v13057_v43, %s18192_s27 }
 0x4c0   :  { %10751 = vrot.lane.b32.xlu0 %v10750_v11, %s18189_s21 }
 0x4c3   :  { %v16847_v27 = vpop.f32.mrf.mxu0 }
 0x4c4   :  { %11590 = vrot.lane.b32.xlu0 %v11589_v24, %s18190_s20 }
 0x4c5   :  { %v16848_v46 = vpop.f32.mrf.mxu0 }
 0x4c6   :  { %v16849_v35 = vadd.f32 %v16848_v46, %v16847_v27  ;;  %v13667_v27 = vld [vmem:[#allocation2] sm:$0xc] }
 0x4c7   :  { %v16850_v54 = vpop.f32.mrf.mxu0 }
 0x4c8   :  { %v13260_v21 = vadd.f32 %v16849_v35, %v21978_v2  ;;  %12429 = vrot.lane.b32.xlu0 %v12428_v44, %s18191_s28  ;;  %v13669_v44 = vpack.c.bf16 %v13667_v27, %v13667_v27  ;;  %v18143_v27 = vld [vmem:[%s22492_s7 + $0x20] sm:$0xff]  }
 0x4c9   :  { %v16851_v22 = vpop.f32.mrf.mxu0 }
 0x4ca   :  { %v13265_v45 = vmax.f32 %v13260_v21, 0.0  ;;  %v13673_v21 = vrot.slane %v13669_v44, 1 }
 0x4cc   :  { %v13267_v49 = vrot.slane %v13265_v45, 4 }
 0x4ce   :  { %13268 = vrot.lane.b32.xlu0 %v13267_v49, %s18192_s27 }
 0x4d2   :  { %8444 = vrot.lane.b32.xlu0 %v8443_v51, %s18186_s15  ;;  %v13837_v51 = vpack.c.bf16 %v13835_v61, %v13835_v61 }
 0x4d4   :  { %v13841_v30 = vrot.slane %v13837_v51, 2 }
 0x4d6   :  { %9283 = vrot.lane.b32.xlu0 %v9282_v55, %s18187_s24 }
 0x4da   :  { %10122 = vrot.lane.b32.xlu0 %v10121_v63, %s18188_s26 }
 0x4de   :  { %v12010_v53 = vpop.permute.xlu0 %12009  ;;  %10961 = vrot.lane.b32.xlu0 %v10960_v3, %s18189_s21  ;;  %v18193_v3 = vmov 0.0  }
 0x4df   :  { %12012 = vst.msk [vmem:[#allocation2 + $0x8] sm:$0x3] %vm5302_vm14, %v12010_v53  ;;  %vm22513_vm14 = vcmask 261254   ;;  %17001 = vmatprep.subr.bf16.mxu1 %v18193_v3 }
 0x4e2   :  { %11800 = vrot.lane.b32.xlu0 %v11799_v32, %s18190_s20 }
 0x4e6   :  { %12639 = vrot.lane.b32.xlu0 %v12638_v5, %s18191_s28 }
 0x4ec   :  { %v12220_v58 = vpop.permute.xlu0 %12219 }
 0x4ed   :  { %12222 = vst.msk [vmem:[#allocation2 + $0x8] sm:$0xc] %vm5513_vm0, %v12220_v58  ;;  %vm18194_vm0 = vmmov 0  }
 0x4f0   :  { %v16869_v4 = vpop.f32.mrf.mxu1 }
 0x4f2   :  { %v16870_v50 = vpop.f32.mrf.mxu1 }
 0x4f3   :  { %v16871_v41 = vadd.f32 %v16870_v50, %v16869_v4  ;;  %v18140_v50 = vld [vmem:[%s22492_s7 + $0x8] sm:$0xff]  }
 0x4f4   :  { %v16872_v26 = vpop.f32.mrf.mxu1 }
 0x4f5   :  { %v13470_v42 = vadd.f32 %v16871_v41, %v21978_v2  ;;  %v18141_v26 = vld [vmem:[%s22492_s7] sm:$0xff]  }
 0x4f6   :  { %v16873_v11 = vpop.f32.mrf.mxu1 }
 0x4f7   :  { %v13475_v10 = vmax.f32 %v13470_v42, 0.0  ;;  %v18142_v11 = vld [vmem:[%s22492_s7 + $0x28] sm:$0xff]  }
 0x4f9   :  { %v13477_v24 = vrot.slane %v13475_v10, 2 }
 0x4fb   :  { %13478 = vrot.lane.b32.xlu0 %v13477_v24, %s18192_s27 }
 0x51e   :  { %v12849_v20 = vpop.permute.xlu0 %12848 }
 0x51f   :  { %12851 = vst.msk [vmem:[#allocation2 + $0x8] sm:$0x3] %vm6145_vm15, %v12849_v20  ;;  %vm22514_vm15 = vcmask 392454  }
 0x522   :  { %v8235_v18 = vpop.permute.xlu0 %8234 }
 0x523   :  { %8237 = vst.msk [vmem:[#allocation2 + $0x8] sm:$0x30] %vm1509_vm2, %v8235_v18  ;;  %vm14181_vm2 = vcmask 523264  }
 0x526   :  { %v9074_v0 = vpop.permute.xlu0 %9073  ;;  %v13483_v19 = vld [vmem:[#allocation2 + $0x8] sm:$0x3] }
 0x527   :  { %9076 = vst.msk [vmem:[#allocation2 + $0x8] sm:$0x30] %vm2352_vm3, %v9074_v0  ;;  %v13485_v37 = vpack.c.bf16 %v13483_v19, %v13483_v19  ;;  %vm14255_vm3 = vcmask 58368  }
 0x529   :  { %13653 = vmatprep.mubr.bf16.mxu0 %v13485_v37 }
 0x52a   :  { %v9913_v43 = vpop.permute.xlu0 %9912  ;;  %13654 = vmatmul.mubr.bf16.vlgmr.msra.gmra.mxu0 %v13484_v8 }
 0x52b   :  { %9915 = vst.msk [vmem:[#allocation2 + $0x8] sm:$0x30] %vm22507_vm8, %v9913_v43  ;;  %16926 = vmatpush3.bf16.msra.mxu0 %v22111_v38 }
 0x52c   :  { %16927 = vmatprep.subr.bf16.mxu0 %v22116_v60 }
 0x52e   :  { %v13059_v34 = vpop.permute.xlu0 %13058 }
 0x52f   :  { %13061 = vst.msk [vmem:[#allocation2 + $0x8] sm:$0xc] %vm22508_vm9, %v13059_v34  ;;  %16928 = vmatpush3.bf16.msra.mxu0 %v22124_v28 }
 0x530   :  { %16929 = vmatprep.subr.bf16.mxu0 %v22131_v1 }
 0x532   :  { %v10752_v25 = vpop.permute.xlu0 %10751 }
 0x533   :  { %10754 = vst.msk [vmem:[#allocation2 + $0x8] sm:$0x30] %vm22509_vm10, %v10752_v25  ;;  %16930 = vmatpush3.bf16.msra.mxu0 %v22139_v6 }
 0x534   :  { %16931 = vmatprep.subr.bf16.mxu0 %v22146_v39 }
 0x536   :  { %v11591_v2 = vpop.permute.xlu0 %11590  ;;  %v13668_v46 = vld [vmem:[#allocation2 + $0x8] sm:$0xc] }
 0x537   :  { %11593 = vst.msk [vmem:[#allocation2 + $0x8] sm:$0x30] %vm22510_vm11, %v11591_v2  ;;  %v13670_v35 = vpack.c.bf16 %v13668_v46, %v13668_v46  ;;  %16932 = vmatpush3.bf16.msra.mxu0 %v22153_v13 }
 0x538   :  { %16933 = vmatprep.subr.bf16.mxu0 %v22160_v17 }
 0x539   :  { %v13674_v54 = vrot.slane %v13670_v35, 1 }
 0x53a   :  { %v12430_v12 = vpop.permute.xlu0 %12429 }
 0x53b   :  { %12432 = vst.msk [vmem:[#allocation2 + $0x8] sm:$0x30] %vm22511_vm12, %v12430_v12  ;;  %13709 = vmatprep.mubr.bf16.mxu1 %v13674_v54  ;;  %16934 = vmatpush3.bf16.msra.mxu0 %v22168_v47 }
 0x53c   :  { %13710 = vmatmul.mubr.bf16.vlgmr.msra.gmra.mxu1 %v13673_v21  ;;  %16935 = vmatprep.subr.bf16.mxu0 %v22175_v36 }
 0x53d   :  { %17005 = vmatprep.mubr.msk.bf16.mxu1 %vm18194_vm0, %v18193_v3  ;;  %17002 = vmatpush3.bf16.msra.mxu1 %v18138_v9  ;;  %v14086_v9 = vld [vmem:[%s22494_s9 + $0x70] sm:$0xff] }
 0x53e   :  { %17003 = vmatprep.subr.bf16.mxu1 %v18193_v3 }
 0x53f   :  { %16936 = vmatpush3.bf16.msra.mxu0 %v22188_v29 }
 0x540   :  { %v13269_v22 = vpop.permute.xlu0 %13268  ;;  %16937 = vmatprep.subr.bf16.mxu0 %v22194_v15 }
 0x541   :  { %13271 = vst.msk [vmem:[#allocation2 + $0x8] sm:$0x30] %vm22512_vm13, %v13269_v22  ;;  %17004 = vmatpush3.bf16.msra.mxu1 %v18139_v56  ;;  %v14085_v56 = vld [vmem:[%s22494_s9 + $0x68] sm:$0xff] }
 0x542   :  { %17009 = vmatprep.subr.bf16.mxu1 %v18193_v3 }
 0x543   :  { %16938 = vmatpush3.bf16.msra.mxu0 %v22201_v31 }
 0x544   :  { %v8445_v45 = vpop.permute.xlu0 %8444  ;;  %16939 = vmatprep.subr.bf16.mxu0 %v22208_v33 }
 0x545   :  { %8447 = vst.msk [vmem:[#allocation2 + $0x8] sm:$0xc0] %vm22513_vm14, %v8445_v45 }
 0x547   :  { %16940 = vmatpush3.bf16.msra.mxu0 %v22215_v14 }
 0x548   :  { %v9284_v48 = vpop.permute.xlu0 %9283  ;;  %v13836_v49 = vld [vmem:[#allocation2 + $0x8] sm:$0x30]  ;;  %17025 = vmatprep.subr.bf16.mxu0 %v18193_v3 }
 0x549   :  { %9286 = vst.msk [vmem:[#allocation2 + $0x8] sm:$0xc0] %vm22514_vm15, %v9284_v48  ;;  %v13838_v52 = vpack.c.bf16 %v13836_v49, %v13836_v49 }
 0x54b   :  { %v13842_v62 = vrot.slane %v13838_v52, 2 }
 0x54c   :  { %v10123_v55 = vpop.permute.xlu0 %10122 }
 0x54d   :  { %10125 = vst.msk [vmem:[#allocation2 + $0x8] sm:$0xc0] %vm3406_vm7, %v10123_v55  ;;  %13877 = vmatprep.mubr.bf16.mxu0 %v13842_v62 }
 0x54e   :  { %13878 = vmatmul.mubr.bf16.vlgmr.msra.gmra.mxu0 %v13841_v30 }
 0x54f   :  { %17029 = vmatprep.mubr.msk.bf16.mxu0 %vm18194_vm0, %v18193_v3 }
 0x550   :  { %v10962_v40 = vpop.permute.xlu0 %10961 }
 0x551   :  { %10964 = vst.msk [vmem:[#allocation2 + $0x8] sm:$0xc0] %vm4249_vm4, %v10962_v40 }
 0x554   :  { %v11801_v63 = vpop.permute.xlu0 %11800 }
 0x555   :  { %11803 = vst.msk [vmem:[#allocation2 + $0x8] sm:$0xc0] %vm5092_vm1, %v11801_v63  ;;  %vm13736_vm1 = vcmask 261120  }
 0x558   :  { %v12640_v59 = vpop.permute.xlu0 %12639 }
 0x559   :  { %12642 = vst.msk [vmem:[#allocation2 + $0x8] sm:$0xc0] %vm5935_vm6, %v12640_v59  ;;  %v14087_v59 = vld [vmem:[%s22494_s9 + $0x78] sm:$0xff] }
 0x56d   :  { %v13479_v16 = vpop.permute.xlu0 %13478 }
 0x56e   :  { %13481 = vst.msk [vmem:[#allocation2 + $0x8] sm:$0xc0] %vm6778_vm5, %v13479_v16  ;;  %v14084_v16 = vld [vmem:[%s22494_s9 + $0x60] sm:$0xff] }
 0x575   :  { %v13949_v24 = vld [vmem:[#allocation2 + $0x8] sm:$0xc0] }
 0x576   :  { %v13951_v44 = vpack.c.bf16 %v13949_v24, %v13949_v24 }
 0x578   :  { %v13955_v21 = vrot.slane %v13951_v44, 3 }
 0x5ea   :  { %v16891_v53 = vpop.f32.mrf.mxu0 }
 0x5ec   :  { %v16892_v32 = vpop.f32.mrf.mxu0 }
 0x5ed   :  { %v16893_v19 = vadd.f32 %v16892_v32, %v16891_v53  ;;  %v14083_v53 = vld [vmem:[%s22494_s9 + $0x58] sm:$0xff]  ;;  %v14082_v32 = vld [vmem:[%s22494_s9 + $0x50] sm:$0xff] }
 0x5ee   :  { %v16894_v57 = vpop.f32.mrf.mxu0 }
 0x5ef   :  { %v13656_v43 = vadd.f32 %v16893_v19, %v22315_v23  ;;  %v14081_v57 = vld [vmem:[%s22494_s9 + $0x48] sm:$0xff]  ;;  %v14074_v19 = vld [vmem:[%s22494_s9 + $0x10] sm:$0xff] }
 0x5f0   :  { %v16895_v5 = vpop.f32.mrf.mxu0 }
 0x5f1   :  { %v13661_v42 = vmax.f32 %v13656_v43, 0.0  ;;  %v14080_v5 = vld [vmem:[%s22494_s9 + $0x40] sm:$0xff] }
 0x5f2   :  { %v14072_v43 = vld [vmem:[%s22494_s9] sm:$0xff] }
 0x5f3   :  { %v13662_v34 = vpack.c.bf16 %v13661_v42, %v13661_v42 }
 0x5fc   :  { %v16913_v58 = vpop.f32.mrf.mxu1 }
 0x5fe   :  { %v16914_v20 = vpop.f32.mrf.mxu1 }
 0x5ff   :  { %v16915_v18 = vadd.f32 %v16914_v20, %v16913_v58  ;;  %v14079_v58 = vld [vmem:[%s22494_s9 + $0x38] sm:$0xff]  ;;  %v14078_v20 = vld [vmem:[%s22494_s9 + $0x30] sm:$0xff] }
 0x600   :  { %v16916_v0 = vpop.f32.mrf.mxu1 }
 0x601   :  { %v13712_v37 = vadd.f32 %v16915_v18, %v22315_v23  ;;  %v14077_v18 = vld [vmem:[%s22494_s9 + $0x28] sm:$0xff]  ;;  %v14075_v0 = vld [vmem:[%s22494_s9 + $0x18] sm:$0xff] }
 0x602   :  { %v16917_v4 = vpop.f32.mrf.mxu1 }
 0x603   :  { %v13717_v8 = vmax.f32 %v13712_v37, 0.0  ;;  %v14173_v37 = vld [vmem:[%s22496_s11 + $0x38] sm:$0xff]  ;;  %v14172_v4 = vld [vmem:[%s22496_s11 + $0x30] sm:$0xff] }
 0x605   :  { %v13718_v41 = vpack.c.bf16 %v13717_v8, %v13717_v8  ;;  %v14073_v8 = vld [vmem:[%s22494_s9 + $0x8] sm:$0xff] }
 0x607   :  { %17006 = vmatmul.mubr.msk.bf16.vlgmr.msra.gmra.mxu1 %vm13736_vm1, %v13718_v41  ;;  %v14170_v41 = vld [vmem:[%s22496_s11 + $0x20] sm:$0xff] }
 0x608   :  { %17010 = vmatpush3.bf16.msra.mxu1 %v18140_v50  ;;  %17013 = vmatprep.mubr.msk.bf16.mxu1 %vm18194_vm0, %v18193_v3  ;;  %v14171_v50 = vld [vmem:[%s22496_s11 + $0x28] sm:$0xff] }
 0x609   :  { %17011 = vmatprep.subr.bf16.mxu1 %v18193_v3 }
 0x60c   :  { %17012 = vmatpush3.bf16.msra.mxu1 %v18141_v26  ;;  %v14169_v26 = vld [vmem:[%s22496_s11 + $0x18] sm:$0xff] }
 0x60d   :  { %17017 = vmatprep.subr.bf16.mxu1 %v18193_v3 }
 0x60e   :  { %v16941_v10 = vpop.f32.mrf.mxu0 }
 0x60f   :  { %17014 = vmatmul.mubr.msk.bf16.vlgmr.msra.gmra.mxu1 %vm13736_vm1, %v13662_v34 }
 0x610   :  { %v16942_v25 = vpop.f32.mrf.mxu0  ;;  %17018 = vmatpush3.bf16.msra.mxu1 %v18142_v11  ;;  %17021 = vmatprep.mubr.msk.bf16.mxu1 %vm18194_vm0, %v18193_v3  ;;  %v15463_v11 = vld [vmem:[%s22493_s8] ss:$0 sm:$0xff] }
 0x611   :  { %v16943_v2 = vadd.f32 %v16942_v25, %v16941_v10  ;;  %17019 = vmatprep.subr.bf16.mxu1 %v18193_v3  ;;  %v14070_v25 = vld [vmem:[%s22487_s2] sm:$0x3] }
 0x612   :  { %v16944_v46 = vpop.f32.mrf.mxu0 }
 0x613   :  { %v13880_v35 = vadd.f32 %v16943_v2, %v22315_v23 }
 0x614   :  { %v16945_v54 = vpop.f32.mrf.mxu0  ;;  %17020 = vmatpush3.bf16.msra.mxu1 %v18143_v27 }
 0x615   :  { %v13885_v12 = vmax.f32 %v13880_v35, 0.0  ;;  %16950 = vmatprep.subr.bf16.mxu1 %v22106_v7  ;;  %v13948_v7 = vld [vmem:[#allocation2] sm:$0xc0]  ;;  %v14168_v35 = vld [vmem:[%s22496_s11 + $0x10] sm:$0xff]  ;;  %v14167_v54 = vld [vmem:[%s22496_s11 + $0x8] sm:$0xff] }
 0x617   :  { %v13886_v22 = vpack.c.bf16 %v13885_v12, %v13885_v12  ;;  %v14166_v12 = vld [vmem:[%s22496_s11] sm:$0xff]  ;;  %s14263_s11 = sshll.u32 %s18195_s18, 4  ;;  %s14264_s11 = int_to_ptr.vmem [resolvable:$true] %s14263_s11 }
 0x618   :  { %s18163_s4 = scalar_lea.vmem %s14264_s11, 32  ;;  %p18168_p1 = scmp.lt.s32.totalorder %s14264_s11, %s14264_s11 }
 0x619   :  { %17022 = vmatmul.mubr.msk.bf16.vlgmr.msra.gmra.mxu1 %vm13736_vm1, %v13886_v22  ;;  %p18164_p0 = scmp.ne.s32.totalorder %s14264_s11, %s18163_s4  ;;  %p18169_p2 = scmp.lt.s32.totalorder %s18163_s4, %s18163_s4 }
 0x61a   :  { %16951 = vmatpush3.bf16.msra.mxu1 %v22111_v38  ;;  %13990 = vmatprep.mubr.bf16.mxu1 %v13955_v21  ;;  %v13950_v38 = vpack.c.bf16 %v13948_v7, %v13948_v7  ;;  %v15464_v21 = vld [vmem:[%s22495_s10] ss:$0 sm:$0xff] }
 0x61b   :  { %16952 = vmatprep.subr.bf16.mxu1 %v22116_v60  ;;  %p18170_p3 = por %p18169_p2, %p18168_p1 }
 0x61c   :  { %v13954_v60 = vrot.slane %v13950_v38, 3 }
 0x61d   :  { %p18171_p4 = pnand %p18170_p3, %p18164_p0 }
 0x61e   :  { %16953 = vmatpush3.bf16.msra.mxu1 %v22124_v28  ;;  %v18144_v28 = vld [vmem:[%s22492_s7 + $0x38] sm:$0xff]  }
 0x61f   :  { %16954 = vmatprep.subr.bf16.mxu1 %v22131_v1  ;;  %17026 = vmatpush3.bf16.msra.mxu0 %v18144_v28  ;;  %v18145_v1 = vld [vmem:[%s22492_s7 + $0x30] sm:$0xff]   ;;  %v15465_v28 = vld [vmem:[%s22497_s12] ss:$0 sm:$0xff] }
 0x620   :  { %17027 = vmatprep.subr.bf16.mxu0 %v18193_v3 }
 0x622   :  { %16955 = vmatpush3.bf16.msra.mxu1 %v22139_v6 }
 0x623   :  { %16956 = vmatprep.subr.bf16.mxu1 %v22146_v39  ;;  %17028 = vmatpush3.bf16.msra.mxu0 %v18145_v1 }
 0x624   :  { %17033 = vmatprep.subr.mxu0 %v18193_v3 }
 0x626   :  { %16957 = vmatpush3.bf16.msra.mxu1 %v22153_v13 }
 0x627   :  { %16958 = vmatprep.subr.bf16.mxu1 %v22160_v17 }
 0x62a   :  { %16959 = vmatpush3.bf16.msra.mxu1 %v22168_v47 }
 0x62b   :  { %16960 = vmatprep.subr.bf16.mxu1 %v22175_v36 }
 0x62e   :  { %16961 = vmatpush3.bf16.msra.mxu1 %v22188_v29 }
 0x62f   :  { %16962 = vmatprep.subr.bf16.mxu1 %v22194_v15 }
 0x632   :  { %16963 = vmatpush3.bf16.msra.mxu1 %v22201_v31 }
 0x633   :  { %16964 = vmatprep.subr.bf16.mxu1 %v22208_v33 }
 0x636   :  { %16965 = vmatpush3.bf16.msra.mxu1 %v22215_v14 }
 0x637   :  { %17068 = vmatprep.subr.mxu1 %v18193_v3 }
 0x639   :  { %13991 = vmatmul.mubr.bf16.vlgmr.msra.gmra.mxu1 %v13954_v60 }
 0x63a   :  { %17084 = vmatprep.mubr.msk.f32.mxu1 %vm18194_vm0, %v18193_v3  ;;  %17069 = vmatpush3.msra.mxu1 %v14173_v37 }
 0x63b   :  { %17070 = vmatprep.subr.mxu1 %v18193_v3 }
 0x63c   :  { %17071 = vmatpush3.msra.mxu1 %v14172_v4 }
 0x63d   :  { %17072 = vmatprep.subr.mxu1 %v18193_v3 }
 0x63e   :  { %17073 = vmatpush3.msra.mxu1 %v14171_v50 }
 0x63f   :  { %17074 = vmatprep.subr.mxu1 %v18193_v3 }
 0x640   :  { %17075 = vmatpush3.msra.mxu1 %v14170_v41 }
 0x641   :  { %17076 = vmatprep.subr.mxu1 %v18193_v3 }
 0x642   :  { %17077 = vmatpush3.msra.mxu1 %v14169_v26 }
 0x643   :  { %17078 = vmatprep.subr.mxu1 %v18193_v3 }
 0x644   :  { %17079 = vmatpush3.msra.mxu1 %v14168_v35 }
 0x645   :  { %17080 = vmatprep.subr.mxu1 %v18193_v3 }
 0x646   :  { %17081 = vmatpush3.msra.mxu1 %v14167_v54 }
 0x647   :  { %17082 = vmatprep.subr.mxu1 %v18193_v3 }
 0x648   :  { %17083 = vmatpush3.msra.mxu1 %v14166_v12 }
 0x6c7   :  { %v13774_v6 = vpop.f32.mrf.mxu1 }
 0x6c9   :  { %v17007_v39 = vpop.f32.mrf.mxu1 }
 0x6cb   :  { %v13777_v13 = vpop.f32.mrf.mxu1 }
 0x6cd   :  { %v17008_v17 = vpop.f32.mrf.mxu1 }
 0x6cf   :  { %v13829_v47 = vpop.f32.mrf.mxu1 }
 0x6d0   :  { %v13830_v36 = vadd.f32 %v13829_v47, %v13774_v6 }
 0x6d1   :  { %v17015_v29 = vpop.f32.mrf.mxu1 }
 0x6d3   :  { %v13832_v15 = vpop.f32.mrf.mxu1 }
 0x6d5   :  { %v17016_v31 = vpop.f32.mrf.mxu1 }
 0x6d9   :  { %v13941_v33 = vpop.f32.mrf.mxu1 }
 0x6da   :  { %v22369_v14 = vadd.f32 %v13941_v33, %v13830_v36 }
 0x6db   :  { %v17023_v45 = vpop.f32.mrf.mxu1 }
 0x6dd   :  { %v13944_v61 = vpop.f32.mrf.mxu1 }
 0x6df   :  { %v17024_v48 = vpop.f32.mrf.mxu1 }
 0x6f9   :  { %v16966_v49 = vpop.f32.mrf.mxu1 }
 0x6fb   :  { %v16967_v51 = vpop.f32.mrf.mxu1 }
 0x6fc   :  { %v16968_v52 = vadd.f32 %v16967_v51, %v16966_v49 }
 0x6fd   :  { %v16969_v62 = vpop.f32.mrf.mxu1 }
 0x6fe   :  { %v13993_v55 = vadd.f32 %v16968_v52, %v22315_v23  ;;  %v14076_v23 = vld [vmem:[%s22494_s9 + $0x20] sm:$0xff] }
 0x6ff   :  { %v16970_v30 = vpop.f32.mrf.mxu1 }
 0x700   :  { %v13998_v40 = vmax.f32 %v13993_v55, 0.0 }
 0x702   :  { %v13999_v63 = vpack.c.bf16 %v13998_v40, %v13998_v40 }
 0x704   :  { %17030 = vmatmul.mubr.msk.bf16.vlgmr.msra.gmra.mxu0 %vm13736_vm1, %v13999_v63 }
 0x705   :  { %17034 = vmatpush3.msra.mxu0 %v14087_v59  ;;  %17065 = vmatprep.mubr.msk.f32.mxu0 %vm18194_vm0, %v18193_v3 }
 0x706   :  { %17035 = vmatprep.subr.mxu0 %v18193_v3 }
 0x707   :  { %17036 = vmatpush3.msra.mxu0 %v14086_v9 }
 0x708   :  { %17037 = vmatprep.subr.mxu0 %v18193_v3 }
 0x709   :  { %17038 = vmatpush3.msra.mxu0 %v14085_v56 }
 0x70a   :  { %17039 = vmatprep.subr.mxu0 %v18193_v3 }
 0x70b   :  { %17040 = vmatpush3.msra.mxu0 %v14084_v16 }
 0x70c   :  { %17041 = vmatprep.subr.mxu0 %v18193_v3 }
 0x70d   :  { %17042 = vmatpush3.msra.mxu0 %v14083_v53 }
 0x70e   :  { %17043 = vmatprep.subr.mxu0 %v18193_v3 }
 0x70f   :  { %17044 = vmatpush3.msra.mxu0 %v14082_v32 }
 0x710   :  { %17045 = vmatprep.subr.mxu0 %v18193_v3 }
 0x711   :  { %17046 = vmatpush3.msra.mxu0 %v14081_v57 }
 0x712   :  { %17047 = vmatprep.subr.mxu0 %v18193_v3 }
 0x713   :  { %17048 = vmatpush3.msra.mxu0 %v14080_v5 }
 0x714   :  { %17049 = vmatprep.subr.mxu0 %v18193_v3 }
 0x715   :  { %17050 = vmatpush3.msra.mxu0 %v14079_v58 }
 0x716   :  { %17051 = vmatprep.subr.mxu0 %v18193_v3 }
 0x717   :  { %17052 = vmatpush3.msra.mxu0 %v14078_v20 }
 0x718   :  { %17053 = vmatprep.subr.mxu0 %v18193_v3 }
 0x719   :  { %17054 = vmatpush3.msra.mxu0 %v14077_v18 }
 0x71a   :  { %17055 = vmatprep.subr.mxu0 %v18193_v3 }
 0x71b   :  { %17056 = vmatpush3.msra.mxu0 %v14076_v23 }
 0x71c   :  { %17057 = vmatprep.subr.mxu0 %v18193_v3 }
 0x71d   :  { %17058 = vmatpush3.msra.mxu0 %v14075_v0 }
 0x71e   :  { %17059 = vmatprep.subr.mxu0 %v18193_v3 }
 0x71f   :  { %17060 = vmatpush3.msra.mxu0 %v14074_v19 }
 0x720   :  { %17061 = vmatprep.subr.mxu0 %v18193_v3 }
 0x721   :  { %17062 = vmatpush3.msra.mxu0 %v14073_v8 }
 0x722   :  { %17063 = vmatprep.subr.mxu0 %v18193_v3 }
 0x723   :  { %17064 = vmatpush3.msra.mxu0 %v14072_v43 }
 0x7c4   :  { %v14054_v42 = vpop.f32.mrf.mxu0 }
 0x7c5   :  { %v14060_v34 = vadd.f32 %v14054_v42, %v22369_v14 }
 0x7c6   :  { %v17031_v10 = vpop.f32.mrf.mxu0 }
 0x7c7   :  { %v14068_v24 = vadd.f32 %v15463_v11, %v14060_v34 }
 0x7c8   :  { %v14057_v27 = vpop.f32.mrf.mxu0 }
 0x7c9   :  { %v14069_v2 = vmax.f32 %v14068_v24, 0.0 }
 0x7ca   :  { %v17032_v46 = vpop.f32.mrf.mxu0 }
 0x7cb   :  { %v14071_v44 = vmul.f32 %v14070_v25, %v14069_v2 }
 0x7cd   :  { %17066 = vmatmul.mubr.f32.vlgmr.msra.gmra.mxu0 %v14071_v44 }
 0x88d   :  { %v14161_v22 = vpop.f32.mrf.mxu0 }
 0x88e   :  { %v14162_v7 = vadd.f32 %v15464_v21, %v14161_v22 }
 0x88f   :  { %v17067_v38 = vpop.f32.mrf.mxu0 }
 0x890   :  { %v14165_v60 = vmax.f32 %v14162_v7, 0.0 }
 0x892   :  { %17085 = vmatmul.mubr.msk.f32.vlgmr.msra.gmra.mxu1 %vm14181_vm2, %v14165_v60 }
 0x952   :  { %v14251_v1 = vpop.f32.mrf.mxu1 }
 0x953   :  { %v14252_v3 = vadd.f32 %v15465_v28, %v14251_v1 }
 0x954   :  { %v17086_v6 = vpop.f32.mrf.mxu1 }
 0x955   :  { %14256 = vst.msk [vmem:[#allocation3] sm:$0x3] %vm14255_vm3, %v14252_v3 }
 0x956   :  { %18174 = shalt.err (!%p18171_p4)
}
 0x957   :  { %14266 = dma.vmem_to_hbm [thread:$0]  %s14264_s11, 32, %s22498_s13, [#allocation4]  }
 0x958   :  { %18183 = dma.done.wait [#allocation4], 32  }
 0x959   :  { %18184 = vsyncadd [#allocation4], 4294967264 }
 0x95a   :  { %14270 = vsyncpa [#allocation4], 1 }

</bundles_post_ra>
